<compile_context>
chip_gen: v7x
topology: tpu7x:2x2x1
jax: 0.10.0
libtpu: 0.0.40
codegen_flags: <defaults>
</compile_context>

<pallas_src>
import functools

import jax
import jax.numpy as jnp
from jax.experimental import pallas as pl
from jax.experimental.pallas import tpu as pltpu

Z_DIM = 20


def _round_up(x, m):
    return (x + m - 1) // m * m


# ---------------------------------------------------------------------------
# Pallas kernels
# ---------------------------------------------------------------------------
def _matmul_bias_kernel(relu, x_ref, w_ref, b_ref, o_ref):
    """One (TM, K) x (K, Np) tile: MXU matmul (f32 accumulate) + bias + optional ReLU."""
    acc = jnp.dot(x_ref[...], w_ref[...], preferred_element_type=jnp.float32)
    acc = acc + b_ref[...]
    if relu:
        acc = jnp.maximum(acc, 0.0)
    o_ref[...] = acc.astype(o_ref.dtype)


def matmul_bias_act(x, w, b, relu=False, out_dtype=jnp.float32, block_m=256):
    """x:(M,K) @ w:(K,N) + b:(N,), fused ReLU.

    Operands are cast to bf16 (f32 accumulation on the MXU).  N is padded to a
    multiple of 128 so stores are lane-dense; M is tiled on a `parallel` grid
    axis (both TensorCores on v7x for the larger layers).
    """
    M, K = x.shape
    N = w.shape[1]
    Np = _round_up(N, 128)
    TM = block_m if M > block_m else _round_up(M, 8)
    Mp = _round_up(M, TM)

    xb = x.astype(jnp.bfloat16)
    wb = w.astype(jnp.bfloat16)
    bb = b.astype(jnp.float32)
    if Mp != M:
        xb = jnp.pad(xb, ((0, Mp - M), (0, 0)))
    if Np != N:
        wb = jnp.pad(wb, ((0, 0), (0, Np - N)))
        bb = jnp.pad(bb, ((0, Np - N),))
    bb = bb.reshape(1, Np)

    out = pl.pallas_call(
        functools.partial(_matmul_bias_kernel, relu),
        out_shape=jax.ShapeDtypeStruct((Mp, Np), out_dtype),
        grid_spec=pltpu.PrefetchScalarGridSpec(
            num_scalar_prefetch=0,
            grid=(Mp // TM,),
            in_specs=[
                pl.BlockSpec((TM, K), lambda i: (i, 0)),
                pl.BlockSpec((K, Np), lambda i: (0, 0)),
                pl.BlockSpec((1, Np), lambda i: (0, 0)),
            ],
            out_specs=pl.BlockSpec((TM, Np), lambda i: (i, 0)),
        ),
        compiler_params=pltpu.CompilerParams(
            dimension_semantics=("parallel",)),
    )(xb, wb, bb)

    if Mp != M or Np != N:
        out = out[:M, :N]
    return out


def _fc_reparam_fc_kernel(h_ref, wmu_ref, bmu_ref, wlv_ref, blv_ref, eps_ref,
                          wd_ref, bd_ref, mu_ref, lv_ref, hdec_ref):
    """Fused: enc_fc -> (mu, logvar), reparametrize, dec_fc + ReLU.  All f32 (tiny)."""
    h = h_ref[...]
    mu = jnp.dot(h, wmu_ref[...], preferred_element_type=jnp.float32) + bmu_ref[...]
    lv = jnp.dot(h, wlv_ref[...], preferred_element_type=jnp.float32) + blv_ref[...]
    z = mu + jnp.exp(lv * 0.5) * eps_ref[...]
    hd = jnp.dot(z, wd_ref[...], preferred_element_type=jnp.float32) + bd_ref[...]
    mu_ref[...] = mu
    lv_ref[...] = lv
    hdec_ref[...] = jnp.maximum(hd, 0.0)


def fc_reparam_fc(h, wmu, bmu, wlv, blv, eps, wd, bd):
    B = h.shape[0]
    D = wd.shape[1]
    vmem = pl.BlockSpec(memory_space=pltpu.MemorySpace.VMEM)
    return pl.pallas_call(
        _fc_reparam_fc_kernel,
        out_shape=(
            jax.ShapeDtypeStruct((B, Z_DIM), jnp.float32),
            jax.ShapeDtypeStruct((B, Z_DIM), jnp.float32),
            jax.ShapeDtypeStruct((B, D), jnp.float32),
        ),
        in_specs=[vmem] * 8,
        out_specs=(vmem, vmem, vmem),
    )(h, wmu, bmu.reshape(1, -1), wlv, blv.reshape(1, -1), eps,
      wd, bd.reshape(1, -1))


# ---------------------------------------------------------------------------
# XLA-side glue: channels-last patch extraction + layer wrappers
# ---------------------------------------------------------------------------
def extract_patches(x, k, stride, pad):
    """NHWC x -> (B*Ho*Wo, k*k*C) patch matrix, columns ordered (kh, kw, c)."""
    B, H, W, C = x.shape
    xp = jnp.pad(x, ((0, 0), (pad, pad), (pad, pad), (0, 0)))
    Ho = (H + 2 * pad - k) // stride + 1
    Wo = (W + 2 * pad - k) // stride + 1
    cols = []
    for i in range(k):
        for j in range(k):
            cols.append(xp[:, i:i + stride * Ho:stride, j:j + stride * Wo:stride, :])
    col = jnp.concatenate(cols, axis=-1)                 # (B, Ho, Wo, k*k*C)
    return col.reshape(B * Ho * Wo, k * k * C), Ho, Wo


def conv2d_nhwc(x, w_mat, b, relu, out_dtype):
    """PyTorch Conv2d(k=4, s=2, p=1); NHWC activations; w_mat: (16*Cin, Cout)."""
    B = x.shape[0]
    col, Ho, Wo = extract_patches(x, 4, 2, 1)
    out = matmul_bias_act(col, w_mat, b, relu=relu, out_dtype=out_dtype)
    return out.reshape(B, Ho, Wo, -1)


def deconv2d_nhwc(x, w9, b4, relu, out_dtype):
    """PyTorch ConvTranspose2d(k=4, s=2, p=1) via polyphase decomposition:
    one stride-1 3x3-window matmul producing all four sub-pixel phases (4*Cout
    channels), then a depth-to-space interleave."""
    B, H, W, _ = x.shape
    cout = w9.shape[1] // 4
    col, _, _ = extract_patches(x, 3, 1, 1)              # (B*H*W, 9*Cin)
    out = matmul_bias_act(col, w9, b4, relu=relu, out_dtype=out_dtype)
    out = out.reshape(B, H, W, 2, 2, cout)
    out = out.transpose(0, 1, 3, 2, 4, 5).reshape(B, 2 * H, 2 * W, cout)
    return out


# ---------------------------------------------------------------------------
# Parameters: PyTorch-layout init + one-time conversion to kernel-ready matrices
# ---------------------------------------------------------------------------
def init_params(key):
    """Deterministic kaiming-style synthetic weights in PyTorch layouts."""
    def kaiming(key, shape, fan_in):
        return (jnp.sqrt(2.0 / fan_in) * jax.random.normal(key, shape)).astype(jnp.float32)

    keys = jax.random.split(key, 10)
    p = {}
    enc_ch = [3, 32, 64, 128, 256]
    for i in range(4):
        cin, cout = enc_ch[i], enc_ch[i + 1]
        p[f"enc_conv{i}_w"] = kaiming(keys[i], (cout, cin, 4, 4), cin * 16)
        p[f"enc_conv{i}_b"] = jnp.zeros((cout,), jnp.float32)
    p["enc_fc_w"] = kaiming(keys[4], (256 * 2 * 2, 2 * Z_DIM), 256 * 2 * 2)  # (in, out)
    p["enc_fc_b"] = jnp.zeros((2 * Z_DIM,), jnp.float32)
    p["dec_fc_w"] = kaiming(keys[5], (Z_DIM, 256 * 2 * 2), Z_DIM)            # (in, out)
    p["dec_fc_b"] = jnp.zeros((256 * 2 * 2,), jnp.float32)
    dec_ch = [256, 128, 64, 32, 3]
    for i in range(4):
        cin, cout = dec_ch[i], dec_ch[i + 1]
        p[f"dec_deconv{i}_w"] = kaiming(keys[6 + i], (cin, cout, 4, 4), cin * 16)
        p[f"dec_deconv{i}_b"] = jnp.zeros((cout,), jnp.float32)
    return p


def _deconv_to_conv3x3(K):
    """ConvTranspose2d(k=4, s=2, p=1) weight (Cin, Cout, 4, 4) -> combined stride-1
    3x3-window weight (9*Cin, 4*Cout) computing all 4 sub-pixel output phases.
    Exact: out[2i+a, 2j+b] = sum over window offsets (u, v) of in[i-1+u, j-1+v] *
    K[:, :, kp(a,u), kq(b,v)] with the tap table below (other taps are zero)."""
    Cin, Cout = K.shape[0], K.shape[1]
    tap = {(0, 0): 3, (0, 1): 1, (1, 1): 2, (1, 2): 0}   # (phase, window offset) -> kernel idx
    W = jnp.zeros((3, 3, Cin, 2, 2, Cout), dtype=K.dtype)
    for (a, u), kp in tap.items():
        for (b, v), kq in tap.items():
            W = W.at[u, v, :, a, b, :].set(K[:, :, kp, kq])
    return W.reshape(9 * Cin, 4 * Cout)


def prepare_params(p):
    """One-time conversion of PyTorch-layout params into kernel-ready matrices."""
    q = {}
    # encoder convs: (Cout, Cin, 4, 4) -> (kh*kw*Cin, Cout), matching (kh, kw, c) patches
    for i in range(4):
        w = p[f"enc_conv{i}_w"]
        q[f"enc_w{i}"] = jnp.transpose(w, (2, 3, 1, 0)).reshape(-1, w.shape[0]).astype(jnp.bfloat16)
        q[f"enc_b{i}"] = p[f"enc_conv{i}_b"]
    # FC layers: permute between PyTorch NCHW flatten (c*4 + hw) and NHWC flatten (hw*256 + c)
    perm = jnp.arange(256 * 4).reshape(256, 4).T.reshape(-1)
    we = p["enc_fc_w"][perm]                              # rows reordered for NHWC input
    q["wmu"], q["wlv"] = we[:, :Z_DIM], we[:, Z_DIM:]
    q["bmu"], q["blv"] = p["enc_fc_b"][:Z_DIM], p["enc_fc_b"][Z_DIM:]
    q["wd"] = p["dec_fc_w"][:, perm]                      # cols reordered to emit NHWC
    q["bd"] = p["dec_fc_b"][perm]
    # decoder deconvs -> polyphase 3x3-window weights, bias replicated per phase
    for i in range(4):
        q[f"dec_w{i}"] = _deconv_to_conv3x3(p[f"dec_deconv{i}_w"]).astype(jnp.bfloat16)
        q[f"dec_b{i}"] = jnp.tile(p[f"dec_deconv{i}_b"], 4)
    return q


# ---------------------------------------------------------------------------
# BetaVAE forward
# ---------------------------------------------------------------------------
def beta_vae_forward(params, x_nchw, eps):
    B = x_nchw.shape[0]
    x = jnp.transpose(x_nchw, (0, 2, 3, 1))               # -> NHWC once at the boundary
    # ---- encoder: 4x (Conv2d k=4 s=2 p=1 + ReLU), intermediate activations bf16 ----
    h = x
    for i in range(4):
        h = conv2d_nhwc(h, params[f"enc_w{i}"], params[f"enc_b{i}"],
                        relu=True, out_dtype=jnp.bfloat16)
    hf = h.reshape(B, 256 * 2 * 2).astype(jnp.float32)    # View((-1, 1024)); NHWC order,
    # FC weights were permuted in prepare_params to match PyTorch's NCHW flatten.
    # ---- enc_fc + reparametrize + dec_fc(+ReLU): one fused Pallas kernel ----
    mu, logvar, hd = fc_reparam_fc(hf, params["wmu"], params["bmu"],
                                   params["wlv"], params["blv"], eps,
                                   params["wd"], params["bd"])
    # ---- decoder: 4x (ConvTranspose2d k=4 s=2 p=1), ReLU on all but the last ----
    h = hd.reshape(B, 2, 2, 256)
    for i in range(4):
        last = (i == 3)
        h = deconv2d_nhwc(h, params[f"dec_w{i}"], params[f"dec_b{i}"],
                          relu=not last,
                          out_dtype=jnp.float32 if last else jnp.bfloat16)
    x_recon = jnp.transpose(h, (0, 3, 1, 2))               # back to NCHW at the boundary
    return x_recon, mu, logvar


# ---------------------------------------------------------------------------
if __name__ == "__main__":
    key = jax.random.PRNGKey(0)
    k_param, k_x, k_eps = jax.random.split(key, 3)

    params = prepare_params(init_params(k_param))
    # encoder architecture (4x stride-2 convs down to 2x2) implies a 32x32 input
    x = jax.random.normal(k_x, (2, 3, 32, 32), dtype=jnp.float32)
    eps = jax.random.normal(k_eps, (2, Z_DIM), dtype=jnp.float32)

    fwd = jax.jit(beta_vae_forward)
    x_recon, mu, logvar = fwd(params, x, eps)
    jax.block_until_ready((x_recon, mu, logvar))

    assert x_recon.shape == (2, 3, 32, 32)
    assert mu.shape == (2, Z_DIM) and logvar.shape == (2, Z_DIM)
    assert bool(jnp.all(jnp.isfinite(x_recon)))
    print("KERNEL_OK")
</pallas_src>

<mosaic_0001>
module attributes {stable_mosaic.version = 11 : i64} {
  func.func @_matmul_bias_kernel(%arg0: i32, %arg1: memref<256x48xbf16, #tpu.memory_space<vmem>>, %arg2: memref<48x128xbf16, #tpu.memory_space<vmem>>, %arg3: memref<1x128xf32, #tpu.memory_space<vmem>>, %arg4: memref<256x128xbf16, #tpu.memory_space<vmem>>) attributes {dimension_semantics = [#tpu.dimension_semantics<parallel>], iteration_bounds = array<i64: 2>, scalar_prefetch = 0 : i64, scratch_operands = 0 : i64, tpu.core_type = #tpu.core_type<tc>, window_params = [{transform_indices = @transform_0, window_bounds = array<i64: 256, 48>}, {pipeline_mode = #tpu.pipeline_mode<synchronous>, transform_indices = @transform_1, window_bounds = array<i64: 48, 128>}, {pipeline_mode = #tpu.pipeline_mode<synchronous>, transform_indices = @transform_2, window_bounds = array<i64: 1, 128>}, {transform_indices = @transform_3, window_bounds = array<i64: 256, 128>}]} {
    %c0 = arith.constant 0 : index
    %c0_0 = arith.constant 0 : index
    %0 = vector.load %arg1[%c0, %c0_0] : memref<256x48xbf16, #tpu.memory_space<vmem>>, vector<256x48xbf16>
    %c0_1 = arith.constant 0 : index
    %c0_2 = arith.constant 0 : index
    %1 = vector.load %arg2[%c0_1, %c0_2] : memref<48x128xbf16, #tpu.memory_space<vmem>>, vector<48x128xbf16>
    %cst = arith.constant dense<0.000000e+00> : vector<256x128xf32>
    %2 = tpu.matmul %0, %1, %cst {dimension_numbers = #tpu.dot_dimension_numbers<[1], [0], [0], [1], [0, 0, 1, 1], [], []>} : vector<256x48xbf16>, vector<48x128xbf16>, vector<256x128xf32> -> vector<256x128xf32>
    %c0_3 = arith.constant 0 : index
    %c0_4 = arith.constant 0 : index
    %3 = vector.load %arg3[%c0_3, %c0_4] : memref<1x128xf32, #tpu.memory_space<vmem>>, vector<1x128xf32>
    %4 = vector.broadcast %3 : vector<1x128xf32> to vector<256x128xf32>
    %5 = arith.addf %2, %4 : vector<256x128xf32>
    %cst_5 = arith.constant 0.000000e+00 : f32
    %6 = vector.broadcast %cst_5 : f32 to vector<256x128xf32>
    %7 = arith.maximumf %5, %6 : vector<256x128xf32>
    %8 = arith.truncf %7 : vector<256x128xf32> to vector<256x128xbf16>
    %c0_6 = arith.constant 0 : index
    %c0_7 = arith.constant 0 : index
    %9 = vector.load %arg4[%c0_6, %c0_7] : memref<256x128xbf16, #tpu.memory_space<vmem>>, vector<256x128xbf16>
    tpu.vector_store %arg4[%c0_6, %c0_7], %8 {strides = array<i32>} : memref<256x128xbf16, #tpu.memory_space<vmem>>, vector<256x128xbf16>,
    return
  }
  func.func @transform_0(%arg0: i32) -> (i32, i32) {
    %c0_i32 = arith.constant 0 : i32
    %c0_i32_0 = arith.constant 0 : i32
    return %arg0, %c0_i32 : i32, i32
  }
  func.func @transform_1(%arg0: i32) -> (i32, i32) {
    %c0_i32 = arith.constant 0 : i32
    %c0_i32_0 = arith.constant 0 : i32
    %c0_i32_1 = arith.constant 0 : i32
    return %c0_i32, %c0_i32_0 : i32, i32
  }
  func.func @transform_2(%arg0: i32) -> (i32, i32) {
    %c0_i32 = arith.constant 0 : i32
    %c0_i32_0 = arith.constant 0 : i32
    %c0_i32_1 = arith.constant 0 : i32
    return %c0_i32, %c0_i32_0 : i32, i32
  }
  func.func @transform_3(%arg0: i32) -> (i32, i32) {
    %c0_i32 = arith.constant 0 : i32
    %c0_i32_0 = arith.constant 0 : i32
    return %arg0, %c0_i32 : i32, i32
  }
}

module attributes {stable_mosaic.version = 11 : i64} {
  func.func @_matmul_bias_kernel(%arg0: i32, %arg1: memref<128x512xbf16, #tpu.memory_space<vmem>>, %arg2: memref<512x128xbf16, #tpu.memory_space<vmem>>, %arg3: memref<1x128xf32, #tpu.memory_space<vmem>>, %arg4: memref<128x128xbf16, #tpu.memory_space<vmem>>) attributes {dimension_semantics = [#tpu.dimension_semantics<parallel>], iteration_bounds = array<i64: 1>, scalar_prefetch = 0 : i64, scratch_operands = 0 : i64, tpu.core_type = #tpu.core_type<tc>, window_params = [{transform_indices = @transform_0, window_bounds = array<i64: 128, 512>}, {pipeline_mode = #tpu.pipeline_mode<synchronous>, transform_indices = @transform_1, window_bounds = array<i64: 512, 128>}, {pipeline_mode = #tpu.pipeline_mode<synchronous>, transform_indices = @transform_2, window_bounds = array<i64: 1, 128>}, {transform_indices = @transform_3, window_bounds = array<i64: 128, 128>}]} {
    %c0 = arith.constant 0 : index
    %c0_0 = arith.constant 0 : index
    %0 = vector.load %arg1[%c0, %c0_0] : memref<128x512xbf16, #tpu.memory_space<vmem>>, vector<128x512xbf16>
    %c0_1 = arith.constant 0 : index
    %c0_2 = arith.constant 0 : index
    %1 = vector.load %arg2[%c0_1, %c0_2] : memref<512x128xbf16, #tpu.memory_space<vmem>>, vector<512x128xbf16>
    %cst = arith.constant dense<0.000000e+00> : vector<128x128xf32>
    %2 = tpu.matmul %0, %1, %cst {dimension_numbers = #tpu.dot_dimension_numbers<[1], [0], [0], [1], [0, 0, 1, 1], [], []>} : vector<128x512xbf16>, vector<512x128xbf16>, vector<128x128xf32> -> vector<128x128xf32>
    %c0_3 = arith.constant 0 : index
    %c0_4 = arith.constant 0 : index
    %3 = vector.load %arg3[%c0_3, %c0_4] : memref<1x128xf32, #tpu.memory_space<vmem>>, vector<1x128xf32>
    %4 = vector.broadcast %3 : vector<1x128xf32> to vector<128x128xf32>
    %5 = arith.addf %2, %4 : vector<128x128xf32>
    %cst_5 = arith.constant 0.000000e+00 : f32
    %6 = vector.broadcast %cst_5 : f32 to vector<128x128xf32>
    %7 = arith.maximumf %5, %6 : vector<128x128xf32>
    %8 = arith.truncf %7 : vector<128x128xf32> to vector<128x128xbf16>
    %c0_6 = arith.constant 0 : index
    %c0_7 = arith.constant 0 : index
    %9 = vector.load %arg4[%c0_6, %c0_7] : memref<128x128xbf16, #tpu.memory_space<vmem>>, vector<128x128xbf16>
    tpu.vector_store %arg4[%c0_6, %c0_7], %8 {strides = array<i32>} : memref<128x128xbf16, #tpu.memory_space<vmem>>, vector<128x128xbf16>,
    return
  }
  func.func @transform_0(%arg0: i32) -> (i32, i32) {
    %c0_i32 = arith.constant 0 : i32
    %c0_i32_0 = arith.constant 0 : i32
    return %arg0, %c0_i32 : i32, i32
  }
  func.func @transform_1(%arg0: i32) -> (i32, i32) {
    %c0_i32 = arith.constant 0 : i32
    %c0_i32_0 = arith.constant 0 : i32
    %c0_i32_1 = arith.constant 0 : i32
    return %c0_i32, %c0_i32_0 : i32, i32
  }
  func.func @transform_2(%arg0: i32) -> (i32, i32) {
    %c0_i32 = arith.constant 0 : i32
    %c0_i32_0 = arith.constant 0 : i32
    %c0_i32_1 = arith.constant 0 : i32
    return %c0_i32, %c0_i32_0 : i32, i32
  }
  func.func @transform_3(%arg0: i32) -> (i32, i32) {
    %c0_i32 = arith.constant 0 : i32
    %c0_i32_0 = arith.constant 0 : i32
    return %arg0, %c0_i32 : i32, i32
  }
}

module attributes {stable_mosaic.version = 11 : i64} {
  func.func @_matmul_bias_kernel(%arg0: i32, %arg1: memref<32x1024xbf16, #tpu.memory_space<vmem>>, %arg2: memref<1024x128xbf16, #tpu.memory_space<vmem>>, %arg3: memref<1x128xf32, #tpu.memory_space<vmem>>, %arg4: memref<32x128xbf16, #tpu.memory_space<vmem>>) attributes {dimension_semantics = [#tpu.dimension_semantics<parallel>], iteration_bounds = array<i64: 1>, scalar_prefetch = 0 : i64, scratch_operands = 0 : i64, tpu.core_type = #tpu.core_type<tc>, window_params = [{transform_indices = @transform_0, window_bounds = array<i64: 32, 1024>}, {pipeline_mode = #tpu.pipeline_mode<synchronous>, transform_indices = @transform_1, window_bounds = array<i64: 1024, 128>}, {pipeline_mode = #tpu.pipeline_mode<synchronous>, transform_indices = @transform_2, window_bounds = array<i64: 1, 128>}, {transform_indices = @transform_3, window_bounds = array<i64: 32, 128>}]} {
    %c0 = arith.constant 0 : index
    %c0_0 = arith.constant 0 : index
    %0 = vector.load %arg1[%c0, %c0_0] : memref<32x1024xbf16, #tpu.memory_space<vmem>>, vector<32x1024xbf16>
    %c0_1 = arith.constant 0 : index
    %c0_2 = arith.constant 0 : index
    %1 = vector.load %arg2[%c0_1, %c0_2] : memref<1024x128xbf16, #tpu.memory_space<vmem>>, vector<1024x128xbf16>
    %cst = arith.constant dense<0.000000e+00> : vector<32x128xf32>
    %2 = tpu.matmul %0, %1, %cst {dimension_numbers = #tpu.dot_dimension_numbers<[1], [0], [0], [1], [0, 0, 1, 1], [], []>} : vector<32x1024xbf16>, vector<1024x128xbf16>, vector<32x128xf32> -> vector<32x128xf32>
    %c0_3 = arith.constant 0 : index
    %c0_4 = arith.constant 0 : index
    %3 = vector.load %arg3[%c0_3, %c0_4] : memref<1x128xf32, #tpu.memory_space<vmem>>, vector<1x128xf32>
    %4 = vector.broadcast %3 : vector<1x128xf32> to vector<32x128xf32>
    %5 = arith.addf %2, %4 : vector<32x128xf32>
    %cst_5 = arith.constant 0.000000e+00 : f32
    %6 = vector.broadcast %cst_5 : f32 to vector<32x128xf32>
    %7 = arith.maximumf %5, %6 : vector<32x128xf32>
    %8 = arith.truncf %7 : vector<32x128xf32> to vector<32x128xbf16>
    %c0_6 = arith.constant 0 : index
    %c0_7 = arith.constant 0 : index
    %9 = vector.load %arg4[%c0_6, %c0_7] : memref<32x128xbf16, #tpu.memory_space<vmem>>, vector<32x128xbf16>
    tpu.vector_store %arg4[%c0_6, %c0_7], %8 {strides = array<i32>} : memref<32x128xbf16, #tpu.memory_space<vmem>>, vector<32x128xbf16>,
    return
  }
  func.func @transform_0(%arg0: i32) -> (i32, i32) {
    %c0_i32 = arith.constant 0 : i32
    %c0_i32_0 = arith.constant 0 : i32
    return %arg0, %c0_i32 : i32, i32
  }
  func.func @transform_1(%arg0: i32) -> (i32, i32) {
    %c0_i32 = arith.constant 0 : i32
    %c0_i32_0 = arith.constant 0 : i32
    %c0_i32_1 = arith.constant 0 : i32
    return %c0_i32, %c0_i32_0 : i32, i32
  }
  func.func @transform_2(%arg0: i32) -> (i32, i32) {
    %c0_i32 = arith.constant 0 : i32
    %c0_i32_0 = arith.constant 0 : i32
    %c0_i32_1 = arith.constant 0 : i32
    return %c0_i32, %c0_i32_0 : i32, i32
  }
  func.func @transform_3(%arg0: i32) -> (i32, i32) {
    %c0_i32 = arith.constant 0 : i32
    %c0_i32_0 = arith.constant 0 : i32
    return %arg0, %c0_i32 : i32, i32
  }
}

module attributes {stable_mosaic.version = 11 : i64} {
  func.func @_fc_reparam_fc_kernel(%arg0: memref<2x1024xf32, #tpu.memory_space<vmem>>, %arg1: memref<1024x20xf32, #tpu.memory_space<vmem>>, %arg2: memref<1x20xf32, #tpu.memory_space<vmem>>, %arg3: memref<1024x20xf32, #tpu.memory_space<vmem>>, %arg4: memref<1x20xf32, #tpu.memory_space<vmem>>, %arg5: memref<2x20xf32, #tpu.memory_space<vmem>>, %arg6: memref<20x1024xf32, #tpu.memory_space<vmem>>, %arg7: memref<1x1024xf32, #tpu.memory_space<vmem>>, %arg8: memref<2x20xf32, #tpu.memory_space<vmem>>, %arg9: memref<2x20xf32, #tpu.memory_space<vmem>>, %arg10: memref<2x1024xf32, #tpu.memory_space<vmem>>) attributes {dimension_semantics = [], scalar_prefetch = 0 : i64, scratch_operands = 0 : i64, tpu.core_type = #tpu.core_type<tc>} {
    %c0 = arith.constant 0 : index
    %c0_0 = arith.constant 0 : index
    %0 = vector.load %arg0[%c0, %c0_0] : memref<2x1024xf32, #tpu.memory_space<vmem>>, vector<2x1024xf32>
    %c0_1 = arith.constant 0 : index
    %c0_2 = arith.constant 0 : index
    %1 = vector.load %arg1[%c0_1, %c0_2] : memref<1024x20xf32, #tpu.memory_space<vmem>>, vector<1024x20xf32>
    %cst = arith.constant dense<0.000000e+00> : vector<2x20xf32>
    %2 = tpu.matmul %0, %1, %cst {dimension_numbers = #tpu.dot_dimension_numbers<[1], [0], [0], [1], [0, 0, 1, 1], [], []>} : vector<2x1024xf32>, vector<1024x20xf32>, vector<2x20xf32> -> vector<2x20xf32>
    %c0_3 = arith.constant 0 : index
    %c0_4 = arith.constant 0 : index
    %3 = vector.load %arg2[%c0_3, %c0_4] : memref<1x20xf32, #tpu.memory_space<vmem>>, vector<1x20xf32>
    %4 = vector.broadcast %3 : vector<1x20xf32> to vector<2x20xf32>
    %5 = arith.addf %2, %4 : vector<2x20xf32>
    %c0_5 = arith.constant 0 : index
    %c0_6 = arith.constant 0 : index
    %6 = vector.load %arg3[%c0_5, %c0_6] : memref<1024x20xf32, #tpu.memory_space<vmem>>, vector<1024x20xf32>
    %cst_7 = arith.constant dense<0.000000e+00> : vector<2x20xf32>
    %7 = tpu.matmul %0, %6, %cst_7 {dimension_numbers = #tpu.dot_dimension_numbers<[1], [0], [0], [1], [0, 0, 1, 1], [], []>} : vector<2x1024xf32>, vector<1024x20xf32>, vector<2x20xf32> -> vector<2x20xf32>
    %c0_8 = arith.constant 0 : index
    %c0_9 = arith.constant 0 : index
    %8 = vector.load %arg4[%c0_8, %c0_9] : memref<1x20xf32, #tpu.memory_space<vmem>>, vector<1x20xf32>
    %9 = vector.broadcast %8 : vector<1x20xf32> to vector<2x20xf32>
    %10 = arith.addf %7, %9 : vector<2x20xf32>
    %cst_10 = arith.constant 5.000000e-01 : f32
    %11 = vector.broadcast %cst_10 : f32 to vector<2x20xf32>
    %12 = arith.mulf %10, %11 : vector<2x20xf32>
    %13 = math.exp %12 : vector<2x20xf32>
    %c0_11 = arith.constant 0 : index
    %c0_12 = arith.constant 0 : index
    %14 = vector.load %arg5[%c0_11, %c0_12] : memref<2x20xf32, #tpu.memory_space<vmem>>, vector<2x20xf32>
    %15 = arith.mulf %13, %14 : vector<2x20xf32>
    %16 = arith.addf %5, %15 : vector<2x20xf32>
    %c0_13 = arith.constant 0 : index
    %c0_14 = arith.constant 0 : index
    %17 = vector.load %arg6[%c0_13, %c0_14] : memref<20x1024xf32, #tpu.memory_space<vmem>>, vector<20x1024xf32>
    %cst_15 = arith.constant dense<0.000000e+00> : vector<2x1024xf32>
    %18 = tpu.matmul %16, %17, %cst_15 {dimension_numbers = #tpu.dot_dimension_numbers<[1], [0], [0], [1], [0, 0, 1, 1], [], []>} : vector<2x20xf32>, vector<20x1024xf32>, vector<2x1024xf32> -> vector<2x1024xf32>
    %c0_16 = arith.constant 0 : index
    %c0_17 = arith.constant 0 : index
    %19 = vector.load %arg7[%c0_16, %c0_17] : memref<1x1024xf32, #tpu.memory_space<vmem>>, vector<1x1024xf32>
    %20 = vector.broadcast %19 : vector<1x1024xf32> to vector<2x1024xf32>
    %21 = arith.addf %18, %20 : vector<2x1024xf32>
    %c0_18 = arith.constant 0 : index
    %c0_19 = arith.constant 0 : index
    %22 = vector.load %arg8[%c0_18, %c0_19] : memref<2x20xf32, #tpu.memory_space<vmem>>, vector<2x20xf32>
    tpu.vector_store %arg8[%c0_18, %c0_19], %5 {strides = array<i32>} : memref<2x20xf32, #tpu.memory_space<vmem>>, vector<2x20xf32>,
    %c0_20 = arith.constant 0 : index
    %c0_21 = arith.constant 0 : index
    %23 = vector.load %arg9[%c0_20, %c0_21] : memref<2x20xf32, #tpu.memory_space<vmem>>, vector<2x20xf32>
    tpu.vector_store %arg9[%c0_20, %c0_21], %10 {strides = array<i32>} : memref<2x20xf32, #tpu.memory_space<vmem>>, vector<2x20xf32>,
    %cst_22 = arith.constant 0.000000e+00 : f32
    %24 = vector.broadcast %cst_22 : f32 to vector<2x1024xf32>
    %25 = arith.maximumf %21, %24 : vector<2x1024xf32>
    %c0_23 = arith.constant 0 : index
    %c0_24 = arith.constant 0 : index
    %26 = vector.load %arg10[%c0_23, %c0_24] : memref<2x1024xf32, #tpu.memory_space<vmem>>, vector<2x1024xf32>
    tpu.vector_store %arg10[%c0_23, %c0_24], %25 {strides = array<i32>} : memref<2x1024xf32, #tpu.memory_space<vmem>>, vector<2x1024xf32>,
    return
  }
}

module attributes {stable_mosaic.version = 11 : i64} {
  func.func @_matmul_bias_kernel(%arg0: i32, %arg1: memref<8x2048xbf16, #tpu.memory_space<vmem>>, %arg2: memref<2048x256xbf16, #tpu.memory_space<vmem>>, %arg3: memref<1x256xf32, #tpu.memory_space<vmem>>, %arg4: memref<8x256xbf16, #tpu.memory_space<vmem>>) attributes {dimension_semantics = [#tpu.dimension_semantics<parallel>], iteration_bounds = array<i64: 1>, scalar_prefetch = 0 : i64, scratch_operands = 0 : i64, tpu.core_type = #tpu.core_type<tc>, window_params = [{transform_indices = @transform_0, window_bounds = array<i64: 8, 2048>}, {pipeline_mode = #tpu.pipeline_mode<synchronous>, transform_indices = @transform_1, window_bounds = array<i64: 2048, 256>}, {pipeline_mode = #tpu.pipeline_mode<synchronous>, transform_indices = @transform_2, window_bounds = array<i64: 1, 256>}, {transform_indices = @transform_3, window_bounds = array<i64: 8, 256>}]} {
    %c0 = arith.constant 0 : index
    %c0_0 = arith.constant 0 : index
    %0 = vector.load %arg1[%c0, %c0_0] : memref<8x2048xbf16, #tpu.memory_space<vmem>>, vector<8x2048xbf16>
    %c0_1 = arith.constant 0 : index
    %c0_2 = arith.constant 0 : index
    %1 = vector.load %arg2[%c0_1, %c0_2] : memref<2048x256xbf16, #tpu.memory_space<vmem>>, vector<2048x256xbf16>
    %cst = arith.constant dense<0.000000e+00> : vector<8x256xf32>
    %2 = tpu.matmul %0, %1, %cst {dimension_numbers = #tpu.dot_dimension_numbers<[1], [0], [0], [1], [0, 0, 1, 1], [], []>} : vector<8x2048xbf16>, vector<2048x256xbf16>, vector<8x256xf32> -> vector<8x256xf32>
    %c0_3 = arith.constant 0 : index
    %c0_4 = arith.constant 0 : index
    %3 = vector.load %arg3[%c0_3, %c0_4] : memref<1x256xf32, #tpu.memory_space<vmem>>, vector<1x256xf32>
    %4 = vector.broadcast %3 : vector<1x256xf32> to vector<8x256xf32>
    %5 = arith.addf %2, %4 : vector<8x256xf32>
    %cst_5 = arith.constant 0.000000e+00 : f32
    %6 = vector.broadcast %cst_5 : f32 to vector<8x256xf32>
    %7 = arith.maximumf %5, %6 : vector<8x256xf32>
    %8 = arith.truncf %7 : vector<8x256xf32> to vector<8x256xbf16>
    %c0_6 = arith.constant 0 : index
    %c0_7 = arith.constant 0 : index
    %9 = vector.load %arg4[%c0_6, %c0_7] : memref<8x256xbf16, #tpu.memory_space<vmem>>, vector<8x256xbf16>
    tpu.vector_store %arg4[%c0_6, %c0_7], %8 {strides = array<i32>} : memref<8x256xbf16, #tpu.memory_space<vmem>>, vector<8x256xbf16>,
    return
  }
  func.func @transform_0(%arg0: i32) -> (i32, i32) {
    %c0_i32 = arith.constant 0 : i32
    %c0_i32_0 = arith.constant 0 : i32
    return %arg0, %c0_i32 : i32, i32
  }
  func.func @transform_1(%arg0: i32) -> (i32, i32) {
    %c0_i32 = arith.constant 0 : i32
    %c0_i32_0 = arith.constant 0 : i32
    %c0_i32_1 = arith.constant 0 : i32
    return %c0_i32, %c0_i32_0 : i32, i32
  }
  func.func @transform_2(%arg0: i32) -> (i32, i32) {
    %c0_i32 = arith.constant 0 : i32
    %c0_i32_0 = arith.constant 0 : i32
    %c0_i32_1 = arith.constant 0 : i32
    return %c0_i32, %c0_i32_0 : i32, i32
  }
  func.func @transform_3(%arg0: i32) -> (i32, i32) {
    %c0_i32 = arith.constant 0 : i32
    %c0_i32_0 = arith.constant 0 : i32
    return %arg0, %c0_i32 : i32, i32
  }
}

module attributes {stable_mosaic.version = 11 : i64} {
  func.func @_matmul_bias_kernel(%arg0: i32, %arg1: memref<8x2304xbf16, #tpu.memory_space<vmem>>, %arg2: memref<2304x512xbf16, #tpu.memory_space<vmem>>, %arg3: memref<1x512xf32, #tpu.memory_space<vmem>>, %arg4: memref<8x512xbf16, #tpu.memory_space<vmem>>) attributes {dimension_semantics = [#tpu.dimension_semantics<parallel>], iteration_bounds = array<i64: 1>, scalar_prefetch = 0 : i64, scratch_operands = 0 : i64, tpu.core_type = #tpu.core_type<tc>, window_params = [{transform_indices = @transform_0, window_bounds = array<i64: 8, 2304>}, {pipeline_mode = #tpu.pipeline_mode<synchronous>, transform_indices = @transform_1, window_bounds = array<i64: 2304, 512>}, {pipeline_mode = #tpu.pipeline_mode<synchronous>, transform_indices = @transform_2, window_bounds = array<i64: 1, 512>}, {transform_indices = @transform_3, window_bounds = array<i64: 8, 512>}]} {
    %c0 = arith.constant 0 : index
    %c0_0 = arith.constant 0 : index
    %0 = vector.load %arg1[%c0, %c0_0] : memref<8x2304xbf16, #tpu.memory_space<vmem>>, vector<8x2304xbf16>
    %c0_1 = arith.constant 0 : index
    %c0_2 = arith.constant 0 : index
    %1 = vector.load %arg2[%c0_1, %c0_2] : memref<2304x512xbf16, #tpu.memory_space<vmem>>, vector<2304x512xbf16>
    %cst = arith.constant dense<0.000000e+00> : vector<8x512xf32>
    %2 = tpu.matmul %0, %1, %cst {dimension_numbers = #tpu.dot_dimension_numbers<[1], [0], [0], [1], [0, 0, 1, 1], [], []>} : vector<8x2304xbf16>, vector<2304x512xbf16>, vector<8x512xf32> -> vector<8x512xf32>
    %c0_3 = arith.constant 0 : index
    %c0_4 = arith.constant 0 : index
    %3 = vector.load %arg3[%c0_3, %c0_4] : memref<1x512xf32, #tpu.memory_space<vmem>>, vector<1x512xf32>
    %4 = vector.broadcast %3 : vector<1x512xf32> to vector<8x512xf32>
    %5 = arith.addf %2, %4 : vector<8x512xf32>
    %cst_5 = arith.constant 0.000000e+00 : f32
    %6 = vector.broadcast %cst_5 : f32 to vector<8x512xf32>
    %7 = arith.maximumf %5, %6 : vector<8x512xf32>
    %8 = arith.truncf %7 : vector<8x512xf32> to vector<8x512xbf16>
    %c0_6 = arith.constant 0 : index
    %c0_7 = arith.constant 0 : index
    %9 = vector.load %arg4[%c0_6, %c0_7] : memref<8x512xbf16, #tpu.memory_space<vmem>>, vector<8x512xbf16>
    tpu.vector_store %arg4[%c0_6, %c0_7], %8 {strides = array<i32>} : memref<8x512xbf16, #tpu.memory_space<vmem>>, vector<8x512xbf16>,
    return
  }
  func.func @transform_0(%arg0: i32) -> (i32, i32) {
    %c0_i32 = arith.constant 0 : i32
    %c0_i32_0 = arith.constant 0 : i32
    return %arg0, %c0_i32 : i32, i32
  }
  func.func @transform_1(%arg0: i32) -> (i32, i32) {
    %c0_i32 = arith.constant 0 : i32
    %c0_i32_0 = arith.constant 0 : i32
    %c0_i32_1 = arith.constant 0 : i32
    return %c0_i32, %c0_i32_0 : i32, i32
  }
  func.func @transform_2(%arg0: i32) -> (i32, i32) {
    %c0_i32 = arith.constant 0 : i32
    %c0_i32_0 = arith.constant 0 : i32
    %c0_i32_1 = arith.constant 0 : i32
    return %c0_i32, %c0_i32_0 : i32, i32
  }
  func.func @transform_3(%arg0: i32) -> (i32, i32) {
    %c0_i32 = arith.constant 0 : i32
    %c0_i32_0 = arith.constant 0 : i32
    return %arg0, %c0_i32 : i32, i32
  }
}

module attributes {stable_mosaic.version = 11 : i64} {
  func.func @_matmul_bias_kernel(%arg0: i32, %arg1: memref<32x1152xbf16, #tpu.memory_space<vmem>>, %arg2: memref<1152x256xbf16, #tpu.memory_space<vmem>>, %arg3: memref<1x256xf32, #tpu.memory_space<vmem>>, %arg4: memref<32x256xbf16, #tpu.memory_space<vmem>>) attributes {dimension_semantics = [#tpu.dimension_semantics<parallel>], iteration_bounds = array<i64: 1>, scalar_prefetch = 0 : i64, scratch_operands = 0 : i64, tpu.core_type = #tpu.core_type<tc>, window_params = [{transform_indices = @transform_0, window_bounds = array<i64: 32, 1152>}, {pipeline_mode = #tpu.pipeline_mode<synchronous>, transform_indices = @transform_1, window_bounds = array<i64: 1152, 256>}, {pipeline_mode = #tpu.pipeline_mode<synchronous>, transform_indices = @transform_2, window_bounds = array<i64: 1, 256>}, {transform_indices = @transform_3, window_bounds = array<i64: 32, 256>}]} {
    %c0 = arith.constant 0 : index
    %c0_0 = arith.constant 0 : index
    %0 = vector.load %arg1[%c0, %c0_0] : memref<32x1152xbf16, #tpu.memory_space<vmem>>, vector<32x1152xbf16>
    %c0_1 = arith.constant 0 : index
    %c0_2 = arith.constant 0 : index
    %1 = vector.load %arg2[%c0_1, %c0_2] : memref<1152x256xbf16, #tpu.memory_space<vmem>>, vector<1152x256xbf16>
    %cst = arith.constant dense<0.000000e+00> : vector<32x256xf32>
    %2 = tpu.matmul %0, %1, %cst {dimension_numbers = #tpu.dot_dimension_numbers<[1], [0], [0], [1], [0, 0, 1, 1], [], []>} : vector<32x1152xbf16>, vector<1152x256xbf16>, vector<32x256xf32> -> vector<32x256xf32>
    %c0_3 = arith.constant 0 : index
    %c0_4 = arith.constant 0 : index
    %3 = vector.load %arg3[%c0_3, %c0_4] : memref<1x256xf32, #tpu.memory_space<vmem>>, vector<1x256xf32>
    %4 = vector.broadcast %3 : vector<1x256xf32> to vector<32x256xf32>
    %5 = arith.addf %2, %4 : vector<32x256xf32>
    %cst_5 = arith.constant 0.000000e+00 : f32
    %6 = vector.broadcast %cst_5 : f32 to vector<32x256xf32>
    %7 = arith.maximumf %5, %6 : vector<32x256xf32>
    %8 = arith.truncf %7 : vector<32x256xf32> to vector<32x256xbf16>
    %c0_6 = arith.constant 0 : index
    %c0_7 = arith.constant 0 : index
    %9 = vector.load %arg4[%c0_6, %c0_7] : memref<32x256xbf16, #tpu.memory_space<vmem>>, vector<32x256xbf16>
    tpu.vector_store %arg4[%c0_6, %c0_7], %8 {strides = array<i32>} : memref<32x256xbf16, #tpu.memory_space<vmem>>, vector<32x256xbf16>,
    return
  }
  func.func @transform_0(%arg0: i32) -> (i32, i32) {
    %c0_i32 = arith.constant 0 : i32
    %c0_i32_0 = arith.constant 0 : i32
    return %arg0, %c0_i32 : i32, i32
  }
  func.func @transform_1(%arg0: i32) -> (i32, i32) {
    %c0_i32 = arith.constant 0 : i32
    %c0_i32_0 = arith.constant 0 : i32
    %c0_i32_1 = arith.constant 0 : i32
    return %c0_i32, %c0_i32_0 : i32, i32
  }
  func.func @transform_2(%arg0: i32) -> (i32, i32) {
    %c0_i32 = arith.constant 0 : i32
    %c0_i32_0 = arith.constant 0 : i32
    %c0_i32_1 = arith.constant 0 : i32
    return %c0_i32, %c0_i32_0 : i32, i32
  }
  func.func @transform_3(%arg0: i32) -> (i32, i32) {
    %c0_i32 = arith.constant 0 : i32
    %c0_i32_0 = arith.constant 0 : i32
    return %arg0, %c0_i32 : i32, i32
  }
}

module attributes {stable_mosaic.version = 11 : i64} {
  func.func @_matmul_bias_kernel(%arg0: i32, %arg1: memref<128x576xbf16, #tpu.memory_space<vmem>>, %arg2: memref<576x128xbf16, #tpu.memory_space<vmem>>, %arg3: memref<1x128xf32, #tpu.memory_space<vmem>>, %arg4: memref<128x128xbf16, #tpu.memory_space<vmem>>) attributes {dimension_semantics = [#tpu.dimension_semantics<parallel>], iteration_bounds = array<i64: 1>, scalar_prefetch = 0 : i64, scratch_operands = 0 : i64, tpu.core_type = #tpu.core_type<tc>, window_params = [{transform_indices = @transform_0, window_bounds = array<i64: 128, 576>}, {pipeline_mode = #tpu.pipeline_mode<synchronous>, transform_indices = @transform_1, window_bounds = array<i64: 576, 128>}, {pipeline_mode = #tpu.pipeline_mode<synchronous>, transform_indices = @transform_2, window_bounds = array<i64: 1, 128>}, {transform_indices = @transform_3, window_bounds = array<i64: 128, 128>}]} {
    %c0 = arith.constant 0 : index
    %c0_0 = arith.constant 0 : index
    %0 = vector.load %arg1[%c0, %c0_0] : memref<128x576xbf16, #tpu.memory_space<vmem>>, vector<128x576xbf16>
    %c0_1 = arith.constant 0 : index
    %c0_2 = arith.constant 0 : index
    %1 = vector.load %arg2[%c0_1, %c0_2] : memref<576x128xbf16, #tpu.memory_space<vmem>>, vector<576x128xbf16>
    %cst = arith.constant dense<0.000000e+00> : vector<128x128xf32>
    %2 = tpu.matmul %0, %1, %cst {dimension_numbers = #tpu.dot_dimension_numbers<[1], [0], [0], [1], [0, 0, 1, 1], [], []>} : vector<128x576xbf16>, vector<576x128xbf16>, vector<128x128xf32> -> vector<128x128xf32>
    %c0_3 = arith.constant 0 : index
    %c0_4 = arith.constant 0 : index
    %3 = vector.load %arg3[%c0_3, %c0_4] : memref<1x128xf32, #tpu.memory_space<vmem>>, vector<1x128xf32>
    %4 = vector.broadcast %3 : vector<1x128xf32> to vector<128x128xf32>
    %5 = arith.addf %2, %4 : vector<128x128xf32>
    %cst_5 = arith.constant 0.000000e+00 : f32
    %6 = vector.broadcast %cst_5 : f32 to vector<128x128xf32>
    %7 = arith.maximumf %5, %6 : vector<128x128xf32>
    %8 = arith.truncf %7 : vector<128x128xf32> to vector<128x128xbf16>
    %c0_6 = arith.constant 0 : index
    %c0_7 = arith.constant 0 : index
    %9 = vector.load %arg4[%c0_6, %c0_7] : memref<128x128xbf16, #tpu.memory_space<vmem>>, vector<128x128xbf16>
    tpu.vector_store %arg4[%c0_6, %c0_7], %8 {strides = array<i32>} : memref<128x128xbf16, #tpu.memory_space<vmem>>, vector<128x128xbf16>,
    return
  }
  func.func @transform_0(%arg0: i32) -> (i32, i32) {
    %c0_i32 = arith.constant 0 : i32
    %c0_i32_0 = arith.constant 0 : i32
    return %arg0, %c0_i32 : i32, i32
  }
  func.func @transform_1(%arg0: i32) -> (i32, i32) {
    %c0_i32 = arith.constant 0 : i32
    %c0_i32_0 = arith.constant 0 : i32
    %c0_i32_1 = arith.constant 0 : i32
    return %c0_i32, %c0_i32_0 : i32, i32
  }
  func.func @transform_2(%arg0: i32) -> (i32, i32) {
    %c0_i32 = arith.constant 0 : i32
    %c0_i32_0 = arith.constant 0 : i32
    %c0_i32_1 = arith.constant 0 : i32
    return %c0_i32, %c0_i32_0 : i32, i32
  }
  func.func @transform_3(%arg0: i32) -> (i32, i32) {
    %c0_i32 = arith.constant 0 : i32
    %c0_i32_0 = arith.constant 0 : i32
    return %arg0, %c0_i32 : i32, i32
  }
}

module attributes {stable_mosaic.version = 11 : i64} {
  func.func @_matmul_bias_kernel(%arg0: i32, %arg1: memref<256x288xbf16, #tpu.memory_space<vmem>>, %arg2: memref<288x128xbf16, #tpu.memory_space<vmem>>, %arg3: memref<1x128xf32, #tpu.memory_space<vmem>>, %arg4: memref<256x128xf32, #tpu.memory_space<vmem>>) attributes {dimension_semantics = [#tpu.dimension_semantics<parallel>], iteration_bounds = array<i64: 2>, scalar_prefetch = 0 : i64, scratch_operands = 0 : i64, tpu.core_type = #tpu.core_type<tc>, window_params = [{transform_indices = @transform_0, window_bounds = array<i64: 256, 288>}, {pipeline_mode = #tpu.pipeline_mode<synchronous>, transform_indices = @transform_1, window_bounds = array<i64: 288, 128>}, {pipeline_mode = #tpu.pipeline_mode<synchronous>, transform_indices = @transform_2, window_bounds = array<i64: 1, 128>}, {transform_indices = @transform_3, window_bounds = array<i64: 256, 128>}]} {
    %c0 = arith.constant 0 : index
    %c0_0 = arith.constant 0 : index
    %0 = vector.load %arg1[%c0, %c0_0] : memref<256x288xbf16, #tpu.memory_space<vmem>>, vector<256x288xbf16>
    %c0_1 = arith.constant 0 : index
    %c0_2 = arith.constant 0 : index
    %1 = vector.load %arg2[%c0_1, %c0_2] : memref<288x128xbf16, #tpu.memory_space<vmem>>, vector<288x128xbf16>
    %cst = arith.constant dense<0.000000e+00> : vector<256x128xf32>
    %2 = tpu.matmul %0, %1, %cst {dimension_numbers = #tpu.dot_dimension_numbers<[1], [0], [0], [1], [0, 0, 1, 1], [], []>} : vector<256x288xbf16>, vector<288x128xbf16>, vector<256x128xf32> -> vector<256x128xf32>
    %c0_3 = arith.constant 0 : index
    %c0_4 = arith.constant 0 : index
    %3 = vector.load %arg3[%c0_3, %c0_4] : memref<1x128xf32, #tpu.memory_space<vmem>>, vector<1x128xf32>
    %4 = vector.broadcast %3 : vector<1x128xf32> to vector<256x128xf32>
    %5 = arith.addf %2, %4 : vector<256x128xf32>
    %c0_5 = arith.constant 0 : index
    %c0_6 = arith.constant 0 : index
    %6 = vector.load %arg4[%c0_5, %c0_6] : memref<256x128xf32, #tpu.memory_space<vmem>>, vector<256x128xf32>
    tpu.vector_store %arg4[%c0_5, %c0_6], %5 {strides = array<i32>} : memref<256x128xf32, #tpu.memory_space<vmem>>, vector<256x128xf32>,
    return
  }
  func.func @transform_0(%arg0: i32) -> (i32, i32) {
    %c0_i32 = arith.constant 0 : i32
    %c0_i32_0 = arith.constant 0 : i32
    return %arg0, %c0_i32 : i32, i32
  }
  func.func @transform_1(%arg0: i32) -> (i32, i32) {
    %c0_i32 = arith.constant 0 : i32
    %c0_i32_0 = arith.constant 0 : i32
    %c0_i32_1 = arith.constant 0 : i32
    return %c0_i32, %c0_i32_0 : i32, i32
  }
  func.func @transform_2(%arg0: i32) -> (i32, i32) {
    %c0_i32 = arith.constant 0 : i32
    %c0_i32_0 = arith.constant 0 : i32
    %c0_i32_1 = arith.constant 0 : i32
    return %c0_i32, %c0_i32_0 : i32, i32
  }
  func.func @transform_3(%arg0: i32) -> (i32, i32) {
    %c0_i32 = arith.constant 0 : i32
    %c0_i32_0 = arith.constant 0 : i32
    return %arg0, %c0_i32 : i32, i32
  }
}

</mosaic_0001>

<bundles_post_ra>
// kernel: beta_vae_forward.9
= control target key start
LH: loop header
LB: loop body
LE: loop exit
PB: predicated region body
PF: predicated region fallthrough
CT: control target
= control target key end

     0   :  { %s1100_s12 = smov 0   ;;  %s1222_s0 = inlined_call_operand.vmem [shape: bf16[512,48], index: 0, kind: input, shape index: {}]   ;;  %s1223_s1 = inlined_call_operand.vmem [shape: bf16[48,128], index: 1, kind: input, shape index: {}]   ;;  %s1224_s2 = inlined_call_operand.vmem [shape: f32[1,128], index: 2, kind: input, shape index: {}]   ;;  %s1225_s3 = inlined_call_operand.vmem [shape: bf16[512,128], index: 3, kind: output, shape index: {}]  }
   0x1 LB: > { %s776_s13 = sadd.s32 4294967295, %s1078_s12   ;;  %p780_p0 = scmp.ge.s32.totalorder %s1078_s12, 1  ;;  %s1078_s12 = sphi %s1100_s12, %s13_s12  }
   0x2   : > { %p138_p1 = scmp.lt.s32.totalorder %s1078_s12, 3 }
   0x4   : > { %p139_p2 = pnand %p780_p0, %p138_p1 }
   0x5   : > { %v1053_v0 = vld [vmem:[%s1223_s1] sm:$0xff] (!%p139_p2)   ;;  %s781_s16 = sshll.u32 (!%p139_p2), %s776_s13, 5  ;;  %v1054_v1 = vld [vmem:[%s1223_s1 + $0x8] sm:$0xff] (!%p139_p2)   ;;  %v1055_v2 = vld [vmem:[%s1223_s1 + $0x10] sm:$0xff] (!%p139_p2)   ;;  %vm318_vm0 = vcmask (!%p139_p2), 392192  }
   0x6   : > { %142 = sbr.rel (%p139_p2) target bundleno = 265 (0x109), region = 32  ;;  %p163_p3 = scmp.lt.s32.totalorder (!%p139_p2), %s781_s16, 63  ;;  %1001 = vmatprep.subr.bf16.mxu0 (!%p139_p2), %v1053_v0  ;;  %1039 = vmatprep.subr.bf16.mxu1 (!%p139_p2), %v1053_v0  ;;  %v1162_v19 = vld [vmem:[%s1224_s2] ss:$0 sm:$0xff] (!%p139_p2) }
   0x7   : > { %1002 = vmatpush3.bf16.msra.mxu0 (!%p139_p2), %v1053_v0  ;;  %1042 = vmatpush3.bf16.msra.mxu1 (!%p139_p2), %v1053_v0 }
   0x8   : > { %1003 = vmatprep.subr.bf16.mxu0 (!%p139_p2), %v1054_v1  ;;  %1040 = vmatprep.subr.bf16.mxu1 (!%p139_p2), %v1054_v1 }
   0xb   : > { %1004 = vmatpush3.bf16.msra.mxu0 (!%p139_p2), %v1054_v1  ;;  %1043 = vmatpush3.bf16.msra.mxu1 (!%p139_p2), %v1054_v1 }
   0xc   : > { %1005 = vmatprep.subr.bf16.mxu0 (!%p139_p2), %v1055_v2  ;;  %1041 = vmatprep.subr.bf16.mxu1 (!%p139_p2), %v1055_v2 }
   0xd   : > { %s1227_s16 = smov (!%p163_p3, %s781_s16), 63 }
   0xe   : > { %s782_s21 = sshll.u32 %s1227_s16, 2 }
   0xf   : > { %s1125_s24 = scalar_lea.vmem %s1222_s0, %s782_s21  ;;  %1006 = vmatpush3.bf16.msra.mxu0 %v1055_v2  ;;  %1044 = vmatpush3.bf16.msra.mxu1 %v1055_v2  ;;  %s1177_s29 = scalar_lea.vmem %s1225_s3, %s782_s21 }
  0x10   : > { %v1056_v3 = vld [vmem:[%s1125_s24] sm:$0xff]   ;;  %v1058_v5 = vld [vmem:[%s1125_s24 + $0x8] sm:$0xff]   ;;  %v1060_v7 = vld [vmem:[%s1125_s24 + $0x10] sm:$0xff]  }
  0x11   : > { %v1057_v4 = vld [vmem:[%s1125_s24 + $0x40] sm:$0xff]   ;;  %1007 = vmatprep.mubr.msk.bf16.mxu0 %vm318_vm0, %v1056_v3  ;;  %v1059_v6 = vld [vmem:[%s1125_s24 + $0x48] sm:$0xff]   ;;  %v1061_v8 = vld [vmem:[%s1125_s24 + $0x50] sm:$0xff]  }
  0x12   : > { %1023 = vmatprep.mubr.msk.bf16.mxu1 %vm318_vm0, %v1057_v4  ;;  %1008 = vmatmul.mubr.msk.bf16.vlgmr.msra.gmra.mrb[0].mxu0 %vm318_vm0, %v1058_v5  ;;  %v1062_v9 = vld [vmem:[%s1125_s24 + $0x18] sm:$0xff]   ;;  %v1064_v11 = vld [vmem:[%s1125_s24 + $0x20] sm:$0xff]   ;;  %v1066_v13 = vld [vmem:[%s1125_s24 + $0x28] sm:$0xff]  }
  0x13   : > { %1024 = vmatmul.mubr.msk.bf16.vlgmr.msra.gmra.mrb[0].mxu1 %vm318_vm0, %v1059_v6  ;;  %1011 = vmatprep.mubr.msk.bf16.mxu0 %vm318_vm0, %v1060_v7  ;;  %v1063_v10 = vld [vmem:[%s1125_s24 + $0x58] sm:$0xff]   ;;  %v1065_v12 = vld [vmem:[%s1125_s24 + $0x60] sm:$0xff]   ;;  %v1067_v14 = vld [vmem:[%s1125_s24 + $0x68] sm:$0xff]  }
  0x14   : > { %1027 = vmatprep.mubr.msk.bf16.mxu1 %vm318_vm0, %v1061_v8  ;;  %v1068_v15 = vld [vmem:[%s1125_s24 + $0x30] sm:$0xff]   ;;  %v1070_v17 = vld [vmem:[%s1125_s24 + $0x38] sm:$0xff]  }
  0x15   : > { %v1069_v16 = vld [vmem:[%s1125_s24 + $0x70] sm:$0xff]   ;;  %v1071_v18 = vld [vmem:[%s1125_s24 + $0x78] sm:$0xff]  }
  0x1a   : > { %1012 = vmatmul.mubr.msk.bf16.gmra.mrb[4].mxu0 %vm318_vm0, %v1062_v9 }
  0x1b   : > { %1028 = vmatmul.mubr.msk.bf16.gmra.mrb[4].mxu1 %vm318_vm0, %v1063_v10  ;;  %1015 = vmatprep.mubr.msk.bf16.mxu0 %vm318_vm0, %v1064_v11 }
  0x1c   : > { %1031 = vmatprep.mubr.msk.bf16.mxu1 %vm318_vm0, %v1065_v12 }
  0x22   : > { %1016 = vmatmul.mubr.msk.bf16.gmra.mrb[8].mxu0 %vm318_vm0, %v1066_v13 }
  0x23   : > { %1032 = vmatmul.mubr.msk.bf16.gmra.mrb[8].mxu1 %vm318_vm0, %v1067_v14  ;;  %1019 = vmatprep.mubr.msk.bf16.mxu0 %vm318_vm0, %v1068_v15 }
  0x24   : > { %1035 = vmatprep.mubr.msk.bf16.mxu1 %vm318_vm0, %v1069_v16 }
  0x2a   : > { %1020 = vmatmul.mubr.msk.bf16.gmra.mrb[12].mxu0 %vm318_vm0, %v1070_v17 }
  0x2b   : > { %1036 = vmatmul.mubr.msk.bf16.gmra.mrb[12].mxu1 %vm318_vm0, %v1071_v18 }
  0xe5   : > { %v1009_v20 = vpop.f32.mrb[0].mxu0 }
  0xe6   : > { %v1025_v21 = vpop.f32.mrb[0].mxu1  ;;  %v410_v22 = vadd.f32 %v1009_v20, %v1162_v19  ;;  %v401_v24 = vpop.f32.mrb[1].mxu0 }
  0xe7   : > { %v474_v23 = vadd.f32 %v1025_v21, %v1162_v19  ;;  %v465_v25 = vpop.f32.mrb[1].mxu1  ;;  %v402_v26 = vadd.f32 %v1162_v19, %v401_v24  ;;  %v1010_v28 = vpop.f32.mrb[2].mxu0 }
  0xe8   : > { %v466_v27 = vadd.f32 %v1162_v19, %v465_v25  ;;  %v1026_v29 = vpop.f32.mrb[2].mxu1  ;;  %v413_v30 = vadd.f32 %v1010_v28, %v1162_v19  ;;  %v404_v32 = vpop.f32.mrb[3].mxu0  ;;  %v530_v36 = vmax.f32 %v410_v22, 0.0 }
  0xe9   : > { %v477_v31 = vadd.f32 %v1026_v29, %v1162_v19  ;;  %v468_v33 = vpop.f32.mrb[3].mxu1  ;;  %v405_v34 = vadd.f32 %v1162_v19, %v404_v32  ;;  %v546_v37 = vmax.f32 %v474_v23, 0.0  ;;  %v528_v40 = vmax.f32 %v402_v26, 0.0 }
  0xea   : > { %v469_v35 = vadd.f32 %v1162_v19, %v468_v33  ;;  %v531_v38 = vmax.f32 %v413_v30, 0.0  ;;  %v544_v41 = vmax.f32 %v466_v27, 0.0 }
  0xeb   : > { %v547_v39 = vmax.f32 %v477_v31, 0.0  ;;  %v529_v42 = vmax.f32 %v405_v34, 0.0 }
  0xec   : > { %v545_v43 = vmax.f32 %v469_v35, 0.0  ;;  %v895_v44 = vpack.c.bf16 %v531_v38, %v530_v36 }
  0xed   : > { %v935_v45 = vpack.c.bf16 %v547_v39, %v546_v37  ;;  %v890_v46 = vpack.c.bf16 %v529_v42, %v528_v40  ;;  %v1013_v48 = vpop.f32.mrb[4].mxu0 }
  0xee   : > { %v930_v47 = vpack.c.bf16 %v545_v43, %v544_v41  ;;  %v1029_v49 = vpop.f32.mrb[4].mxu1  ;;  %967 = vst [vmem:[%s1177_s29 + $0x8] sm:$0xff] %v895_v44   ;;  %v426_v50 = vadd.f32 %v1013_v48, %v1162_v19  ;;  %v417_v52 = vpop.f32.mrb[5].mxu0 }
  0xef   : > { %975 = vst [vmem:[%s1177_s29 + $0x48] sm:$0xff] %v935_v45   ;;  %v490_v51 = vadd.f32 %v1029_v49, %v1162_v19  ;;  %v481_v53 = vpop.f32.mrb[5].mxu1  ;;  %891 = vst [vmem:[%s1177_s29] sm:$0xff] %v890_v46   ;;  %v418_v54 = vadd.f32 %v1162_v19, %v417_v52  ;;  %v1014_v56 = vpop.f32.mrb[6].mxu0 }
  0xf0   : > { %974 = vst [vmem:[%s1177_s29 + $0x40] sm:$0xff] %v930_v47   ;;  %v482_v55 = vadd.f32 %v1162_v19, %v481_v53  ;;  %v1030_v57 = vpop.f32.mrb[6].mxu1  ;;  %v429_v58 = vadd.f32 %v1014_v56, %v1162_v19  ;;  %v420_v60 = vpop.f32.mrb[7].mxu0  ;;  %v534_v0 = vmax.f32 %v426_v50, 0.0 }
  0xf1   : > { %v493_v59 = vadd.f32 %v1030_v57, %v1162_v19  ;;  %v484_v61 = vpop.f32.mrb[7].mxu1  ;;  %v421_v62 = vadd.f32 %v1162_v19, %v420_v60  ;;  %v550_v1 = vmax.f32 %v490_v51, 0.0  ;;  %v532_v4 = vmax.f32 %v418_v54, 0.0 }
  0xf2   : > { %v485_v63 = vadd.f32 %v1162_v19, %v484_v61  ;;  %v535_v2 = vmax.f32 %v429_v58, 0.0  ;;  %v548_v5 = vmax.f32 %v482_v55, 0.0 }
  0xf3   : > { %v551_v3 = vmax.f32 %v493_v59, 0.0  ;;  %v533_v6 = vmax.f32 %v421_v62, 0.0 }
  0xf4   : > { %v549_v7 = vmax.f32 %v485_v63, 0.0  ;;  %v905_v8 = vpack.c.bf16 %v535_v2, %v534_v0 }
  0xf5   : > { %v945_v9 = vpack.c.bf16 %v551_v3, %v550_v1  ;;  %v900_v10 = vpack.c.bf16 %v533_v6, %v532_v4  ;;  %v1017_v12 = vpop.f32.mrb[8].mxu0 }
  0xf6   : > { %v940_v11 = vpack.c.bf16 %v549_v7, %v548_v5  ;;  %v1033_v13 = vpop.f32.mrb[8].mxu1  ;;  %969 = vst [vmem:[%s1177_s29 + $0x18] sm:$0xff] %v905_v8   ;;  %v442_v14 = vadd.f32 %v1017_v12, %v1162_v19  ;;  %v433_v16 = vpop.f32.mrb[9].mxu0 }
  0xf7   : > { %977 = vst [vmem:[%s1177_s29 + $0x58] sm:$0xff] %v945_v9   ;;  %v506_v15 = vadd.f32 %v1033_v13, %v1162_v19  ;;  %v497_v17 = vpop.f32.mrb[9].mxu1  ;;  %968 = vst [vmem:[%s1177_s29 + $0x10] sm:$0xff] %v900_v10   ;;  %v434_v18 = vadd.f32 %v1162_v19, %v433_v16  ;;  %v1018_v21 = vpop.f32.mrb[10].mxu0 }
  0xf8   : > { %976 = vst [vmem:[%s1177_s29 + $0x50] sm:$0xff] %v940_v11   ;;  %v498_v20 = vadd.f32 %v1162_v19, %v497_v17  ;;  %v1034_v22 = vpop.f32.mrb[10].mxu1  ;;  %v445_v23 = vadd.f32 %v1018_v21, %v1162_v19  ;;  %v436_v25 = vpop.f32.mrb[11].mxu0  ;;  %v538_v29 = vmax.f32 %v442_v14, 0.0 }
  0xf9   : > { %v509_v24 = vadd.f32 %v1034_v22, %v1162_v19  ;;  %v500_v26 = vpop.f32.mrb[11].mxu1  ;;  %v437_v27 = vadd.f32 %v1162_v19, %v436_v25  ;;  %v554_v30 = vmax.f32 %v506_v15, 0.0  ;;  %v536_v33 = vmax.f32 %v434_v18, 0.0 }
  0xfa   : > { %v501_v28 = vadd.f32 %v1162_v19, %v500_v26  ;;  %v539_v31 = vmax.f32 %v445_v23, 0.0  ;;  %v552_v34 = vmax.f32 %v498_v20, 0.0 }
  0xfb   : > { %v555_v32 = vmax.f32 %v509_v24, 0.0  ;;  %v537_v35 = vmax.f32 %v437_v27, 0.0 }
  0xfc   : > { %v553_v36 = vmax.f32 %v501_v28, 0.0  ;;  %v915_v37 = vpack.c.bf16 %v539_v31, %v538_v29 }
  0xfd   : > { %v955_v38 = vpack.c.bf16 %v555_v32, %v554_v30  ;;  %v910_v39 = vpack.c.bf16 %v537_v35, %v536_v33  ;;  %v1021_v41 = vpop.f32.mrb[12].mxu0 }
  0xfe   : > { %v950_v40 = vpack.c.bf16 %v553_v36, %v552_v34  ;;  %v1037_v42 = vpop.f32.mrb[12].mxu1  ;;  %971 = vst [vmem:[%s1177_s29 + $0x28] sm:$0xff] %v915_v37   ;;  %v458_v43 = vadd.f32 %v1021_v41, %v1162_v19  ;;  %v449_v45 = vpop.f32.mrb[13].mxu0 }
  0xff   : > { %979 = vst [vmem:[%s1177_s29 + $0x68] sm:$0xff] %v955_v38   ;;  %v522_v44 = vadd.f32 %v1037_v42, %v1162_v19  ;;  %v513_v46 = vpop.f32.mrb[13].mxu1  ;;  %970 = vst [vmem:[%s1177_s29 + $0x20] sm:$0xff] %v910_v39   ;;  %v450_v47 = vadd.f32 %v1162_v19, %v449_v45  ;;  %v1022_v49 = vpop.f32.mrb[14].mxu0 }
 0x100   : > { %978 = vst [vmem:[%s1177_s29 + $0x60] sm:$0xff] %v950_v40   ;;  %v514_v48 = vadd.f32 %v1162_v19, %v513_v46  ;;  %v1038_v50 = vpop.f32.mrb[14].mxu1  ;;  %v461_v51 = vadd.f32 %v1022_v49, %v1162_v19  ;;  %v452_v53 = vpop.f32.mrb[15].mxu0  ;;  %v542_v57 = vmax.f32 %v458_v43, 0.0 }
 0x101   : > { %v525_v52 = vadd.f32 %v1038_v50, %v1162_v19  ;;  %v516_v54 = vpop.f32.mrb[15].mxu1  ;;  %v453_v55 = vadd.f32 %v1162_v19, %v452_v53  ;;  %v558_v58 = vmax.f32 %v522_v44, 0.0  ;;  %v540_v61 = vmax.f32 %v450_v47, 0.0 }
 0x102   : > { %v517_v56 = vadd.f32 %v1162_v19, %v516_v54  ;;  %v543_v59 = vmax.f32 %v461_v51, 0.0  ;;  %v556_v62 = vmax.f32 %v514_v48, 0.0 }
 0x103   : > { %v559_v60 = vmax.f32 %v525_v52, 0.0  ;;  %v541_v63 = vmax.f32 %v453_v55, 0.0 }
 0x104   : > { %v557_v0 = vmax.f32 %v517_v56, 0.0  ;;  %v925_v1 = vpack.c.bf16 %v543_v59, %v542_v57 }
 0x105   : > { %v965_v2 = vpack.c.bf16 %v559_v60, %v558_v58  ;;  %v920_v3 = vpack.c.bf16 %v541_v63, %v540_v61 }
 0x106   : > { %v960_v4 = vpack.c.bf16 %v557_v0, %v556_v62  ;;  %973 = vst [vmem:[%s1177_s29 + $0x38] sm:$0xff] %v925_v1  }
 0x107   : > { %981 = vst [vmem:[%s1177_s29 + $0x78] sm:$0xff] %v965_v2   ;;  %972 = vst [vmem:[%s1177_s29 + $0x30] sm:$0xff] %v920_v3  }
 0x108   : > { %980 = vst [vmem:[%s1177_s29 + $0x70] sm:$0xff] %v960_v4  }
 0x109 PF: > { %s13_s12 = sadd.s32 1, %s1078_s12  }
 0x10a   : > { %p10_p4 = scmp.ge.s32.totalorder %s13_s12, 4  }
 0x10c   :  { %12 = sbr.rel (!%p10_p4) target bundleno = 1 (0x1), region = 62 }

// kernel: beta_vae_forward.10
= control target key start
LH: loop header
LB: loop body
LE: loop exit
PB: predicated region body
PF: predicated region fallthrough
CT: control target
= control target key end

     0   :  { %s1373_s1 = inlined_call_operand.vmem [shape: bf16[512,128], index: 1, kind: input, shape index: {}]   ;;  %s1374_s0 = inlined_call_operand.vmem [shape: bf16[128,512], index: 0, kind: input, shape index: {}]   ;;  %s1375_s2 = inlined_call_operand.vmem [shape: f32[1,128], index: 2, kind: input, shape index: {}]   ;;  %s1376_s3 = inlined_call_operand.vmem [shape: bf16[128,128], index: 3, kind: output, shape index: {}]  }
   0x1   :  { %v1036_v0 = vld [vmem:[%s1373_s1 + $0x40] sm:$0xff]   ;;  %v1040_v4 = vld [vmem:[%s1373_s1 + $0x48] sm:$0xff]   ;;  %v1044_v8 = vld [vmem:[%s1373_s1 + $0x50] sm:$0xff]  }
   0x2   :  { %v1037_v1 = vld [vmem:[%s1373_s1 + $0xc0] sm:$0xff]   ;;  %908 = vmatprep.subr.bf16.mxu0 %v1036_v0  ;;  %v1041_v5 = vld [vmem:[%s1373_s1 + $0xc8] sm:$0xff]   ;;  %v1045_v9 = vld [vmem:[%s1373_s1 + $0xd0] sm:$0xff]  }
   0x3   :  { %v1038_v2 = vld [vmem:[%s1373_s1] sm:$0xff]   ;;  %972 = vmatprep.subr.bf16.mxu1 %v1037_v1  ;;  %v1042_v6 = vld [vmem:[%s1373_s1 + $0x8] sm:$0xff]   ;;  %v1046_v10 = vld [vmem:[%s1373_s1 + $0x10] sm:$0xff]  }
   0x4   :  { %v1039_v3 = vld [vmem:[%s1373_s1 + $0x80] sm:$0xff]   ;;  %909 = vmatpush3.bf16.msra.mxu0 %v1038_v2  ;;  %v1043_v7 = vld [vmem:[%s1373_s1 + $0x88] sm:$0xff]   ;;  %v1047_v11 = vld [vmem:[%s1373_s1 + $0x90] sm:$0xff]  }
   0x5   :  { %973 = vmatpush3.bf16.msra.mxu1 %v1039_v3  ;;  %910 = vmatprep.subr.bf16.mxu0 %v1040_v4  ;;  %v1048_v12 = vld [vmem:[%s1373_s1 + $0x58] sm:$0xff]   ;;  %v1052_v16 = vld [vmem:[%s1373_s1 + $0x60] sm:$0xff]   ;;  %v1056_v20 = vld [vmem:[%s1373_s1 + $0x68] sm:$0xff]  }
   0x6   :  { %974 = vmatprep.subr.bf16.mxu1 %v1041_v5  ;;  %v1049_v13 = vld [vmem:[%s1373_s1 + $0xd8] sm:$0xff]   ;;  %v1053_v17 = vld [vmem:[%s1373_s1 + $0xe0] sm:$0xff]   ;;  %v1057_v21 = vld [vmem:[%s1373_s1 + $0xe8] sm:$0xff]  }
   0x7   :  { %v1050_v14 = vld [vmem:[%s1373_s1 + $0x18] sm:$0xff]   ;;  %v1054_v18 = vld [vmem:[%s1373_s1 + $0x20] sm:$0xff]   ;;  %v1058_v22 = vld [vmem:[%s1373_s1 + $0x28] sm:$0xff]  }
   0x8   :  { %911 = vmatpush3.bf16.msra.mxu0 %v1042_v6  ;;  %v1051_v15 = vld [vmem:[%s1373_s1 + $0x98] sm:$0xff]   ;;  %v1055_v19 = vld [vmem:[%s1373_s1 + $0xa0] sm:$0xff]   ;;  %v1059_v23 = vld [vmem:[%s1373_s1 + $0xa8] sm:$0xff]  }
   0x9   :  { %975 = vmatpush3.bf16.msra.mxu1 %v1043_v7  ;;  %912 = vmatprep.subr.bf16.mxu0 %v1044_v8  ;;  %v1060_v24 = vld [vmem:[%s1373_s1 + $0x70] sm:$0xff]   ;;  %v1064_v28 = vld [vmem:[%s1373_s1 + $0x78] sm:$0xff]   ;;  %v1331_v2 = vld [vmem:[%s1375_s2] ss:$0 sm:$0xff] }
   0xa   :  { %976 = vmatprep.subr.bf16.mxu1 %v1045_v9  ;;  %v1061_v25 = vld [vmem:[%s1373_s1 + $0xf0] sm:$0xff]   ;;  %v1065_v29 = vld [vmem:[%s1373_s1 + $0xf8] sm:$0xff]  }
   0xb   :  { %v1062_v26 = vld [vmem:[%s1373_s1 + $0x30] sm:$0xff]   ;;  %v1066_v30 = vld [vmem:[%s1373_s1 + $0x38] sm:$0xff]  }
   0xc   :  { %913 = vmatpush3.bf16.msra.mxu0 %v1046_v10  ;;  %v1063_v27 = vld [vmem:[%s1373_s1 + $0xb0] sm:$0xff]   ;;  %v1067_v31 = vld [vmem:[%s1373_s1 + $0xb8] sm:$0xff]  }
   0xd   :  { %977 = vmatpush3.bf16.msra.mxu1 %v1047_v11  ;;  %914 = vmatprep.subr.bf16.mxu0 %v1048_v12  ;;  %v1068_v32 = vld [vmem:[%s1374_s0] ss:$16 sps:$4 sm:$0xff]   ;;  %v1070_v33 = vld [vmem:[%s1374_s0 + $0x4] ss:$16 sps:$4 sm:$0xff]   ;;  %v1071_v34 = vld [vmem:[%s1374_s0 + $0x8] ss:$16 sps:$4 sm:$0xff]  }
   0xe   :  { %978 = vmatprep.subr.bf16.mxu1 %v1049_v13  ;;  %v1073_v35 = vld [vmem:[%s1374_s0 + $0xc] ss:$16 sps:$4 sm:$0xff]   ;;  %502 = vmatprep.mubr.bf16.mxu0 %v1070_v33  ;;  %v1074_v36 = vld [vmem:[%s1374_s0 + $0x24] ss:$16 sps:$4 sm:$0xff]   ;;  %v1078_v38 = vld [vmem:[%s1374_s0 + $0x20] ss:$16 sps:$4 sm:$0xff]  }
   0xf   :  { %599 = vmatprep.mubr.bf16.mxu1 %v1073_v35  ;;  %v1076_v37 = vld [vmem:[%s1374_s0 + $0x2c] ss:$16 sps:$4 sm:$0xff]   ;;  %v1079_v39 = vld [vmem:[%s1374_s0 + $0x28] ss:$16 sps:$4 sm:$0xff]   ;;  %v1080_v40 = vld [vmem:[%s1374_s0 + $0x44] ss:$16 sps:$4 sm:$0xff]  }
  0x10   :  { %915 = vmatpush3.bf16.msra.mxu0 %v1050_v14  ;;  %v1082_v41 = vld [vmem:[%s1374_s0 + $0x4c] ss:$16 sps:$4 sm:$0xff]   ;;  %v1084_v42 = vld [vmem:[%s1374_s0 + $0x40] ss:$16 sps:$4 sm:$0xff]   ;;  %v1085_v43 = vld [vmem:[%s1374_s0 + $0x48] ss:$16 sps:$4 sm:$0xff]  }
  0x11   :  { %979 = vmatpush3.bf16.msra.mxu1 %v1051_v15  ;;  %916 = vmatprep.subr.bf16.mxu0 %v1052_v16  ;;  %v1086_v44 = vld [vmem:[%s1374_s0 + $0x64] ss:$16 sps:$4 sm:$0xff]   ;;  %v1088_v45 = vld [vmem:[%s1374_s0 + $0x6c] ss:$16 sps:$4 sm:$0xff]   ;;  %v1090_v46 = vld [vmem:[%s1374_s0 + $0x60] ss:$16 sps:$4 sm:$0xff]  }
  0x12   :  { %980 = vmatprep.subr.bf16.mxu1 %v1053_v17  ;;  %v1091_v47 = vld [vmem:[%s1374_s0 + $0x68] ss:$16 sps:$4 sm:$0xff]   ;;  %v1092_v48 = vld [vmem:[%s1374_s0 + $0x84] ss:$16 sps:$4 sm:$0xff]   ;;  %v1094_v49 = vld [vmem:[%s1374_s0 + $0x8c] ss:$16 sps:$4 sm:$0xff]  }
  0x13   :  { %v1096_v50 = vld [vmem:[%s1374_s0 + $0x80] ss:$16 sps:$4 sm:$0xff]   ;;  %v1097_v51 = vld [vmem:[%s1374_s0 + $0x88] ss:$16 sps:$4 sm:$0xff]   ;;  %v1098_v52 = vld [vmem:[%s1374_s0 + $0xa4] ss:$16 sps:$4 sm:$0xff]  }
  0x14   :  { %917 = vmatpush3.bf16.msra.mxu0 %v1054_v18  ;;  %v1100_v53 = vld [vmem:[%s1374_s0 + $0xac] ss:$16 sps:$4 sm:$0xff]   ;;  %v1102_v54 = vld [vmem:[%s1374_s0 + $0xa0] ss:$16 sps:$4 sm:$0xff]   ;;  %v1103_v55 = vld [vmem:[%s1374_s0 + $0xa8] ss:$16 sps:$4 sm:$0xff]  }
  0x15   :  { %981 = vmatpush3.bf16.msra.mxu1 %v1055_v19  ;;  %918 = vmatprep.subr.bf16.mxu0 %v1056_v20  ;;  %v1104_v56 = vld [vmem:[%s1374_s0 + $0xc4] ss:$16 sps:$4 sm:$0xff]   ;;  %v1106_v57 = vld [vmem:[%s1374_s0 + $0xcc] ss:$16 sps:$4 sm:$0xff]   ;;  %v1108_v58 = vld [vmem:[%s1374_s0 + $0xc0] ss:$16 sps:$4 sm:$0xff]  }
  0x16   :  { %982 = vmatprep.subr.bf16.mxu1 %v1057_v21  ;;  %v1109_v59 = vld [vmem:[%s1374_s0 + $0xc8] ss:$16 sps:$4 sm:$0xff]   ;;  %v1110_v60 = vld [vmem:[%s1374_s0 + $0xe4] ss:$16 sps:$4 sm:$0xff]   ;;  %v1112_v61 = vld [vmem:[%s1374_s0 + $0xec] ss:$16 sps:$4 sm:$0xff]  }
  0x17   :  { %v1114_v62 = vld [vmem:[%s1374_s0 + $0xe0] ss:$16 sps:$4 sm:$0xff]   ;;  %v1115_v63 = vld [vmem:[%s1374_s0 + $0xe8] ss:$16 sps:$4 sm:$0xff]  }
  0x18   :  { %919 = vmatpush3.bf16.msra.mxu0 %v1058_v22 }
  0x19   :  { %983 = vmatpush3.bf16.msra.mxu1 %v1059_v23  ;;  %920 = vmatprep.subr.bf16.mxu0 %v1060_v24 }
  0x1a   :  { %984 = vmatprep.subr.bf16.mxu1 %v1061_v25 }
  0x1c   :  { %921 = vmatpush3.bf16.msra.mxu0 %v1062_v26 }
  0x1d   :  { %985 = vmatpush3.bf16.msra.mxu1 %v1063_v27  ;;  %922 = vmatprep.subr.bf16.mxu0 %v1064_v28 }
  0x1e   :  { %986 = vmatprep.subr.bf16.mxu1 %v1065_v29 }
  0x20   :  { %923 = vmatpush3.bf16.msra.mxu0 %v1066_v30 }
  0x21   :  { %987 = vmatpush3.bf16.msra.mxu1 %v1067_v31 }
  0x23   :  { %503 = vmatmul.mubr.bf16.vlgmr.msra.gmra.mrb[0].mxu0 %v1068_v32 }
  0x24   :  { %600 = vmatmul.mubr.bf16.vlgmr.msra.gmra.mrb[0].mxu1 %v1071_v34  ;;  %510 = vmatprep.mubr.bf16.mxu0 %v1074_v36 }
  0x25   :  { %607 = vmatprep.mubr.bf16.mxu1 %v1076_v37 }
  0x2b   :  { %511 = vmatmul.mubr.bf16.gmra.mrb[4].mxu0 %v1078_v38 }
  0x2c   :  { %608 = vmatmul.mubr.bf16.gmra.mrb[4].mxu1 %v1079_v39  ;;  %518 = vmatprep.mubr.bf16.mxu0 %v1080_v40 }
  0x2d   :  { %615 = vmatprep.mubr.bf16.mxu1 %v1082_v41 }
  0x33   :  { %519 = vmatmul.mubr.bf16.gmra.mrb[8].mxu0 %v1084_v42 }
  0x34   :  { %616 = vmatmul.mubr.bf16.gmra.mrb[8].mxu1 %v1085_v43  ;;  %526 = vmatprep.mubr.bf16.mxu0 %v1086_v44 }
  0x35   :  { %623 = vmatprep.mubr.bf16.mxu1 %v1088_v45 }
  0x3b   :  { %527 = vmatmul.mubr.bf16.gmra.mrb[12].mxu0 %v1090_v46 }
  0x3c   :  { %624 = vmatmul.mubr.bf16.gmra.mrb[12].mxu1 %v1091_v47  ;;  %534 = vmatprep.mubr.bf16.mxu0 %v1092_v48 }
  0x3d   :  { %631 = vmatprep.mubr.bf16.mxu1 %v1094_v49 }
  0x43   :  { %535 = vmatmul.mubr.bf16.gmra.mrb[16].mxu0 %v1096_v50 }
  0x44   :  { %632 = vmatmul.mubr.bf16.gmra.mrb[16].mxu1 %v1097_v51  ;;  %542 = vmatprep.mubr.bf16.mxu0 %v1098_v52 }
  0x45   :  { %639 = vmatprep.mubr.bf16.mxu1 %v1100_v53 }
  0x4b   :  { %543 = vmatmul.mubr.bf16.gmra.mrb[20].mxu0 %v1102_v54 }
  0x4c   :  { %640 = vmatmul.mubr.bf16.gmra.mrb[20].mxu1 %v1103_v55  ;;  %550 = vmatprep.mubr.bf16.mxu0 %v1104_v56 }
  0x4d   :  { %647 = vmatprep.mubr.bf16.mxu1 %v1106_v57 }
  0x53   :  { %551 = vmatmul.mubr.bf16.gmra.mrb[24].mxu0 %v1108_v58 }
  0x54   :  { %648 = vmatmul.mubr.bf16.gmra.mrb[24].mxu1 %v1109_v59  ;;  %558 = vmatprep.mubr.bf16.mxu0 %v1110_v60 }
  0x55   :  { %655 = vmatprep.mubr.bf16.mxu1 %v1112_v61 }
  0x5b   :  { %559 = vmatmul.mubr.bf16.gmra.mrb[28].mxu0 %v1114_v62 }
  0x5c   :  { %656 = vmatmul.mubr.bf16.gmra.mrb[28].mxu1 %v1115_v63 }
  0xf6   :  { %v924_v0 = vpop.f32.mrb[0].mxu0 }
  0xf7   :  { %v988_v1 = vpop.f32.mrb[0].mxu1  ;;  %v925_v3 = vpop.f32.mrb[1].mxu0 }
  0xf8   :  { %v926_v4 = vadd.f32 %v925_v3, %v924_v0  ;;  %v989_v5 = vpop.f32.mrb[1].mxu1  ;;  %v927_v6 = vpop.f32.mrb[2].mxu0 }
  0xf9   :  { %v990_v7 = vadd.f32 %v989_v5, %v988_v1  ;;  %v991_v8 = vpop.f32.mrb[2].mxu1  ;;  %v928_v9 = vpop.f32.mrb[3].mxu0 }
  0xfa   :  { %v505_v10 = vadd.f32 %v926_v4, %v1331_v2  ;;  %v929_v11 = vadd.f32 %v928_v9, %v927_v6  ;;  %v992_v12 = vpop.f32.mrb[3].mxu1 }
  0xfb   :  { %v993_v13 = vadd.f32 %v992_v12, %v991_v8 }
  0xfc   :  { %v602_v14 = vadd.f32 %v990_v7, %v505_v10  ;;  %v508_v15 = vadd.f32 %v929_v11, %v1331_v2 }
  0xfe   :  { %v605_v16 = vadd.f32 %v993_v13, %v508_v15  ;;  %v930_v17 = vpop.f32.mrb[4].mxu0  ;;  %v664_v20 = vmax.f32 %v602_v14, 0.0 }
  0xff   :  { %v994_v18 = vpop.f32.mrb[4].mxu1  ;;  %v931_v19 = vpop.f32.mrb[5].mxu0 }
 0x100   :  { %v665_v21 = vmax.f32 %v605_v16, 0.0  ;;  %v932_v22 = vadd.f32 %v931_v19, %v930_v17  ;;  %v995_v23 = vpop.f32.mrb[5].mxu1  ;;  %v933_v24 = vpop.f32.mrb[6].mxu0 }
 0x101   :  { %v996_v25 = vadd.f32 %v995_v23, %v994_v18  ;;  %v997_v26 = vpop.f32.mrb[6].mxu1  ;;  %v934_v27 = vpop.f32.mrb[7].mxu0 }
 0x102   :  { %v864_v28 = vpack.c.bf16 %v665_v21, %v664_v20  ;;  %v513_v29 = vadd.f32 %v932_v22, %v1331_v2  ;;  %v935_v30 = vadd.f32 %v934_v27, %v933_v24  ;;  %v998_v31 = vpop.f32.mrb[7].mxu1 }
 0x103   :  { %v999_v32 = vadd.f32 %v998_v31, %v997_v26 }
 0x104   :  { %865 = vst [vmem:[%s1376_s3] sm:$0xff] %v864_v28   ;;  %v610_v33 = vadd.f32 %v996_v25, %v513_v29  ;;  %v516_v34 = vadd.f32 %v935_v30, %v1331_v2 }
 0x106   :  { %v613_v35 = vadd.f32 %v999_v32, %v516_v34  ;;  %v936_v36 = vpop.f32.mrb[8].mxu0  ;;  %v666_v39 = vmax.f32 %v610_v33, 0.0 }
 0x107   :  { %v1000_v37 = vpop.f32.mrb[8].mxu1  ;;  %v937_v38 = vpop.f32.mrb[9].mxu0 }
 0x108   :  { %v667_v40 = vmax.f32 %v613_v35, 0.0  ;;  %v938_v41 = vadd.f32 %v937_v38, %v936_v36  ;;  %v1001_v42 = vpop.f32.mrb[9].mxu1  ;;  %v939_v43 = vpop.f32.mrb[10].mxu0 }
 0x109   :  { %v1002_v44 = vadd.f32 %v1001_v42, %v1000_v37  ;;  %v1003_v45 = vpop.f32.mrb[10].mxu1  ;;  %v940_v46 = vpop.f32.mrb[11].mxu0 }
 0x10a   :  { %v869_v47 = vpack.c.bf16 %v667_v40, %v666_v39  ;;  %v521_v48 = vadd.f32 %v938_v41, %v1331_v2  ;;  %v941_v49 = vadd.f32 %v940_v46, %v939_v43  ;;  %v1004_v50 = vpop.f32.mrb[11].mxu1 }
 0x10b   :  { %v1005_v51 = vadd.f32 %v1004_v50, %v1003_v45 }
 0x10c   :  { %901 = vst [vmem:[%s1376_s3 + $0x8] sm:$0xff] %v869_v47   ;;  %v618_v52 = vadd.f32 %v1002_v44, %v521_v48  ;;  %v524_v53 = vadd.f32 %v941_v49, %v1331_v2 }
 0x10e   :  { %v621_v54 = vadd.f32 %v1005_v51, %v524_v53  ;;  %v942_v55 = vpop.f32.mrb[12].mxu0  ;;  %v668_v58 = vmax.f32 %v618_v52, 0.0 }
 0x10f   :  { %v1006_v56 = vpop.f32.mrb[12].mxu1  ;;  %v943_v57 = vpop.f32.mrb[13].mxu0 }
 0x110   :  { %v669_v59 = vmax.f32 %v621_v54, 0.0  ;;  %v944_v60 = vadd.f32 %v943_v57, %v942_v55  ;;  %v1007_v61 = vpop.f32.mrb[13].mxu1  ;;  %v945_v62 = vpop.f32.mrb[14].mxu0 }
 0x111   :  { %v1008_v63 = vadd.f32 %v1007_v61, %v1006_v56  ;;  %v1009_v0 = vpop.f32.mrb[14].mxu1  ;;  %v946_v1 = vpop.f32.mrb[15].mxu0 }
 0x112   :  { %v874_v3 = vpack.c.bf16 %v669_v59, %v668_v58  ;;  %v529_v4 = vadd.f32 %v944_v60, %v1331_v2  ;;  %v947_v5 = vadd.f32 %v946_v1, %v945_v62  ;;  %v1010_v6 = vpop.f32.mrb[15].mxu1 }
 0x113   :  { %v1011_v7 = vadd.f32 %v1010_v6, %v1009_v0 }
 0x114   :  { %902 = vst [vmem:[%s1376_s3 + $0x10] sm:$0xff] %v874_v3   ;;  %v626_v8 = vadd.f32 %v1008_v63, %v529_v4  ;;  %v532_v9 = vadd.f32 %v947_v5, %v1331_v2 }
 0x116   :  { %v629_v10 = vadd.f32 %v1011_v7, %v532_v9  ;;  %v948_v11 = vpop.f32.mrb[16].mxu0  ;;  %v670_v14 = vmax.f32 %v626_v8, 0.0 }
 0x117   :  { %v1012_v12 = vpop.f32.mrb[16].mxu1  ;;  %v949_v13 = vpop.f32.mrb[17].mxu0 }
 0x118   :  { %v671_v15 = vmax.f32 %v629_v10, 0.0  ;;  %v950_v16 = vadd.f32 %v949_v13, %v948_v11  ;;  %v1013_v17 = vpop.f32.mrb[17].mxu1  ;;  %v951_v18 = vpop.f32.mrb[18].mxu0 }
 0x119   :  { %v1014_v19 = vadd.f32 %v1013_v17, %v1012_v12  ;;  %v1015_v20 = vpop.f32.mrb[18].mxu1  ;;  %v952_v21 = vpop.f32.mrb[19].mxu0 }
 0x11a   :  { %v879_v22 = vpack.c.bf16 %v671_v15, %v670_v14  ;;  %v537_v23 = vadd.f32 %v950_v16, %v1331_v2  ;;  %v953_v24 = vadd.f32 %v952_v21, %v951_v18  ;;  %v1016_v25 = vpop.f32.mrb[19].mxu1 }
 0x11b   :  { %v1017_v26 = vadd.f32 %v1016_v25, %v1015_v20 }
 0x11c   :  { %903 = vst [vmem:[%s1376_s3 + $0x18] sm:$0xff] %v879_v22   ;;  %v634_v27 = vadd.f32 %v1014_v19, %v537_v23  ;;  %v540_v28 = vadd.f32 %v953_v24, %v1331_v2 }
 0x11e   :  { %v637_v29 = vadd.f32 %v1017_v26, %v540_v28  ;;  %v954_v30 = vpop.f32.mrb[20].mxu0  ;;  %v672_v33 = vmax.f32 %v634_v27, 0.0 }
 0x11f   :  { %v1018_v31 = vpop.f32.mrb[20].mxu1  ;;  %v955_v32 = vpop.f32.mrb[21].mxu0 }
 0x120   :  { %v673_v34 = vmax.f32 %v637_v29, 0.0  ;;  %v956_v35 = vadd.f32 %v955_v32, %v954_v30  ;;  %v1019_v36 = vpop.f32.mrb[21].mxu1  ;;  %v957_v37 = vpop.f32.mrb[22].mxu0 }
 0x121   :  { %v1020_v38 = vadd.f32 %v1019_v36, %v1018_v31  ;;  %v1021_v39 = vpop.f32.mrb[22].mxu1  ;;  %v958_v40 = vpop.f32.mrb[23].mxu0 }
 0x122   :  { %v884_v41 = vpack.c.bf16 %v673_v34, %v672_v33  ;;  %v545_v42 = vadd.f32 %v956_v35, %v1331_v2  ;;  %v959_v43 = vadd.f32 %v958_v40, %v957_v37  ;;  %v1022_v44 = vpop.f32.mrb[23].mxu1 }
 0x123   :  { %v1023_v45 = vadd.f32 %v1022_v44, %v1021_v39 }
 0x124   :  { %904 = vst [vmem:[%s1376_s3 + $0x20] sm:$0xff] %v884_v41   ;;  %v642_v46 = vadd.f32 %v1020_v38, %v545_v42  ;;  %v548_v47 = vadd.f32 %v959_v43, %v1331_v2 }
 0x126   :  { %v645_v48 = vadd.f32 %v1023_v45, %v548_v47  ;;  %v960_v49 = vpop.f32.mrb[24].mxu0  ;;  %v674_v52 = vmax.f32 %v642_v46, 0.0 }
 0x127   :  { %v1024_v50 = vpop.f32.mrb[24].mxu1  ;;  %v961_v51 = vpop.f32.mrb[25].mxu0 }
 0x128   :  { %v675_v53 = vmax.f32 %v645_v48, 0.0  ;;  %v962_v54 = vadd.f32 %v961_v51, %v960_v49  ;;  %v1025_v55 = vpop.f32.mrb[25].mxu1  ;;  %v963_v56 = vpop.f32.mrb[26].mxu0 }
 0x129   :  { %v1026_v57 = vadd.f32 %v1025_v55, %v1024_v50  ;;  %v1027_v58 = vpop.f32.mrb[26].mxu1  ;;  %v964_v59 = vpop.f32.mrb[27].mxu0 }
 0x12a   :  { %v889_v60 = vpack.c.bf16 %v675_v53, %v674_v52  ;;  %v553_v61 = vadd.f32 %v962_v54, %v1331_v2  ;;  %v965_v62 = vadd.f32 %v964_v59, %v963_v56  ;;  %v1028_v63 = vpop.f32.mrb[27].mxu1 }
 0x12b   :  { %v1029_v0 = vadd.f32 %v1028_v63, %v1027_v58 }
 0x12c   :  { %905 = vst [vmem:[%s1376_s3 + $0x28] sm:$0xff] %v889_v60   ;;  %v650_v1 = vadd.f32 %v1026_v57, %v553_v61  ;;  %v556_v3 = vadd.f32 %v965_v62, %v1331_v2 }
 0x12e   :  { %v653_v4 = vadd.f32 %v1029_v0, %v556_v3  ;;  %v966_v5 = vpop.f32.mrb[28].mxu0  ;;  %v676_v8 = vmax.f32 %v650_v1, 0.0 }
 0x12f   :  { %v1030_v6 = vpop.f32.mrb[28].mxu1  ;;  %v967_v7 = vpop.f32.mrb[29].mxu0 }
 0x130   :  { %v677_v9 = vmax.f32 %v653_v4, 0.0  ;;  %v968_v10 = vadd.f32 %v967_v7, %v966_v5  ;;  %v1031_v11 = vpop.f32.mrb[29].mxu1  ;;  %v969_v12 = vpop.f32.mrb[30].mxu0 }
 0x131   :  { %v1032_v13 = vadd.f32 %v1031_v11, %v1030_v6  ;;  %v1033_v14 = vpop.f32.mrb[30].mxu1  ;;  %v970_v15 = vpop.f32.mrb[31].mxu0 }
 0x132   :  { %v894_v16 = vpack.c.bf16 %v677_v9, %v676_v8  ;;  %v561_v17 = vadd.f32 %v968_v10, %v1331_v2  ;;  %v971_v18 = vadd.f32 %v970_v15, %v969_v12  ;;  %v1034_v19 = vpop.f32.mrb[31].mxu1 }
 0x133   :  { %v1035_v20 = vadd.f32 %v1034_v19, %v1033_v14 }
 0x134   :  { %906 = vst [vmem:[%s1376_s3 + $0x30] sm:$0xff] %v894_v16   ;;  %v658_v21 = vadd.f32 %v1032_v13, %v561_v17  ;;  %v564_v22 = vadd.f32 %v971_v18, %v1331_v2 }
 0x136   :  { %v661_v23 = vadd.f32 %v1035_v20, %v564_v22  ;;  %v678_v24 = vmax.f32 %v658_v21, 0.0 }
 0x138   :  { %v679_v25 = vmax.f32 %v661_v23, 0.0 }
 0x13a   :  { %v899_v26 = vpack.c.bf16 %v679_v25, %v678_v24 }
 0x13c   :  { %907 = vst [vmem:[%s1376_s3 + $0x38] sm:$0xff] %v899_v26  }

// kernel: beta_vae_forward.11
= control target key start
LH: loop header
LB: loop body
LE: loop exit
PB: predicated region body
PF: predicated region fallthrough
CT: control target
= control target key end

     0   :  { %s1399_s1 = inlined_call_operand.vmem [shape: bf16[1024,128], index: 1, kind: input, shape index: {}]   ;;  %s1400_s0 = inlined_call_operand.vmem [shape: bf16[32,1024], index: 0, kind: input, shape index: {}]   ;;  %s1401_s2 = inlined_call_operand.vmem [shape: f32[1,128], index: 2, kind: input, shape index: {}]   ;;  %s1402_s3 = inlined_call_operand.vmem [shape: bf16[32,128], index: 3, kind: output, shape index: {}]  }
   0x1   :  { %v1066_v0 = vld [vmem:[%s1399_s1 + $0x40] sm:$0xff]   ;;  %v1070_v4 = vld [vmem:[%s1399_s1 + $0x48] sm:$0xff]   ;;  %v1074_v8 = vld [vmem:[%s1399_s1 + $0x50] sm:$0xff]  }
   0x2   :  { %v1067_v1 = vld [vmem:[%s1399_s1 + $0xc0] sm:$0xff]   ;;  %954 = vmatprep.subr.bf16.mxu0 %v1066_v0  ;;  %v1071_v5 = vld [vmem:[%s1399_s1 + $0xc8] sm:$0xff]   ;;  %v1075_v9 = vld [vmem:[%s1399_s1 + $0xd0] sm:$0xff]  }
   0x3   :  { %v1068_v2 = vld [vmem:[%s1399_s1] sm:$0xff]   ;;  %982 = vmatprep.subr.bf16.mxu1 %v1067_v1  ;;  %v1072_v6 = vld [vmem:[%s1399_s1 + $0x8] sm:$0xff]   ;;  %v1076_v10 = vld [vmem:[%s1399_s1 + $0x10] sm:$0xff]  }
   0x4   :  { %v1069_v3 = vld [vmem:[%s1399_s1 + $0x80] sm:$0xff]   ;;  %955 = vmatpush3.bf16.msra.mxu0 %v1068_v2  ;;  %v1073_v7 = vld [vmem:[%s1399_s1 + $0x88] sm:$0xff]   ;;  %v1077_v11 = vld [vmem:[%s1399_s1 + $0x90] sm:$0xff]  }
   0x5   :  { %983 = vmatpush3.bf16.msra.mxu1 %v1069_v3  ;;  %956 = vmatprep.subr.bf16.mxu0 %v1070_v4  ;;  %v1078_v12 = vld [vmem:[%s1399_s1 + $0x58] sm:$0xff]   ;;  %v1082_v16 = vld [vmem:[%s1399_s1 + $0x60] sm:$0xff]   ;;  %v1086_v20 = vld [vmem:[%s1399_s1 + $0x68] sm:$0xff]  }
   0x6   :  { %984 = vmatprep.subr.bf16.mxu1 %v1071_v5  ;;  %v1079_v13 = vld [vmem:[%s1399_s1 + $0xd8] sm:$0xff]   ;;  %v1083_v17 = vld [vmem:[%s1399_s1 + $0xe0] sm:$0xff]   ;;  %v1087_v21 = vld [vmem:[%s1399_s1 + $0xe8] sm:$0xff]  }
   0x7   :  { %v1080_v14 = vld [vmem:[%s1399_s1 + $0x18] sm:$0xff]   ;;  %v1084_v18 = vld [vmem:[%s1399_s1 + $0x20] sm:$0xff]   ;;  %v1088_v22 = vld [vmem:[%s1399_s1 + $0x28] sm:$0xff]  }
   0x8   :  { %957 = vmatpush3.bf16.msra.mxu0 %v1072_v6  ;;  %v1081_v15 = vld [vmem:[%s1399_s1 + $0x98] sm:$0xff]   ;;  %v1085_v19 = vld [vmem:[%s1399_s1 + $0xa0] sm:$0xff]   ;;  %v1089_v23 = vld [vmem:[%s1399_s1 + $0xa8] sm:$0xff]  }
   0x9   :  { %985 = vmatpush3.bf16.msra.mxu1 %v1073_v7  ;;  %958 = vmatprep.subr.bf16.mxu0 %v1074_v8  ;;  %v1090_v24 = vld [vmem:[%s1399_s1 + $0x70] sm:$0xff]   ;;  %v1094_v28 = vld [vmem:[%s1399_s1 + $0x78] sm:$0xff]   ;;  %v15_v32 = vld [vmem:[%s1400_s0] sm:$0xff] }
   0xa   :  { %986 = vmatprep.subr.bf16.mxu1 %v1075_v9  ;;  %v1091_v25 = vld [vmem:[%s1399_s1 + $0xf0] sm:$0xff]   ;;  %v1095_v29 = vld [vmem:[%s1399_s1 + $0xf8] sm:$0xff]   ;;  %v19_v33 = vld [vmem:[%s1400_s0 + $0x20] sm:$0xff] }
   0xb   :  { %v1092_v26 = vld [vmem:[%s1399_s1 + $0x30] sm:$0xff]   ;;  %v1096_v30 = vld [vmem:[%s1399_s1 + $0x38] sm:$0xff]   ;;  %v16_v34 = vld [vmem:[%s1400_s0 + $0x8] sm:$0xff]  ;;  %v855_v35 = vcombine.low %v15_v32, %v19_v33  ;;  %v856_v36 = vcombine.high %v15_v32, %v19_v33 }
   0xc   :  { %959 = vmatpush3.bf16.msra.mxu0 %v1076_v10  ;;  %v1093_v27 = vld [vmem:[%s1399_s1 + $0xb0] sm:$0xff]   ;;  %v1097_v31 = vld [vmem:[%s1399_s1 + $0xb8] sm:$0xff]   ;;  %v20_v37 = vld [vmem:[%s1400_s0 + $0x28] sm:$0xff] }
   0xd   :  { %987 = vmatpush3.bf16.msra.mxu1 %v1077_v11  ;;  %960 = vmatprep.subr.bf16.mxu0 %v1078_v12  ;;  %v857_v38 = vcombine.low %v16_v34, %v20_v37  ;;  %v858_v39 = vcombine.high %v16_v34, %v20_v37  ;;  %v1098_v40 = vld [vmem:[%s1399_s1 + $0x140] sm:$0xff]   ;;  %v1102_v44 = vld [vmem:[%s1399_s1 + $0x148] sm:$0xff]   ;;  %v1106_v48 = vld [vmem:[%s1399_s1 + $0x150] sm:$0xff]  }
   0xe   :  { %988 = vmatprep.subr.bf16.mxu1 %v1079_v13  ;;  %662 = vmatprep.mubr.bf16.mxu0 %v856_v36  ;;  %v1099_v41 = vld [vmem:[%s1399_s1 + $0x1c0] sm:$0xff]   ;;  %v1103_v45 = vld [vmem:[%s1399_s1 + $0x1c8] sm:$0xff]   ;;  %v1107_v49 = vld [vmem:[%s1399_s1 + $0x1d0] sm:$0xff]  }
   0xf   :  { %711 = vmatprep.mubr.bf16.mxu1 %v858_v39  ;;  %v1100_v42 = vld [vmem:[%s1399_s1 + $0x100] sm:$0xff]   ;;  %v1104_v46 = vld [vmem:[%s1399_s1 + $0x108] sm:$0xff]   ;;  %v1108_v50 = vld [vmem:[%s1399_s1 + $0x110] sm:$0xff]  }
  0x10   :  { %961 = vmatpush3.bf16.msra.mxu0 %v1080_v14  ;;  %v1101_v43 = vld [vmem:[%s1399_s1 + $0x180] sm:$0xff]   ;;  %v1105_v47 = vld [vmem:[%s1399_s1 + $0x188] sm:$0xff]   ;;  %v1109_v51 = vld [vmem:[%s1399_s1 + $0x190] sm:$0xff]  }
  0x11   :  { %989 = vmatpush3.bf16.msra.mxu1 %v1081_v15  ;;  %962 = vmatprep.subr.bf16.mxu0 %v1082_v16  ;;  %v1110_v52 = vld [vmem:[%s1399_s1 + $0x158] sm:$0xff]   ;;  %v1114_v56 = vld [vmem:[%s1399_s1 + $0x160] sm:$0xff]   ;;  %v1118_v63 = vld [vmem:[%s1399_s1 + $0x168] sm:$0xff]  }
  0x12   :  { %990 = vmatprep.subr.bf16.mxu1 %v1083_v17  ;;  %v1111_v53 = vld [vmem:[%s1399_s1 + $0x1d8] sm:$0xff]   ;;  %v1115_v57 = vld [vmem:[%s1399_s1 + $0x1e0] sm:$0xff]   ;;  %v1119_v1 = vld [vmem:[%s1399_s1 + $0x1e8] sm:$0xff]  }
  0x13   :  { %v1112_v54 = vld [vmem:[%s1399_s1 + $0x118] sm:$0xff]   ;;  %v1116_v58 = vld [vmem:[%s1399_s1 + $0x120] sm:$0xff]   ;;  %v1120_v2 = vld [vmem:[%s1399_s1 + $0x128] sm:$0xff]  }
  0x14   :  { %963 = vmatpush3.bf16.msra.mxu0 %v1084_v18  ;;  %v1113_v55 = vld [vmem:[%s1399_s1 + $0x198] sm:$0xff]   ;;  %v1117_v59 = vld [vmem:[%s1399_s1 + $0x1a0] sm:$0xff]   ;;  %v1121_v3 = vld [vmem:[%s1399_s1 + $0x1a8] sm:$0xff]  }
  0x15   :  { %991 = vmatpush3.bf16.msra.mxu1 %v1085_v19  ;;  %964 = vmatprep.subr.bf16.mxu0 %v1086_v20  ;;  %v23_v60 = vld [vmem:[%s1400_s0 + $0x40] sm:$0xff]  ;;  %v24_v4 = vld [vmem:[%s1400_s0 + $0x48] sm:$0xff]  ;;  %v1122_v8 = vld [vmem:[%s1399_s1 + $0x170] sm:$0xff]  }
  0x16   :  { %992 = vmatprep.subr.bf16.mxu1 %v1087_v21  ;;  %v27_v61 = vld [vmem:[%s1400_s0 + $0x60] sm:$0xff]  ;;  %v28_v5 = vld [vmem:[%s1400_s0 + $0x68] sm:$0xff]  ;;  %v1123_v9 = vld [vmem:[%s1399_s1 + $0x1f0] sm:$0xff]  }
  0x17   :  { %v864_v62 = vcombine.high %v23_v60, %v27_v61  ;;  %v863_v0 = vcombine.low %v23_v60, %v27_v61  ;;  %v866_v6 = vcombine.high %v24_v4, %v28_v5  ;;  %v865_v7 = vcombine.low %v24_v4, %v28_v5  ;;  %v1124_v10 = vld [vmem:[%s1399_s1 + $0x130] sm:$0xff]   ;;  %v1126_v12 = vld [vmem:[%s1399_s1 + $0x178] sm:$0xff]   ;;  %v854_v34 = vld [vmem:[%s1401_s2] ss:$0 sm:$0xff] }
  0x18   :  { %965 = vmatpush3.bf16.msra.mxu0 %v1088_v22  ;;  %v1125_v11 = vld [vmem:[%s1399_s1 + $0x1b0] sm:$0xff]   ;;  %v1127_v13 = vld [vmem:[%s1399_s1 + $0x1f8] sm:$0xff]  }
  0x19   :  { %993 = vmatpush3.bf16.msra.mxu1 %v1089_v23  ;;  %966 = vmatprep.subr.bf16.mxu0 %v1090_v24  ;;  %v1128_v14 = vld [vmem:[%s1399_s1 + $0x138] sm:$0xff]   ;;  %v17_v16 = vld [vmem:[%s1400_s0 + $0x10] sm:$0xff] }
  0x1a   :  { %994 = vmatprep.subr.bf16.mxu1 %v1091_v25  ;;  %v1129_v15 = vld [vmem:[%s1399_s1 + $0x1b8] sm:$0xff]   ;;  %v21_v17 = vld [vmem:[%s1400_s0 + $0x30] sm:$0xff] }
  0x1b   :  { %v18_v18 = vld [vmem:[%s1400_s0 + $0x18] sm:$0xff]  ;;  %v859_v20 = vcombine.low %v17_v16, %v21_v17  ;;  %v860_v21 = vcombine.high %v17_v16, %v21_v17  ;;  %v25_v24 = vld [vmem:[%s1400_s0 + $0x50] sm:$0xff] }
  0x1c   :  { %967 = vmatpush3.bf16.msra.mxu0 %v1092_v26  ;;  %v22_v19 = vld [vmem:[%s1400_s0 + $0x38] sm:$0xff]  ;;  %v29_v25 = vld [vmem:[%s1400_s0 + $0x70] sm:$0xff] }
  0x1d   :  { %995 = vmatpush3.bf16.msra.mxu1 %v1093_v27  ;;  %968 = vmatprep.subr.bf16.mxu0 %v1094_v28  ;;  %v861_v22 = vcombine.low %v18_v18, %v22_v19  ;;  %v862_v23 = vcombine.high %v18_v18, %v22_v19  ;;  %v26_v26 = vld [vmem:[%s1400_s0 + $0x58] sm:$0xff]  ;;  %v868_v27 = vcombine.high %v25_v24, %v29_v25 }
  0x1e   :  { %996 = vmatprep.subr.bf16.mxu1 %v1095_v29  ;;  %v30_v28 = vld [vmem:[%s1400_s0 + $0x78] sm:$0xff] }
  0x1f   :  { %v870_v29 = vcombine.high %v26_v26, %v30_v28 }
  0x20   :  { %969 = vmatpush3.bf16.msra.mxu0 %v1096_v30  ;;  %v867_v30 = vcombine.low %v25_v24, %v29_v25 }
  0x21   :  { %997 = vmatpush3.bf16.msra.mxu1 %v1097_v31  ;;  %1010 = vmatprep.subr.bf16.mxu0 %v1098_v40  ;;  %v869_v31 = vcombine.low %v26_v26, %v30_v28 }
  0x22   :  { %1038 = vmatprep.subr.bf16.mxu1 %v1099_v41 }
  0x23   :  { %663 = vmatmul.mubr.bf16.vlgmr.msra.gmra.mrb[0].mxu0 %v855_v35 }
  0x24   :  { %712 = vmatmul.mubr.bf16.vlgmr.msra.gmra.mrb[0].mxu1 %v857_v38  ;;  %1011 = vmatpush3.bf16.msra.mxu0 %v1100_v42 }
  0x25   :  { %1039 = vmatpush3.bf16.msra.mxu1 %v1101_v43  ;;  %1012 = vmatprep.subr.bf16.mxu0 %v1102_v44 }
  0x26   :  { %1040 = vmatprep.subr.bf16.mxu1 %v1103_v45  ;;  %670 = vmatprep.mubr.bf16.mxu0 %v864_v62 }
  0x27   :  { %719 = vmatprep.mubr.bf16.mxu1 %v866_v6 }
  0x28   :  { %1013 = vmatpush3.bf16.msra.mxu0 %v1104_v46 }
  0x29   :  { %1041 = vmatpush3.bf16.msra.mxu1 %v1105_v47  ;;  %1014 = vmatprep.subr.bf16.mxu0 %v1106_v48 }
  0x2a   :  { %1042 = vmatprep.subr.bf16.mxu1 %v1107_v49 }
  0x2b   :  { %671 = vmatmul.mubr.bf16.gmra.mrb[4].mxu0 %v863_v0 }
  0x2c   :  { %1015 = vmatpush3.bf16.msra.mxu0 %v1108_v50  ;;  %720 = vmatmul.mubr.bf16.gmra.mrb[4].mxu1 %v865_v7 }
  0x2d   :  { %1043 = vmatpush3.bf16.msra.mxu1 %v1109_v51  ;;  %1016 = vmatprep.subr.bf16.mxu0 %v1110_v52 }
  0x2e   :  { %1044 = vmatprep.subr.bf16.mxu1 %v1111_v53  ;;  %760 = vmatprep.mubr.bf16.mxu0 %v860_v21 }
  0x2f   :  { %809 = vmatprep.mubr.bf16.mxu1 %v862_v23 }
  0x30   :  { %1017 = vmatpush3.bf16.msra.mxu0 %v1112_v54 }
  0x31   :  { %1045 = vmatpush3.bf16.msra.mxu1 %v1113_v55  ;;  %1018 = vmatprep.subr.bf16.mxu0 %v1114_v56 }
  0x32   :  { %1046 = vmatprep.subr.bf16.mxu1 %v1115_v57 }
  0x34   :  { %1019 = vmatpush3.bf16.msra.mxu0 %v1116_v58 }
  0x35   :  { %1047 = vmatpush3.bf16.msra.mxu1 %v1117_v59  ;;  %1020 = vmatprep.subr.bf16.mxu0 %v1118_v63 }
  0x36   :  { %1048 = vmatprep.subr.bf16.mxu1 %v1119_v1 }
  0x38   :  { %1021 = vmatpush3.bf16.msra.mxu0 %v1120_v2 }
  0x39   :  { %1049 = vmatpush3.bf16.msra.mxu1 %v1121_v3  ;;  %1022 = vmatprep.subr.bf16.mxu0 %v1122_v8 }
  0x3a   :  { %1050 = vmatprep.subr.bf16.mxu1 %v1123_v9 }
  0x3c   :  { %1023 = vmatpush3.bf16.msra.mxu0 %v1124_v10 }
  0x3d   :  { %1051 = vmatpush3.bf16.msra.mxu1 %v1125_v11  ;;  %1024 = vmatprep.subr.bf16.mxu0 %v1126_v12 }
  0x3e   :  { %1052 = vmatprep.subr.bf16.mxu1 %v1127_v13 }
  0x40   :  { %1025 = vmatpush3.bf16.msra.mxu0 %v1128_v14 }
  0x41   :  { %1053 = vmatpush3.bf16.msra.mxu1 %v1129_v15 }
  0x43   :  { %761 = vmatmul.mubr.bf16.vlgmr.msra.gmra.mrb[8].mxu0 %v859_v20 }
  0x44   :  { %810 = vmatmul.mubr.bf16.vlgmr.msra.gmra.mrb[8].mxu1 %v861_v22  ;;  %768 = vmatprep.mubr.bf16.mxu0 %v868_v27 }
  0x45   :  { %817 = vmatprep.mubr.bf16.mxu1 %v870_v29 }
  0x4b   :  { %769 = vmatmul.mubr.bf16.gmra.mrb[12].mxu0 %v867_v30 }
  0x4c   :  { %818 = vmatmul.mubr.bf16.gmra.mrb[12].mxu1 %v869_v31 }
  0xf6   :  { %v970_v32 = vpop.f32.mrb[0].mxu0 }
  0xf7   :  { %v998_v33 = vpop.f32.mrb[0].mxu1  ;;  %v971_v35 = vpop.f32.mrb[1].mxu0 }
  0xf8   :  { %v972_v36 = vadd.f32 %v971_v35, %v970_v32  ;;  %v999_v37 = vpop.f32.mrb[1].mxu1  ;;  %v973_v38 = vpop.f32.mrb[2].mxu0 }
  0xf9   :  { %v1000_v39 = vadd.f32 %v999_v37, %v998_v33  ;;  %v1001_v40 = vpop.f32.mrb[2].mxu1  ;;  %v974_v41 = vpop.f32.mrb[3].mxu0 }
  0xfa   :  { %v665_v42 = vadd.f32 %v972_v36, %v854_v34  ;;  %v975_v43 = vadd.f32 %v974_v41, %v973_v38  ;;  %v1002_v44 = vpop.f32.mrb[3].mxu1 }
  0xfb   :  { %v1003_v45 = vadd.f32 %v1002_v44, %v1001_v40 }
  0xfc   :  { %v714_v46 = vadd.f32 %v1000_v39, %v665_v42  ;;  %v668_v47 = vadd.f32 %v975_v43, %v854_v34 }
  0xfe   :  { %v717_v48 = vadd.f32 %v1003_v45, %v668_v47  ;;  %v976_v49 = vpop.f32.mrb[4].mxu0 }
  0xff   :  { %v977_v50 = vpop.f32.mrb[5].mxu0  ;;  %v1004_v56 = vpop.f32.mrb[4].mxu1 }
 0x100   :  { %v978_v51 = vadd.f32 %v977_v50, %v976_v49  ;;  %v979_v52 = vpop.f32.mrb[6].mxu0  ;;  %v1005_v57 = vpop.f32.mrb[5].mxu1 }
 0x101   :  { %v980_v53 = vpop.f32.mrb[7].mxu0  ;;  %v1006_v59 = vadd.f32 %v1005_v57, %v1004_v56  ;;  %v1007_v60 = vpop.f32.mrb[6].mxu1 }
 0x102   :  { %v981_v54 = vadd.f32 %v980_v53, %v979_v52  ;;  %v673_v55 = vadd.f32 %v978_v51, %v854_v34  ;;  %v1008_v61 = vpop.f32.mrb[7].mxu1 }
 0x103   :  { %v1009_v63 = vadd.f32 %v1008_v61, %v1007_v60 }
 0x104   :  { %v676_v58 = vadd.f32 %v981_v54, %v854_v34  ;;  %v722_v62 = vadd.f32 %v1006_v59, %v673_v55 }
 0x106   :  { %v725_v0 = vadd.f32 %v1009_v63, %v676_v58 }
 0x116   :  { %v1026_v1 = vpop.f32.mrb[8].mxu0 }
 0x117   :  { %v1054_v2 = vpop.f32.mrb[8].mxu1  ;;  %v1027_v3 = vpop.f32.mrb[9].mxu0 }
 0x118   :  { %v1055_v4 = vpop.f32.mrb[9].mxu1  ;;  %v1028_v5 = vadd.f32 %v1027_v3, %v1026_v1  ;;  %v1029_v7 = vpop.f32.mrb[10].mxu0 }
 0x119   :  { %v1056_v6 = vadd.f32 %v1055_v4, %v1054_v2  ;;  %v1057_v8 = vpop.f32.mrb[10].mxu1  ;;  %v1030_v9 = vpop.f32.mrb[11].mxu0 }
 0x11a   :  { %v1058_v10 = vpop.f32.mrb[11].mxu1  ;;  %v763_v11 = vadd.f32 %v1028_v5, %v714_v46  ;;  %v1031_v12 = vadd.f32 %v1030_v9, %v1029_v7 }
 0x11b   :  { %v1059_v13 = vadd.f32 %v1058_v10, %v1057_v8 }
 0x11c   :  { %v812_v14 = vadd.f32 %v1056_v6, %v763_v11  ;;  %v766_v15 = vadd.f32 %v1031_v12, %v717_v48 }
 0x11e   :  { %v815_v16 = vadd.f32 %v1059_v13, %v766_v15  ;;  %v1032_v17 = vpop.f32.mrb[12].mxu0  ;;  %v826_v21 = vmax.f32 %v812_v14, 0.0 }
 0x11f   :  { %v1060_v18 = vpop.f32.mrb[12].mxu1  ;;  %v1033_v19 = vpop.f32.mrb[13].mxu0 }
 0x120   :  { %v1061_v20 = vpop.f32.mrb[13].mxu1  ;;  %v827_v22 = vmax.f32 %v815_v16, 0.0  ;;  %v1034_v23 = vadd.f32 %v1033_v19, %v1032_v17  ;;  %v1035_v25 = vpop.f32.mrb[14].mxu0 }
 0x121   :  { %v1062_v24 = vadd.f32 %v1061_v20, %v1060_v18  ;;  %v1063_v26 = vpop.f32.mrb[14].mxu1  ;;  %v1036_v27 = vpop.f32.mrb[15].mxu0 }
 0x122   :  { %v1064_v28 = vpop.f32.mrb[15].mxu1  ;;  %v946_v29 = vpack.c.bf16 %v827_v22, %v826_v21  ;;  %v771_v30 = vadd.f32 %v1034_v23, %v722_v62  ;;  %v1037_v31 = vadd.f32 %v1036_v27, %v1035_v25 }
 0x123   :  { %v1065_v32 = vadd.f32 %v1064_v28, %v1063_v26 }
 0x124   :  { %947 = vst [vmem:[%s1402_s3] sm:$0xff] %v946_v29   ;;  %v820_v33 = vadd.f32 %v1062_v24, %v771_v30  ;;  %v774_v34 = vadd.f32 %v1037_v31, %v725_v0 }
 0x126   :  { %v823_v35 = vadd.f32 %v1065_v32, %v774_v34  ;;  %v828_v36 = vmax.f32 %v820_v33, 0.0 }
 0x128   :  { %v829_v37 = vmax.f32 %v823_v35, 0.0 }
 0x12a   :  { %v951_v38 = vpack.c.bf16 %v829_v37, %v828_v36 }
 0x12c   :  { %953 = vst [vmem:[%s1402_s3 + $0x8] sm:$0xff] %v951_v38  }

// kernel: beta_vae_forward.13
= control target key start
LH: loop header
LB: loop body
LE: loop exit
PB: predicated region body
PF: predicated region fallthrough
CT: control target
= control target key end

     0   :  { %16 = vsyncpa [#allocation3], 0  ;;  %v2006_v47 = vmov 1983009808   ;;  %v177_v49 = vlaneseq  ;;  %s3032_s0 = inlined_call_operand.vmem [shape: f32[2,1024], index: 0, kind: input, shape index: {}]   ;;  %s3033_s1 = inlined_call_operand.vmem [shape: f32[1024,20], index: 1, kind: input, shape index: {}]   ;;  %s3034_s2 = inlined_call_operand.vmem [shape: f32[1,20], index: 2, kind: input, shape index: {}]   ;;  %s3035_s3 = inlined_call_operand.vmem [shape: f32[1024,20], index: 3, kind: input, shape index: {}]   ;;  %s3036_s4 = inlined_call_operand.vmem [shape: f32[1,20], index: 4, kind: input, shape index: {}]   ;;  %s3037_s5 = inlined_call_operand.vmem [shape: f32[2,20], index: 5, kind: input, shape index: {}]   ;;  %s3038_s6 = inlined_call_operand.vmem [shape: f32[20,1024], index: 6, kind: input, shape index: {}]   ;;  %s3039_s7 = inlined_call_operand.vmem [shape: f32[1,1024], index: 7, kind: input, shape index: {}]   ;;  %s3040_s8 = inlined_call_operand.hbm [shape: f32[2,20], index: 8, kind: output, shape index: {0}]   ;;  %s3041_s9 = inlined_call_operand.hbm [shape: f32[2,20], index: 9, kind: output, shape index: {1}]   ;;  %s3042_s10 = inlined_call_operand.vmem [shape: f32[2,1024], index: 10, kind: output, shape index: {2}]  }
   0x1   :  { %v52_v0 = vld [vmem:[%s3033_s1 + $0x80] sm:$0xff]  ;;  %v53_v1 = vld [vmem:[%s3033_s1 + $0x88] sm:$0xff]  ;;  %v54_v11 = vld [vmem:[%s3033_s1 + $0x90] sm:$0xff]  ;;  %v175_v48 = vunpack.c.l.s4 %v2006_v47 }
   0x2   :  { %v36_v2 = vld [vmem:[%s3033_s1] sm:$0xff]  ;;  %v1678_v3 = vpack.c.bf16 %v53_v1, %v52_v0  ;;  %v37_v4 = vld [vmem:[%s3033_s1 + $0x8] sm:$0xff]  ;;  %v55_v13 = vld [vmem:[%s3033_s1 + $0x98] sm:$0xff]  ;;  %v2191_v0 = vshrl.u32 %v177_v49, 7 }
   0x3   :  { %v84_v5 = vld [vmem:[%s3033_s1 + $0x180] sm:$0xff]  ;;  %v85_v6 = vld [vmem:[%s3033_s1 + $0x188] sm:$0xff]  ;;  %v1680_v7 = vpack.c.bf16 %v37_v4, %v36_v2  ;;  %v38_v14 = vld [vmem:[%s3033_s1 + $0x10] sm:$0xff]  ;;  %v1682_v16 = vpack.c.bf16 %v55_v13, %v54_v11  ;;  %v176_v63 = vunpack.c.0.s8 %v175_v48 }
   0x4   :  { %v1710_v8 = vpack.c.bf16 %v85_v6, %v84_v5  ;;  %v68_v9 = vld [vmem:[%s3033_s1 + $0x100] sm:$0xff]  ;;  %v69_v10 = vld [vmem:[%s3033_s1 + $0x108] sm:$0xff]  ;;  %1679 = vmatprep.subr.bf16.mxu0 %v1678_v3  ;;  %v39_v15 = vld [vmem:[%s3033_s1 + $0x18] sm:$0xff] }
   0x5   :  { %v1712_v12 = vpack.c.bf16 %v69_v10, %v68_v9  ;;  %1681 = vmatpush3.bf16.msra.mxu0 %v1680_v7  ;;  %v1684_v17 = vpack.c.bf16 %v39_v15, %v38_v14  ;;  %v86_v18 = vld [vmem:[%s3033_s1 + $0x190] sm:$0xff]  ;;  %v87_v19 = vld [vmem:[%s3033_s1 + $0x198] sm:$0xff]  ;;  %v56_v23 = vld [vmem:[%s3033_s1 + $0xa0] sm:$0xff]  ;;  %v2218_v13 = vsub.s32 %v176_v63, %v2191_v0 }
   0x6   :  { %1711 = vmatprep.subr.bf16.mxu1 %v1710_v8  ;;  %v70_v20 = vld [vmem:[%s3033_s1 + $0x110] sm:$0xff]  ;;  %v1714_v21 = vpack.c.bf16 %v87_v19, %v86_v18  ;;  %v71_v22 = vld [vmem:[%s3033_s1 + $0x118] sm:$0xff]  ;;  %v57_v24 = vld [vmem:[%s3033_s1 + $0xa8] sm:$0xff]  ;;  %1683 = vmatprep.subr.bf16.mxu0 %v1682_v16 }
   0x7   :  { %1713 = vmatpush3.bf16.msra.mxu1 %v1712_v12  ;;  %v1716_v25 = vpack.c.bf16 %v71_v22, %v70_v20  ;;  %v1686_v26 = vpack.c.bf16 %v57_v24, %v56_v23  ;;  %v40_v27 = vld [vmem:[%s3033_s1 + $0x20] sm:$0xff]  ;;  %v41_v28 = vld [vmem:[%s3033_s1 + $0x28] sm:$0xff]  ;;  %v58_v35 = vld [vmem:[%s3033_s1 + $0xb0] sm:$0xff] }
   0x8   :  { %v88_v29 = vld [vmem:[%s3033_s1 + $0x1a0] sm:$0xff]  ;;  %1715 = vmatprep.subr.bf16.mxu1 %v1714_v21  ;;  %v89_v30 = vld [vmem:[%s3033_s1 + $0x1a8] sm:$0xff]  ;;  %v1688_v33 = vpack.c.bf16 %v41_v28, %v40_v27  ;;  %v59_v36 = vld [vmem:[%s3033_s1 + $0xb8] sm:$0xff] }
   0x9   :  { %v72_v31 = vld [vmem:[%s3033_s1 + $0x120] sm:$0xff]  ;;  %v73_v32 = vld [vmem:[%s3033_s1 + $0x128] sm:$0xff]  ;;  %1685 = vmatpush3.bf16.msra.mxu0 %v1684_v17  ;;  %v1718_v34 = vpack.c.bf16 %v89_v30, %v88_v29  ;;  %v42_v37 = vld [vmem:[%s3033_s1 + $0x30] sm:$0xff]  ;;  %v1690_v39 = vpack.c.bf16 %v59_v36, %v58_v35 }
   0xa   :  { %1687 = vmatprep.subr.bf16.mxu0 %v1686_v26  ;;  %v1720_v38 = vpack.c.bf16 %v73_v32, %v72_v31  ;;  %v43_v40 = vld [vmem:[%s3033_s1 + $0x38] sm:$0xff]  ;;  %v90_v41 = vld [vmem:[%s3033_s1 + $0x1b0] sm:$0xff]  ;;  %v60_v46 = vld [vmem:[%s3033_s1 + $0xc0] sm:$0xff] }
   0xb   :  { %1717 = vmatpush3.bf16.msra.mxu1 %v1716_v25  ;;  %v91_v42 = vld [vmem:[%s3033_s1 + $0x1b8] sm:$0xff]  ;;  %v74_v44 = vld [vmem:[%s3033_s1 + $0x130] sm:$0xff]  ;;  %v61_v50 = vld [vmem:[%s3033_s1 + $0xc8] sm:$0xff]  ;;  %v1692_v51 = vpack.c.bf16 %v43_v40, %v42_v37 }
   0xc   :  { %1719 = vmatprep.subr.bf16.mxu1 %v1718_v34  ;;  %v1722_v43 = vpack.c.bf16 %v91_v42, %v90_v41  ;;  %v75_v45 = vld [vmem:[%s3033_s1 + $0x138] sm:$0xff]  ;;  %v92_v52 = vld [vmem:[%s3033_s1 + $0x1c0] sm:$0xff]  ;;  %v93_v53 = vld [vmem:[%s3033_s1 + $0x1c8] sm:$0xff]  ;;  %v1694_v55 = vpack.c.bf16 %v61_v50, %v60_v46 }
   0xd   :  { %1689 = vmatpush3.bf16.msra.mxu0 %v1688_v33  ;;  %v1724_v54 = vpack.c.bf16 %v75_v45, %v74_v44  ;;  %v44_v56 = vld [vmem:[%s3033_s1 + $0x40] sm:$0xff]  ;;  %v45_v57 = vld [vmem:[%s3033_s1 + $0x48] sm:$0xff]  ;;  %v1726_v59 = vpack.c.bf16 %v93_v53, %v92_v52  ;;  %v62_v61 = vld [vmem:[%s3033_s1 + $0xd0] sm:$0xff] }
   0xe   :  { %1691 = vmatprep.subr.bf16.mxu0 %v1690_v39  ;;  %v76_v58 = vld [vmem:[%s3033_s1 + $0x140] sm:$0xff]  ;;  %v77_v60 = vld [vmem:[%s3033_s1 + $0x148] sm:$0xff]  ;;  %v63_v62 = vld [vmem:[%s3033_s1 + $0xd8] sm:$0xff]  ;;  %v1696_v3 = vpack.c.bf16 %v45_v57, %v44_v56 }
   0xf   :  { %1721 = vmatpush3.bf16.msra.mxu1 %v1720_v38  ;;  %v94_v1 = vld [vmem:[%s3033_s1 + $0x1d0] sm:$0xff]  ;;  %v95_v2 = vld [vmem:[%s3033_s1 + $0x1d8] sm:$0xff]  ;;  %v1728_v4 = vpack.c.bf16 %v77_v60, %v76_v58  ;;  %v1698_v5 = vpack.c.bf16 %v63_v62, %v62_v61  ;;  %v64_v11 = vld [vmem:[%s3033_s1 + $0xe0] sm:$0xff] }
  0x10   :  { %1723 = vmatprep.subr.bf16.mxu1 %v1722_v43  ;;  %v46_v6 = vld [vmem:[%s3033_s1 + $0x50] sm:$0xff]  ;;  %v47_v7 = vld [vmem:[%s3033_s1 + $0x58] sm:$0xff]  ;;  %v1730_v9 = vpack.c.bf16 %v95_v2, %v94_v1  ;;  %v65_v12 = vld [vmem:[%s3033_s1 + $0xe8] sm:$0xff] }
  0x11   :  { %1693 = vmatpush3.bf16.msra.mxu0 %v1692_v51  ;;  %v78_v8 = vld [vmem:[%s3033_s1 + $0x150] sm:$0xff]  ;;  %v79_v10 = vld [vmem:[%s3033_s1 + $0x158] sm:$0xff]  ;;  %v96_v14 = vld [vmem:[%s3033_s1 + $0x1e0] sm:$0xff]  ;;  %v1700_v16 = vpack.c.bf16 %v47_v7, %v46_v6  ;;  %v1702_v19 = vpack.c.bf16 %v65_v12, %v64_v11 }
  0x12   :  { %1695 = vmatprep.subr.bf16.mxu0 %v1694_v55  ;;  %v97_v15 = vld [vmem:[%s3033_s1 + $0x1e8] sm:$0xff]  ;;  %v48_v17 = vld [vmem:[%s3033_s1 + $0x60] sm:$0xff]  ;;  %v1732_v18 = vpack.c.bf16 %v79_v10, %v78_v8  ;;  %v66_v25 = vld [vmem:[%s3033_s1 + $0xf0] sm:$0xff] }
  0x13   :  { %1725 = vmatpush3.bf16.msra.mxu1 %v1724_v54  ;;  %v49_v20 = vld [vmem:[%s3033_s1 + $0x68] sm:$0xff]  ;;  %v80_v21 = vld [vmem:[%s3033_s1 + $0x160] sm:$0xff]  ;;  %v1734_v23 = vpack.c.bf16 %v97_v15, %v96_v14  ;;  %v67_v26 = vld [vmem:[%s3033_s1 + $0xf8] sm:$0xff] }
  0x14   :  { %1727 = vmatprep.subr.bf16.mxu1 %v1726_v59  ;;  %v34_v22 = vld [vmem:[%s3032_s0] sm:$0xff]  ;;  %v81_v24 = vld [vmem:[%s3033_s1 + $0x168] sm:$0xff]  ;;  %v98_v29 = vld [vmem:[%s3033_s1 + $0x1f0] sm:$0xff]  ;;  %v1704_v31 = vpack.c.bf16 %v49_v20, %v48_v17  ;;  %v1706_v35 = vpack.c.bf16 %v67_v26, %v66_v25 }
  0x15   :  { %1697 = vmatpush3.bf16.msra.mxu0 %v1696_v3  ;;  %v2248_v27 = vrot.slane %v34_v22, %v2218_v13  ;;  %v173_v28 = vcombine.high %v34_v22, %v34_v22  ;;  %v99_v30 = vld [vmem:[%s3033_s1 + $0x1f8] sm:$0xff]  ;;  %v1736_v34 = vpack.c.bf16 %v81_v24, %v80_v21  ;;  %v50_v36 = vld [vmem:[%s3033_s1 + $0x70] sm:$0xff]  ;;  %v116_v41 = vld [vmem:[%s3033_s1 + $0x280] sm:$0xff] }
  0x16   :  { %1699 = vmatprep.subr.bf16.mxu0 %v1698_v5  ;;  %v51_v37 = vld [vmem:[%s3033_s1 + $0x78] sm:$0xff]  ;;  %v82_v38 = vld [vmem:[%s3033_s1 + $0x170] sm:$0xff]  ;;  %v1738_v39 = vpack.c.bf16 %v99_v30, %v98_v29  ;;  %v117_v42 = vld [vmem:[%s3033_s1 + $0x288] sm:$0xff] }
  0x17   :  { %1729 = vmatpush3.bf16.msra.mxu1 %v1728_v4  ;;  %v2258_v32 = vcombine.high %v2248_v27, %v2248_v27  ;;  %v2261_v33 = vrot.slane %v173_v28, %v2218_v13  ;;  %v83_v40 = vld [vmem:[%s3033_s1 + $0x178] sm:$0xff]  ;;  %v148_v44 = vld [vmem:[%s3033_s1 + $0x380] sm:$0xff]  ;;  %v149_v45 = vld [vmem:[%s3033_s1 + $0x388] sm:$0xff]  ;;  %v1708_v46 = vpack.c.bf16 %v51_v37, %v50_v36  ;;  %v1742_v48 = vpack.c.bf16 %v117_v42, %v116_v41 }
  0x18   :  { %1731 = vmatprep.subr.bf16.mxu1 %v1730_v9  ;;  %v1740_v47 = vpack.c.bf16 %v83_v40, %v82_v38  ;;  %v100_v49 = vld [vmem:[%s3033_s1 + $0x200] sm:$0xff]  ;;  %v101_v50 = vld [vmem:[%s3033_s1 + $0x208] sm:$0xff]  ;;  %v1774_v52 = vpack.c.bf16 %v149_v45, %v148_v44  ;;  %v118_v54 = vld [vmem:[%s3033_s1 + $0x290] sm:$0xff] }
  0x19   :  { %1701 = vmatpush3.bf16.msra.mxu0 %v1700_v16  ;;  %279 = vmatprep.mubr.f32.mxu0 %v2258_v32  ;;  %v2284_v43 = vcombine.high %v2261_v33, %v2261_v33  ;;  %v132_v51 = vld [vmem:[%s3033_s1 + $0x300] sm:$0xff]  ;;  %v133_v53 = vld [vmem:[%s3033_s1 + $0x308] sm:$0xff]  ;;  %v119_v55 = vld [vmem:[%s3033_s1 + $0x298] sm:$0xff]  ;;  %v1744_v58 = vpack.c.bf16 %v101_v50, %v100_v49 }
  0x1a   :  { %1703 = vmatprep.subr.bf16.mxu0 %v1702_v19  ;;  %v150_v56 = vld [vmem:[%s3033_s1 + $0x390] sm:$0xff]  ;;  %v151_v57 = vld [vmem:[%s3033_s1 + $0x398] sm:$0xff]  ;;  %v1776_v59 = vpack.c.bf16 %v133_v53, %v132_v51  ;;  %v1746_v60 = vpack.c.bf16 %v119_v55, %v118_v54  ;;  %v120_v3 = vld [vmem:[%s3033_s1 + $0x2a0] sm:$0xff] }
  0x1b   :  { %1733 = vmatpush3.bf16.msra.mxu1 %v1732_v18  ;;  %349 = vmatprep.mubr.f32.mxu1 %v2284_v43  ;;  %v102_v61 = vld [vmem:[%s3033_s1 + $0x210] sm:$0xff]  ;;  %v103_v62 = vld [vmem:[%s3033_s1 + $0x218] sm:$0xff]  ;;  %v1778_v1 = vpack.c.bf16 %v151_v57, %v150_v56  ;;  %v121_v4 = vld [vmem:[%s3033_s1 + $0x2a8] sm:$0xff] }
  0x1c   :  { %1735 = vmatprep.subr.bf16.mxu1 %v1734_v23  ;;  %v134_v63 = vld [vmem:[%s3033_s1 + $0x310] sm:$0xff]  ;;  %v135_v2 = vld [vmem:[%s3033_s1 + $0x318] sm:$0xff]  ;;  %v152_v5 = vld [vmem:[%s3033_s1 + $0x3a0] sm:$0xff]  ;;  %v1748_v7 = vpack.c.bf16 %v103_v62, %v102_v61  ;;  %v1750_v9 = vpack.c.bf16 %v121_v4, %v120_v3 }
  0x1d   :  { %1705 = vmatpush3.bf16.msra.mxu0 %v1704_v31  ;;  %v153_v6 = vld [vmem:[%s3033_s1 + $0x3a8] sm:$0xff]  ;;  %v1780_v8 = vpack.c.bf16 %v135_v2, %v134_v63  ;;  %v104_v10 = vld [vmem:[%s3033_s1 + $0x220] sm:$0xff]  ;;  %v122_v16 = vld [vmem:[%s3033_s1 + $0x2b0] sm:$0xff] }
  0x1e   :  { %1707 = vmatprep.subr.bf16.mxu0 %v1706_v35  ;;  %v105_v11 = vld [vmem:[%s3033_s1 + $0x228] sm:$0xff]  ;;  %v136_v12 = vld [vmem:[%s3033_s1 + $0x320] sm:$0xff]  ;;  %v1782_v14 = vpack.c.bf16 %v153_v6, %v152_v5  ;;  %v123_v17 = vld [vmem:[%s3033_s1 + $0x2b8] sm:$0xff] }
  0x1f   :  { %1737 = vmatpush3.bf16.msra.mxu1 %v1736_v34  ;;  %v137_v15 = vld [vmem:[%s3033_s1 + $0x328] sm:$0xff]  ;;  %v154_v18 = vld [vmem:[%s3033_s1 + $0x3b0] sm:$0xff]  ;;  %v155_v19 = vld [vmem:[%s3033_s1 + $0x3b8] sm:$0xff]  ;;  %v1752_v20 = vpack.c.bf16 %v105_v11, %v104_v10  ;;  %v1754_v22 = vpack.c.bf16 %v123_v17, %v122_v16 }
  0x20   :  { %1739 = vmatprep.subr.bf16.mxu1 %v1738_v39  ;;  %v1784_v21 = vpack.c.bf16 %v137_v15, %v136_v12  ;;  %v106_v23 = vld [vmem:[%s3033_s1 + $0x230] sm:$0xff]  ;;  %v107_v24 = vld [vmem:[%s3033_s1 + $0x238] sm:$0xff]  ;;  %v1786_v26 = vpack.c.bf16 %v155_v19, %v154_v18  ;;  %v124_v29 = vld [vmem:[%s3033_s1 + $0x2c0] sm:$0xff] }
  0x21   :  { %1709 = vmatpush3.bf16.msra.mxu0 %v1708_v46  ;;  %v138_v25 = vld [vmem:[%s3033_s1 + $0x330] sm:$0xff]  ;;  %v139_v28 = vld [vmem:[%s3033_s1 + $0x338] sm:$0xff]  ;;  %v125_v30 = vld [vmem:[%s3033_s1 + $0x2c8] sm:$0xff]  ;;  %v1756_v36 = vpack.c.bf16 %v107_v24, %v106_v23 }
  0x22   :  { %1743 = vmatprep.subr.bf16.mxu0 %v1742_v48  ;;  %v156_v31 = vld [vmem:[%s3033_s1 + $0x3c0] sm:$0xff]  ;;  %v157_v34 = vld [vmem:[%s3033_s1 + $0x3c8] sm:$0xff]  ;;  %v1788_v39 = vpack.c.bf16 %v139_v28, %v138_v25  ;;  %v1758_v40 = vpack.c.bf16 %v125_v30, %v124_v29  ;;  %v127_v48 = vld [vmem:[%s3033_s1 + $0x2d8] sm:$0xff] }
  0x23   :  { %1741 = vmatpush3.bf16.msra.mxu1 %v1740_v47  ;;  %v35_v35 = vld [vmem:[%s3032_s0 + $0x8] sm:$0xff]  ;;  %v108_v41 = vld [vmem:[%s3033_s1 + $0x240] sm:$0xff]  ;;  %v1790_v45 = vpack.c.bf16 %v157_v34, %v156_v31  ;;  %v126_v47 = vld [vmem:[%s3033_s1 + $0x2d0] sm:$0xff] }
  0x24   :  { %1775 = vmatprep.subr.bf16.mxu1 %v1774_v52  ;;  %280 = vmatmul.mubr.f32.vlgmr.msra.gmra.mrb[0].mxu0 %v2248_v27  ;;  %v2395_v37 = vrot.slane %v35_v35, %v2218_v13  ;;  %v190_v38 = vcombine.high %v35_v35, %v35_v35  ;;  %v109_v42 = vld [vmem:[%s3033_s1 + $0x248] sm:$0xff]  ;;  %v140_v44 = vld [vmem:[%s3033_s1 + $0x340] sm:$0xff]  ;;  %v158_v51 = vld [vmem:[%s3033_s1 + $0x3d0] sm:$0xff]  ;;  %v1762_v56 = vpack.c.bf16 %v127_v48, %v126_v47 }
  0x25   :  { %1745 = vmatpush3.bf16.msra.mxu0 %v1744_v58  ;;  %v141_v46 = vld [vmem:[%s3033_s1 + $0x348] sm:$0xff]  ;;  %v159_v52 = vld [vmem:[%s3033_s1 + $0x3d8] sm:$0xff]  ;;  %v1760_v53 = vpack.c.bf16 %v109_v42, %v108_v41  ;;  %v110_v57 = vld [vmem:[%s3033_s1 + $0x250] sm:$0xff] }
  0x26   :  { %350 = vmatmul.mubr.f32.vlgmr.msra.gmra.mrb[0].mxu1 %v2261_v33  ;;  %1747 = vmatprep.subr.bf16.mxu0 %v1746_v60  ;;  %v2417_v49 = vcombine.high %v2395_v37, %v2395_v37  ;;  %v2420_v50 = vrot.slane %v190_v38, %v2218_v13  ;;  %v1792_v55 = vpack.c.bf16 %v141_v46, %v140_v44  ;;  %v111_v58 = vld [vmem:[%s3033_s1 + $0x258] sm:$0xff]  ;;  %v128_v62 = vld [vmem:[%s3033_s1 + $0x2e0] sm:$0xff]  ;;  %v129_v63 = vld [vmem:[%s3033_s1 + $0x2e8] sm:$0xff] }
  0x27   :  { %1777 = vmatpush3.bf16.msra.mxu1 %v1776_v59  ;;  %v142_v59 = vld [vmem:[%s3033_s1 + $0x350] sm:$0xff]  ;;  %v1794_v60 = vpack.c.bf16 %v159_v52, %v158_v51  ;;  %v143_v61 = vld [vmem:[%s3033_s1 + $0x358] sm:$0xff]  ;;  %v161_v2 = vld [vmem:[%s3033_s1 + $0x3e8] sm:$0xff]  ;;  %v1764_v3 = vpack.c.bf16 %v111_v58, %v110_v57  ;;  %v1766_v5 = vpack.c.bf16 %v129_v63, %v128_v62 }
  0x28   :  { %1779 = vmatprep.subr.bf16.mxu1 %v1778_v1  ;;  %419 = vmatprep.mubr.f32.mxu0 %v2417_v49  ;;  %v2431_v54 = vcombine.high %v2420_v50, %v2420_v50  ;;  %v160_v1 = vld [vmem:[%s3033_s1 + $0x3e0] sm:$0xff]  ;;  %v1796_v4 = vpack.c.bf16 %v143_v61, %v142_v59  ;;  %v145_v10 = vld [vmem:[%s3033_s1 + $0x368] sm:$0xff]  ;;  %v130_v11 = vld [vmem:[%s3033_s1 + $0x2f0] sm:$0xff] }
  0x29   :  { %1749 = vmatpush3.bf16.msra.mxu0 %v1748_v7  ;;  %v112_v6 = vld [vmem:[%s3033_s1 + $0x260] sm:$0xff]  ;;  %v113_v7 = vld [vmem:[%s3033_s1 + $0x268] sm:$0xff]  ;;  %v131_v12 = vld [vmem:[%s3033_s1 + $0x2f8] sm:$0xff] }
  0x2a   :  { %1751 = vmatprep.subr.bf16.mxu0 %v1750_v9  ;;  %489 = vmatprep.mubr.f32.mxu1 %v2431_v54  ;;  %v1798_v9 = vpack.c.bf16 %v161_v2, %v160_v1  ;;  %v163_v15 = vld [vmem:[%s3033_s1 + $0x3f8] sm:$0xff]  ;;  %v1768_v16 = vpack.c.bf16 %v113_v7, %v112_v6  ;;  %v1770_v18 = vpack.c.bf16 %v131_v12, %v130_v11  ;;  %v114_v19 = vld [vmem:[%s3033_s1 + $0x270] sm:$0xff]  ;;  %v511_v24 = vld [vmem:[%s3035_s3 + $0x80] sm:$0xff] }
  0x2b   :  { %1781 = vmatpush3.bf16.msra.mxu1 %v1780_v8  ;;  %v144_v8 = vld [vmem:[%s3033_s1 + $0x360] sm:$0xff]  ;;  %v147_v23 = vld [vmem:[%s3033_s1 + $0x378] sm:$0xff]  ;;  %v512_v25 = vld [vmem:[%s3035_s3 + $0x88] sm:$0xff] }
  0x2c   :  { %1783 = vmatprep.subr.bf16.mxu1 %v1782_v14  ;;  %v162_v14 = vld [vmem:[%s3033_s1 + $0x3f0] sm:$0xff]  ;;  %v1800_v17 = vpack.c.bf16 %v145_v10, %v144_v8  ;;  %v544_v28 = vld [vmem:[%s3035_s3 + $0x188] sm:$0xff]  ;;  %v1806_v31 = vpack.c.bf16 %v512_v25, %v511_v24  ;;  %v495_v34 = vld [vmem:[%s3035_s3] sm:$0xff] }
  0x2d   :  { %1753 = vmatpush3.bf16.msra.mxu0 %v1752_v20  ;;  %v115_v20 = vld [vmem:[%s3033_s1 + $0x278] sm:$0xff]  ;;  %v496_v35 = vld [vmem:[%s3035_s3 + $0x8] sm:$0xff]  ;;  %v545_v42 = vld [vmem:[%s3035_s3 + $0x190] sm:$0xff] }
  0x2e   :  { %1755 = vmatprep.subr.bf16.mxu0 %v1754_v22  ;;  %v1802_v22 = vpack.c.bf16 %v163_v15, %v162_v14  ;;  %v1772_v29 = vpack.c.bf16 %v115_v20, %v114_v19  ;;  %v514_v41 = vld [vmem:[%s3035_s3 + $0x98] sm:$0xff]  ;;  %v497_v48 = vld [vmem:[%s3035_s3 + $0x10] sm:$0xff]  ;;  %v516_v57 = vld [vmem:[%s3035_s3 + $0xa8] sm:$0xff] }
  0x2f   :  { %1785 = vmatpush3.bf16.msra.mxu1 %v1784_v21  ;;  %v146_v21 = vld [vmem:[%s3033_s1 + $0x370] sm:$0xff]  ;;  %v546_v44 = vld [vmem:[%s3035_s3 + $0x198] sm:$0xff]  ;;  %v547_v58 = vld [vmem:[%s3035_s3 + $0x1a0] sm:$0xff] }
  0x30   :  { %1787 = vmatprep.subr.bf16.mxu1 %v1786_v26  ;;  %v543_v26 = vld [vmem:[%s3035_s3 + $0x180] sm:$0xff]  ;;  %v1804_v30 = vpack.c.bf16 %v147_v23, %v146_v21  ;;  %v498_v51 = vld [vmem:[%s3035_s3 + $0x18] sm:$0xff]  ;;  %v529_v52 = vld [vmem:[%s3035_s3 + $0x110] sm:$0xff] }
  0x31   :  { %1757 = vmatpush3.bf16.msra.mxu0 %v1756_v36  ;;  %v527_v36 = vld [vmem:[%s3035_s3 + $0x100] sm:$0xff]  ;;  %v1838_v38 = vpack.c.bf16 %v544_v28, %v543_v26  ;;  %v548_v59 = vld [vmem:[%s3035_s3 + $0x1a8] sm:$0xff]  ;;  %v518_v6 = vld [vmem:[%s3035_s3 + $0xb8] sm:$0xff] }
  0x32   :  { %1759 = vmatprep.subr.bf16.mxu0 %v1758_v40  ;;  %v513_v40 = vld [vmem:[%s3035_s3 + $0x90] sm:$0xff]  ;;  %v499_v63 = vld [vmem:[%s3035_s3 + $0x20] sm:$0xff]  ;;  %v500_v1 = vld [vmem:[%s3035_s3 + $0x28] sm:$0xff] }
  0x33   :  { %1789 = vmatpush3.bf16.msra.mxu1 %v1788_v39  ;;  %v528_v39 = vld [vmem:[%s3035_s3 + $0x108] sm:$0xff]  ;;  %v1810_v47 = vpack.c.bf16 %v514_v41, %v513_v40  ;;  %v531_v2 = vld [vmem:[%s3035_s3 + $0x120] sm:$0xff]  ;;  %v549_v7 = vld [vmem:[%s3035_s3 + $0x1b0] sm:$0xff] }
  0x34   :  { %1791 = vmatprep.subr.bf16.mxu1 %v1790_v45  ;;  %v1808_v45 = vpack.c.bf16 %v496_v35, %v495_v34  ;;  %v1840_v46 = vpack.c.bf16 %v528_v39, %v527_v36  ;;  %v550_v8 = vld [vmem:[%s3035_s3 + $0x1b8] sm:$0xff]  ;;  %v533_v14 = vld [vmem:[%s3035_s3 + $0x130] sm:$0xff]  ;;  %v552_v19 = vld [vmem:[%s3035_s3 + $0x1c8] sm:$0xff] }
  0x35   :  { %1761 = vmatpush3.bf16.msra.mxu0 %v1760_v53  ;;  %v1842_v53 = vpack.c.bf16 %v546_v44, %v545_v42  ;;  %v502_v12 = vld [vmem:[%s3035_s3 + $0x38] sm:$0xff]  ;;  %v503_v23 = vld [vmem:[%s3035_s3 + $0x40] sm:$0xff]  ;;  %v504_v24 = vld [vmem:[%s3035_s3 + $0x48] sm:$0xff] }
  0x36   :  { %1763 = vmatprep.subr.bf16.mxu0 %v1762_v56  ;;  %v515_v56 = vld [vmem:[%s3035_s3 + $0xa0] sm:$0xff]  ;;  %v534_v15 = vld [vmem:[%s3035_s3 + $0x138] sm:$0xff]  ;;  %v536_v28 = vld [vmem:[%s3035_s3 + $0x148] sm:$0xff]  ;;  %v1824_v35 = vpack.c.bf16 %v504_v24, %v503_v23 }
  0x37   :  { %1793 = vmatpush3.bf16.msra.mxu1 %v1792_v55  ;;  %v530_v55 = vld [vmem:[%s3035_s3 + $0x118] sm:$0xff]  ;;  %v1814_v62 = vpack.c.bf16 %v516_v57, %v515_v56  ;;  %v1852_v21 = vpack.c.bf16 %v534_v15, %v533_v14  ;;  %v535_v25 = vld [vmem:[%s3035_s3 + $0x140] sm:$0xff]  ;;  %v505_v39 = vld [vmem:[%s3035_s3 + $0x50] sm:$0xff] }
  0x38   :  { %1795 = vmatprep.subr.bf16.mxu1 %v1794_v60  ;;  %v1812_v60 = vpack.c.bf16 %v498_v51, %v497_v48  ;;  %v1844_v61 = vpack.c.bf16 %v530_v55, %v529_v52  ;;  %v554_v34 = vld [vmem:[%s3035_s3 + $0x1d8] sm:$0xff]  ;;  %v1856_v36 = vpack.c.bf16 %v536_v28, %v535_v25  ;;  %v537_v41 = vld [vmem:[%s3035_s3 + $0x150] sm:$0xff]  ;;  %v556_v48 = vld [vmem:[%s3035_s3 + $0x1e8] sm:$0xff] }
  0x39   :  { %1765 = vmatpush3.bf16.msra.mxu0 %v1764_v3  ;;  %v1846_v3 = vpack.c.bf16 %v548_v59, %v547_v58  ;;  %v506_v40 = vld [vmem:[%s3035_s3 + $0x58] sm:$0xff]  ;;  %v507_v52 = vld [vmem:[%s3035_s3 + $0x60] sm:$0xff]  ;;  %v508_v56 = vld [vmem:[%s3035_s3 + $0x68] sm:$0xff] }
  0x3a   :  { %1767 = vmatprep.subr.bf16.mxu0 %v1766_v5  ;;  %v517_v5 = vld [vmem:[%s3035_s3 + $0xb0] sm:$0xff]  ;;  %v538_v44 = vld [vmem:[%s3035_s3 + $0x158] sm:$0xff]  ;;  %v1828_v51 = vpack.c.bf16 %v506_v40, %v505_v39  ;;  %v539_v57 = vld [vmem:[%s3035_s3 + $0x160] sm:$0xff] }
  0x3b   :  { %1797 = vmatpush3.bf16.msra.mxu1 %v1796_v4  ;;  %v532_v4 = vld [vmem:[%s3035_s3 + $0x128] sm:$0xff]  ;;  %v1818_v11 = vpack.c.bf16 %v518_v6, %v517_v5 }
  0x3c   :  { %1799 = vmatprep.subr.bf16.mxu1 %v1798_v9  ;;  %v1816_v9 = vpack.c.bf16 %v500_v1, %v499_v63  ;;  %v1848_v10 = vpack.c.bf16 %v532_v4, %v531_v2  ;;  %v540_v58 = vld [vmem:[%s3035_s3 + $0x168] sm:$0xff] }
  0x3d   :  { %1769 = vmatpush3.bf16.msra.mxu0 %v1768_v16  ;;  %v519_v16 = vld [vmem:[%s3035_s3 + $0xc0] sm:$0xff] }
  0x3e   :  { %1771 = vmatprep.subr.bf16.mxu0 %v1770_v18  ;;  %v551_v18 = vld [vmem:[%s3035_s3 + $0x1c0] sm:$0xff] }
  0x3f   :  { %1801 = vmatpush3.bf16.msra.mxu1 %v1800_v17  ;;  %v520_v17 = vld [vmem:[%s3035_s3 + $0xc8] sm:$0xff]  ;;  %v1854_v26 = vpack.c.bf16 %v552_v19, %v551_v18 }
  0x40   :  { %1803 = vmatprep.subr.bf16.mxu1 %v1802_v22  ;;  %v1822_v22 = vpack.c.bf16 %v520_v17, %v519_v16 }
  0x41   :  { %1773 = vmatpush3.bf16.msra.mxu0 %v1772_v29  ;;  %v521_v29 = vld [vmem:[%s3035_s3 + $0xd0] sm:$0xff] }
  0x42   :  { %1807 = vmatprep.subr.bf16.mxu0 %v1806_v31  ;;  %v553_v31 = vld [vmem:[%s3035_s3 + $0x1d0] sm:$0xff] }
  0x43   :  { %1805 = vmatpush3.bf16.msra.mxu1 %v1804_v30  ;;  %v522_v30 = vld [vmem:[%s3035_s3 + $0xd8] sm:$0xff]  ;;  %v1858_v42 = vpack.c.bf16 %v554_v34, %v553_v31 }
  0x44   :  { %1839 = vmatprep.subr.bf16.mxu1 %v1838_v38  ;;  %420 = vmatmul.mubr.f32.vlgmr.msra.gmra.mrb[2].mxu0 %v2395_v37  ;;  %v1826_v38 = vpack.c.bf16 %v522_v30, %v521_v29 }
  0x45   :  { %1809 = vmatpush3.bf16.msra.mxu0 %v1808_v45  ;;  %694 = vmatprep.mubr.f32.mxu0 %v2258_v32  ;;  %v501_v32 = vld [vmem:[%s3035_s3 + $0x30] sm:$0xff]  ;;  %v523_v45 = vld [vmem:[%s3035_s3 + $0xe0] sm:$0xff] }
  0x46   :  { %490 = vmatmul.mubr.f32.vlgmr.msra.gmra.mrb[2].mxu1 %v2420_v50  ;;  %1811 = vmatprep.subr.bf16.mxu0 %v1810_v47  ;;  %v1820_v20 = vpack.c.bf16 %v502_v12, %v501_v32  ;;  %v555_v47 = vld [vmem:[%s3035_s3 + $0x1e0] sm:$0xff] }
  0x47   :  { %1841 = vmatpush3.bf16.msra.mxu1 %v1840_v46  ;;  %764 = vmatprep.mubr.f32.mxu1 %v2284_v43  ;;  %v1850_v43 = vpack.c.bf16 %v550_v8, %v549_v7  ;;  %v524_v46 = vld [vmem:[%s3035_s3 + $0xe8] sm:$0xff]  ;;  %v1862_v59 = vpack.c.bf16 %v556_v48, %v555_v47 }
  0x48   :  { %1843 = vmatprep.subr.bf16.mxu1 %v1842_v53  ;;  %v1860_v53 = vpack.c.bf16 %v538_v44, %v537_v41  ;;  %v1830_v55 = vpack.c.bf16 %v524_v46, %v523_v45 }
  0x49   :  { %1813 = vmatpush3.bf16.msra.mxu0 %v1812_v60  ;;  %v525_v60 = vld [vmem:[%s3035_s3 + $0xf0] sm:$0xff] }
  0x4a   :  { %1815 = vmatprep.subr.bf16.mxu0 %v1814_v62 }
  0x4b   :  { %1845 = vmatpush3.bf16.msra.mxu1 %v1844_v61  ;;  %v526_v61 = vld [vmem:[%s3035_s3 + $0xf8] sm:$0xff] }
  0x4c   :  { %1847 = vmatprep.subr.bf16.mxu1 %v1846_v3 }
  0x4d   :  { %1817 = vmatpush3.bf16.msra.mxu0 %v1816_v9 }
  0x4e   :  { %1819 = vmatprep.subr.bf16.mxu0 %v1818_v11 }
  0x4f   :  { %1849 = vmatpush3.bf16.msra.mxu1 %v1848_v10 }
  0x50   :  { %1851 = vmatprep.subr.bf16.mxu1 %v1850_v43 }
  0x51   :  { %1821 = vmatpush3.bf16.msra.mxu0 %v1820_v20 }
  0x52   :  { %1823 = vmatprep.subr.bf16.mxu0 %v1822_v22 }
  0x53   :  { %1853 = vmatpush3.bf16.msra.mxu1 %v1852_v21 }
  0x54   :  { %1855 = vmatprep.subr.bf16.mxu1 %v1854_v26 }
  0x55   :  { %1825 = vmatpush3.bf16.msra.mxu0 %v1824_v35 }
  0x56   :  { %1827 = vmatprep.subr.bf16.mxu0 %v1826_v38 }
  0x57   :  { %1857 = vmatpush3.bf16.msra.mxu1 %v1856_v36 }
  0x58   :  { %1859 = vmatprep.subr.bf16.mxu1 %v1858_v42 }
  0x59   :  { %17 = vsyncpa [#allocation5], 0  ;;  %v557_v62 = vld [vmem:[%s3035_s3 + $0x1f0] sm:$0xff]  ;;  %v558_v63 = vld [vmem:[%s3035_s3 + $0x1f8] sm:$0xff]  ;;  %1829 = vmatpush3.bf16.msra.mxu0 %v1828_v51  ;;  %v1832_v1 = vpack.c.bf16 %v508_v56, %v507_v52  ;;  %v1864_v2 = vpack.c.bf16 %v540_v58, %v539_v57  ;;  %v1834_v3 = vpack.c.bf16 %v526_v61, %v525_v60  ;;  %vm986_vm0 = vcmask 1043456   ;;  %s2008_s26 = smov [#allocation2]  }
  0x5a   :  { %1831 = vmatprep.subr.bf16.mxu0 %v1830_v55  ;;  %v509_v4 = vld [vmem:[%s3035_s3 + $0x70] sm:$0xff]  ;;  %v510_v5 = vld [vmem:[%s3035_s3 + $0x78] sm:$0xff]  ;;  %v1866_v7 = vpack.c.bf16 %v558_v63, %v557_v62  ;;  %v575_v9 = vld [vmem:[%s3035_s3 + $0x280] sm:$0xff]  ;;  %vm1295_vm1 = vcmask 156672   ;;  %vm982_vm2 = vcmask 162816   ;;  %s1358_s27 = sshll.u32 %s2008_s26, 4  ;;  %s1359_s27 = int_to_ptr.vmem [resolvable:$true] %s1358_s27 }
  0x5b   :  { %1861 = vmatpush3.bf16.msra.mxu1 %v1860_v53  ;;  %v541_v6 = vld [vmem:[%s3035_s3 + $0x170] sm:$0xff]  ;;  %v542_v8 = vld [vmem:[%s3035_s3 + $0x178] sm:$0xff]  ;;  %v576_v10 = vld [vmem:[%s3035_s3 + $0x288] sm:$0xff]  ;;  %v1836_v12 = vpack.c.bf16 %v510_v5, %v509_v4  ;;  %s2009_s28 = smov [#allocation4]   ;;  %s1958_s30 = scalar_lea.vmem %s1359_s27, 32 }
  0x5c   :  { %1863 = vmatprep.subr.bf16.mxu1 %v1862_v59  ;;  %v607_v11 = vld [vmem:[%s3035_s3 + $0x380] sm:$0xff]  ;;  %v608_v32 = vld [vmem:[%s3035_s3 + $0x388] sm:$0xff]  ;;  %v1868_v14 = vpack.c.bf16 %v542_v8, %v541_v6  ;;  %v1870_v43 = vpack.c.bf16 %v576_v10, %v575_v9  ;;  %v577_v20 = vld [vmem:[%s3035_s3 + $0x290] sm:$0xff]  ;;  %s1368_s29 = sshll.u32 %s2009_s28, 4  ;;  %p1959_p0 = scmp.ne.s32.totalorder %s1359_s27, %s1958_s30  ;;  %s1369_s29 = int_to_ptr.vmem [resolvable:$true] %s1368_s29 }
  0x5d   :  { %1833 = vmatpush3.bf16.msra.mxu0 %v1832_v1  ;;  %v559_v15 = vld [vmem:[%s3035_s3 + $0x200] sm:$0xff]  ;;  %v560_v16 = vld [vmem:[%s3035_s3 + $0x208] sm:$0xff]  ;;  %v1902_v18 = vpack.c.bf16 %v608_v32, %v607_v11  ;;  %v578_v21 = vld [vmem:[%s3035_s3 + $0x298] sm:$0xff]  ;;  %p1963_p1 = scmp.lt.s32.totalorder %s1359_s27, %s1359_s27  ;;  %p1964_p2 = scmp.lt.s32.totalorder %s1958_s30, %s1958_s30 }
  0x5e   :  { %1835 = vmatprep.subr.bf16.mxu0 %v1834_v3  ;;  %v591_v17 = vld [vmem:[%s3035_s3 + $0x300] sm:$0xff]  ;;  %v592_v19 = vld [vmem:[%s3035_s3 + $0x308] sm:$0xff]  ;;  %v609_v22 = vld [vmem:[%s3035_s3 + $0x390] sm:$0xff]  ;;  %v1872_v24 = vpack.c.bf16 %v560_v16, %v559_v15  ;;  %v1874_v26 = vpack.c.bf16 %v578_v21, %v577_v20 }
  0x5f   :  { %1865 = vmatpush3.bf16.msra.mxu1 %v1864_v2  ;;  %v610_v23 = vld [vmem:[%s3035_s3 + $0x398] sm:$0xff]  ;;  %v1904_v25 = vpack.c.bf16 %v592_v19, %v591_v17  ;;  %v561_v28 = vld [vmem:[%s3035_s3 + $0x210] sm:$0xff]  ;;  %v579_v35 = vld [vmem:[%s3035_s3 + $0x2a0] sm:$0xff]  ;;  %p1965_p3 = por %p1964_p2, %p1963_p1 }
  0x60   :  { %1867 = vmatprep.subr.bf16.mxu1 %v1866_v7  ;;  %v562_v29 = vld [vmem:[%s3035_s3 + $0x218] sm:$0xff]  ;;  %v593_v30 = vld [vmem:[%s3035_s3 + $0x310] sm:$0xff]  ;;  %v1906_v31 = vpack.c.bf16 %v610_v23, %v609_v22  ;;  %v580_v36 = vld [vmem:[%s3035_s3 + $0x2a8] sm:$0xff] }
  0x61   :  { %1837 = vmatpush3.bf16.msra.mxu0 %v1836_v12  ;;  %v594_v34 = vld [vmem:[%s3035_s3 + $0x318] sm:$0xff]  ;;  %v611_v38 = vld [vmem:[%s3035_s3 + $0x3a0] sm:$0xff]  ;;  %v612_v39 = vld [vmem:[%s3035_s3 + $0x3a8] sm:$0xff]  ;;  %v1876_v40 = vpack.c.bf16 %v562_v29, %v561_v28  ;;  %v1878_v42 = vpack.c.bf16 %v580_v36, %v579_v35  ;;  %p1966_p4 = pnand %p1965_p3, %p1959_p0 }
  0x62   :  { %1871 = vmatprep.subr.bf16.mxu0 %v1870_v43  ;;  %v1908_v41 = vpack.c.bf16 %v594_v34, %v593_v30  ;;  %v564_v44 = vld [vmem:[%s3035_s3 + $0x228] sm:$0xff]  ;;  %v595_v45 = vld [vmem:[%s3035_s3 + $0x320] sm:$0xff]  ;;  %v1910_v46 = vpack.c.bf16 %v612_v39, %v611_v38  ;;  %v581_v47 = vld [vmem:[%s3035_s3 + $0x2b0] sm:$0xff] }
  0x63   :  { %1869 = vmatpush3.bf16.msra.mxu1 %v1868_v14  ;;  %v582_v48 = vld [vmem:[%s3035_s3 + $0x2b8] sm:$0xff]  ;;  %v613_v51 = vld [vmem:[%s3035_s3 + $0x3b0] sm:$0xff]  ;;  %v583_v60 = vld [vmem:[%s3035_s3 + $0x2c0] sm:$0xff] }
  0x64   :  { %1903 = vmatprep.subr.bf16.mxu1 %v1902_v18  ;;  %695 = vmatmul.mubr.f32.vlgmr.msra.gmra.mrb[4].mxu0 %v2248_v27  ;;  %v563_v27 = vld [vmem:[%s3035_s3 + $0x220] sm:$0xff]  ;;  %v614_v52 = vld [vmem:[%s3035_s3 + $0x3b8] sm:$0xff]  ;;  %v1882_v56 = vpack.c.bf16 %v582_v48, %v581_v47  ;;  %v597_v58 = vld [vmem:[%s3035_s3 + $0x330] sm:$0xff] }
  0x65   :  { %1873 = vmatpush3.bf16.msra.mxu0 %v1872_v24  ;;  %834 = vmatprep.mubr.f32.mxu0 %v2417_v49  ;;  %v1880_v53 = vpack.c.bf16 %v564_v44, %v563_v27  ;;  %v565_v49 = vld [vmem:[%s3035_s3 + $0x230] sm:$0xff]  ;;  %v566_v57 = vld [vmem:[%s3035_s3 + $0x238] sm:$0xff]  ;;  %v584_v61 = vld [vmem:[%s3035_s3 + $0x2c8] sm:$0xff] }
  0x66   :  { %765 = vmatmul.mubr.f32.vlgmr.msra.gmra.mrb[4].mxu1 %v2261_v33  ;;  %1875 = vmatprep.subr.bf16.mxu0 %v1874_v26  ;;  %v596_v33 = vld [vmem:[%s3035_s3 + $0x328] sm:$0xff]  ;;  %v598_v59 = vld [vmem:[%s3035_s3 + $0x338] sm:$0xff]  ;;  %v615_v62 = vld [vmem:[%s3035_s3 + $0x3c0] sm:$0xff]  ;;  %v1884_v1 = vpack.c.bf16 %v566_v57, %v565_v49  ;;  %v1886_v3 = vpack.c.bf16 %v584_v61, %v583_v60  ;;  %v2007_v49 = vmov 0.0  }
  0x67   :  { %1905 = vmatpush3.bf16.msra.mxu1 %v1904_v25  ;;  %904 = vmatprep.mubr.f32.mxu1 %v2431_v54  ;;  %v1912_v55 = vpack.c.bf16 %v596_v33, %v595_v45  ;;  %v1914_v54 = vpack.c.bf16 %v614_v52, %v613_v51  ;;  %v616_v63 = vld [vmem:[%s3035_s3 + $0x3c8] sm:$0xff]  ;;  %v1916_v2 = vpack.c.bf16 %v598_v59, %v597_v58  ;;  %v567_v4 = vld [vmem:[%s3035_s3 + $0x240] sm:$0xff]  ;;  %v585_v9 = vld [vmem:[%s3035_s3 + $0x2d0] sm:$0xff] }
  0x68   :  { %1907 = vmatprep.subr.bf16.mxu1 %v1906_v31  ;;  %v568_v5 = vld [vmem:[%s3035_s3 + $0x248] sm:$0xff]  ;;  %v599_v6 = vld [vmem:[%s3035_s3 + $0x340] sm:$0xff]  ;;  %v1918_v7 = vpack.c.bf16 %v616_v63, %v615_v62  ;;  %v586_v10 = vld [vmem:[%s3035_s3 + $0x2d8] sm:$0xff] }
  0x69   :  { %1877 = vmatpush3.bf16.msra.mxu0 %v1876_v40  ;;  %v600_v8 = vld [vmem:[%s3035_s3 + $0x348] sm:$0xff]  ;;  %v617_v11 = vld [vmem:[%s3035_s3 + $0x3d0] sm:$0xff]  ;;  %v618_v32 = vld [vmem:[%s3035_s3 + $0x3d8] sm:$0xff]  ;;  %v1888_v12 = vpack.c.bf16 %v568_v5, %v567_v4  ;;  %v1890_v43 = vpack.c.bf16 %v586_v10, %v585_v9 }
  0x6a   :  { %1879 = vmatprep.subr.bf16.mxu0 %v1878_v42  ;;  %v1920_v14 = vpack.c.bf16 %v600_v8, %v599_v6  ;;  %v569_v15 = vld [vmem:[%s3035_s3 + $0x250] sm:$0xff]  ;;  %v570_v16 = vld [vmem:[%s3035_s3 + $0x258] sm:$0xff]  ;;  %v1922_v18 = vpack.c.bf16 %v618_v32, %v617_v11  ;;  %v587_v20 = vld [vmem:[%s3035_s3 + $0x2e0] sm:$0xff] }
  0x6b   :  { %1909 = vmatpush3.bf16.msra.mxu1 %v1908_v41  ;;  %v601_v17 = vld [vmem:[%s3035_s3 + $0x350] sm:$0xff]  ;;  %v602_v19 = vld [vmem:[%s3035_s3 + $0x358] sm:$0xff]  ;;  %v588_v21 = vld [vmem:[%s3035_s3 + $0x2e8] sm:$0xff]  ;;  %v1892_v24 = vpack.c.bf16 %v570_v16, %v569_v15 }
  0x6c   :  { %1911 = vmatprep.subr.bf16.mxu1 %v1910_v46  ;;  %v619_v22 = vld [vmem:[%s3035_s3 + $0x3e0] sm:$0xff]  ;;  %v620_v23 = vld [vmem:[%s3035_s3 + $0x3e8] sm:$0xff]  ;;  %v1924_v25 = vpack.c.bf16 %v602_v19, %v601_v17  ;;  %v1894_v26 = vpack.c.bf16 %v588_v21, %v587_v20  ;;  %v589_v35 = vld [vmem:[%s3035_s3 + $0x2f0] sm:$0xff] }
  0x6d   :  { %1881 = vmatpush3.bf16.msra.mxu0 %v1880_v53  ;;  %v571_v28 = vld [vmem:[%s3035_s3 + $0x260] sm:$0xff]  ;;  %v572_v29 = vld [vmem:[%s3035_s3 + $0x268] sm:$0xff]  ;;  %v1926_v31 = vpack.c.bf16 %v620_v23, %v619_v22  ;;  %v590_v36 = vld [vmem:[%s3035_s3 + $0x2f8] sm:$0xff] }
  0x6e   :  { %1883 = vmatprep.subr.bf16.mxu0 %v1882_v56  ;;  %v603_v30 = vld [vmem:[%s3035_s3 + $0x360] sm:$0xff]  ;;  %v604_v34 = vld [vmem:[%s3035_s3 + $0x368] sm:$0xff]  ;;  %v621_v38 = vld [vmem:[%s3035_s3 + $0x3f0] sm:$0xff]  ;;  %v1896_v40 = vpack.c.bf16 %v572_v29, %v571_v28  ;;  %v1898_v42 = vpack.c.bf16 %v590_v36, %v589_v35 }
  0x6f   :  { %1913 = vmatpush3.bf16.msra.mxu1 %v1912_v55  ;;  %v622_v39 = vld [vmem:[%s3035_s3 + $0x3f8] sm:$0xff]  ;;  %v1928_v41 = vpack.c.bf16 %v604_v34, %v603_v30  ;;  %v573_v27 = vld [vmem:[%s3035_s3 + $0x270] sm:$0xff]  ;;  %v917_v51 = vld [vmem:[%s3038_s6 + $0x8] sm:$0xff] }
  0x70   :  { %1915 = vmatprep.subr.bf16.mxu1 %v1914_v54  ;;  %v574_v44 = vld [vmem:[%s3035_s3 + $0x278] sm:$0xff]  ;;  %v1930_v45 = vpack.c.bf16 %v622_v39, %v621_v38  ;;  %v605_v46 = vld [vmem:[%s3035_s3 + $0x370] sm:$0xff]  ;;  %v925_v52 = vld [vmem:[%s3038_s6 + $0x48] sm:$0xff] }
  0x71   :  { %1885 = vmatpush3.bf16.msra.mxu0 %v1884_v1  ;;  %v606_v33 = vld [vmem:[%s3035_s3 + $0x378] sm:$0xff]  ;;  %v1900_v47 = vpack.c.bf16 %v574_v44, %v573_v27  ;;  %v1934_v55 = vpack.c.bf16 %v925_v52, %v917_v51  ;;  %v918_v54 = vld [vmem:[%s3038_s6 + $0x10] sm:$0xff]  ;;  %v933_v60 = vld [vmem:[%s3038_s6 + $0x88] sm:$0xf] }
  0x72   :  { %1887 = vmatprep.subr.bf16.mxu0 %v1886_v3  ;;  %v1932_v48 = vpack.c.bf16 %v606_v33, %v605_v46  ;;  %v919_v53 = vld [vmem:[%s3038_s6 + $0x18] sm:$0xff]  ;;  %v926_v59 = vld [vmem:[%s3038_s6 + $0x50] sm:$0xff]  ;;  %v921_v63 = vld [vmem:[%s3038_s6 + $0x28] sm:$0xff] }
  0x73   :  { %1917 = vmatpush3.bf16.msra.mxu1 %v1916_v2  ;;  %v927_v56 = vld [vmem:[%s3038_s6 + $0x58] sm:$0xff]  ;;  %v1940_v61 = vpack.c.bf16 %v926_v59, %v918_v54  ;;  %v929_v1 = vld [vmem:[%s3038_s6 + $0x68] sm:$0xff]  ;;  %v932_v3 = vld [vmem:[%s3038_s6 + $0x80] sm:$0xf] }
  0x74   :  { %1919 = vmatprep.subr.bf16.mxu1 %v1918_v7  ;;  %v1938_v57 = vpack.c.bf16 %v927_v56, %v919_v53  ;;  %v935_v62 = vld [vmem:[%s3038_s6 + $0x98] sm:$0xf]  ;;  %v1942_v4 = vpack.c.bf16 %v929_v1, %v921_v63  ;;  %v934_v6 = vld [vmem:[%s3038_s6 + $0x90] sm:$0xf]  ;;  %v1384_v9 = vld [vmem:[%s3034_s2] ss:$0 sm:$0xff] }
  0x75   :  { %1889 = vmatpush3.bf16.msra.mxu0 %v1888_v12  ;;  %v923_v2 = vld [vmem:[%s3038_s6 + $0x38] sm:$0xff]  ;;  %v913_v33 = vld [vmem:[%s3037_s5] sm:$0x3]  ;;  %v922_v51 = vld [vmem:[%s3038_s6 + $0x30] sm:$0xff] }
  0x76   :  { %1891 = vmatprep.subr.bf16.mxu0 %v1890_v43  ;;  %v931_v5 = vld [vmem:[%s3038_s6 + $0x78] sm:$0xff]  ;;  %v930_v52 = vld [vmem:[%s3038_s6 + $0x70] sm:$0xff]  ;;  %v936_v54 = vld [vmem:[%s3038_s6 + $0xa0] sm:$0xf] }
  0x77   :  { %1921 = vmatpush3.bf16.msra.mxu1 %v1920_v14  ;;  %v1946_v7 = vpack.c.bf16 %v931_v5, %v923_v2  ;;  %v938_v59 = vld [vmem:[%s3038_s6 + $0xb0] sm:$0xf] }
  0x78   :  { %1923 = vmatprep.subr.bf16.mxu1 %v1922_v18 }
  0x79   :  { %1893 = vmatpush3.bf16.msra.mxu0 %v1892_v24 }
  0x7a   :  { %1895 = vmatprep.subr.bf16.mxu0 %v1894_v26 }
  0x7b   :  { %1925 = vmatpush3.bf16.msra.mxu1 %v1924_v25  ;;  %v1385_v25 = vld [vmem:[%s3036_s4] ss:$0 sm:$0xff] }
  0x7c   :  { %1927 = vmatprep.subr.bf16.mxu1 %v1926_v31 }
  0x7d   :  { %1897 = vmatpush3.bf16.msra.mxu0 %v1896_v40 }
  0x7e   :  { %1899 = vmatprep.subr.bf16.mxu0 %v1898_v42 }
  0x7f   :  { %1929 = vmatpush3.bf16.msra.mxu1 %v1928_v41 }
  0x80   :  { %1931 = vmatprep.subr.bf16.mxu1 %v1930_v45 }
  0x81   :  { %1901 = vmatpush3.bf16.msra.mxu0 %v1900_v47  ;;  %v920_v47 = vld [vmem:[%s3038_s6 + $0x20] sm:$0xff] }
  0x82   :  { %1935 = vmatprep.subr.bf16.mxu0 %v1934_v55 }
  0x83   :  { %1933 = vmatpush3.bf16.msra.mxu1 %v1932_v48  ;;  %v928_v48 = vld [vmem:[%s3038_s6 + $0x60] sm:$0xff] }
  0x84   :  { %835 = vmatmul.mubr.f32.vlgmr.msra.gmra.mrb[6].mxu0 %v2395_v37  ;;  %v916_v37 = vld [vmem:[%s3038_s6] sm:$0xff]  ;;  %1939 = vmatprep.subr.bf16.mxu1 %v1938_v57  ;;  %v1944_v56 = vpack.c.bf16 %v928_v48, %v920_v47  ;;  %v937_v57 = vld [vmem:[%s3038_s6 + $0xa8] sm:$0xf] }
  0x85   :  { %1075 = vmatprep.mubr.f32.mxu0 %v2007_v49 }
  0x86   :  { %905 = vmatmul.mubr.f32.vlgmr.msra.gmra.mrb[6].mxu1 %v2420_v50  ;;  %v924_v50 = vld [vmem:[%s3038_s6 + $0x40] sm:$0xff] }
  0x87   :  { %1146 = vmatprep.mubr.f32.mxu1 %v2007_v49  ;;  %v1936_v58 = vpack.c.bf16 %v924_v50, %v916_v37  ;;  %1941 = vmatpush1.bf16.msra.mxu1 %v1940_v61  ;;  %v1948_v37 = vpack.c.bf16 %v930_v52, %v922_v51 }
  0x88   :  { %1389 = vmatprep.subr.msk.mxu1 %vm986_vm0, %v935_v62 }
  0x89   :  { %1937 = vmatpush1.bf16.msra.mxu0 %v1936_v58  ;;  %v939_v58 = vld [vmem:[%s3038_s6 + $0xb8] sm:$0xf] }
  0x8a   :  { %1386 = vmatprep.subr.msk.mxu0 %vm986_vm0, %v933_v60 }
  0x8b   :  { %1390 = vmatpush1.msk.msra.mxu1 %vm986_vm0, %v934_v6 }
  0x8c   :  { %1947 = vmatprep.subr.bf16.mxu1 %v1946_v7 }
  0x8d   :  { %1387 = vmatpush1.msk.msra.mxu0 %vm986_vm0, %v932_v3 }
  0x8e   :  { %1943 = vmatprep.subr.bf16.mxu0 %v1942_v4 }
  0xf7   :  { %v1430_v8 = vpop.f32.mrb[0].mxu0 }
  0xf8   :  { %v1431_v10 = vpop.f32.mrb[1].mxu0 }
  0xf9   :  { %v1465_v11 = vpop.f32.mrb[0].mxu1  ;;  %v1432_v32 = vadd.f32 %v1431_v10, %v1430_v8 }
  0xfa   :  { %v1466_v12 = vpop.f32.mrb[1].mxu1 }
  0xfb   :  { %v1467_v14 = vadd.f32 %v1466_v12, %v1465_v11  ;;  %v282_v43 = vadd.f32 %v1432_v32, %v1384_v9 }
  0xfd   :  { %v352_v15 = vadd.f32 %v1467_v14, %v282_v43 }
 0x117   :  { %v1500_v16 = vpop.f32.mrb[2].mxu0 }
 0x118   :  { %v1501_v17 = vpop.f32.mrb[3].mxu0 }
 0x119   :  { %v1535_v18 = vpop.f32.mrb[2].mxu1  ;;  %v1502_v19 = vadd.f32 %v1501_v17, %v1500_v16 }
 0x11a   :  { %v1536_v20 = vpop.f32.mrb[3].mxu1 }
 0x11b   :  { %v1537_v21 = vadd.f32 %v1536_v20, %v1535_v18  ;;  %v422_v22 = vadd.f32 %v1502_v19, %v352_v15 }
 0x11d   :  { %v492_v23 = vadd.f32 %v1537_v21, %v422_v22 }
 0x11f   :  { %1296 = vst.msk [vmem:[#allocation2] sm:$0x3] %vm1295_vm1, %v492_v23 }
 0x137   :  { %v1570_v24 = vpop.f32.mrb[4].mxu0 }
 0x138   :  { %v1571_v26 = vpop.f32.mrb[5].mxu0 }
 0x139   :  { %v1605_v28 = vpop.f32.mrb[4].mxu1  ;;  %v1572_v29 = vadd.f32 %v1571_v26, %v1570_v24 }
 0x13a   :  { %v1606_v30 = vpop.f32.mrb[5].mxu1 }
 0x13b   :  { %v1607_v31 = vadd.f32 %v1606_v30, %v1605_v28  ;;  %v697_v34 = vadd.f32 %v1572_v29, %v1385_v25 }
 0x13d   :  { %v767_v35 = vadd.f32 %v1607_v31, %v697_v34 }
 0x157   :  { %v1640_v36 = vpop.f32.mrb[6].mxu0 }
 0x158   :  { %v1641_v38 = vpop.f32.mrb[7].mxu0 }
 0x159   :  { %v1675_v39 = vpop.f32.mrb[6].mxu1  ;;  %v1642_v40 = vadd.f32 %v1641_v38, %v1640_v36 }
 0x15a   :  { %v1676_v41 = vpop.f32.mrb[7].mxu1 }
 0x15b   :  { %v1677_v42 = vadd.f32 %v1676_v41, %v1675_v39  ;;  %v837_v27 = vadd.f32 %v1642_v40, %v767_v35 }
 0x15d   :  { %v907_v44 = vadd.f32 %v1677_v42, %v837_v27 }
 0x15f   :  { %v910_v45 = vmul.f32 0.5, %v907_v44  ;;  %1297 = vst.msk [vmem:[#allocation4] sm:$0x3] %vm1295_vm1, %v907_v44 }
 0x161   :  { %v911_v46 = vmul.f32 1.442695, %v910_v45 }
 0x163   :  { %1956 = vpow2.f32 %v911_v46 }
 0x16d   :  { %v1957_v53 = vpop.eup %1956 }
 0x16e   :  { %v914_v55 = vmul.f32 %v1957_v53, %v913_v33 }
 0x170   :  { %v915_v50 = vadd.f32 %v914_v55, %v492_v23 }
 0x172   :  { %1388 = vmatmul.mubr.msk.f32.vlgmr.msra.gmra.mrb[8].mxu0 %vm982_vm2, %v915_v50  ;;  %1391 = vmatmul.mubr.msk.f32.vlgmr.msra.gmra.mrb[8].mxu1 %vm982_vm2, %v915_v50 }
 0x173   :  { %1945 = vmatpush1.bf16.msra.mxu0 %v1944_v56  ;;  %1949 = vmatpush1.bf16.msra.mxu1 %v1948_v37 }
 0x174   :  { %1392 = vmatprep.subr.msk.mxu0 %vm986_vm0, %v937_v57  ;;  %1395 = vmatprep.subr.msk.mxu1 %vm986_vm0, %v939_v58 }
 0x175   :  { %1217 = vmatprep.mubr.f32.mxu0 %v2007_v49  ;;  %1288 = vmatprep.mubr.f32.mxu1 %v2007_v49 }
 0x177   :  { %1393 = vmatpush1.msk.msra.mxu0 %vm986_vm0, %v936_v54  ;;  %1396 = vmatpush1.msk.msra.mxu1 %vm986_vm0, %v938_v59 }
 0x178   :  { %1394 = vmatmul.mubr.msk.f32.vlgmr.msra.gmra.mrb[10].mxu0 %vm982_vm2, %v915_v50  ;;  %1397 = vmatmul.mubr.msk.f32.vlgmr.msra.gmra.mrb[10].mxu1 %vm982_vm2, %v915_v50 }
 0x179   :  { %1969 = shalt.err (!%p1966_p4)
}
 0x17a   :  { %s1970_s2 = scalar_lea.hbm %s3040_s8, 32 }
 0x17b   :  { %p1971_p5 = scmp.ne.s32.totalorder %s3040_s8, %s1970_s2  ;;  %p1974_p6 = scmp.lt.u32.totalorder %s1970_s2, %s3040_s8 }
 0x17d   :  { %p1976_p7 = pnand %p1974_p6, %p1971_p5 }
 0x17f   :  { %1979 = shalt.err (!%p1976_p7)
}
 0x180   :  { %1361 = dma.vmem_to_hbm [thread:$0]  %s1359_s27, 32, %s3040_s8, [#allocation3]  }
 0x181   :  { %s1980_s17 = scalar_lea.vmem %s1369_s29, 32  ;;  %p1985_p9 = scmp.lt.s32.totalorder %s1369_s29, %s1369_s29 }
 0x182   :  { %p1981_p8 = scmp.ne.s32.totalorder %s1369_s29, %s1980_s17  ;;  %p1986_p10 = scmp.lt.s32.totalorder %s1980_s17, %s1980_s17 }
 0x184   :  { %p1987_p11 = por %p1986_p10, %p1985_p9 }
 0x186   :  { %p1988_p12 = pnand %p1987_p11, %p1981_p8 }
 0x188   :  { %1991 = shalt.err (!%p1988_p12)
}
 0x189   :  { %s1992_s19 = scalar_lea.hbm %s3041_s9, 32 }
 0x18a   :  { %p1993_p13 = scmp.ne.s32.totalorder %s3041_s9, %s1992_s19  ;;  %p1996_p0 = scmp.lt.u32.totalorder %s1992_s19, %s3041_s9 }
 0x18c   :  { %p1998_p1 = pnand %p1996_p0, %p1993_p13 }
 0x18e   :  { %2001 = shalt.err (!%p1998_p1)
}
 0x18f   :  { %1371 = dma.vmem_to_hbm [thread:$0]  %s1369_s29, 32, %s3041_s9, [#allocation5]   ;;  %v944_v49 = vsub.s32 0, %v2191_v0  ;;  %v952_v60 = vsub.s32 2, %v2191_v0  ;;  %v940_v61 = vld [vmem:[%s3039_s7] sm:$0xff]  ;;  %v948_v62 = vsub.s32 1, %v2191_v0 }
 0x190   :  { %v956_v63 = vsub.s32 3, %v2191_v0  ;;  %v960_v5 = vsub.s32 4, %v2191_v0  ;;  %v968_v6 = vsub.s32 6, %v2191_v0  ;;  %v964_v9 = vsub.s32 5, %v2191_v0 }
 0x191   :  { %v945_v1 = vrot.slane %v940_v61, %v944_v49  ;;  %v953_v2 = vrot.slane %v940_v61, %v952_v60  ;;  %v949_v3 = vrot.slane %v940_v61, %v948_v62  ;;  %v972_v10 = vsub.s32 7, %v2191_v0 }
 0x192   :  { %v957_v4 = vrot.slane %v940_v61, %v956_v63  ;;  %v961_v18 = vrot.slane %v940_v61, %v960_v5  ;;  %v969_v19 = vrot.slane %v940_v61, %v968_v6  ;;  %v965_v22 = vrot.slane %v940_v61, %v964_v9 }
 0x193   :  { %v973_v23 = vrot.slane %v940_v61, %v972_v10 }
 0x245   :  { %v1077_v7 = vpop.f32.mrb[8].mxu0  ;;  %v1148_v8 = vpop.f32.mrb[8].mxu1 }
 0x246   :  { %v1078_v11 = vadd.f32 %v1077_v7, %v945_v1  ;;  %v1149_v32 = vadd.f32 %v1148_v8, %v953_v2  ;;  %v1079_v12 = vpop.f32.mrb[9].mxu0  ;;  %v1150_v14 = vpop.f32.mrb[9].mxu1 }
 0x247   :  { %v1080_v43 = vadd.f32 %v1079_v12, %v949_v3  ;;  %v1151_v15 = vadd.f32 %v1150_v14, %v957_v4 }
 0x248   :  { %v1298_v16 = vmax.f32 %v1078_v11, 0.0  ;;  %v1300_v17 = vmax.f32 %v1149_v32, 0.0 }
 0x249   :  { %v1299_v20 = vmax.f32 %v1080_v43, 0.0  ;;  %v1301_v21 = vmax.f32 %v1151_v15, 0.0 }
 0x24b   :  { %v1314_v24 = vcombine.low %v1298_v16, %v1299_v20  ;;  %v1315_v25 = vcombine.low %v1300_v17, %v1301_v21  ;;  %v1219_v26 = vpop.f32.mrb[10].mxu0  ;;  %v1290_v28 = vpop.f32.mrb[10].mxu1 }
 0x24c   :  { %v1220_v29 = vadd.f32 %v1219_v26, %v961_v18  ;;  %v1291_v0 = vadd.f32 %v1290_v28, %v969_v19  ;;  %v1221_v30 = vpop.f32.mrb[11].mxu0  ;;  %v1292_v31 = vpop.f32.mrb[11].mxu1 }
 0x24d   :  { %v1322_v34 = vrot.slane %v1314_v24, %v2218_v13  ;;  %v1329_v35 = vrot.slane %v1315_v25, %v2218_v13  ;;  %v1222_v36 = vadd.f32 %v1221_v30, %v965_v22  ;;  %v1293_v38 = vadd.f32 %v1292_v31, %v973_v23 }
 0x24e   :  { %v1302_v39 = vmax.f32 %v1220_v29, 0.0  ;;  %v1304_v40 = vmax.f32 %v1291_v0, 0.0 }
 0x24f   :  { %v1330_v41 = vcombine.low %v1322_v34, %v1329_v35  ;;  %v1303_v42 = vmax.f32 %v1222_v36, 0.0  ;;  %v1305_v27 = vmax.f32 %v1293_v38, 0.0 }
 0x251   :  { %1350 = vst [vmem:[%s3042_s10] sm:$0xff] %v1330_v41  ;;  %v1331_v44 = vcombine.low %v1302_v39, %v1303_v42  ;;  %v1332_v45 = vcombine.low %v1304_v40, %v1305_v27 }
 0x253   :  { %v1339_v46 = vrot.slane %v1331_v44, %v2218_v13  ;;  %v1346_v33 = vrot.slane %v1332_v45, %v2218_v13 }
 0x255   :  { %v1347_v47 = vcombine.low %v1339_v46, %v1346_v33 }
 0x257   :  { %1351 = vst [vmem:[%s3042_s10 + $0x8] sm:$0xff] %v1347_v47 }
 0x258   :  { %2002 = dma.done.wait [#allocation3], 32  }
 0x259   :  { %2003 = vsyncadd [#allocation3], 4294967264 }
 0x25a   :  { %2004 = dma.done.wait [#allocation5], 32  }
 0x25b   :  { %2005 = vsyncadd [#allocation5], 4294967264 }
 0x25c   :  { %1382 = vsyncpa [#allocation3], 1 }
 0x25d   :  { %1383 = vsyncpa [#allocation5], 1 }

// kernel: beta_vae_forward.12
= control target key start
LH: loop header
LB: loop body
LE: loop exit
PB: predicated region body
PF: predicated region fallthrough
CT: control target
= control target key end

     0   :  { %s3525_s1 = inlined_call_operand.vmem [shape: bf16[2048,256], index: 1, kind: input, shape index: {}]   ;;  %s3526_s0 = inlined_call_operand.vmem [shape: bf16[8,2048], index: 0, kind: input, shape index: {}]   ;;  %s3527_s2 = inlined_call_operand.vmem [shape: f32[1,256], index: 2, kind: input, shape index: {}]   ;;  %s3528_s3 = inlined_call_operand.vmem [shape: bf16[8,256], index: 3, kind: output, shape index: {}]  }
   0x1   :  { %v2271_v0 = vld [vmem:[%s3525_s1 + $0x4] ss:$8 sps:$4 sm:$0xff]   ;;  %v2275_v2 = vld [vmem:[%s3525_s1] ss:$8 sps:$4 sm:$0xff]   ;;  %v2277_v4 = vld [vmem:[%s3525_s1 + $0x14] ss:$8 sps:$4 sm:$0xff]  }
   0x2   :  { %v2273_v1 = vld [vmem:[%s3525_s1 + $0x404] ss:$8 sps:$4 sm:$0xff]   ;;  %1626 = vmatprep.subr.bf16.mxu1 %v2271_v0  ;;  %v2276_v3 = vld [vmem:[%s3525_s1 + $0x400] ss:$8 sps:$4 sm:$0xff]   ;;  %v2279_v5 = vld [vmem:[%s3525_s1 + $0x414] ss:$8 sps:$4 sm:$0xff]  }
   0x3   :  { %1790 = vmatprep.subr.bf16.mxu0 %v2273_v1  ;;  %1627 = vmatpush1.bf16.msra.mxu1 %v2275_v2  ;;  %v2281_v6 = vld [vmem:[%s3525_s1 + $0x10] ss:$8 sps:$4 sm:$0xff]   ;;  %v2283_v8 = vld [vmem:[%s3525_s1 + $0x24] ss:$8 sps:$4 sm:$0xff]   ;;  %v2287_v10 = vld [vmem:[%s3525_s1 + $0x20] ss:$8 sps:$4 sm:$0xff]  }
   0x4   :  { %1791 = vmatpush1.bf16.msra.mxu0 %v2276_v3  ;;  %1628 = vmatprep.subr.bf16.mxu1 %v2277_v4  ;;  %v2282_v7 = vld [vmem:[%s3525_s1 + $0x410] ss:$8 sps:$4 sm:$0xff]   ;;  %v2285_v9 = vld [vmem:[%s3525_s1 + $0x424] ss:$8 sps:$4 sm:$0xff]   ;;  %v2288_v11 = vld [vmem:[%s3525_s1 + $0x420] ss:$8 sps:$4 sm:$0xff]  }
   0x5   :  { %1792 = vmatprep.subr.bf16.mxu0 %v2279_v5  ;;  %v2289_v12 = vld [vmem:[%s3525_s1 + $0x34] ss:$8 sps:$4 sm:$0xff]   ;;  %v2293_v14 = vld [vmem:[%s3525_s1 + $0x30] ss:$8 sps:$4 sm:$0xff]   ;;  %v2295_v16 = vld [vmem:[%s3525_s1 + $0x44] ss:$8 sps:$4 sm:$0xff]  }
   0x6   :  { %v2291_v13 = vld [vmem:[%s3525_s1 + $0x434] ss:$8 sps:$4 sm:$0xff]   ;;  %v2294_v15 = vld [vmem:[%s3525_s1 + $0x430] ss:$8 sps:$4 sm:$0xff]   ;;  %v2297_v17 = vld [vmem:[%s3525_s1 + $0x444] ss:$8 sps:$4 sm:$0xff]  }
   0x7   :  { %1629 = vmatpush1.bf16.msra.mxu1 %v2281_v6  ;;  %v2299_v18 = vld [vmem:[%s3525_s1 + $0x40] ss:$8 sps:$4 sm:$0xff]   ;;  %v2301_v20 = vld [vmem:[%s3525_s1 + $0x54] ss:$8 sps:$4 sm:$0xff]   ;;  %v2305_v22 = vld [vmem:[%s3525_s1 + $0x50] ss:$8 sps:$4 sm:$0xff]  }
   0x8   :  { %1793 = vmatpush1.bf16.msra.mxu0 %v2282_v7  ;;  %1630 = vmatprep.subr.bf16.mxu1 %v2283_v8  ;;  %v2300_v19 = vld [vmem:[%s3525_s1 + $0x440] ss:$8 sps:$4 sm:$0xff]   ;;  %v2303_v21 = vld [vmem:[%s3525_s1 + $0x454] ss:$8 sps:$4 sm:$0xff]   ;;  %v2306_v23 = vld [vmem:[%s3525_s1 + $0x450] ss:$8 sps:$4 sm:$0xff]  }
   0x9   :  { %1794 = vmatprep.subr.bf16.mxu0 %v2285_v9  ;;  %v2307_v24 = vld [vmem:[%s3525_s1 + $0x64] ss:$8 sps:$4 sm:$0xff]   ;;  %v2311_v26 = vld [vmem:[%s3525_s1 + $0x60] ss:$8 sps:$4 sm:$0xff]   ;;  %v2313_v28 = vld [vmem:[%s3525_s1 + $0x74] ss:$8 sps:$4 sm:$0xff]  }
   0xa   :  { %v2309_v25 = vld [vmem:[%s3525_s1 + $0x464] ss:$8 sps:$4 sm:$0xff]   ;;  %v2312_v27 = vld [vmem:[%s3525_s1 + $0x460] ss:$8 sps:$4 sm:$0xff]   ;;  %v2315_v29 = vld [vmem:[%s3525_s1 + $0x474] ss:$8 sps:$4 sm:$0xff]  }
   0xb   :  { %1631 = vmatpush1.bf16.msra.mxu1 %v2287_v10  ;;  %v2317_v30 = vld [vmem:[%s3525_s1 + $0x70] ss:$8 sps:$4 sm:$0xff]   ;;  %v2319_v32 = vld [vmem:[%s3525_s1 + $0x84] ss:$8 sps:$4 sm:$0xff]   ;;  %v2323_v34 = vld [vmem:[%s3525_s1 + $0x80] ss:$8 sps:$4 sm:$0xff]  }
   0xc   :  { %1795 = vmatpush1.bf16.msra.mxu0 %v2288_v11  ;;  %1632 = vmatprep.subr.bf16.mxu1 %v2289_v12  ;;  %v2318_v31 = vld [vmem:[%s3525_s1 + $0x470] ss:$8 sps:$4 sm:$0xff]   ;;  %v2321_v33 = vld [vmem:[%s3525_s1 + $0x484] ss:$8 sps:$4 sm:$0xff]   ;;  %v2324_v35 = vld [vmem:[%s3525_s1 + $0x480] ss:$8 sps:$4 sm:$0xff]  }
   0xd   :  { %1796 = vmatprep.subr.bf16.mxu0 %v2291_v13  ;;  %v2325_v36 = vld [vmem:[%s3525_s1 + $0x94] ss:$8 sps:$4 sm:$0xff]   ;;  %v2329_v38 = vld [vmem:[%s3525_s1 + $0x90] ss:$8 sps:$4 sm:$0xff]   ;;  %v2331_v40 = vld [vmem:[%s3525_s1 + $0xa4] ss:$8 sps:$4 sm:$0xff]  }
   0xe   :  { %v2327_v37 = vld [vmem:[%s3525_s1 + $0x494] ss:$8 sps:$4 sm:$0xff]   ;;  %v2330_v39 = vld [vmem:[%s3525_s1 + $0x490] ss:$8 sps:$4 sm:$0xff]   ;;  %v2333_v41 = vld [vmem:[%s3525_s1 + $0x4a4] ss:$8 sps:$4 sm:$0xff]  }
   0xf   :  { %1633 = vmatpush1.bf16.msra.mxu1 %v2293_v14  ;;  %v2335_v42 = vld [vmem:[%s3525_s1 + $0xa0] ss:$8 sps:$4 sm:$0xff]   ;;  %v2337_v44 = vld [vmem:[%s3525_s1 + $0xb4] ss:$8 sps:$4 sm:$0xff]   ;;  %v2341_v47 = vld [vmem:[%s3525_s1 + $0xb0] ss:$8 sps:$4 sm:$0xff]  }
  0x10   :  { %1797 = vmatpush1.bf16.msra.mxu0 %v2294_v15  ;;  %1634 = vmatprep.subr.bf16.mxu1 %v2295_v16  ;;  %v2336_v43 = vld [vmem:[%s3525_s1 + $0x4a0] ss:$8 sps:$4 sm:$0xff]   ;;  %v2339_v45 = vld [vmem:[%s3525_s1 + $0x4b4] ss:$8 sps:$4 sm:$0xff]   ;;  %v2342_v49 = vld [vmem:[%s3525_s1 + $0x4b0] ss:$8 sps:$4 sm:$0xff]  }
  0x11   :  { %1798 = vmatprep.subr.bf16.mxu0 %v2297_v17  ;;  %v14_v46 = vld [vmem:[%s3526_s0] sm:$0xff]  ;;  %v2349_v56 = vld [vmem:[%s3525_s1 + $0xd4] ss:$8 sps:$4 sm:$0xff]   ;;  %v2353_v58 = vld [vmem:[%s3525_s1 + $0xd0] ss:$8 sps:$4 sm:$0xff]  }
  0x12   :  { %v1970_v48 = vcombine.high %v14_v46, %v14_v46  ;;  %v18_v50 = vld [vmem:[%s3526_s0 + $0x20] sm:$0xff]  ;;  %v2351_v57 = vld [vmem:[%s3525_s1 + $0x4d4] ss:$8 sps:$4 sm:$0xff]   ;;  %v2354_v59 = vld [vmem:[%s3525_s1 + $0x4d0] ss:$8 sps:$4 sm:$0xff]   ;;  %v1969_v6 = vcombine.low %v14_v46, %v14_v46 }
  0x13   :  { %1635 = vmatpush1.bf16.msra.mxu1 %v2299_v18  ;;  %v2343_v51 = vld [vmem:[%s3525_s1 + $0xc4] ss:$8 sps:$4 sm:$0xff]   ;;  %v1978_v53 = vcombine.high %v18_v50, %v18_v50  ;;  %v2347_v54 = vld [vmem:[%s3525_s1 + $0xc0] ss:$8 sps:$4 sm:$0xff]   ;;  %v2361_v0 = vld [vmem:[%s3525_s1 + $0xf4] ss:$8 sps:$4 sm:$0xff]   ;;  %v1977_v7 = vcombine.low %v18_v50, %v18_v50 }
  0x14   :  { %1799 = vmatpush1.bf16.msra.mxu0 %v2300_v19  ;;  %1636 = vmatprep.subr.bf16.mxu1 %v2301_v20  ;;  %v2345_v52 = vld [vmem:[%s3525_s1 + $0x4c4] ss:$8 sps:$4 sm:$0xff]   ;;  %v2348_v55 = vld [vmem:[%s3525_s1 + $0x4c0] ss:$8 sps:$4 sm:$0xff]   ;;  %v2363_v1 = vld [vmem:[%s3525_s1 + $0x4f4] ss:$8 sps:$4 sm:$0xff]  }
  0x15   :  { %1800 = vmatprep.subr.bf16.mxu0 %v2303_v21  ;;  %1658 = vmatprep.mubr.bf16.mxu1 %v1970_v48  ;;  %v2355_v60 = vld [vmem:[%s3525_s1 + $0xe4] ss:$8 sps:$4 sm:$0xff]   ;;  %v2359_v62 = vld [vmem:[%s3525_s1 + $0xe0] ss:$8 sps:$4 sm:$0xff]   ;;  %v2365_v2 = vld [vmem:[%s3525_s1 + $0xf0] ss:$8 sps:$4 sm:$0xff]  }
  0x16   :  { %1822 = vmatprep.mubr.bf16.mxu0 %v1978_v53  ;;  %v2357_v61 = vld [vmem:[%s3525_s1 + $0x4e4] ss:$8 sps:$4 sm:$0xff]   ;;  %v2360_v63 = vld [vmem:[%s3525_s1 + $0x4e0] ss:$8 sps:$4 sm:$0xff]   ;;  %v2366_v3 = vld [vmem:[%s3525_s1 + $0x4f0] ss:$8 sps:$4 sm:$0xff]  }
  0x17   :  { %1637 = vmatpush1.bf16.msra.mxu1 %v2305_v22  ;;  %v2371_v4 = vld [vmem:[%s3525_s1 + $0x104] ss:$8 sps:$4 sm:$0xff]   ;;  %v2369_v8 = vld [vmem:[%s3525_s1 + $0x100] ss:$8 sps:$4 sm:$0xff]   ;;  %v2379_v10 = vld [vmem:[%s3525_s1 + $0x114] ss:$8 sps:$4 sm:$0xff]  }
  0x18   :  { %1801 = vmatpush1.bf16.msra.mxu0 %v2306_v23  ;;  %1638 = vmatprep.subr.bf16.mxu1 %v2307_v24  ;;  %v2376_v5 = vld [vmem:[%s3525_s1 + $0x504] ss:$8 sps:$4 sm:$0xff]   ;;  %v2374_v9 = vld [vmem:[%s3525_s1 + $0x500] ss:$8 sps:$4 sm:$0xff]   ;;  %v2382_v11 = vld [vmem:[%s3525_s1 + $0x514] ss:$8 sps:$4 sm:$0xff]  }
  0x19   :  { %1802 = vmatprep.subr.bf16.mxu0 %v2309_v25  ;;  %v2377_v12 = vld [vmem:[%s3525_s1 + $0x110] ss:$8 sps:$4 sm:$0xff]   ;;  %v2385_v14 = vld [vmem:[%s3525_s1 + $0x124] ss:$8 sps:$4 sm:$0xff]   ;;  %v2383_v16 = vld [vmem:[%s3525_s1 + $0x120] ss:$8 sps:$4 sm:$0xff]  }
  0x1a   :  { %v2380_v13 = vld [vmem:[%s3525_s1 + $0x510] ss:$8 sps:$4 sm:$0xff]   ;;  %v2388_v15 = vld [vmem:[%s3525_s1 + $0x524] ss:$8 sps:$4 sm:$0xff]   ;;  %v2386_v17 = vld [vmem:[%s3525_s1 + $0x520] ss:$8 sps:$4 sm:$0xff]  }
  0x1b   :  { %1639 = vmatpush1.bf16.msra.mxu1 %v2311_v26  ;;  %v2391_v18 = vld [vmem:[%s3525_s1 + $0x134] ss:$8 sps:$4 sm:$0xff]   ;;  %v2389_v20 = vld [vmem:[%s3525_s1 + $0x130] ss:$8 sps:$4 sm:$0xff]   ;;  %v2397_v22 = vld [vmem:[%s3525_s1 + $0x144] ss:$8 sps:$4 sm:$0xff]  }
  0x1c   :  { %1803 = vmatpush1.bf16.msra.mxu0 %v2312_v27  ;;  %1640 = vmatprep.subr.bf16.mxu1 %v2313_v28  ;;  %v2394_v19 = vld [vmem:[%s3525_s1 + $0x534] ss:$8 sps:$4 sm:$0xff]   ;;  %v2392_v21 = vld [vmem:[%s3525_s1 + $0x530] ss:$8 sps:$4 sm:$0xff]   ;;  %v2400_v23 = vld [vmem:[%s3525_s1 + $0x544] ss:$8 sps:$4 sm:$0xff]  }
  0x1d   :  { %1804 = vmatprep.subr.bf16.mxu0 %v2315_v29  ;;  %v2395_v24 = vld [vmem:[%s3525_s1 + $0x140] ss:$8 sps:$4 sm:$0xff]   ;;  %v2403_v26 = vld [vmem:[%s3525_s1 + $0x154] ss:$8 sps:$4 sm:$0xff]   ;;  %v2401_v28 = vld [vmem:[%s3525_s1 + $0x150] ss:$8 sps:$4 sm:$0xff]  }
  0x1e   :  { %v2398_v25 = vld [vmem:[%s3525_s1 + $0x540] ss:$8 sps:$4 sm:$0xff]   ;;  %v2406_v27 = vld [vmem:[%s3525_s1 + $0x554] ss:$8 sps:$4 sm:$0xff]   ;;  %v2404_v29 = vld [vmem:[%s3525_s1 + $0x550] ss:$8 sps:$4 sm:$0xff]  }
  0x1f   :  { %1641 = vmatpush1.bf16.msra.mxu1 %v2317_v30  ;;  %v2409_v30 = vld [vmem:[%s3525_s1 + $0x164] ss:$8 sps:$4 sm:$0xff]   ;;  %v2427_v46 = vld [vmem:[%s3525_s1 + $0x194] ss:$8 sps:$4 sm:$0xff]   ;;  %v2425_v48 = vld [vmem:[%s3525_s1 + $0x190] ss:$8 sps:$4 sm:$0xff]  }
  0x20   :  { %1805 = vmatpush1.bf16.msra.mxu0 %v2318_v31  ;;  %1642 = vmatprep.subr.bf16.mxu1 %v2319_v32  ;;  %v2412_v31 = vld [vmem:[%s3525_s1 + $0x564] ss:$8 sps:$4 sm:$0xff]   ;;  %v2434_v53 = vld [vmem:[%s3525_s1 + $0x5a0] ss:$8 sps:$4 sm:$0xff]  }
  0x21   :  { %1806 = vmatprep.subr.bf16.mxu0 %v2321_v33  ;;  %v2970_v32 = vld [vmem:[%s3526_s0 + $0x8] sm:$0xff] }
  0x22   :  { %v2407_v33 = vld [vmem:[%s3525_s1 + $0x160] ss:$8 sps:$4 sm:$0xff]   ;;  %v2433_v50 = vld [vmem:[%s3525_s1 + $0x1a4] ss:$8 sps:$4 sm:$0xff]  }
  0x23   :  { %1643 = vmatpush1.bf16.msra.mxu1 %v2323_v34  ;;  %v2410_v34 = vld [vmem:[%s3525_s1 + $0x560] ss:$8 sps:$4 sm:$0xff]  }
  0x24   :  { %1807 = vmatpush1.bf16.msra.mxu0 %v2324_v35  ;;  %1644 = vmatprep.subr.bf16.mxu1 %v2325_v36  ;;  %v1972_v35 = vcombine.high %v2970_v32, %v2970_v32  ;;  %v2983_v36 = vld [vmem:[%s3526_s0 + $0x28] sm:$0xff] }
  0x25   :  { %1808 = vmatprep.subr.bf16.mxu0 %v2327_v37  ;;  %v2415_v37 = vld [vmem:[%s3525_s1 + $0x174] ss:$8 sps:$4 sm:$0xff]  }
  0x27   :  { %1645 = vmatpush1.bf16.msra.mxu1 %v2329_v38  ;;  %v1980_v38 = vcombine.high %v2983_v36, %v2983_v36 }
  0x28   :  { %1809 = vmatpush1.bf16.msra.mxu0 %v2330_v39  ;;  %1646 = vmatprep.subr.bf16.mxu1 %v2331_v40  ;;  %v2418_v39 = vld [vmem:[%s3525_s1 + $0x574] ss:$8 sps:$4 sm:$0xff]   ;;  %v2413_v40 = vld [vmem:[%s3525_s1 + $0x170] ss:$8 sps:$4 sm:$0xff]  }
  0x29   :  { %1810 = vmatprep.subr.bf16.mxu0 %v2333_v41  ;;  %v2416_v41 = vld [vmem:[%s3525_s1 + $0x570] ss:$8 sps:$4 sm:$0xff]  }
  0x2b   :  { %1647 = vmatpush1.bf16.msra.mxu1 %v2335_v42  ;;  %v2421_v42 = vld [vmem:[%s3525_s1 + $0x184] ss:$8 sps:$4 sm:$0xff]  }
  0x2c   :  { %1811 = vmatpush1.bf16.msra.mxu0 %v2336_v43  ;;  %1648 = vmatprep.subr.bf16.mxu1 %v2337_v44  ;;  %v2424_v43 = vld [vmem:[%s3525_s1 + $0x584] ss:$8 sps:$4 sm:$0xff]   ;;  %v2419_v44 = vld [vmem:[%s3525_s1 + $0x180] ss:$8 sps:$4 sm:$0xff]  }
  0x2d   :  { %1812 = vmatprep.subr.bf16.mxu0 %v2339_v45  ;;  %v2422_v45 = vld [vmem:[%s3525_s1 + $0x580] ss:$8 sps:$4 sm:$0xff]  }
  0x2f   :  { %1649 = vmatpush1.bf16.msra.mxu1 %v2341_v47  ;;  %v2430_v47 = vld [vmem:[%s3525_s1 + $0x594] ss:$8 sps:$4 sm:$0xff]  }
  0x30   :  { %1813 = vmatpush1.bf16.msra.mxu0 %v2342_v49  ;;  %1650 = vmatprep.subr.bf16.mxu1 %v2343_v51  ;;  %v2428_v49 = vld [vmem:[%s3525_s1 + $0x590] ss:$8 sps:$4 sm:$0xff]   ;;  %v2436_v51 = vld [vmem:[%s3525_s1 + $0x5a4] ss:$8 sps:$4 sm:$0xff]  }
  0x31   :  { %1814 = vmatprep.subr.bf16.mxu0 %v2345_v52  ;;  %v2431_v52 = vld [vmem:[%s3525_s1 + $0x1a0] ss:$8 sps:$4 sm:$0xff]  }
  0x33   :  { %1651 = vmatpush1.bf16.msra.mxu1 %v2347_v54  ;;  %v2439_v54 = vld [vmem:[%s3525_s1 + $0x1b4] ss:$8 sps:$4 sm:$0xff]  }
  0x34   :  { %1815 = vmatpush1.bf16.msra.mxu0 %v2348_v55  ;;  %1652 = vmatprep.subr.bf16.mxu1 %v2349_v56  ;;  %v2442_v55 = vld [vmem:[%s3525_s1 + $0x5b4] ss:$8 sps:$4 sm:$0xff]   ;;  %v2437_v56 = vld [vmem:[%s3525_s1 + $0x1b0] ss:$8 sps:$4 sm:$0xff]  }
  0x35   :  { %1816 = vmatprep.subr.bf16.mxu0 %v2351_v57  ;;  %v2440_v57 = vld [vmem:[%s3525_s1 + $0x5b0] ss:$8 sps:$4 sm:$0xff]  }
  0x37   :  { %1653 = vmatpush1.bf16.msra.mxu1 %v2353_v58  ;;  %v2445_v58 = vld [vmem:[%s3525_s1 + $0x1c4] ss:$8 sps:$4 sm:$0xff]  }
  0x38   :  { %1817 = vmatpush1.bf16.msra.mxu0 %v2354_v59  ;;  %1654 = vmatprep.subr.bf16.mxu1 %v2355_v60  ;;  %v2448_v59 = vld [vmem:[%s3525_s1 + $0x5c4] ss:$8 sps:$4 sm:$0xff]   ;;  %v2443_v60 = vld [vmem:[%s3525_s1 + $0x1c0] ss:$8 sps:$4 sm:$0xff]  }
  0x39   :  { %1818 = vmatprep.subr.bf16.mxu0 %v2357_v61  ;;  %v2446_v61 = vld [vmem:[%s3525_s1 + $0x5c0] ss:$8 sps:$4 sm:$0xff]  }
  0x3b   :  { %1655 = vmatpush1.bf16.msra.mxu1 %v2359_v62  ;;  %v2451_v62 = vld [vmem:[%s3525_s1 + $0x1d4] ss:$8 sps:$4 sm:$0xff]  }
  0x3c   :  { %1819 = vmatpush1.bf16.msra.mxu0 %v2360_v63  ;;  %1656 = vmatprep.subr.bf16.mxu1 %v2361_v0  ;;  %v2454_v63 = vld [vmem:[%s3525_s1 + $0x5d4] ss:$8 sps:$4 sm:$0xff]   ;;  %v2449_v0 = vld [vmem:[%s3525_s1 + $0x1d0] ss:$8 sps:$4 sm:$0xff]  }
  0x3d   :  { %1820 = vmatprep.subr.bf16.mxu0 %v2363_v1  ;;  %v2452_v1 = vld [vmem:[%s3525_s1 + $0x5d0] ss:$8 sps:$4 sm:$0xff]  }
  0x3f   :  { %1657 = vmatpush1.bf16.msra.mxu1 %v2365_v2  ;;  %v2457_v2 = vld [vmem:[%s3525_s1 + $0x1e4] ss:$8 sps:$4 sm:$0xff]  }
  0x40   :  { %1821 = vmatpush1.bf16.msra.mxu0 %v2366_v3  ;;  %1667 = vmatprep.subr.bf16.mxu1 %v2371_v4  ;;  %v2460_v3 = vld [vmem:[%s3525_s1 + $0x5e4] ss:$8 sps:$4 sm:$0xff]   ;;  %v2455_v4 = vld [vmem:[%s3525_s1 + $0x1e0] ss:$8 sps:$4 sm:$0xff]  }
  0x41   :  { %1831 = vmatprep.subr.bf16.mxu0 %v2376_v5  ;;  %v2458_v5 = vld [vmem:[%s3525_s1 + $0x5e0] ss:$8 sps:$4 sm:$0xff]  }
  0x42   :  { %1659 = vmatmul.mubr.bf16.vlgmr.msra.gmra.mrb[0].mxu1 %v1969_v6  ;;  %v2463_v6 = vld [vmem:[%s3525_s1 + $0x1f4] ss:$8 sps:$4 sm:$0xff]  }
  0x43   :  { %1823 = vmatmul.mubr.bf16.vlgmr.msra.gmra.mrb[0].mxu0 %v1977_v7  ;;  %1668 = vmatpush1.bf16.msra.mxu1 %v2369_v8  ;;  %v2466_v7 = vld [vmem:[%s3525_s1 + $0x5f4] ss:$8 sps:$4 sm:$0xff]   ;;  %v2461_v8 = vld [vmem:[%s3525_s1 + $0x1f0] ss:$8 sps:$4 sm:$0xff]  }
  0x44   :  { %1832 = vmatpush1.bf16.msra.mxu0 %v2374_v9  ;;  %1669 = vmatprep.subr.bf16.mxu1 %v2379_v10  ;;  %v2464_v9 = vld [vmem:[%s3525_s1 + $0x5f0] ss:$8 sps:$4 sm:$0xff]   ;;  %v2471_v10 = vld [vmem:[%s3525_s1 + $0x204] ss:$8 sps:$4 sm:$0xff]  }
  0x45   :  { %1833 = vmatprep.subr.bf16.mxu0 %v2382_v11  ;;  %1699 = vmatprep.mubr.bf16.mxu1 %v1972_v35  ;;  %v2476_v11 = vld [vmem:[%s3525_s1 + $0x604] ss:$8 sps:$4 sm:$0xff]   ;;  %v2498_v35 = vld [vmem:[%s3525_s1 + $0x640] ss:$8 sps:$4 sm:$0xff]  }
  0x46   :  { %1863 = vmatprep.mubr.bf16.mxu0 %v1980_v38  ;;  %v2501_v38 = vld [vmem:[%s3525_s1 + $0x250] ss:$8 sps:$4 sm:$0xff]  }
  0x47   :  { %1670 = vmatpush1.bf16.msra.mxu1 %v2377_v12  ;;  %v1971_v12 = vcombine.low %v2970_v32, %v2970_v32  ;;  %v2497_v32 = vld [vmem:[%s3525_s1 + $0x244] ss:$8 sps:$4 sm:$0xff]  }
  0x48   :  { %1834 = vmatpush1.bf16.msra.mxu0 %v2380_v13  ;;  %1671 = vmatprep.subr.bf16.mxu1 %v2385_v14  ;;  %v2469_v13 = vld [vmem:[%s3525_s1 + $0x200] ss:$8 sps:$4 sm:$0xff]   ;;  %v1979_v14 = vcombine.low %v2983_v36, %v2983_v36  ;;  %v2503_v36 = vld [vmem:[%s3525_s1 + $0x254] ss:$8 sps:$4 sm:$0xff]  }
  0x49   :  { %1835 = vmatprep.subr.bf16.mxu0 %v2388_v15  ;;  %v2474_v15 = vld [vmem:[%s3525_s1 + $0x600] ss:$8 sps:$4 sm:$0xff]  }
  0x4b   :  { %1672 = vmatpush1.bf16.msra.mxu1 %v2383_v16  ;;  %v2479_v16 = vld [vmem:[%s3525_s1 + $0x214] ss:$8 sps:$4 sm:$0xff]  }
  0x4c   :  { %1836 = vmatpush1.bf16.msra.mxu0 %v2386_v17  ;;  %1673 = vmatprep.subr.bf16.mxu1 %v2391_v18  ;;  %v2482_v17 = vld [vmem:[%s3525_s1 + $0x614] ss:$8 sps:$4 sm:$0xff]  }
  0x4d   :  { %1837 = vmatprep.subr.bf16.mxu0 %v2394_v19  ;;  %v3120_v18 = vld [vmem:[%s3526_s0 + $0x10] sm:$0xff] }
  0x4e   :  { %v1974_v19 = vcombine.high %v3120_v18, %v3120_v18 }
  0x4f   :  { %1674 = vmatpush1.bf16.msra.mxu1 %v2389_v20  ;;  %v3127_v20 = vld [vmem:[%s3526_s0 + $0x30] sm:$0xff] }
  0x50   :  { %1838 = vmatpush1.bf16.msra.mxu0 %v2392_v21  ;;  %1675 = vmatprep.subr.bf16.mxu1 %v2397_v22  ;;  %v2477_v21 = vld [vmem:[%s3525_s1 + $0x210] ss:$8 sps:$4 sm:$0xff]  }
  0x51   :  { %1839 = vmatprep.subr.bf16.mxu0 %v2400_v23  ;;  %v2480_v22 = vld [vmem:[%s3525_s1 + $0x610] ss:$8 sps:$4 sm:$0xff]   ;;  %v1982_v23 = vcombine.high %v3127_v20, %v3127_v20 }
  0x53   :  { %1676 = vmatpush1.bf16.msra.mxu1 %v2395_v24  ;;  %v2485_v24 = vld [vmem:[%s3525_s1 + $0x224] ss:$8 sps:$4 sm:$0xff]  }
  0x54   :  { %1840 = vmatpush1.bf16.msra.mxu0 %v2398_v25  ;;  %1677 = vmatprep.subr.bf16.mxu1 %v2403_v26  ;;  %v2488_v25 = vld [vmem:[%s3525_s1 + $0x624] ss:$8 sps:$4 sm:$0xff]   ;;  %v2483_v26 = vld [vmem:[%s3525_s1 + $0x220] ss:$8 sps:$4 sm:$0xff]  }
  0x55   :  { %1841 = vmatprep.subr.bf16.mxu0 %v2406_v27  ;;  %v2486_v27 = vld [vmem:[%s3525_s1 + $0x620] ss:$8 sps:$4 sm:$0xff]  }
  0x57   :  { %1678 = vmatpush1.bf16.msra.mxu1 %v2401_v28  ;;  %v2491_v28 = vld [vmem:[%s3525_s1 + $0x234] ss:$8 sps:$4 sm:$0xff]  }
  0x58   :  { %1842 = vmatpush1.bf16.msra.mxu0 %v2404_v29  ;;  %1679 = vmatprep.subr.bf16.mxu1 %v2409_v30  ;;  %v2494_v29 = vld [vmem:[%s3525_s1 + $0x634] ss:$8 sps:$4 sm:$0xff]   ;;  %v2489_v30 = vld [vmem:[%s3525_s1 + $0x230] ss:$8 sps:$4 sm:$0xff]  }
  0x59   :  { %1843 = vmatprep.subr.bf16.mxu0 %v2412_v31  ;;  %v2492_v31 = vld [vmem:[%s3525_s1 + $0x630] ss:$8 sps:$4 sm:$0xff]  }
  0x5b   :  { %1680 = vmatpush1.bf16.msra.mxu1 %v2407_v33  ;;  %v2500_v33 = vld [vmem:[%s3525_s1 + $0x644] ss:$8 sps:$4 sm:$0xff]  }
  0x5c   :  { %1844 = vmatpush1.bf16.msra.mxu0 %v2410_v34  ;;  %1681 = vmatprep.subr.bf16.mxu1 %v2415_v37  ;;  %v2495_v34 = vld [vmem:[%s3525_s1 + $0x240] ss:$8 sps:$4 sm:$0xff]   ;;  %v2506_v37 = vld [vmem:[%s3525_s1 + $0x654] ss:$8 sps:$4 sm:$0xff]  }
  0x5d   :  { %1845 = vmatprep.subr.bf16.mxu0 %v2418_v39  ;;  %v2504_v39 = vld [vmem:[%s3525_s1 + $0x650] ss:$8 sps:$4 sm:$0xff]  }
  0x5f   :  { %1682 = vmatpush1.bf16.msra.mxu1 %v2413_v40  ;;  %v2509_v40 = vld [vmem:[%s3525_s1 + $0x264] ss:$8 sps:$4 sm:$0xff]  }
  0x60   :  { %1846 = vmatpush1.bf16.msra.mxu0 %v2416_v41  ;;  %1683 = vmatprep.subr.bf16.mxu1 %v2421_v42  ;;  %v2512_v41 = vld [vmem:[%s3525_s1 + $0x664] ss:$8 sps:$4 sm:$0xff]   ;;  %v2507_v42 = vld [vmem:[%s3525_s1 + $0x260] ss:$8 sps:$4 sm:$0xff]  }
  0x61   :  { %1847 = vmatprep.subr.bf16.mxu0 %v2424_v43  ;;  %v2510_v43 = vld [vmem:[%s3525_s1 + $0x660] ss:$8 sps:$4 sm:$0xff]  }
  0x63   :  { %1684 = vmatpush1.bf16.msra.mxu1 %v2419_v44  ;;  %v2515_v44 = vld [vmem:[%s3525_s1 + $0x274] ss:$8 sps:$4 sm:$0xff]  }
  0x64   :  { %1848 = vmatpush1.bf16.msra.mxu0 %v2422_v45  ;;  %1685 = vmatprep.subr.bf16.mxu1 %v2427_v46  ;;  %v2518_v45 = vld [vmem:[%s3525_s1 + $0x674] ss:$8 sps:$4 sm:$0xff]   ;;  %v2513_v46 = vld [vmem:[%s3525_s1 + $0x270] ss:$8 sps:$4 sm:$0xff]  }
  0x65   :  { %1849 = vmatprep.subr.bf16.mxu0 %v2430_v47  ;;  %v2516_v47 = vld [vmem:[%s3525_s1 + $0x670] ss:$8 sps:$4 sm:$0xff]  }
  0x67   :  { %1686 = vmatpush1.bf16.msra.mxu1 %v2425_v48  ;;  %v2521_v48 = vld [vmem:[%s3525_s1 + $0x284] ss:$8 sps:$4 sm:$0xff]  }
  0x68   :  { %1850 = vmatpush1.bf16.msra.mxu0 %v2428_v49  ;;  %1687 = vmatprep.subr.bf16.mxu1 %v2433_v50  ;;  %v2524_v49 = vld [vmem:[%s3525_s1 + $0x684] ss:$8 sps:$4 sm:$0xff]   ;;  %v2519_v50 = vld [vmem:[%s3525_s1 + $0x280] ss:$8 sps:$4 sm:$0xff]  }
  0x69   :  { %1851 = vmatprep.subr.bf16.mxu0 %v2436_v51  ;;  %v2522_v51 = vld [vmem:[%s3525_s1 + $0x680] ss:$8 sps:$4 sm:$0xff]  }
  0x6b   :  { %1688 = vmatpush1.bf16.msra.mxu1 %v2431_v52  ;;  %v2527_v52 = vld [vmem:[%s3525_s1 + $0x294] ss:$8 sps:$4 sm:$0xff]  }
  0x6c   :  { %1852 = vmatpush1.bf16.msra.mxu0 %v2434_v53  ;;  %1689 = vmatprep.subr.bf16.mxu1 %v2439_v54  ;;  %v2530_v53 = vld [vmem:[%s3525_s1 + $0x694] ss:$8 sps:$4 sm:$0xff]   ;;  %v2525_v54 = vld [vmem:[%s3525_s1 + $0x290] ss:$8 sps:$4 sm:$0xff]  }
  0x6d   :  { %1853 = vmatprep.subr.bf16.mxu0 %v2442_v55  ;;  %v2528_v55 = vld [vmem:[%s3525_s1 + $0x690] ss:$8 sps:$4 sm:$0xff]  }
  0x6f   :  { %1690 = vmatpush1.bf16.msra.mxu1 %v2437_v56  ;;  %v2533_v56 = vld [vmem:[%s3525_s1 + $0x2a4] ss:$8 sps:$4 sm:$0xff]  }
  0x70   :  { %1854 = vmatpush1.bf16.msra.mxu0 %v2440_v57  ;;  %1691 = vmatprep.subr.bf16.mxu1 %v2445_v58  ;;  %v2536_v57 = vld [vmem:[%s3525_s1 + $0x6a4] ss:$8 sps:$4 sm:$0xff]   ;;  %v2531_v58 = vld [vmem:[%s3525_s1 + $0x2a0] ss:$8 sps:$4 sm:$0xff]  }
  0x71   :  { %1855 = vmatprep.subr.bf16.mxu0 %v2448_v59  ;;  %v2534_v59 = vld [vmem:[%s3525_s1 + $0x6a0] ss:$8 sps:$4 sm:$0xff]  }
  0x73   :  { %1692 = vmatpush1.bf16.msra.mxu1 %v2443_v60  ;;  %v2539_v60 = vld [vmem:[%s3525_s1 + $0x2b4] ss:$8 sps:$4 sm:$0xff]  }
  0x74   :  { %1856 = vmatpush1.bf16.msra.mxu0 %v2446_v61  ;;  %1693 = vmatprep.subr.bf16.mxu1 %v2451_v62  ;;  %v2542_v61 = vld [vmem:[%s3525_s1 + $0x6b4] ss:$8 sps:$4 sm:$0xff]   ;;  %v2537_v62 = vld [vmem:[%s3525_s1 + $0x2b0] ss:$8 sps:$4 sm:$0xff]  }
  0x75   :  { %1857 = vmatprep.subr.bf16.mxu0 %v2454_v63  ;;  %v2540_v63 = vld [vmem:[%s3525_s1 + $0x6b0] ss:$8 sps:$4 sm:$0xff]  }
  0x77   :  { %1694 = vmatpush1.bf16.msra.mxu1 %v2449_v0  ;;  %v2545_v0 = vld [vmem:[%s3525_s1 + $0x2c4] ss:$8 sps:$4 sm:$0xff]  }
  0x78   :  { %1858 = vmatpush1.bf16.msra.mxu0 %v2452_v1  ;;  %1695 = vmatprep.subr.bf16.mxu1 %v2457_v2  ;;  %v2548_v1 = vld [vmem:[%s3525_s1 + $0x6c4] ss:$8 sps:$4 sm:$0xff]   ;;  %v2543_v2 = vld [vmem:[%s3525_s1 + $0x2c0] ss:$8 sps:$4 sm:$0xff]  }
  0x79   :  { %1859 = vmatprep.subr.bf16.mxu0 %v2460_v3  ;;  %v2546_v3 = vld [vmem:[%s3525_s1 + $0x6c0] ss:$8 sps:$4 sm:$0xff]  }
  0x7b   :  { %1696 = vmatpush1.bf16.msra.mxu1 %v2455_v4  ;;  %v2551_v4 = vld [vmem:[%s3525_s1 + $0x2d4] ss:$8 sps:$4 sm:$0xff]  }
  0x7c   :  { %1860 = vmatpush1.bf16.msra.mxu0 %v2458_v5  ;;  %1697 = vmatprep.subr.bf16.mxu1 %v2463_v6  ;;  %v2554_v5 = vld [vmem:[%s3525_s1 + $0x6d4] ss:$8 sps:$4 sm:$0xff]   ;;  %v2549_v6 = vld [vmem:[%s3525_s1 + $0x2d0] ss:$8 sps:$4 sm:$0xff]  }
  0x7d   :  { %1861 = vmatprep.subr.bf16.mxu0 %v2466_v7  ;;  %v2552_v7 = vld [vmem:[%s3525_s1 + $0x6d0] ss:$8 sps:$4 sm:$0xff]  }
  0x7f   :  { %1698 = vmatpush1.bf16.msra.mxu1 %v2461_v8  ;;  %v2557_v8 = vld [vmem:[%s3525_s1 + $0x2e4] ss:$8 sps:$4 sm:$0xff]  }
  0x80   :  { %1862 = vmatpush1.bf16.msra.mxu0 %v2464_v9  ;;  %1708 = vmatprep.subr.bf16.mxu1 %v2471_v10  ;;  %v2560_v9 = vld [vmem:[%s3525_s1 + $0x6e4] ss:$8 sps:$4 sm:$0xff]   ;;  %v2555_v10 = vld [vmem:[%s3525_s1 + $0x2e0] ss:$8 sps:$4 sm:$0xff]  }
  0x81   :  { %1872 = vmatprep.subr.bf16.mxu0 %v2476_v11  ;;  %v2558_v11 = vld [vmem:[%s3525_s1 + $0x6e0] ss:$8 sps:$4 sm:$0xff]  }
  0x82   :  { %1700 = vmatmul.mubr.bf16.vlgmr.msra.gmra.mrb[0].mxu1 %v1971_v12  ;;  %v2563_v12 = vld [vmem:[%s3525_s1 + $0x2f4] ss:$8 sps:$4 sm:$0xff]  }
  0x83   :  { %1864 = vmatmul.mubr.bf16.vlgmr.msra.gmra.mrb[0].mxu0 %v1979_v14  ;;  %1709 = vmatpush1.bf16.msra.mxu1 %v2469_v13  ;;  %v2566_v13 = vld [vmem:[%s3525_s1 + $0x6f4] ss:$8 sps:$4 sm:$0xff]   ;;  %v2561_v14 = vld [vmem:[%s3525_s1 + $0x2f0] ss:$8 sps:$4 sm:$0xff]  }
  0x84   :  { %1873 = vmatpush1.bf16.msra.mxu0 %v2474_v15  ;;  %1710 = vmatprep.subr.bf16.mxu1 %v2479_v16  ;;  %v2564_v15 = vld [vmem:[%s3525_s1 + $0x6f0] ss:$8 sps:$4 sm:$0xff]   ;;  %v2571_v16 = vld [vmem:[%s3525_s1 + $0x304] ss:$8 sps:$4 sm:$0xff]  }
  0x85   :  { %1874 = vmatprep.subr.bf16.mxu0 %v2482_v17  ;;  %1740 = vmatprep.mubr.bf16.mxu1 %v1974_v19  ;;  %v2576_v17 = vld [vmem:[%s3525_s1 + $0x704] ss:$8 sps:$4 sm:$0xff]   ;;  %v1973_v19 = vcombine.low %v3120_v18, %v3120_v18  ;;  %v2574_v18 = vld [vmem:[%s3525_s1 + $0x700] ss:$8 sps:$4 sm:$0xff]  }
  0x86   :  { %1904 = vmatprep.mubr.bf16.mxu0 %v1982_v23  ;;  %v3323_v23 = vld [vmem:[%s3526_s0 + $0x38] sm:$0xff] }
  0x87   :  { %1711 = vmatpush1.bf16.msra.mxu1 %v2477_v21  ;;  %v1981_v21 = vcombine.low %v3127_v20, %v3127_v20  ;;  %v2579_v20 = vld [vmem:[%s3525_s1 + $0x314] ss:$8 sps:$4 sm:$0xff]  }
  0x88   :  { %1875 = vmatpush1.bf16.msra.mxu0 %v2480_v22  ;;  %1712 = vmatprep.subr.bf16.mxu1 %v2485_v24  ;;  %v3318_v22 = vld [vmem:[%s3526_s0 + $0x18] sm:$0xff]  ;;  %v2569_v24 = vld [vmem:[%s3525_s1 + $0x300] ss:$8 sps:$4 sm:$0xff]  }
  0x89   :  { %1876 = vmatprep.subr.bf16.mxu0 %v2488_v25  ;;  %v2582_v25 = vld [vmem:[%s3525_s1 + $0x714] ss:$8 sps:$4 sm:$0xff]  }
  0x8b   :  { %1713 = vmatpush1.bf16.msra.mxu1 %v2483_v26  ;;  %v1976_v26 = vcombine.high %v3318_v22, %v3318_v22 }
  0x8c   :  { %1877 = vmatpush1.bf16.msra.mxu0 %v2486_v27  ;;  %1714 = vmatprep.subr.bf16.mxu1 %v2491_v28  ;;  %v1984_v27 = vcombine.high %v3323_v23, %v3323_v23  ;;  %v2577_v28 = vld [vmem:[%s3525_s1 + $0x310] ss:$8 sps:$4 sm:$0xff]  }
  0x8d   :  { %1878 = vmatprep.subr.bf16.mxu0 %v2494_v29  ;;  %v2580_v29 = vld [vmem:[%s3525_s1 + $0x710] ss:$8 sps:$4 sm:$0xff]  }
  0x8f   :  { %1715 = vmatpush1.bf16.msra.mxu1 %v2489_v30  ;;  %v2585_v30 = vld [vmem:[%s3525_s1 + $0x324] ss:$8 sps:$4 sm:$0xff]  }
  0x90   :  { %1879 = vmatpush1.bf16.msra.mxu0 %v2492_v31  ;;  %1716 = vmatprep.subr.bf16.mxu1 %v2497_v32  ;;  %v2588_v31 = vld [vmem:[%s3525_s1 + $0x724] ss:$8 sps:$4 sm:$0xff]   ;;  %v2583_v32 = vld [vmem:[%s3525_s1 + $0x320] ss:$8 sps:$4 sm:$0xff]  }
  0x91   :  { %1880 = vmatprep.subr.bf16.mxu0 %v2500_v33  ;;  %v2586_v33 = vld [vmem:[%s3525_s1 + $0x720] ss:$8 sps:$4 sm:$0xff]  }
  0x93   :  { %1717 = vmatpush1.bf16.msra.mxu1 %v2495_v34  ;;  %v2591_v34 = vld [vmem:[%s3525_s1 + $0x334] ss:$8 sps:$4 sm:$0xff]  }
  0x94   :  { %1881 = vmatpush1.bf16.msra.mxu0 %v2498_v35  ;;  %1718 = vmatprep.subr.bf16.mxu1 %v2503_v36  ;;  %v2594_v35 = vld [vmem:[%s3525_s1 + $0x734] ss:$8 sps:$4 sm:$0xff]   ;;  %v2589_v36 = vld [vmem:[%s3525_s1 + $0x330] ss:$8 sps:$4 sm:$0xff]  }
  0x95   :  { %1882 = vmatprep.subr.bf16.mxu0 %v2506_v37  ;;  %v2592_v37 = vld [vmem:[%s3525_s1 + $0x730] ss:$8 sps:$4 sm:$0xff]  }
  0x97   :  { %1719 = vmatpush1.bf16.msra.mxu1 %v2501_v38  ;;  %v2597_v38 = vld [vmem:[%s3525_s1 + $0x344] ss:$8 sps:$4 sm:$0xff]  }
  0x98   :  { %1883 = vmatpush1.bf16.msra.mxu0 %v2504_v39  ;;  %1720 = vmatprep.subr.bf16.mxu1 %v2509_v40  ;;  %v2600_v39 = vld [vmem:[%s3525_s1 + $0x744] ss:$8 sps:$4 sm:$0xff]   ;;  %v2595_v40 = vld [vmem:[%s3525_s1 + $0x340] ss:$8 sps:$4 sm:$0xff]  }
  0x99   :  { %1884 = vmatprep.subr.bf16.mxu0 %v2512_v41  ;;  %v2598_v41 = vld [vmem:[%s3525_s1 + $0x740] ss:$8 sps:$4 sm:$0xff]  }
  0x9b   :  { %1721 = vmatpush1.bf16.msra.mxu1 %v2507_v42  ;;  %v2603_v42 = vld [vmem:[%s3525_s1 + $0x354] ss:$8 sps:$4 sm:$0xff]  }
  0x9c   :  { %1885 = vmatpush1.bf16.msra.mxu0 %v2510_v43  ;;  %1722 = vmatprep.subr.bf16.mxu1 %v2515_v44  ;;  %v2606_v43 = vld [vmem:[%s3525_s1 + $0x754] ss:$8 sps:$4 sm:$0xff]   ;;  %v2601_v44 = vld [vmem:[%s3525_s1 + $0x350] ss:$8 sps:$4 sm:$0xff]  }
  0x9d   :  { %1886 = vmatprep.subr.bf16.mxu0 %v2518_v45  ;;  %v2604_v45 = vld [vmem:[%s3525_s1 + $0x750] ss:$8 sps:$4 sm:$0xff]  }
  0x9f   :  { %1723 = vmatpush1.bf16.msra.mxu1 %v2513_v46  ;;  %v2609_v46 = vld [vmem:[%s3525_s1 + $0x364] ss:$8 sps:$4 sm:$0xff]  }
  0xa0   :  { %1887 = vmatpush1.bf16.msra.mxu0 %v2516_v47  ;;  %1724 = vmatprep.subr.bf16.mxu1 %v2521_v48  ;;  %v2612_v47 = vld [vmem:[%s3525_s1 + $0x764] ss:$8 sps:$4 sm:$0xff]   ;;  %v2607_v48 = vld [vmem:[%s3525_s1 + $0x360] ss:$8 sps:$4 sm:$0xff]  }
  0xa1   :  { %1888 = vmatprep.subr.bf16.mxu0 %v2524_v49  ;;  %v2610_v49 = vld [vmem:[%s3525_s1 + $0x760] ss:$8 sps:$4 sm:$0xff]  }
  0xa3   :  { %1725 = vmatpush1.bf16.msra.mxu1 %v2519_v50  ;;  %v2615_v50 = vld [vmem:[%s3525_s1 + $0x374] ss:$8 sps:$4 sm:$0xff]  }
  0xa4   :  { %1889 = vmatpush1.bf16.msra.mxu0 %v2522_v51  ;;  %1726 = vmatprep.subr.bf16.mxu1 %v2527_v52  ;;  %v2618_v51 = vld [vmem:[%s3525_s1 + $0x774] ss:$8 sps:$4 sm:$0xff]   ;;  %v2613_v52 = vld [vmem:[%s3525_s1 + $0x370] ss:$8 sps:$4 sm:$0xff]  }
  0xa5   :  { %1890 = vmatprep.subr.bf16.mxu0 %v2530_v53  ;;  %v2616_v53 = vld [vmem:[%s3525_s1 + $0x770] ss:$8 sps:$4 sm:$0xff]  }
  0xa7   :  { %1727 = vmatpush1.bf16.msra.mxu1 %v2525_v54  ;;  %v2621_v54 = vld [vmem:[%s3525_s1 + $0x384] ss:$8 sps:$4 sm:$0xff]  }
  0xa8   :  { %1891 = vmatpush1.bf16.msra.mxu0 %v2528_v55  ;;  %1728 = vmatprep.subr.bf16.mxu1 %v2533_v56  ;;  %v2624_v55 = vld [vmem:[%s3525_s1 + $0x784] ss:$8 sps:$4 sm:$0xff]   ;;  %v2619_v56 = vld [vmem:[%s3525_s1 + $0x380] ss:$8 sps:$4 sm:$0xff]  }
  0xa9   :  { %1892 = vmatprep.subr.bf16.mxu0 %v2536_v57  ;;  %v2622_v57 = vld [vmem:[%s3525_s1 + $0x780] ss:$8 sps:$4 sm:$0xff]  }
  0xab   :  { %1729 = vmatpush1.bf16.msra.mxu1 %v2531_v58  ;;  %v2627_v58 = vld [vmem:[%s3525_s1 + $0x394] ss:$8 sps:$4 sm:$0xff]  }
  0xac   :  { %1893 = vmatpush1.bf16.msra.mxu0 %v2534_v59  ;;  %1730 = vmatprep.subr.bf16.mxu1 %v2539_v60  ;;  %v2630_v59 = vld [vmem:[%s3525_s1 + $0x794] ss:$8 sps:$4 sm:$0xff]   ;;  %v2625_v60 = vld [vmem:[%s3525_s1 + $0x390] ss:$8 sps:$4 sm:$0xff]  }
  0xad   :  { %1894 = vmatprep.subr.bf16.mxu0 %v2542_v61  ;;  %v2628_v61 = vld [vmem:[%s3525_s1 + $0x790] ss:$8 sps:$4 sm:$0xff]  }
  0xaf   :  { %1731 = vmatpush1.bf16.msra.mxu1 %v2537_v62  ;;  %v2633_v62 = vld [vmem:[%s3525_s1 + $0x3a4] ss:$8 sps:$4 sm:$0xff]  }
  0xb0   :  { %1895 = vmatpush1.bf16.msra.mxu0 %v2540_v63  ;;  %1732 = vmatprep.subr.bf16.mxu1 %v2545_v0  ;;  %v2636_v63 = vld [vmem:[%s3525_s1 + $0x7a4] ss:$8 sps:$4 sm:$0xff]   ;;  %v2631_v0 = vld [vmem:[%s3525_s1 + $0x3a0] ss:$8 sps:$4 sm:$0xff]  }
  0xb1   :  { %1896 = vmatprep.subr.bf16.mxu0 %v2548_v1  ;;  %v2634_v1 = vld [vmem:[%s3525_s1 + $0x7a0] ss:$8 sps:$4 sm:$0xff]  }
  0xb3   :  { %1733 = vmatpush1.bf16.msra.mxu1 %v2543_v2  ;;  %v2639_v2 = vld [vmem:[%s3525_s1 + $0x3b4] ss:$8 sps:$4 sm:$0xff]  }
  0xb4   :  { %1897 = vmatpush1.bf16.msra.mxu0 %v2546_v3  ;;  %1734 = vmatprep.subr.bf16.mxu1 %v2551_v4  ;;  %v2642_v3 = vld [vmem:[%s3525_s1 + $0x7b4] ss:$8 sps:$4 sm:$0xff]   ;;  %v2637_v4 = vld [vmem:[%s3525_s1 + $0x3b0] ss:$8 sps:$4 sm:$0xff]  }
  0xb5   :  { %1898 = vmatprep.subr.bf16.mxu0 %v2554_v5  ;;  %v2640_v5 = vld [vmem:[%s3525_s1 + $0x7b0] ss:$8 sps:$4 sm:$0xff]  }
  0xb7   :  { %1735 = vmatpush1.bf16.msra.mxu1 %v2549_v6  ;;  %v2645_v6 = vld [vmem:[%s3525_s1 + $0x3c4] ss:$8 sps:$4 sm:$0xff]  }
  0xb8   :  { %1899 = vmatpush1.bf16.msra.mxu0 %v2552_v7  ;;  %1736 = vmatprep.subr.bf16.mxu1 %v2557_v8  ;;  %v2648_v7 = vld [vmem:[%s3525_s1 + $0x7c4] ss:$8 sps:$4 sm:$0xff]   ;;  %v2643_v8 = vld [vmem:[%s3525_s1 + $0x3c0] ss:$8 sps:$4 sm:$0xff]  }
  0xb9   :  { %1900 = vmatprep.subr.bf16.mxu0 %v2560_v9  ;;  %v2646_v9 = vld [vmem:[%s3525_s1 + $0x7c0] ss:$8 sps:$4 sm:$0xff]  }
  0xbb   :  { %1737 = vmatpush1.bf16.msra.mxu1 %v2555_v10  ;;  %v2651_v10 = vld [vmem:[%s3525_s1 + $0x3d4] ss:$8 sps:$4 sm:$0xff]  }
  0xbc   :  { %1901 = vmatpush1.bf16.msra.mxu0 %v2558_v11  ;;  %1738 = vmatprep.subr.bf16.mxu1 %v2563_v12  ;;  %v2654_v11 = vld [vmem:[%s3525_s1 + $0x7d4] ss:$8 sps:$4 sm:$0xff]   ;;  %v2649_v12 = vld [vmem:[%s3525_s1 + $0x3d0] ss:$8 sps:$4 sm:$0xff]  }
  0xbd   :  { %1902 = vmatprep.subr.bf16.mxu0 %v2566_v13  ;;  %v2652_v13 = vld [vmem:[%s3525_s1 + $0x7d0] ss:$8 sps:$4 sm:$0xff]  }
  0xbf   :  { %1739 = vmatpush1.bf16.msra.mxu1 %v2561_v14  ;;  %v2657_v14 = vld [vmem:[%s3525_s1 + $0x3e4] ss:$8 sps:$4 sm:$0xff]  }
  0xc0   :  { %1903 = vmatpush1.bf16.msra.mxu0 %v2564_v15  ;;  %1749 = vmatprep.subr.bf16.mxu1 %v2571_v16  ;;  %v2660_v15 = vld [vmem:[%s3525_s1 + $0x7e4] ss:$8 sps:$4 sm:$0xff]   ;;  %v2655_v16 = vld [vmem:[%s3525_s1 + $0x3e0] ss:$8 sps:$4 sm:$0xff]  }
  0xc1   :  { %1913 = vmatprep.subr.bf16.mxu0 %v2576_v17  ;;  %v2658_v17 = vld [vmem:[%s3525_s1 + $0x7e0] ss:$8 sps:$4 sm:$0xff]  }
  0xc2   :  { %1741 = vmatmul.mubr.bf16.vlgmr.msra.gmra.mrb[0].mxu1 %v1973_v19  ;;  %v2663_v19 = vld [vmem:[%s3525_s1 + $0x3f4] ss:$8 sps:$4 sm:$0xff]  }
  0xc3   :  { %1905 = vmatmul.mubr.bf16.vlgmr.msra.gmra.mrb[0].mxu0 %v1981_v21  ;;  %1750 = vmatpush1.bf16.msra.mxu1 %v2569_v24  ;;  %v2666_v21 = vld [vmem:[%s3525_s1 + $0x7f4] ss:$8 sps:$4 sm:$0xff]   ;;  %v2661_v24 = vld [vmem:[%s3525_s1 + $0x3f0] ss:$8 sps:$4 sm:$0xff]  }
  0xc4   :  { %1914 = vmatpush1.bf16.msra.mxu0 %v2574_v18  ;;  %1751 = vmatprep.subr.bf16.mxu1 %v2579_v20  ;;  %v2664_v18 = vld [vmem:[%s3525_s1 + $0x7f0] ss:$8 sps:$4 sm:$0xff]   ;;  %v1975_v20 = vcombine.low %v3318_v22, %v3318_v22 }
  0xc5   :  { %1915 = vmatprep.subr.bf16.mxu0 %v2582_v25  ;;  %1781 = vmatprep.mubr.bf16.mxu1 %v1976_v26  ;;  %v1983_v25 = vcombine.low %v3323_v23, %v3323_v23  ;;  %v280_v26 = vlaneseq }
  0xc6   :  { %1945 = vmatprep.mubr.bf16.mxu0 %v1984_v27 }
  0xc7   :  { %1752 = vmatpush1.bf16.msra.mxu1 %v2577_v28  ;;  %v281_v27 = vshrl.u32 %v280_v26, 7 }
  0xc8   :  { %1916 = vmatpush1.bf16.msra.mxu0 %v2580_v29  ;;  %1753 = vmatprep.subr.bf16.mxu1 %v2585_v30  ;;  %v278_v29 = vld [vmem:[%s3527_s2] sm:$0x3] }
  0xc9   :  { %1917 = vmatprep.subr.bf16.mxu0 %v2588_v31  ;;  %v282_v28 = vsub.s32 0, %v281_v27  ;;  %v286_v30 = vsub.s32 1, %v281_v27 }
  0xcb   :  { %1754 = vmatpush1.bf16.msra.mxu1 %v2583_v32  ;;  %v283_v31 = vrot.slane %v278_v29, %v282_v28  ;;  %v287_v32 = vrot.slane %v278_v29, %v286_v30 }
  0xcc   :  { %1918 = vmatpush1.bf16.msra.mxu0 %v2586_v33  ;;  %1755 = vmatprep.subr.bf16.mxu1 %v2591_v34 }
  0xcd   :  { %1919 = vmatprep.subr.bf16.mxu0 %v2594_v35 }
  0xcf   :  { %1756 = vmatpush1.bf16.msra.mxu1 %v2589_v36 }
  0xd0   :  { %1920 = vmatpush1.bf16.msra.mxu0 %v2592_v37  ;;  %1757 = vmatprep.subr.bf16.mxu1 %v2597_v38 }
  0xd1   :  { %1921 = vmatprep.subr.bf16.mxu0 %v2600_v39 }
  0xd3   :  { %1758 = vmatpush1.bf16.msra.mxu1 %v2595_v40 }
  0xd4   :  { %1922 = vmatpush1.bf16.msra.mxu0 %v2598_v41  ;;  %1759 = vmatprep.subr.bf16.mxu1 %v2603_v42 }
  0xd5   :  { %1923 = vmatprep.subr.bf16.mxu0 %v2606_v43 }
  0xd7   :  { %1760 = vmatpush1.bf16.msra.mxu1 %v2601_v44 }
  0xd8   :  { %1924 = vmatpush1.bf16.msra.mxu0 %v2604_v45  ;;  %1761 = vmatprep.subr.bf16.mxu1 %v2609_v46 }
  0xd9   :  { %1925 = vmatprep.subr.bf16.mxu0 %v2612_v47 }
  0xdb   :  { %1762 = vmatpush1.bf16.msra.mxu1 %v2607_v48 }
  0xdc   :  { %1926 = vmatpush1.bf16.msra.mxu0 %v2610_v49  ;;  %1763 = vmatprep.subr.bf16.mxu1 %v2615_v50 }
  0xdd   :  { %1927 = vmatprep.subr.bf16.mxu0 %v2618_v51 }
  0xdf   :  { %1764 = vmatpush1.bf16.msra.mxu1 %v2613_v52 }
  0xe0   :  { %1928 = vmatpush1.bf16.msra.mxu0 %v2616_v53  ;;  %1765 = vmatprep.subr.bf16.mxu1 %v2621_v54 }
  0xe1   :  { %1929 = vmatprep.subr.bf16.mxu0 %v2624_v55 }
  0xe3   :  { %1766 = vmatpush1.bf16.msra.mxu1 %v2619_v56 }
  0xe4   :  { %1930 = vmatpush1.bf16.msra.mxu0 %v2622_v57  ;;  %1767 = vmatprep.subr.bf16.mxu1 %v2627_v58 }
  0xe5   :  { %1931 = vmatprep.subr.bf16.mxu0 %v2630_v59 }
  0xe7   :  { %1768 = vmatpush1.bf16.msra.mxu1 %v2625_v60 }
  0xe8   :  { %1932 = vmatpush1.bf16.msra.mxu0 %v2628_v61  ;;  %1769 = vmatprep.subr.bf16.mxu1 %v2633_v62 }
  0xe9   :  { %1933 = vmatprep.subr.bf16.mxu0 %v2636_v63 }
  0xeb   :  { %1770 = vmatpush1.bf16.msra.mxu1 %v2631_v0 }
  0xec   :  { %1934 = vmatpush1.bf16.msra.mxu0 %v2634_v1  ;;  %1771 = vmatprep.subr.bf16.mxu1 %v2639_v2 }
  0xed   :  { %1935 = vmatprep.subr.bf16.mxu0 %v2642_v3 }
  0xef   :  { %1772 = vmatpush1.bf16.msra.mxu1 %v2637_v4 }
  0xf0   :  { %1936 = vmatpush1.bf16.msra.mxu0 %v2640_v5  ;;  %1773 = vmatprep.subr.bf16.mxu1 %v2645_v6 }
  0xf1   :  { %1937 = vmatprep.subr.bf16.mxu0 %v2648_v7 }
  0xf3   :  { %1774 = vmatpush1.bf16.msra.mxu1 %v2643_v8 }
  0xf4   :  { %1938 = vmatpush1.bf16.msra.mxu0 %v2646_v9  ;;  %1775 = vmatprep.subr.bf16.mxu1 %v2651_v10 }
  0xf5   :  { %1939 = vmatprep.subr.bf16.mxu0 %v2654_v11 }
  0xf7   :  { %1776 = vmatpush1.bf16.msra.mxu1 %v2649_v12 }
  0xf8   :  { %1940 = vmatpush1.bf16.msra.mxu0 %v2652_v13  ;;  %1777 = vmatprep.subr.bf16.mxu1 %v2657_v14 }
  0xf9   :  { %1941 = vmatprep.subr.bf16.mxu0 %v2660_v15 }
  0xfb   :  { %1778 = vmatpush1.bf16.msra.mxu1 %v2655_v16 }
  0xfc   :  { %1942 = vmatpush1.bf16.msra.mxu0 %v2658_v17  ;;  %1779 = vmatprep.subr.bf16.mxu1 %v2663_v19 }
  0xfd   :  { %1943 = vmatprep.subr.bf16.mxu0 %v2666_v21 }
  0xff   :  { %1780 = vmatpush1.bf16.msra.mxu1 %v2661_v24 }
 0x100   :  { %1944 = vmatpush1.bf16.msra.mxu0 %v2664_v18 }
 0x102   :  { %1782 = vmatmul.mubr.bf16.vlgmr.msra.gmra.mrb[0].mxu1 %v1975_v20 }
 0x103   :  { %1946 = vmatmul.mubr.bf16.vlgmr.msra.gmra.mrb[0].mxu0 %v1983_v25 }
 0x1d5   :  { %v1783_v33 = vpop.f32.mrb[0].mxu1 }
 0x1d6   :  { %v1947_v34 = vpop.f32.mrb[0].mxu0  ;;  %v2243_v22 = vadd.f32 %v1783_v33, %v283_v31  ;;  %v1785_v35 = vpop.f32.mrb[1].mxu1 }
 0x1d7   :  { %v1949_v36 = vpop.f32.mrb[1].mxu0  ;;  %v2245_v23 = vadd.f32 %v1785_v35, %v287_v32  ;;  %v1787_v37 = vpop.f32.mrb[2].mxu1 }
 0x1d8   :  { %v1951_v38 = vpop.f32.mrb[2].mxu0  ;;  %v2244_v39 = vadd.f32 %v2243_v22, %v1947_v34  ;;  %v1788_v40 = vpop.f32.mrb[3].mxu1 }
 0x1d9   :  { %v1952_v41 = vpop.f32.mrb[3].mxu0  ;;  %v2246_v42 = vadd.f32 %v2245_v23, %v1949_v36 }
 0x1da   :  { %v1954_v43 = vmax.f32 %v2244_v39, 0.0 }
 0x1db   :  { %v1955_v44 = vmax.f32 %v2246_v42, 0.0 }
 0x1dd   :  { %v2242_v45 = vpack.c.bf16 %v1955_v44, %v1954_v43 }
 0x1df   :  { %1964 = vst [vmem:[%s3528_s3] sm:$0xff] %v2242_v45 }

// kernel: beta_vae_forward.15
= control target key start
LH: loop header
LB: loop body
LE: loop exit
PB: predicated region body
PF: predicated region fallthrough
CT: control target
= control target key end

     0   :  { %s2299_s1 = inlined_call_operand.vmem [shape: bf16[1152,256], index: 1, kind: input, shape index: {}]   ;;  %s2300_s0 = inlined_call_operand.vmem [shape: bf16[32,1152], index: 0, kind: input, shape index: {}]   ;;  %s2301_s2 = inlined_call_operand.vmem [shape: f32[1,256], index: 2, kind: input, shape index: {}]   ;;  %s2302_s3 = inlined_call_operand.vmem [shape: bf16[32,256], index: 3, kind: output, shape index: {}]  }
   0x1   :  { %v1535_v0 = vld [vmem:[%s2299_s1 + $0x4] ss:$8 sps:$4 sm:$0xff]   ;;  %v1539_v2 = vld [vmem:[%s2299_s1] ss:$8 sps:$4 sm:$0xff]   ;;  %v1541_v4 = vld [vmem:[%s2299_s1 + $0x14] ss:$8 sps:$4 sm:$0xff]  }
   0x2   :  { %v1537_v1 = vld [vmem:[%s2299_s1 + $0x204] ss:$8 sps:$4 sm:$0xff]   ;;  %1003 = vmatprep.subr.bf16.mxu1 %v1535_v0  ;;  %v1540_v3 = vld [vmem:[%s2299_s1 + $0x200] ss:$8 sps:$4 sm:$0xff]   ;;  %v1543_v5 = vld [vmem:[%s2299_s1 + $0x214] ss:$8 sps:$4 sm:$0xff]  }
   0x3   :  { %1109 = vmatprep.subr.bf16.mxu0 %v1537_v1  ;;  %1004 = vmatpush1.bf16.msra.mxu1 %v1539_v2  ;;  %v1545_v6 = vld [vmem:[%s2299_s1 + $0x10] ss:$8 sps:$4 sm:$0xff]   ;;  %v1547_v8 = vld [vmem:[%s2299_s1 + $0x24] ss:$8 sps:$4 sm:$0xff]   ;;  %v1551_v10 = vld [vmem:[%s2299_s1 + $0x20] ss:$8 sps:$4 sm:$0xff]  }
   0x4   :  { %1110 = vmatpush1.bf16.msra.mxu0 %v1540_v3  ;;  %1005 = vmatprep.subr.bf16.mxu1 %v1541_v4  ;;  %v1546_v7 = vld [vmem:[%s2299_s1 + $0x210] ss:$8 sps:$4 sm:$0xff]   ;;  %v1549_v9 = vld [vmem:[%s2299_s1 + $0x224] ss:$8 sps:$4 sm:$0xff]   ;;  %v1552_v11 = vld [vmem:[%s2299_s1 + $0x220] ss:$8 sps:$4 sm:$0xff]  }
   0x5   :  { %1111 = vmatprep.subr.bf16.mxu0 %v1543_v5  ;;  %v1553_v12 = vld [vmem:[%s2299_s1 + $0x34] ss:$8 sps:$4 sm:$0xff]   ;;  %v1557_v14 = vld [vmem:[%s2299_s1 + $0x30] ss:$8 sps:$4 sm:$0xff]   ;;  %v1559_v16 = vld [vmem:[%s2299_s1 + $0x44] ss:$8 sps:$4 sm:$0xff]  }
   0x6   :  { %v1555_v13 = vld [vmem:[%s2299_s1 + $0x234] ss:$8 sps:$4 sm:$0xff]   ;;  %v1558_v15 = vld [vmem:[%s2299_s1 + $0x230] ss:$8 sps:$4 sm:$0xff]   ;;  %v1561_v17 = vld [vmem:[%s2299_s1 + $0x244] ss:$8 sps:$4 sm:$0xff]  }
   0x7   :  { %1006 = vmatpush1.bf16.msra.mxu1 %v1545_v6  ;;  %v1563_v18 = vld [vmem:[%s2299_s1 + $0x40] ss:$8 sps:$4 sm:$0xff]   ;;  %v1565_v20 = vld [vmem:[%s2299_s1 + $0x54] ss:$8 sps:$4 sm:$0xff]   ;;  %v1569_v22 = vld [vmem:[%s2299_s1 + $0x50] ss:$8 sps:$4 sm:$0xff]  }
   0x8   :  { %1112 = vmatpush1.bf16.msra.mxu0 %v1546_v7  ;;  %1007 = vmatprep.subr.bf16.mxu1 %v1547_v8  ;;  %v1564_v19 = vld [vmem:[%s2299_s1 + $0x240] ss:$8 sps:$4 sm:$0xff]   ;;  %v1567_v21 = vld [vmem:[%s2299_s1 + $0x254] ss:$8 sps:$4 sm:$0xff]   ;;  %v1570_v23 = vld [vmem:[%s2299_s1 + $0x250] ss:$8 sps:$4 sm:$0xff]  }
   0x9   :  { %1113 = vmatprep.subr.bf16.mxu0 %v1549_v9  ;;  %v1571_v24 = vld [vmem:[%s2299_s1 + $0x64] ss:$8 sps:$4 sm:$0xff]   ;;  %v1575_v26 = vld [vmem:[%s2299_s1 + $0x60] ss:$8 sps:$4 sm:$0xff]   ;;  %v1577_v28 = vld [vmem:[%s2299_s1 + $0x74] ss:$8 sps:$4 sm:$0xff]  }
   0xa   :  { %v1573_v25 = vld [vmem:[%s2299_s1 + $0x264] ss:$8 sps:$4 sm:$0xff]   ;;  %v1576_v27 = vld [vmem:[%s2299_s1 + $0x260] ss:$8 sps:$4 sm:$0xff]   ;;  %v1579_v29 = vld [vmem:[%s2299_s1 + $0x274] ss:$8 sps:$4 sm:$0xff]  }
   0xb   :  { %1008 = vmatpush1.bf16.msra.mxu1 %v1551_v10  ;;  %v1581_v30 = vld [vmem:[%s2299_s1 + $0x70] ss:$8 sps:$4 sm:$0xff]   ;;  %v1583_v32 = vld [vmem:[%s2299_s1 + $0x84] ss:$8 sps:$4 sm:$0xff]   ;;  %v1587_v34 = vld [vmem:[%s2299_s1 + $0x80] ss:$8 sps:$4 sm:$0xff]  }
   0xc   :  { %1114 = vmatpush1.bf16.msra.mxu0 %v1552_v11  ;;  %1009 = vmatprep.subr.bf16.mxu1 %v1553_v12  ;;  %v1582_v31 = vld [vmem:[%s2299_s1 + $0x270] ss:$8 sps:$4 sm:$0xff]   ;;  %v1585_v33 = vld [vmem:[%s2299_s1 + $0x284] ss:$8 sps:$4 sm:$0xff]   ;;  %v1588_v35 = vld [vmem:[%s2299_s1 + $0x280] ss:$8 sps:$4 sm:$0xff]  }
   0xd   :  { %1115 = vmatprep.subr.bf16.mxu0 %v1555_v13  ;;  %v1589_v36 = vld [vmem:[%s2299_s1 + $0x94] ss:$8 sps:$4 sm:$0xff]   ;;  %v1593_v38 = vld [vmem:[%s2299_s1 + $0x90] ss:$8 sps:$4 sm:$0xff]   ;;  %v1595_v40 = vld [vmem:[%s2299_s1 + $0xa4] ss:$8 sps:$4 sm:$0xff]  }
   0xe   :  { %v1591_v37 = vld [vmem:[%s2299_s1 + $0x294] ss:$8 sps:$4 sm:$0xff]   ;;  %v1594_v39 = vld [vmem:[%s2299_s1 + $0x290] ss:$8 sps:$4 sm:$0xff]   ;;  %v1597_v41 = vld [vmem:[%s2299_s1 + $0x2a4] ss:$8 sps:$4 sm:$0xff]  }
   0xf   :  { %1010 = vmatpush1.bf16.msra.mxu1 %v1557_v14  ;;  %v1599_v42 = vld [vmem:[%s2299_s1 + $0xa0] ss:$8 sps:$4 sm:$0xff]   ;;  %v1601_v44 = vld [vmem:[%s2299_s1 + $0xb4] ss:$8 sps:$4 sm:$0xff]   ;;  %v1605_v46 = vld [vmem:[%s2299_s1 + $0xb0] ss:$8 sps:$4 sm:$0xff]  }
  0x10   :  { %1116 = vmatpush1.bf16.msra.mxu0 %v1558_v15  ;;  %1011 = vmatprep.subr.bf16.mxu1 %v1559_v16  ;;  %v1600_v43 = vld [vmem:[%s2299_s1 + $0x2a0] ss:$8 sps:$4 sm:$0xff]   ;;  %v1603_v45 = vld [vmem:[%s2299_s1 + $0x2b4] ss:$8 sps:$4 sm:$0xff]   ;;  %v1606_v47 = vld [vmem:[%s2299_s1 + $0x2b0] ss:$8 sps:$4 sm:$0xff]  }
  0x11   :  { %1117 = vmatprep.subr.bf16.mxu0 %v1561_v17  ;;  %v1633_v48 = vld [vmem:[%s2300_s0 + $0x4] ss:$36 sps:$4 sm:$0xff]   ;;  %v1639_v51 = vld [vmem:[%s2300_s0 + $0x14] ss:$36 sps:$4 sm:$0xff]  }
  0x12   :  { %v1607_v49 = vld [vmem:[%s2299_s1 + $0xc4] ss:$8 sps:$4 sm:$0xff]   ;;  %1035 = vmatprep.mubr.bf16.mxu1 %v1633_v48  ;;  %v1611_v52 = vld [vmem:[%s2299_s1 + $0xc0] ss:$8 sps:$4 sm:$0xff]   ;;  %v1613_v54 = vld [vmem:[%s2299_s1 + $0xd4] ss:$8 sps:$4 sm:$0xff]   ;;  %1141 = vmatprep.mubr.bf16.mxu0 %v1639_v51 }
  0x13   :  { %1012 = vmatpush1.bf16.msra.mxu1 %v1563_v18  ;;  %v1609_v50 = vld [vmem:[%s2299_s1 + $0x2c4] ss:$8 sps:$4 sm:$0xff]   ;;  %v1612_v53 = vld [vmem:[%s2299_s1 + $0x2c0] ss:$8 sps:$4 sm:$0xff]   ;;  %v1615_v55 = vld [vmem:[%s2299_s1 + $0x2d4] ss:$8 sps:$4 sm:$0xff]  }
  0x14   :  { %1118 = vmatpush1.bf16.msra.mxu0 %v1564_v19  ;;  %1013 = vmatprep.subr.bf16.mxu1 %v1565_v20  ;;  %v1617_v56 = vld [vmem:[%s2299_s1 + $0xd0] ss:$8 sps:$4 sm:$0xff]   ;;  %v1619_v58 = vld [vmem:[%s2299_s1 + $0xe4] ss:$8 sps:$4 sm:$0xff]   ;;  %v1623_v60 = vld [vmem:[%s2299_s1 + $0xe0] ss:$8 sps:$4 sm:$0xff]  }
  0x15   :  { %1119 = vmatprep.subr.bf16.mxu0 %v1567_v21  ;;  %v1618_v57 = vld [vmem:[%s2299_s1 + $0x2d0] ss:$8 sps:$4 sm:$0xff]   ;;  %v1621_v59 = vld [vmem:[%s2299_s1 + $0x2e4] ss:$8 sps:$4 sm:$0xff]   ;;  %v1624_v61 = vld [vmem:[%s2299_s1 + $0x2e0] ss:$8 sps:$4 sm:$0xff]  }
  0x16   :  { %v1625_v62 = vld [vmem:[%s2299_s1 + $0xf4] ss:$8 sps:$4 sm:$0xff]   ;;  %v1629_v0 = vld [vmem:[%s2299_s1 + $0xf0] ss:$8 sps:$4 sm:$0xff]   ;;  %v1636_v2 = vld [vmem:[%s2299_s1 + $0x104] ss:$8 sps:$4 sm:$0xff]  }
  0x17   :  { %1014 = vmatpush1.bf16.msra.mxu1 %v1569_v22  ;;  %v1627_v63 = vld [vmem:[%s2299_s1 + $0x2f4] ss:$8 sps:$4 sm:$0xff]   ;;  %v1630_v1 = vld [vmem:[%s2299_s1 + $0x2f0] ss:$8 sps:$4 sm:$0xff]   ;;  %v1642_v3 = vld [vmem:[%s2299_s1 + $0x304] ss:$8 sps:$4 sm:$0xff]  }
  0x18   :  { %1120 = vmatpush1.bf16.msra.mxu0 %v1570_v23  ;;  %1015 = vmatprep.subr.bf16.mxu1 %v1571_v24  ;;  %v1631_v4 = vld [vmem:[%s2300_s0] ss:$36 sps:$4 sm:$0xff]   ;;  %v1637_v6 = vld [vmem:[%s2300_s0 + $0x10] ss:$36 sps:$4 sm:$0xff]  }
  0x19   :  { %1121 = vmatprep.subr.bf16.mxu0 %v1573_v25  ;;  %v1634_v5 = vld [vmem:[%s2299_s1 + $0x100] ss:$8 sps:$4 sm:$0xff]   ;;  %v1645_v8 = vld [vmem:[%s2299_s1 + $0x114] ss:$8 sps:$4 sm:$0xff]   ;;  %v1643_v10 = vld [vmem:[%s2299_s1 + $0x110] ss:$8 sps:$4 sm:$0xff]  }
  0x1a   :  { %v1640_v7 = vld [vmem:[%s2299_s1 + $0x300] ss:$8 sps:$4 sm:$0xff]   ;;  %v1648_v9 = vld [vmem:[%s2299_s1 + $0x314] ss:$8 sps:$4 sm:$0xff]   ;;  %v1646_v11 = vld [vmem:[%s2299_s1 + $0x310] ss:$8 sps:$4 sm:$0xff]  }
  0x1b   :  { %1016 = vmatpush1.bf16.msra.mxu1 %v1575_v26  ;;  %v1651_v12 = vld [vmem:[%s2299_s1 + $0x124] ss:$8 sps:$4 sm:$0xff]   ;;  %v1649_v14 = vld [vmem:[%s2299_s1 + $0x120] ss:$8 sps:$4 sm:$0xff]   ;;  %v1657_v16 = vld [vmem:[%s2299_s1 + $0x134] ss:$8 sps:$4 sm:$0xff]  }
  0x1c   :  { %1122 = vmatpush1.bf16.msra.mxu0 %v1576_v27  ;;  %1017 = vmatprep.subr.bf16.mxu1 %v1577_v28  ;;  %v1654_v13 = vld [vmem:[%s2299_s1 + $0x324] ss:$8 sps:$4 sm:$0xff]   ;;  %v1652_v15 = vld [vmem:[%s2299_s1 + $0x320] ss:$8 sps:$4 sm:$0xff]   ;;  %v1660_v17 = vld [vmem:[%s2299_s1 + $0x334] ss:$8 sps:$4 sm:$0xff]  }
  0x1d   :  { %1123 = vmatprep.subr.bf16.mxu0 %v1579_v29  ;;  %v1655_v18 = vld [vmem:[%s2299_s1 + $0x130] ss:$8 sps:$4 sm:$0xff]   ;;  %v1663_v20 = vld [vmem:[%s2299_s1 + $0x144] ss:$8 sps:$4 sm:$0xff]   ;;  %v1661_v22 = vld [vmem:[%s2299_s1 + $0x140] ss:$8 sps:$4 sm:$0xff]  }
  0x1e   :  { %v1658_v19 = vld [vmem:[%s2299_s1 + $0x330] ss:$8 sps:$4 sm:$0xff]   ;;  %v1666_v21 = vld [vmem:[%s2299_s1 + $0x344] ss:$8 sps:$4 sm:$0xff]   ;;  %v1664_v23 = vld [vmem:[%s2299_s1 + $0x340] ss:$8 sps:$4 sm:$0xff]  }
  0x1f   :  { %1018 = vmatpush1.bf16.msra.mxu1 %v1581_v30  ;;  %v1669_v24 = vld [vmem:[%s2299_s1 + $0x154] ss:$8 sps:$4 sm:$0xff]   ;;  %v1667_v26 = vld [vmem:[%s2299_s1 + $0x150] ss:$8 sps:$4 sm:$0xff]   ;;  %v1675_v28 = vld [vmem:[%s2299_s1 + $0x164] ss:$8 sps:$4 sm:$0xff]  }
  0x20   :  { %1124 = vmatpush1.bf16.msra.mxu0 %v1582_v31  ;;  %1019 = vmatprep.subr.bf16.mxu1 %v1583_v32  ;;  %v1672_v25 = vld [vmem:[%s2299_s1 + $0x354] ss:$8 sps:$4 sm:$0xff]   ;;  %v1670_v27 = vld [vmem:[%s2299_s1 + $0x350] ss:$8 sps:$4 sm:$0xff]   ;;  %v1725_v31 = vld [vmem:[%s2300_s0 + $0x48] ss:$36 sps:$4 sm:$0xff]  }
  0x21   :  { %1125 = vmatprep.subr.bf16.mxu0 %v1585_v33  ;;  %v1721_v29 = vld [vmem:[%s2300_s0 + $0x4c] ss:$36 sps:$4 sm:$0xff]   ;;  %v1723_v30 = vld [vmem:[%s2300_s0 + $0x5c] ss:$36 sps:$4 sm:$0xff]  }
  0x22   :  { %v1678_v32 = vld [vmem:[%s2299_s1 + $0x364] ss:$8 sps:$4 sm:$0xff]   ;;  %v1729_v33 = vld [vmem:[%s2300_s0 + $0x58] ss:$36 sps:$4 sm:$0xff]  }
  0x23   :  { %1020 = vmatpush1.bf16.msra.mxu1 %v1587_v34  ;;  %v1673_v34 = vld [vmem:[%s2299_s1 + $0x160] ss:$8 sps:$4 sm:$0xff]   ;;  %v1691_v48 = vld [vmem:[%s2299_s1 + $0x190] ss:$8 sps:$4 sm:$0xff]   ;;  %v1702_v51 = vld [vmem:[%s2299_s1 + $0x3a4] ss:$8 sps:$4 sm:$0xff]  }
  0x24   :  { %1126 = vmatpush1.bf16.msra.mxu0 %v1588_v35  ;;  %1021 = vmatprep.subr.bf16.mxu1 %v1589_v36  ;;  %v1676_v35 = vld [vmem:[%s2299_s1 + $0x360] ss:$8 sps:$4 sm:$0xff]   ;;  %v1681_v36 = vld [vmem:[%s2299_s1 + $0x174] ss:$8 sps:$4 sm:$0xff]  }
  0x25   :  { %1127 = vmatprep.subr.bf16.mxu0 %v1591_v37  ;;  %v1684_v37 = vld [vmem:[%s2299_s1 + $0x374] ss:$8 sps:$4 sm:$0xff]  }
  0x27   :  { %1022 = vmatpush1.bf16.msra.mxu1 %v1593_v38  ;;  %v1679_v38 = vld [vmem:[%s2299_s1 + $0x170] ss:$8 sps:$4 sm:$0xff]  }
  0x28   :  { %1128 = vmatpush1.bf16.msra.mxu0 %v1594_v39  ;;  %1023 = vmatprep.subr.bf16.mxu1 %v1595_v40  ;;  %v1682_v39 = vld [vmem:[%s2299_s1 + $0x370] ss:$8 sps:$4 sm:$0xff]   ;;  %v1687_v40 = vld [vmem:[%s2299_s1 + $0x184] ss:$8 sps:$4 sm:$0xff]  }
  0x29   :  { %1129 = vmatprep.subr.bf16.mxu0 %v1597_v41  ;;  %v1741_v41 = vld [vmem:[%s2300_s0 + $0xc] ss:$36 sps:$4 sm:$0xff]  }
  0x2b   :  { %1024 = vmatpush1.bf16.msra.mxu1 %v1599_v42  ;;  %v1690_v42 = vld [vmem:[%s2299_s1 + $0x384] ss:$8 sps:$4 sm:$0xff]  }
  0x2c   :  { %1130 = vmatpush1.bf16.msra.mxu0 %v1600_v43  ;;  %1025 = vmatprep.subr.bf16.mxu1 %v1601_v44  ;;  %v1744_v43 = vld [vmem:[%s2300_s0 + $0x1c] ss:$36 sps:$4 sm:$0xff]  }
  0x2d   :  { %1131 = vmatprep.subr.bf16.mxu0 %v1603_v45  ;;  %v1685_v44 = vld [vmem:[%s2299_s1 + $0x180] ss:$8 sps:$4 sm:$0xff]  }
  0x2e   :  { %v1688_v45 = vld [vmem:[%s2299_s1 + $0x380] ss:$8 sps:$4 sm:$0xff]  }
  0x2f   :  { %1026 = vmatpush1.bf16.msra.mxu1 %v1605_v46  ;;  %v1693_v46 = vld [vmem:[%s2299_s1 + $0x194] ss:$8 sps:$4 sm:$0xff]  }
  0x30   :  { %1132 = vmatpush1.bf16.msra.mxu0 %v1606_v47  ;;  %1027 = vmatprep.subr.bf16.mxu1 %v1607_v49  ;;  %v1696_v47 = vld [vmem:[%s2299_s1 + $0x394] ss:$8 sps:$4 sm:$0xff]   ;;  %v1694_v49 = vld [vmem:[%s2299_s1 + $0x390] ss:$8 sps:$4 sm:$0xff]  }
  0x31   :  { %1133 = vmatprep.subr.bf16.mxu0 %v1609_v50  ;;  %v1699_v50 = vld [vmem:[%s2299_s1 + $0x1a4] ss:$8 sps:$4 sm:$0xff]  }
  0x33   :  { %1028 = vmatpush1.bf16.msra.mxu1 %v1611_v52  ;;  %v1697_v52 = vld [vmem:[%s2299_s1 + $0x1a0] ss:$8 sps:$4 sm:$0xff]  }
  0x34   :  { %1134 = vmatpush1.bf16.msra.mxu0 %v1612_v53  ;;  %1029 = vmatprep.subr.bf16.mxu1 %v1613_v54  ;;  %v1700_v53 = vld [vmem:[%s2299_s1 + $0x3a0] ss:$8 sps:$4 sm:$0xff]   ;;  %v1705_v54 = vld [vmem:[%s2299_s1 + $0x1b4] ss:$8 sps:$4 sm:$0xff]  }
  0x35   :  { %1135 = vmatprep.subr.bf16.mxu0 %v1615_v55  ;;  %v1708_v55 = vld [vmem:[%s2299_s1 + $0x3b4] ss:$8 sps:$4 sm:$0xff]  }
  0x37   :  { %1030 = vmatpush1.bf16.msra.mxu1 %v1617_v56  ;;  %v1703_v56 = vld [vmem:[%s2299_s1 + $0x1b0] ss:$8 sps:$4 sm:$0xff]  }
  0x38   :  { %1136 = vmatpush1.bf16.msra.mxu0 %v1618_v57  ;;  %1031 = vmatprep.subr.bf16.mxu1 %v1619_v58  ;;  %v1706_v57 = vld [vmem:[%s2299_s1 + $0x3b0] ss:$8 sps:$4 sm:$0xff]   ;;  %v1711_v58 = vld [vmem:[%s2299_s1 + $0x1c4] ss:$8 sps:$4 sm:$0xff]  }
  0x39   :  { %1137 = vmatprep.subr.bf16.mxu0 %v1621_v59  ;;  %v1714_v59 = vld [vmem:[%s2299_s1 + $0x3c4] ss:$8 sps:$4 sm:$0xff]  }
  0x3b   :  { %1032 = vmatpush1.bf16.msra.mxu1 %v1623_v60  ;;  %v1709_v60 = vld [vmem:[%s2299_s1 + $0x1c0] ss:$8 sps:$4 sm:$0xff]  }
  0x3c   :  { %1138 = vmatpush1.bf16.msra.mxu0 %v1624_v61  ;;  %1033 = vmatprep.subr.bf16.mxu1 %v1625_v62  ;;  %v1712_v61 = vld [vmem:[%s2299_s1 + $0x3c0] ss:$8 sps:$4 sm:$0xff]   ;;  %v1717_v62 = vld [vmem:[%s2299_s1 + $0x1d4] ss:$8 sps:$4 sm:$0xff]  }
  0x3d   :  { %1139 = vmatprep.subr.bf16.mxu0 %v1627_v63  ;;  %v1720_v63 = vld [vmem:[%s2299_s1 + $0x3d4] ss:$8 sps:$4 sm:$0xff]  }
  0x3f   :  { %1034 = vmatpush1.bf16.msra.mxu1 %v1629_v0  ;;  %v1715_v0 = vld [vmem:[%s2299_s1 + $0x1d0] ss:$8 sps:$4 sm:$0xff]  }
  0x40   :  { %1140 = vmatpush1.bf16.msra.mxu0 %v1630_v1  ;;  %1056 = vmatprep.subr.bf16.mxu1 %v1636_v2  ;;  %v1718_v1 = vld [vmem:[%s2299_s1 + $0x3d0] ss:$8 sps:$4 sm:$0xff]   ;;  %v1728_v2 = vld [vmem:[%s2299_s1 + $0x1e4] ss:$8 sps:$4 sm:$0xff]  }
  0x41   :  { %1162 = vmatprep.subr.bf16.mxu0 %v1642_v3  ;;  %v1732_v3 = vld [vmem:[%s2299_s1 + $0x3e4] ss:$8 sps:$4 sm:$0xff]  }
  0x42   :  { %1036 = vmatmul.mubr.bf16.vlgmr.msra.gmra.mrb[0].mxu1 %v1631_v4  ;;  %v1726_v4 = vld [vmem:[%s2299_s1 + $0x1e0] ss:$8 sps:$4 sm:$0xff]  }
  0x43   :  { %1142 = vmatmul.mubr.bf16.vlgmr.msra.gmra.mrb[0].mxu0 %v1637_v6  ;;  %1057 = vmatpush1.bf16.msra.mxu1 %v1634_v5  ;;  %v1730_v5 = vld [vmem:[%s2299_s1 + $0x3e0] ss:$8 sps:$4 sm:$0xff]   ;;  %v1735_v6 = vld [vmem:[%s2299_s1 + $0x1f4] ss:$8 sps:$4 sm:$0xff]  }
  0x44   :  { %1163 = vmatpush1.bf16.msra.mxu0 %v1640_v7  ;;  %1058 = vmatprep.subr.bf16.mxu1 %v1645_v8  ;;  %v1738_v7 = vld [vmem:[%s2299_s1 + $0x3f4] ss:$8 sps:$4 sm:$0xff]   ;;  %v1733_v8 = vld [vmem:[%s2299_s1 + $0x1f0] ss:$8 sps:$4 sm:$0xff]  }
  0x45   :  { %1164 = vmatprep.subr.bf16.mxu0 %v1648_v9  ;;  %1045 = vmatprep.mubr.bf16.mxu1 %v1721_v29  ;;  %v1736_v9 = vld [vmem:[%s2299_s1 + $0x3f0] ss:$8 sps:$4 sm:$0xff]   ;;  %v1771_v29 = vld [vmem:[%s2299_s1 + $0x464] ss:$8 sps:$4 sm:$0xff]  }
  0x46   :  { %1151 = vmatprep.mubr.bf16.mxu0 %v1723_v30  ;;  %v1769_v30 = vld [vmem:[%s2299_s1 + $0x460] ss:$8 sps:$4 sm:$0xff]  }
  0x47   :  { %1059 = vmatpush1.bf16.msra.mxu1 %v1643_v10  ;;  %v1747_v10 = vld [vmem:[%s2299_s1 + $0x404] ss:$8 sps:$4 sm:$0xff]  }
  0x48   :  { %1165 = vmatpush1.bf16.msra.mxu0 %v1646_v11  ;;  %1060 = vmatprep.subr.bf16.mxu1 %v1651_v12  ;;  %v1739_v11 = vld [vmem:[%s2300_s0 + $0x8] ss:$36 sps:$4 sm:$0xff]   ;;  %v1742_v12 = vld [vmem:[%s2300_s0 + $0x18] ss:$36 sps:$4 sm:$0xff]  }
  0x49   :  { %1166 = vmatprep.subr.bf16.mxu0 %v1654_v13  ;;  %v1745_v13 = vld [vmem:[%s2299_s1 + $0x400] ss:$8 sps:$4 sm:$0xff]  }
  0x4a   :  { %1046 = vmatmul.mubr.bf16.gmra.mrb[4].mxu1 %v1725_v31  ;;  %v1774_v31 = vld [vmem:[%s2299_s1 + $0x474] ss:$8 sps:$4 sm:$0xff]  }
  0x4b   :  { %1061 = vmatpush1.bf16.msra.mxu1 %v1649_v14  ;;  %1152 = vmatmul.mubr.bf16.gmra.mrb[4].mxu0 %v1729_v33  ;;  %v1750_v14 = vld [vmem:[%s2299_s1 + $0x414] ss:$8 sps:$4 sm:$0xff]   ;;  %v1775_v33 = vld [vmem:[%s2300_s0 + $0x20] ss:$36 sps:$4 sm:$0xff]  }
  0x4c   :  { %1167 = vmatpush1.bf16.msra.mxu0 %v1652_v15  ;;  %1062 = vmatprep.subr.bf16.mxu1 %v1657_v16  ;;  %v1751_v15 = vld [vmem:[%s2300_s0 + $0x54] ss:$36 sps:$4 sm:$0xff]   ;;  %v1753_v16 = vld [vmem:[%s2300_s0 + $0x64] ss:$36 sps:$4 sm:$0xff]  }
  0x4d   :  { %1168 = vmatprep.subr.bf16.mxu0 %v1660_v17  ;;  %1088 = vmatprep.mubr.bf16.mxu1 %v1741_v41  ;;  %v1748_v17 = vld [vmem:[%s2299_s1 + $0x410] ss:$8 sps:$4 sm:$0xff]  }
  0x4e   :  { %1194 = vmatprep.mubr.bf16.mxu0 %v1744_v43 }
  0x4f   :  { %1063 = vmatpush1.bf16.msra.mxu1 %v1655_v18  ;;  %v1759_v18 = vld [vmem:[%s2299_s1 + $0x424] ss:$8 sps:$4 sm:$0xff]  }
  0x50   :  { %1169 = vmatpush1.bf16.msra.mxu0 %v1658_v19  ;;  %1064 = vmatprep.subr.bf16.mxu1 %v1663_v20  ;;  %v1755_v19 = vld [vmem:[%s2300_s0 + $0x50] ss:$36 sps:$4 sm:$0xff]   ;;  %v1756_v20 = vld [vmem:[%s2300_s0 + $0x60] ss:$36 sps:$4 sm:$0xff]  }
  0x51   :  { %1170 = vmatprep.subr.bf16.mxu0 %v1666_v21  ;;  %v1757_v21 = vld [vmem:[%s2299_s1 + $0x420] ss:$8 sps:$4 sm:$0xff]  }
  0x53   :  { %1065 = vmatpush1.bf16.msra.mxu1 %v1661_v22  ;;  %v1762_v22 = vld [vmem:[%s2299_s1 + $0x434] ss:$8 sps:$4 sm:$0xff]  }
  0x54   :  { %1171 = vmatpush1.bf16.msra.mxu0 %v1664_v23  ;;  %1066 = vmatprep.subr.bf16.mxu1 %v1669_v24  ;;  %v1760_v23 = vld [vmem:[%s2299_s1 + $0x430] ss:$8 sps:$4 sm:$0xff]   ;;  %v1765_v24 = vld [vmem:[%s2299_s1 + $0x444] ss:$8 sps:$4 sm:$0xff]  }
  0x55   :  { %1172 = vmatprep.subr.bf16.mxu0 %v1672_v25  ;;  %v1777_v25 = vmov 0  }
  0x57   :  { %1067 = vmatpush1.bf16.msra.mxu1 %v1667_v26  ;;  %v1763_v26 = vld [vmem:[%s2299_s1 + $0x440] ss:$8 sps:$4 sm:$0xff]  }
  0x58   :  { %1173 = vmatpush1.bf16.msra.mxu0 %v1670_v27  ;;  %1068 = vmatprep.subr.bf16.mxu1 %v1675_v28  ;;  %v1768_v27 = vld [vmem:[%s2299_s1 + $0x454] ss:$8 sps:$4 sm:$0xff]   ;;  %v1766_v28 = vld [vmem:[%s2299_s1 + $0x450] ss:$8 sps:$4 sm:$0xff]  }
  0x59   :  { %1174 = vmatprep.subr.bf16.mxu0 %v1678_v32  ;;  %v1772_v32 = vld [vmem:[%s2299_s1 + $0x470] ss:$8 sps:$4 sm:$0xff]  }
  0x5b   :  { %1069 = vmatpush1.bf16.msra.mxu1 %v1673_v34  ;;  %v1776_v34 = vld [vmem:[%s2300_s0 + $0x68] ss:$36 sps:$4 sm:$0xff]  }
  0x5c   :  { %1175 = vmatpush1.bf16.msra.mxu0 %v1676_v35  ;;  %1070 = vmatprep.subr.bf16.mxu1 %v1681_v36  ;;  %v181_v35 = vlaneseq }
  0x5d   :  { %1176 = vmatprep.subr.bf16.mxu0 %v1684_v37 }
  0x5e   :  { %v182_v36 = vshrl.u32 %v181_v35, 7 }
  0x5f   :  { %1071 = vmatpush1.bf16.msra.mxu1 %v1679_v38 }
  0x60   :  { %1177 = vmatpush1.bf16.msra.mxu0 %v1682_v39  ;;  %1072 = vmatprep.subr.bf16.mxu1 %v1687_v40  ;;  %v183_v40 = vsub.s32 0, %v182_v36  ;;  %v187_v43 = vsub.s32 1, %v182_v36 }
  0x61   :  { %1178 = vmatprep.subr.bf16.mxu0 %v1690_v42  ;;  %v179_v42 = vld [vmem:[%s2301_s2] sm:$0x3] }
  0x63   :  { %1073 = vmatpush1.bf16.msra.mxu1 %v1685_v44  ;;  %v184_v44 = vrot.slane %v179_v42, %v183_v40 }
  0x64   :  { %1179 = vmatpush1.bf16.msra.mxu0 %v1688_v45  ;;  %1074 = vmatprep.subr.bf16.mxu1 %v1693_v46  ;;  %v188_v45 = vrot.slane %v179_v42, %v187_v43 }
  0x65   :  { %1180 = vmatprep.subr.bf16.mxu0 %v1696_v47 }
  0x67   :  { %1075 = vmatpush1.bf16.msra.mxu1 %v1691_v48 }
  0x68   :  { %1181 = vmatpush1.bf16.msra.mxu0 %v1694_v49  ;;  %1076 = vmatprep.subr.bf16.mxu1 %v1699_v50 }
  0x69   :  { %1182 = vmatprep.subr.bf16.mxu0 %v1702_v51 }
  0x6b   :  { %1077 = vmatpush1.bf16.msra.mxu1 %v1697_v52 }
  0x6c   :  { %1183 = vmatpush1.bf16.msra.mxu0 %v1700_v53  ;;  %1078 = vmatprep.subr.bf16.mxu1 %v1705_v54 }
  0x6d   :  { %1184 = vmatprep.subr.bf16.mxu0 %v1708_v55 }
  0x6f   :  { %1079 = vmatpush1.bf16.msra.mxu1 %v1703_v56 }
  0x70   :  { %1185 = vmatpush1.bf16.msra.mxu0 %v1706_v57  ;;  %1080 = vmatprep.subr.bf16.mxu1 %v1711_v58 }
  0x71   :  { %1186 = vmatprep.subr.bf16.mxu0 %v1714_v59 }
  0x73   :  { %1081 = vmatpush1.bf16.msra.mxu1 %v1709_v60 }
  0x74   :  { %1187 = vmatpush1.bf16.msra.mxu0 %v1712_v61  ;;  %1082 = vmatprep.subr.bf16.mxu1 %v1717_v62 }
  0x75   :  { %1188 = vmatprep.subr.bf16.mxu0 %v1720_v63 }
  0x77   :  { %1083 = vmatpush1.bf16.msra.mxu1 %v1715_v0 }
  0x78   :  { %1189 = vmatpush1.bf16.msra.mxu0 %v1718_v1  ;;  %1084 = vmatprep.subr.bf16.mxu1 %v1728_v2 }
  0x79   :  { %1190 = vmatprep.subr.bf16.mxu0 %v1732_v3 }
  0x7b   :  { %1085 = vmatpush1.bf16.msra.mxu1 %v1726_v4 }
  0x7c   :  { %1191 = vmatpush1.bf16.msra.mxu0 %v1730_v5  ;;  %1086 = vmatprep.subr.bf16.mxu1 %v1735_v6 }
  0x7d   :  { %1192 = vmatprep.subr.bf16.mxu0 %v1738_v7 }
  0x7f   :  { %1087 = vmatpush1.bf16.msra.mxu1 %v1733_v8 }
  0x80   :  { %1193 = vmatpush1.bf16.msra.mxu0 %v1736_v9  ;;  %1478 = vmatprep.subr.bf16.mxu1 %v1747_v10 }
  0x81   :  { %1215 = vmatprep.subr.bf16.mxu0 %v1747_v10 }
  0x82   :  { %1089 = vmatmul.mubr.bf16.vlgmr.msra.gmra.mrb[0].mxu1 %v1739_v11 }
  0x83   :  { %1195 = vmatmul.mubr.bf16.vlgmr.msra.gmra.mrb[0].mxu0 %v1742_v12  ;;  %1486 = vmatpush1.bf16.msra.mxu1 %v1745_v13 }
  0x84   :  { %1216 = vmatpush1.bf16.msra.mxu0 %v1745_v13  ;;  %1479 = vmatprep.subr.bf16.mxu1 %v1750_v14 }
  0x85   :  { %1217 = vmatprep.subr.bf16.mxu0 %v1750_v14  ;;  %1098 = vmatprep.mubr.bf16.mxu1 %v1751_v15 }
  0x86   :  { %1204 = vmatprep.mubr.bf16.mxu0 %v1753_v16 }
  0x87   :  { %1487 = vmatpush1.bf16.msra.mxu1 %v1748_v17 }
  0x88   :  { %1218 = vmatpush1.bf16.msra.mxu0 %v1748_v17  ;;  %1480 = vmatprep.subr.bf16.mxu1 %v1759_v18 }
  0x89   :  { %1219 = vmatprep.subr.bf16.mxu0 %v1759_v18 }
  0x8a   :  { %1099 = vmatmul.mubr.bf16.gmra.mrb[4].mxu1 %v1755_v19 }
  0x8b   :  { %1205 = vmatmul.mubr.bf16.gmra.mrb[4].mxu0 %v1756_v20  ;;  %1488 = vmatpush1.bf16.msra.mxu1 %v1757_v21 }
  0x8c   :  { %1220 = vmatpush1.bf16.msra.mxu0 %v1757_v21  ;;  %1481 = vmatprep.subr.bf16.mxu1 %v1762_v22 }
  0x8d   :  { %1221 = vmatprep.subr.bf16.mxu0 %v1762_v22  ;;  %1247 = vmatprep.mubr.bf16.mxu0 %v1777_v25 }
  0x8e   :  { %1257 = vmatprep.mubr.bf16.mxu1 %v1777_v25 }
  0x8f   :  { %1489 = vmatpush1.bf16.msra.mxu1 %v1760_v23 }
  0x90   :  { %1222 = vmatpush1.bf16.msra.mxu0 %v1760_v23  ;;  %1482 = vmatprep.subr.bf16.mxu1 %v1765_v24 }
  0x91   :  { %1223 = vmatprep.subr.bf16.mxu0 %v1765_v24 }
  0x93   :  { %1490 = vmatpush1.bf16.msra.mxu1 %v1763_v26 }
  0x94   :  { %1224 = vmatpush1.bf16.msra.mxu0 %v1763_v26  ;;  %1483 = vmatprep.subr.bf16.mxu1 %v1768_v27 }
  0x95   :  { %1225 = vmatprep.subr.bf16.mxu0 %v1768_v27 }
  0x97   :  { %1491 = vmatpush1.bf16.msra.mxu1 %v1766_v28 }
  0x98   :  { %1226 = vmatpush1.bf16.msra.mxu0 %v1766_v28  ;;  %1484 = vmatprep.subr.bf16.mxu1 %v1771_v29 }
  0x99   :  { %1227 = vmatprep.subr.bf16.mxu0 %v1771_v29 }
  0x9b   :  { %1492 = vmatpush1.bf16.msra.mxu1 %v1769_v30 }
  0x9c   :  { %1228 = vmatpush1.bf16.msra.mxu0 %v1769_v30  ;;  %1485 = vmatprep.subr.bf16.mxu1 %v1774_v31 }
  0x9d   :  { %1229 = vmatprep.subr.bf16.mxu0 %v1774_v31 }
  0x9f   :  { %1493 = vmatpush1.bf16.msra.mxu1 %v1772_v32 }
  0xa0   :  { %1230 = vmatpush1.bf16.msra.mxu0 %v1772_v32 }
  0xa2   :  { %1258 = vmatmul.mubr.bf16.vlgmr.msra.gmra.mrb[8].mxu1 %v1776_v34 }
  0xa3   :  { %1248 = vmatmul.mubr.bf16.vlgmr.msra.gmra.mrb[0].mxu0 %v1775_v33 }
 0x155   :  { %v1090_v37 = vpop.f32.mrb[0].mxu1 }
 0x156   :  { %v1092_v38 = vpop.f32.mrb[1].mxu1  ;;  %v1494_v62 = vadd.f32 %v1090_v37, %v184_v44 }
 0x157   :  { %v1094_v39 = vpop.f32.mrb[2].mxu1  ;;  %v1496_v63 = vadd.f32 %v1092_v38, %v188_v45 }
 0x158   :  { %v1096_v41 = vpop.f32.mrb[3].mxu1  ;;  %v1498_v2 = vadd.f32 %v1094_v39, %v184_v44 }
 0x159   :  { %v1500_v7 = vadd.f32 %v1096_v41, %v188_v45 }
 0x15d   :  { %v1100_v46 = vpop.f32.mrb[4].mxu1 }
 0x15e   :  { %v1206_v47 = vpop.f32.mrb[4].mxu0  ;;  %v1502_v48 = vadd.f32 %v1100_v46, %v184_v44  ;;  %v1102_v49 = vpop.f32.mrb[5].mxu1 }
 0x15f   :  { %v1208_v50 = vpop.f32.mrb[5].mxu0  ;;  %v1505_v51 = vadd.f32 %v1102_v49, %v188_v45  ;;  %v1104_v52 = vpop.f32.mrb[6].mxu1 }
 0x160   :  { %v1210_v53 = vpop.f32.mrb[6].mxu0  ;;  %v1503_v54 = vadd.f32 %v1502_v48, %v1206_v47  ;;  %v1508_v55 = vadd.f32 %v1104_v52, %v184_v44  ;;  %v1106_v56 = vpop.f32.mrb[7].mxu1 }
 0x161   :  { %v1212_v57 = vpop.f32.mrb[7].mxu0  ;;  %v1506_v58 = vadd.f32 %v1505_v51, %v1208_v50  ;;  %v1511_v59 = vadd.f32 %v1106_v56, %v188_v45 }
 0x162   :  { %v1509_v60 = vadd.f32 %v1508_v55, %v1210_v53 }
 0x163   :  { %v1512_v61 = vadd.f32 %v1511_v59, %v1212_v57 }
 0x175   :  { %v1259_v1 = vpop.f32.mrb[8].mxu1 }
 0x176   :  { %v1249_v0 = vpop.f32.mrb[0].mxu0  ;;  %v1504_v4 = vadd.f32 %v1503_v54, %v1259_v1  ;;  %v1261_v6 = vpop.f32.mrb[9].mxu1 }
 0x177   :  { %v1495_v3 = vadd.f32 %v1494_v62, %v1249_v0  ;;  %v1251_v5 = vpop.f32.mrb[1].mxu0  ;;  %v1507_v9 = vadd.f32 %v1506_v58, %v1261_v6  ;;  %v1263_v11 = vpop.f32.mrb[10].mxu1 }
 0x178   :  { %v1497_v8 = vadd.f32 %v1496_v63, %v1251_v5  ;;  %v1253_v10 = vpop.f32.mrb[2].mxu0  ;;  %v1272_v13 = vmax.f32 %v1504_v4, 0.0  ;;  %v1510_v15 = vadd.f32 %v1509_v60, %v1263_v11  ;;  %v1265_v17 = vpop.f32.mrb[11].mxu1 }
 0x179   :  { %v1268_v12 = vmax.f32 %v1495_v3, 0.0  ;;  %v1499_v14 = vadd.f32 %v1498_v2, %v1253_v10  ;;  %v1255_v16 = vpop.f32.mrb[3].mxu0  ;;  %v1273_v19 = vmax.f32 %v1507_v9, 0.0  ;;  %v1513_v21 = vadd.f32 %v1512_v61, %v1265_v17 }
 0x17a   :  { %v1269_v18 = vmax.f32 %v1497_v8, 0.0  ;;  %v1501_v20 = vadd.f32 %v1500_v7, %v1255_v16  ;;  %v1274_v23 = vmax.f32 %v1510_v15, 0.0 }
 0x17b   :  { %v1270_v22 = vmax.f32 %v1499_v14, 0.0  ;;  %v1476_v25 = vpack.c.bf16 %v1273_v19, %v1272_v13  ;;  %v1275_v27 = vmax.f32 %v1513_v21, 0.0 }
 0x17c   :  { %v1474_v24 = vpack.c.bf16 %v1269_v18, %v1268_v12  ;;  %v1271_v26 = vmax.f32 %v1501_v20, 0.0 }
 0x17d   :  { %1302 = vst [vmem:[%s2302_s3 + $0x10] sm:$0xff] %v1476_v25  ;;  %v1477_v29 = vpack.c.bf16 %v1275_v27, %v1274_v23 }
 0x17e   :  { %1300 = vst [vmem:[%s2302_s3] sm:$0xff] %v1474_v24  ;;  %v1475_v28 = vpack.c.bf16 %v1271_v26, %v1270_v22 }
 0x17f   :  { %1303 = vst [vmem:[%s2302_s3 + $0x18] sm:$0xff] %v1477_v29 }
 0x180   :  { %1301 = vst [vmem:[%s2302_s3 + $0x8] sm:$0xff] %v1475_v28 }

// kernel: beta_vae_forward.16
= control target key start
LH: loop header
LB: loop body
LE: loop exit
PB: predicated region body
PF: predicated region fallthrough
CT: control target
= control target key end

     0   :  { %vm558_vm0 = vcmask 523264   ;;  %s1733_s1 = inlined_call_operand.vmem [shape: bf16[576,128], index: 1, kind: input, shape index: {}]   ;;  %s1734_s0 = inlined_call_operand.vmem [shape: bf16[128,576], index: 0, kind: input, shape index: {}]   ;;  %s1735_s2 = inlined_call_operand.vmem [shape: f32[1,128], index: 2, kind: input, shape index: {}]   ;;  %s1736_s3 = inlined_call_operand.vmem [shape: bf16[128,128], index: 3, kind: output, shape index: {}]  }
   0x1   :  { %v1310_v0 = vld [vmem:[%s1733_s1 + $0x40] sm:$0xff]   ;;  %v1314_v4 = vld [vmem:[%s1733_s1 + $0x48] sm:$0xff]   ;;  %v1318_v8 = vld [vmem:[%s1733_s1 + $0x50] sm:$0xff]  }
   0x2   :  { %v1311_v1 = vld [vmem:[%s1733_s1 + $0xc0] sm:$0xff]   ;;  %1138 = vmatprep.subr.bf16.mxu0 %v1310_v0  ;;  %v1315_v5 = vld [vmem:[%s1733_s1 + $0xc8] sm:$0xff]   ;;  %v1319_v9 = vld [vmem:[%s1733_s1 + $0xd0] sm:$0xff]  }
   0x3   :  { %v1312_v2 = vld [vmem:[%s1733_s1] sm:$0xff]   ;;  %1202 = vmatprep.subr.bf16.mxu1 %v1311_v1  ;;  %v1316_v6 = vld [vmem:[%s1733_s1 + $0x8] sm:$0xff]   ;;  %v1320_v10 = vld [vmem:[%s1733_s1 + $0x10] sm:$0xff]  }
   0x4   :  { %v1313_v3 = vld [vmem:[%s1733_s1 + $0x80] sm:$0xff]   ;;  %1139 = vmatpush3.bf16.msra.mxu0 %v1312_v2  ;;  %v1317_v7 = vld [vmem:[%s1733_s1 + $0x88] sm:$0xff]   ;;  %v1321_v11 = vld [vmem:[%s1733_s1 + $0x90] sm:$0xff]  }
   0x5   :  { %1203 = vmatpush3.bf16.msra.mxu1 %v1313_v3  ;;  %1140 = vmatprep.subr.bf16.mxu0 %v1314_v4  ;;  %v1322_v12 = vld [vmem:[%s1733_s1 + $0x58] sm:$0xff]   ;;  %v1326_v16 = vld [vmem:[%s1733_s1 + $0x60] sm:$0xff]   ;;  %v1330_v20 = vld [vmem:[%s1733_s1 + $0x68] sm:$0xff]  }
   0x6   :  { %1204 = vmatprep.subr.bf16.mxu1 %v1315_v5  ;;  %v1323_v13 = vld [vmem:[%s1733_s1 + $0xd8] sm:$0xff]   ;;  %v1327_v17 = vld [vmem:[%s1733_s1 + $0xe0] sm:$0xff]   ;;  %v1331_v21 = vld [vmem:[%s1733_s1 + $0xe8] sm:$0xff]  }
   0x7   :  { %v1324_v14 = vld [vmem:[%s1733_s1 + $0x18] sm:$0xff]   ;;  %v1328_v18 = vld [vmem:[%s1733_s1 + $0x20] sm:$0xff]   ;;  %v1332_v22 = vld [vmem:[%s1733_s1 + $0x28] sm:$0xff]  }
   0x8   :  { %1141 = vmatpush3.bf16.msra.mxu0 %v1316_v6  ;;  %v1325_v15 = vld [vmem:[%s1733_s1 + $0x98] sm:$0xff]   ;;  %v1329_v19 = vld [vmem:[%s1733_s1 + $0xa0] sm:$0xff]   ;;  %v1333_v23 = vld [vmem:[%s1733_s1 + $0xa8] sm:$0xff]  }
   0x9   :  { %1205 = vmatpush3.bf16.msra.mxu1 %v1317_v7  ;;  %1142 = vmatprep.subr.bf16.mxu0 %v1318_v8  ;;  %v1334_v24 = vld [vmem:[%s1733_s1 + $0x70] sm:$0xff]   ;;  %v1338_v28 = vld [vmem:[%s1733_s1 + $0x78] sm:$0xff]   ;;  %v1347_v35 = vld [vmem:[%s1734_s0 + $0xc] ss:$20 sps:$4 sm:$0xff]  }
   0xa   :  { %1206 = vmatprep.subr.bf16.mxu1 %v1319_v9  ;;  %v1335_v25 = vld [vmem:[%s1733_s1 + $0xf0] sm:$0xff]   ;;  %v1339_v29 = vld [vmem:[%s1733_s1 + $0xf8] sm:$0xff]   ;;  %v1348_v36 = vld [vmem:[%s1733_s1 + $0x100] sm:$0xff]   ;;  %712 = vmatprep.mubr.bf16.mxu1 %v1347_v35 }
   0xb   :  { %v1336_v26 = vld [vmem:[%s1733_s1 + $0x30] sm:$0xff]   ;;  %v1340_v30 = vld [vmem:[%s1733_s1 + $0x38] sm:$0xff]   ;;  %v1349_v37 = vld [vmem:[%s1734_s0 + $0x2c] ss:$20 sps:$4 sm:$0xff]  }
   0xc   :  { %1143 = vmatpush3.bf16.msra.mxu0 %v1320_v10  ;;  %v1337_v27 = vld [vmem:[%s1733_s1 + $0xb0] sm:$0xff]   ;;  %v1341_v31 = vld [vmem:[%s1733_s1 + $0xb8] sm:$0xff]   ;;  %v1361_v42 = vld [vmem:[%s1733_s1 + $0x108] sm:$0xff]  }
   0xd   :  { %1207 = vmatpush3.bf16.msra.mxu1 %v1321_v11  ;;  %1144 = vmatprep.subr.bf16.mxu0 %v1322_v12  ;;  %v1342_v32 = vld [vmem:[%s1734_s0] ss:$20 sps:$4 sm:$0xff]   ;;  %v1344_v33 = vld [vmem:[%s1734_s0 + $0x4] ss:$20 sps:$4 sm:$0xff]   ;;  %v1345_v34 = vld [vmem:[%s1734_s0 + $0x8] ss:$20 sps:$4 sm:$0xff]  }
   0xe   :  { %1208 = vmatprep.subr.bf16.mxu1 %v1323_v13  ;;  %615 = vmatprep.mubr.bf16.mxu0 %v1344_v33  ;;  %v1351_v38 = vld [vmem:[%s1734_s0 + $0x34] ss:$20 sps:$4 sm:$0xff]   ;;  %v1354_v40 = vld [vmem:[%s1734_s0 + $0x30] ss:$20 sps:$4 sm:$0xff]   ;;  %v1360_v45 = vld [vmem:[%s1734_s0 + $0x58] ss:$20 sps:$4 sm:$0xff]  }
   0xf   :  { %v1353_v39 = vld [vmem:[%s1734_s0 + $0x28] ss:$20 sps:$4 sm:$0xff]   ;;  %v1359_v44 = vld [vmem:[%s1734_s0 + $0x50] ss:$20 sps:$4 sm:$0xff]   ;;  %v1366_v50 = vld [vmem:[%s1734_s0 + $0x78] ss:$20 sps:$4 sm:$0xff]  }
  0x10   :  { %1145 = vmatpush3.bf16.msra.mxu0 %v1324_v14  ;;  %v1355_v41 = vld [vmem:[%s1734_s0 + $0x54] ss:$20 sps:$4 sm:$0xff]   ;;  %v1357_v43 = vld [vmem:[%s1734_s0 + $0x5c] ss:$20 sps:$4 sm:$0xff]   ;;  %v1364_v48 = vld [vmem:[%s1734_s0 + $0x84] ss:$20 sps:$4 sm:$0xff]  }
  0x11   :  { %1209 = vmatpush3.bf16.msra.mxu1 %v1325_v15  ;;  %1146 = vmatprep.subr.bf16.mxu0 %v1326_v16  ;;  %v1374_v46 = vld [vmem:[%s1733_s1 + $0x110] sm:$0xff]   ;;  %v1387_v49 = vld [vmem:[%s1733_s1 + $0x118] sm:$0xff]   ;;  %v1370_v53 = vld [vmem:[%s1734_s0 + $0xac] ss:$20 sps:$4 sm:$0xff]  }
  0x12   :  { %1210 = vmatprep.subr.bf16.mxu1 %v1327_v17  ;;  %v1362_v47 = vld [vmem:[%s1734_s0 + $0x7c] ss:$20 sps:$4 sm:$0xff]   ;;  %v1367_v51 = vld [vmem:[%s1734_s0 + $0x80] ss:$20 sps:$4 sm:$0xff]   ;;  %v1368_v52 = vld [vmem:[%s1734_s0 + $0xa4] ss:$20 sps:$4 sm:$0xff]  }
  0x13   :  { %v1372_v54 = vld [vmem:[%s1734_s0 + $0xa0] ss:$20 sps:$4 sm:$0xff]   ;;  %v1373_v55 = vld [vmem:[%s1734_s0 + $0xa8] ss:$20 sps:$4 sm:$0xff]   ;;  %v1380_v59 = vld [vmem:[%s1734_s0 + $0xd0] ss:$20 sps:$4 sm:$0xff]  }
  0x14   :  { %1147 = vmatpush3.bf16.msra.mxu0 %v1328_v18  ;;  %v1375_v56 = vld [vmem:[%s1734_s0 + $0xcc] ss:$20 sps:$4 sm:$0xff]   ;;  %v1377_v57 = vld [vmem:[%s1734_s0 + $0xd4] ss:$20 sps:$4 sm:$0xff]   ;;  %v1383_v61 = vld [vmem:[%s1734_s0 + $0xfc] ss:$20 sps:$4 sm:$0xff]  }
  0x15   :  { %1211 = vmatpush3.bf16.msra.mxu1 %v1329_v19  ;;  %1148 = vmatprep.subr.bf16.mxu0 %v1330_v20  ;;  %v1379_v58 = vld [vmem:[%s1734_s0 + $0xc8] ss:$20 sps:$4 sm:$0xff]   ;;  %v1385_v62 = vld [vmem:[%s1734_s0 + $0xf0] ss:$20 sps:$4 sm:$0xff]   ;;  %v1386_v63 = vld [vmem:[%s1734_s0 + $0xf8] ss:$20 sps:$4 sm:$0xff]  }
  0x16   :  { %1212 = vmatprep.subr.bf16.mxu1 %v1331_v21  ;;  %v1381_v60 = vld [vmem:[%s1734_s0 + $0xf4] ss:$20 sps:$4 sm:$0xff]   ;;  %v1388_v0 = vld [vmem:[%s1734_s0 + $0x11c] ss:$20 sps:$4 sm:$0xff]   ;;  %v1390_v1 = vld [vmem:[%s1734_s0 + $0x124] ss:$20 sps:$4 sm:$0xff]  }
  0x17   :  { %v1392_v2 = vld [vmem:[%s1734_s0 + $0x118] ss:$20 sps:$4 sm:$0xff]   ;;  %v1393_v3 = vld [vmem:[%s1734_s0 + $0x120] ss:$20 sps:$4 sm:$0xff]   ;;  %v1394_v4 = vld [vmem:[%s1734_s0 + $0x10] ss:$20 sps:$4 sm:$0xff]  }
  0x18   :  { %1149 = vmatpush3.bf16.msra.mxu0 %v1332_v22  ;;  %v1395_v5 = vld [vmem:[%s1734_s0 + $0xb0] ss:$20 sps:$4 sm:$0xff]   ;;  %v1396_v6 = vld [vmem:[%s1734_s0 + $0x38] ss:$20 sps:$4 sm:$0xff]   ;;  %v1398_v8 = vld [vmem:[%s1734_s0 + $0x60] ss:$20 sps:$4 sm:$0xff]  }
  0x19   :  { %1213 = vmatpush3.bf16.msra.mxu1 %v1333_v23  ;;  %1150 = vmatprep.subr.bf16.mxu0 %v1334_v24  ;;  %v1397_v7 = vld [vmem:[%s1734_s0 + $0xd8] ss:$20 sps:$4 sm:$0xff]   ;;  %v1399_v9 = vld [vmem:[%s1734_s0 + $0x100] ss:$20 sps:$4 sm:$0xff]   ;;  %v1400_v10 = vld [vmem:[%s1734_s0 + $0x88] ss:$20 sps:$4 sm:$0xff]  }
  0x1a   :  { %1214 = vmatprep.subr.bf16.mxu1 %v1335_v25  ;;  %v1401_v11 = vld [vmem:[%s1734_s0 + $0x128] ss:$20 sps:$4 sm:$0xff]   ;;  %v1661_v14 = vld [vmem:[%s1735_s2] ss:$0 sm:$0xff] }
  0x1c   :  { %1151 = vmatpush3.bf16.msra.mxu0 %v1336_v26 }
  0x1d   :  { %1215 = vmatpush3.bf16.msra.mxu1 %v1337_v27  ;;  %1152 = vmatprep.subr.bf16.mxu0 %v1338_v28 }
  0x1e   :  { %1216 = vmatprep.subr.bf16.mxu1 %v1339_v29 }
  0x20   :  { %1153 = vmatpush3.bf16.msra.mxu0 %v1340_v30 }
  0x21   :  { %1217 = vmatpush3.bf16.msra.mxu1 %v1341_v31  ;;  %1278 = vmatprep.subr.bf16.mxu0 %v1348_v36 }
  0x22   :  { %1302 = vmatprep.subr.bf16.mxu1 %v1348_v36 }
  0x23   :  { %616 = vmatmul.mubr.bf16.vlgmr.msra.gmra.mrb[0].mxu0 %v1342_v32 }
  0x24   :  { %713 = vmatmul.mubr.bf16.vlgmr.msra.gmra.mrb[0].mxu1 %v1345_v34  ;;  %1279 = vmatpush3.bf16.msra.mxu0 %v1348_v36 }
  0x25   :  { %1306 = vmatpush3.bf16.msra.mxu1 %v1348_v36  ;;  %623 = vmatprep.mubr.bf16.mxu0 %v1349_v37 }
  0x26   :  { %720 = vmatprep.mubr.bf16.mxu1 %v1351_v38  ;;  %1280 = vmatprep.subr.bf16.mxu0 %v1361_v42 }
  0x27   :  { %1303 = vmatprep.subr.bf16.mxu1 %v1361_v42 }
  0x28   :  { %1281 = vmatpush3.bf16.msra.mxu0 %v1361_v42 }
  0x29   :  { %1307 = vmatpush3.bf16.msra.mxu1 %v1361_v42  ;;  %1282 = vmatprep.subr.bf16.mxu0 %v1374_v46 }
  0x2a   :  { %1304 = vmatprep.subr.bf16.mxu1 %v1374_v46 }
  0x2b   :  { %624 = vmatmul.mubr.bf16.gmra.mrb[4].mxu0 %v1353_v39 }
  0x2c   :  { %721 = vmatmul.mubr.bf16.gmra.mrb[4].mxu1 %v1354_v40  ;;  %631 = vmatprep.mubr.bf16.mxu0 %v1355_v41 }
  0x2d   :  { %728 = vmatprep.mubr.bf16.mxu1 %v1357_v43  ;;  %1283 = vmatpush3.bf16.msra.mxu0 %v1374_v46 }
  0x2e   :  { %1308 = vmatpush3.bf16.msra.mxu1 %v1374_v46  ;;  %1284 = vmatprep.subr.bf16.mxu0 %v1387_v49 }
  0x2f   :  { %1305 = vmatprep.subr.bf16.mxu1 %v1387_v49 }
  0x31   :  { %1285 = vmatpush3.bf16.msra.mxu0 %v1387_v49 }
  0x32   :  { %1309 = vmatpush3.bf16.msra.mxu1 %v1387_v49 }
  0x33   :  { %632 = vmatmul.mubr.bf16.gmra.mrb[8].mxu0 %v1359_v44 }
  0x34   :  { %729 = vmatmul.mubr.bf16.gmra.mrb[8].mxu1 %v1360_v45  ;;  %639 = vmatprep.mubr.bf16.mxu0 %v1362_v47 }
  0x35   :  { %736 = vmatprep.mubr.bf16.mxu1 %v1364_v48 }
  0x3b   :  { %640 = vmatmul.mubr.bf16.gmra.mrb[12].mxu0 %v1366_v50 }
  0x3c   :  { %737 = vmatmul.mubr.bf16.gmra.mrb[12].mxu1 %v1367_v51  ;;  %647 = vmatprep.mubr.bf16.mxu0 %v1368_v52 }
  0x3d   :  { %744 = vmatprep.mubr.bf16.mxu1 %v1370_v53 }
  0x43   :  { %648 = vmatmul.mubr.bf16.gmra.mrb[16].mxu0 %v1372_v54 }
  0x44   :  { %745 = vmatmul.mubr.bf16.gmra.mrb[16].mxu1 %v1373_v55  ;;  %655 = vmatprep.mubr.bf16.mxu0 %v1375_v56 }
  0x45   :  { %752 = vmatprep.mubr.bf16.mxu1 %v1377_v57 }
  0x4b   :  { %656 = vmatmul.mubr.bf16.gmra.mrb[20].mxu0 %v1379_v58 }
  0x4c   :  { %753 = vmatmul.mubr.bf16.gmra.mrb[20].mxu1 %v1380_v59  ;;  %663 = vmatprep.mubr.bf16.mxu0 %v1381_v60 }
  0x4d   :  { %760 = vmatprep.mubr.bf16.mxu1 %v1383_v61 }
  0x53   :  { %664 = vmatmul.mubr.bf16.gmra.mrb[24].mxu0 %v1385_v62 }
  0x54   :  { %761 = vmatmul.mubr.bf16.gmra.mrb[24].mxu1 %v1386_v63  ;;  %671 = vmatprep.mubr.bf16.mxu0 %v1388_v0 }
  0x55   :  { %768 = vmatprep.mubr.bf16.mxu1 %v1390_v1 }
  0x5b   :  { %672 = vmatmul.mubr.bf16.gmra.mrb[28].mxu0 %v1392_v2 }
  0x5c   :  { %769 = vmatmul.mubr.bf16.gmra.mrb[28].mxu1 %v1393_v3  ;;  %1286 = vmatprep.mubr.msk.bf16.mxu0 %vm558_vm0, %v1394_v4 }
  0x5d   :  { %1294 = vmatprep.mubr.msk.bf16.mxu1 %vm558_vm0, %v1395_v5 }
  0x63   :  { %1287 = vmatmul.mubr.msk.bf16.vlgmr.msra.gmra.mrb[32].mxu0 %vm558_vm0, %v1396_v6 }
  0x64   :  { %1295 = vmatmul.mubr.msk.bf16.vlgmr.msra.gmra.mrb[32].mxu1 %vm558_vm0, %v1397_v7  ;;  %1290 = vmatprep.mubr.msk.bf16.mxu0 %vm558_vm0, %v1398_v8 }
  0x65   :  { %1298 = vmatprep.mubr.msk.bf16.mxu1 %vm558_vm0, %v1399_v9 }
  0x6b   :  { %1291 = vmatmul.mubr.msk.bf16.gmra.mrb[36].mxu0 %vm558_vm0, %v1400_v10 }
  0x6c   :  { %1299 = vmatmul.mubr.msk.bf16.gmra.mrb[36].mxu1 %vm558_vm0, %v1401_v11 }
  0xf6   :  { %v1154_v12 = vpop.f32.mrb[0].mxu0 }
  0xf7   :  { %v1218_v13 = vpop.f32.mrb[0].mxu1  ;;  %v1155_v15 = vpop.f32.mrb[1].mxu0 }
  0xf8   :  { %v1156_v16 = vadd.f32 %v1155_v15, %v1154_v12  ;;  %v1219_v17 = vpop.f32.mrb[1].mxu1  ;;  %v1157_v18 = vpop.f32.mrb[2].mxu0 }
  0xf9   :  { %v1220_v19 = vadd.f32 %v1219_v17, %v1218_v13  ;;  %v1221_v20 = vpop.f32.mrb[2].mxu1  ;;  %v1158_v21 = vpop.f32.mrb[3].mxu0 }
  0xfa   :  { %v618_v22 = vadd.f32 %v1156_v16, %v1661_v14  ;;  %v1159_v23 = vadd.f32 %v1158_v21, %v1157_v18  ;;  %v1222_v24 = vpop.f32.mrb[3].mxu1 }
  0xfb   :  { %v1223_v25 = vadd.f32 %v1222_v24, %v1221_v20 }
  0xfc   :  { %v621_v26 = vadd.f32 %v1159_v23, %v1661_v14  ;;  %v1665_v27 = vadd.f32 %v1220_v19, %v618_v22 }
  0xfe   :  { %v1160_v28 = vpop.f32.mrb[4].mxu0  ;;  %v1667_v29 = vadd.f32 %v1223_v25, %v621_v26 }
  0xff   :  { %v1224_v30 = vpop.f32.mrb[4].mxu1  ;;  %v1161_v31 = vpop.f32.mrb[5].mxu0 }
 0x100   :  { %v1162_v32 = vadd.f32 %v1161_v31, %v1160_v28  ;;  %v1225_v33 = vpop.f32.mrb[5].mxu1  ;;  %v1163_v34 = vpop.f32.mrb[6].mxu0 }
 0x101   :  { %v1226_v35 = vadd.f32 %v1225_v33, %v1224_v30  ;;  %v1227_v36 = vpop.f32.mrb[6].mxu1  ;;  %v1164_v37 = vpop.f32.mrb[7].mxu0 }
 0x102   :  { %v626_v38 = vadd.f32 %v1162_v32, %v1661_v14  ;;  %v1165_v39 = vadd.f32 %v1164_v37, %v1163_v34  ;;  %v1228_v40 = vpop.f32.mrb[7].mxu1 }
 0x103   :  { %v1229_v41 = vadd.f32 %v1228_v40, %v1227_v36 }
 0x104   :  { %v629_v42 = vadd.f32 %v1165_v39, %v1661_v14  ;;  %v1671_v43 = vadd.f32 %v1226_v35, %v626_v38 }
 0x106   :  { %v1166_v44 = vpop.f32.mrb[8].mxu0  ;;  %v1673_v45 = vadd.f32 %v1229_v41, %v629_v42 }
 0x107   :  { %v1230_v46 = vpop.f32.mrb[8].mxu1  ;;  %v1167_v47 = vpop.f32.mrb[9].mxu0 }
 0x108   :  { %v1168_v48 = vadd.f32 %v1167_v47, %v1166_v44  ;;  %v1231_v49 = vpop.f32.mrb[9].mxu1  ;;  %v1169_v50 = vpop.f32.mrb[10].mxu0 }
 0x109   :  { %v1232_v51 = vadd.f32 %v1231_v49, %v1230_v46  ;;  %v1233_v52 = vpop.f32.mrb[10].mxu1  ;;  %v1170_v53 = vpop.f32.mrb[11].mxu0 }
 0x10a   :  { %v634_v54 = vadd.f32 %v1168_v48, %v1661_v14  ;;  %v1171_v55 = vadd.f32 %v1170_v53, %v1169_v50  ;;  %v1234_v56 = vpop.f32.mrb[11].mxu1 }
 0x10b   :  { %v1235_v57 = vadd.f32 %v1234_v56, %v1233_v52 }
 0x10c   :  { %v637_v58 = vadd.f32 %v1171_v55, %v1661_v14  ;;  %v1677_v59 = vadd.f32 %v1232_v51, %v634_v54 }
 0x10e   :  { %v1172_v60 = vpop.f32.mrb[12].mxu0  ;;  %v1679_v61 = vadd.f32 %v1235_v57, %v637_v58 }
 0x10f   :  { %v1236_v62 = vpop.f32.mrb[12].mxu1  ;;  %v1173_v63 = vpop.f32.mrb[13].mxu0 }
 0x110   :  { %v1174_v0 = vadd.f32 %v1173_v63, %v1172_v60  ;;  %v1237_v1 = vpop.f32.mrb[13].mxu1  ;;  %v1175_v2 = vpop.f32.mrb[14].mxu0 }
 0x111   :  { %v1238_v3 = vadd.f32 %v1237_v1, %v1236_v62  ;;  %v1239_v4 = vpop.f32.mrb[14].mxu1  ;;  %v1176_v5 = vpop.f32.mrb[15].mxu0 }
 0x112   :  { %v642_v6 = vadd.f32 %v1174_v0, %v1661_v14  ;;  %v1177_v7 = vadd.f32 %v1176_v5, %v1175_v2  ;;  %v1240_v8 = vpop.f32.mrb[15].mxu1 }
 0x113   :  { %v1241_v9 = vadd.f32 %v1240_v8, %v1239_v4 }
 0x114   :  { %v645_v10 = vadd.f32 %v1177_v7, %v1661_v14  ;;  %v1683_v11 = vadd.f32 %v1238_v3, %v642_v6 }
 0x116   :  { %v1178_v12 = vpop.f32.mrb[16].mxu0  ;;  %v1685_v13 = vadd.f32 %v1241_v9, %v645_v10 }
 0x117   :  { %v1242_v15 = vpop.f32.mrb[16].mxu1  ;;  %v1179_v16 = vpop.f32.mrb[17].mxu0 }
 0x118   :  { %v1180_v17 = vadd.f32 %v1179_v16, %v1178_v12  ;;  %v1243_v18 = vpop.f32.mrb[17].mxu1  ;;  %v1181_v19 = vpop.f32.mrb[18].mxu0 }
 0x119   :  { %v1244_v20 = vadd.f32 %v1243_v18, %v1242_v15  ;;  %v1245_v21 = vpop.f32.mrb[18].mxu1  ;;  %v1182_v22 = vpop.f32.mrb[19].mxu0 }
 0x11a   :  { %v650_v23 = vadd.f32 %v1180_v17, %v1661_v14  ;;  %v1183_v24 = vadd.f32 %v1182_v22, %v1181_v19  ;;  %v1246_v25 = vpop.f32.mrb[19].mxu1 }
 0x11b   :  { %v1247_v26 = vadd.f32 %v1246_v25, %v1245_v21 }
 0x11c   :  { %v653_v28 = vadd.f32 %v1183_v24, %v1661_v14  ;;  %v747_v30 = vadd.f32 %v1244_v20, %v650_v23 }
 0x11e   :  { %v1184_v31 = vpop.f32.mrb[20].mxu0  ;;  %v1689_v32 = vadd.f32 %v1247_v26, %v653_v28 }
 0x11f   :  { %v1248_v33 = vpop.f32.mrb[20].mxu1  ;;  %v1185_v34 = vpop.f32.mrb[21].mxu0 }
 0x120   :  { %v1186_v35 = vadd.f32 %v1185_v34, %v1184_v31  ;;  %v1249_v36 = vpop.f32.mrb[21].mxu1  ;;  %v1187_v37 = vpop.f32.mrb[22].mxu0 }
 0x121   :  { %v1250_v38 = vadd.f32 %v1249_v36, %v1248_v33  ;;  %v1251_v39 = vpop.f32.mrb[22].mxu1  ;;  %v1188_v40 = vpop.f32.mrb[23].mxu0 }
 0x122   :  { %v658_v41 = vadd.f32 %v1186_v35, %v1661_v14  ;;  %v1189_v42 = vadd.f32 %v1188_v40, %v1187_v37  ;;  %v1252_v44 = vpop.f32.mrb[23].mxu1 }
 0x123   :  { %v1253_v46 = vadd.f32 %v1252_v44, %v1251_v39 }
 0x124   :  { %v661_v47 = vadd.f32 %v1189_v42, %v1661_v14  ;;  %v755_v48 = vadd.f32 %v1250_v38, %v658_v41 }
 0x126   :  { %v1190_v49 = vpop.f32.mrb[24].mxu0  ;;  %v758_v50 = vadd.f32 %v1253_v46, %v661_v47 }
 0x127   :  { %v1254_v51 = vpop.f32.mrb[24].mxu1  ;;  %v1191_v52 = vpop.f32.mrb[25].mxu0 }
 0x128   :  { %v1192_v53 = vadd.f32 %v1191_v52, %v1190_v49  ;;  %v1255_v54 = vpop.f32.mrb[25].mxu1  ;;  %v1193_v55 = vpop.f32.mrb[26].mxu0 }
 0x129   :  { %v1256_v56 = vadd.f32 %v1255_v54, %v1254_v51  ;;  %v1257_v57 = vpop.f32.mrb[26].mxu1  ;;  %v1194_v58 = vpop.f32.mrb[27].mxu0 }
 0x12a   :  { %v666_v60 = vadd.f32 %v1192_v53, %v1661_v14  ;;  %v1195_v62 = vadd.f32 %v1194_v58, %v1193_v55  ;;  %v1258_v63 = vpop.f32.mrb[27].mxu1 }
 0x12b   :  { %v1259_v0 = vadd.f32 %v1258_v63, %v1257_v57 }
 0x12c   :  { %v669_v1 = vadd.f32 %v1195_v62, %v1661_v14  ;;  %v763_v2 = vadd.f32 %v1256_v56, %v666_v60 }
 0x12e   :  { %v1196_v3 = vpop.f32.mrb[28].mxu0  ;;  %v1695_v4 = vadd.f32 %v1259_v0, %v669_v1 }
 0x12f   :  { %v1260_v5 = vpop.f32.mrb[28].mxu1  ;;  %v1197_v6 = vpop.f32.mrb[29].mxu0 }
 0x130   :  { %v1198_v7 = vadd.f32 %v1197_v6, %v1196_v3  ;;  %v1261_v8 = vpop.f32.mrb[29].mxu1  ;;  %v1199_v9 = vpop.f32.mrb[30].mxu0 }
 0x131   :  { %v1262_v10 = vadd.f32 %v1261_v8, %v1260_v5  ;;  %v1263_v12 = vpop.f32.mrb[30].mxu1  ;;  %v1200_v15 = vpop.f32.mrb[31].mxu0 }
 0x132   :  { %v674_v16 = vadd.f32 %v1198_v7, %v1661_v14  ;;  %v1201_v17 = vadd.f32 %v1200_v15, %v1199_v9  ;;  %v1264_v18 = vpop.f32.mrb[31].mxu1 }
 0x133   :  { %v1265_v19 = vadd.f32 %v1264_v18, %v1263_v12 }
 0x134   :  { %v677_v20 = vadd.f32 %v1201_v17, %v1661_v14  ;;  %v771_v21 = vadd.f32 %v1262_v10, %v674_v16 }
 0x136   :  { %v1288_v22 = vpop.f32.mrb[32].mxu0  ;;  %v774_v23 = vadd.f32 %v1265_v19, %v677_v20 }
 0x137   :  { %v820_v24 = vadd.f32 %v1288_v22, %v1671_v43  ;;  %v1296_v25 = vpop.f32.mrb[32].mxu1  ;;  %v811_v26 = vpop.f32.mrb[33].mxu0 }
 0x138   :  { %v852_v28 = vadd.f32 %v1296_v25, %v755_v48  ;;  %v812_v31 = vadd.f32 %v811_v26, %v1665_v27  ;;  %v843_v33 = vpop.f32.mrb[33].mxu1  ;;  %v1289_v34 = vpop.f32.mrb[34].mxu0 }
 0x139   :  { %v844_v35 = vadd.f32 %v843_v33, %v747_v30  ;;  %v823_v36 = vadd.f32 %v1289_v34, %v1673_v45  ;;  %v1297_v37 = vpop.f32.mrb[34].mxu1  ;;  %v814_v38 = vpop.f32.mrb[35].mxu0  ;;  %v876_v41 = vmax.f32 %v820_v24, 0.0 }
 0x13a   :  { %v855_v39 = vadd.f32 %v1297_v37, %v758_v50  ;;  %v815_v14 = vadd.f32 %v814_v38, %v1667_v29  ;;  %v846_v40 = vpop.f32.mrb[35].mxu1  ;;  %v884_v44 = vmax.f32 %v852_v28, 0.0  ;;  %v874_v46 = vmax.f32 %v812_v31, 0.0 }
 0x13b   :  { %v877_v42 = vmax.f32 %v823_v36, 0.0  ;;  %v847_v43 = vadd.f32 %v846_v40, %v1689_v32  ;;  %v882_v27 = vmax.f32 %v844_v35, 0.0 }
 0x13c   :  { %v885_v47 = vmax.f32 %v855_v39, 0.0  ;;  %v875_v48 = vmax.f32 %v815_v14, 0.0 }
 0x13d   :  { %v1099_v49 = vpack.c.bf16 %v877_v42, %v876_v41  ;;  %v883_v51 = vmax.f32 %v847_v43, 0.0 }
 0x13e   :  { %v1119_v30 = vpack.c.bf16 %v885_v47, %v884_v44  ;;  %v1094_v52 = vpack.c.bf16 %v875_v48, %v874_v46  ;;  %v1292_v45 = vpop.f32.mrb[36].mxu0 }
 0x13f   :  { %1131 = vst [vmem:[%s1736_s3 + $0x8] sm:$0xff] %v1099_v49   ;;  %v1114_v29 = vpack.c.bf16 %v883_v51, %v882_v27  ;;  %v836_v50 = vadd.f32 %v1292_v45, %v1683_v11  ;;  %v1300_v53 = vpop.f32.mrb[36].mxu1  ;;  %v827_v54 = vpop.f32.mrb[37].mxu0 }
 0x140   :  { %1135 = vst [vmem:[%s1736_s3 + $0x28] sm:$0xff] %v1119_v30   ;;  %1095 = vst [vmem:[%s1736_s3] sm:$0xff] %v1094_v52   ;;  %v868_v32 = vadd.f32 %v1300_v53, %v771_v21  ;;  %v828_v55 = vadd.f32 %v827_v54, %v1677_v59  ;;  %v859_v56 = vpop.f32.mrb[37].mxu1  ;;  %v1293_v57 = vpop.f32.mrb[38].mxu0 }
 0x141   :  { %1134 = vst [vmem:[%s1736_s3 + $0x20] sm:$0xff] %v1114_v29   ;;  %v860_v11 = vadd.f32 %v859_v56, %v763_v2  ;;  %v839_v58 = vadd.f32 %v1293_v57, %v1685_v13  ;;  %v1301_v60 = vpop.f32.mrb[38].mxu1  ;;  %v830_v62 = vpop.f32.mrb[39].mxu0  ;;  %v880_v3 = vmax.f32 %v836_v50, 0.0 }
 0x142   :  { %v871_v63 = vadd.f32 %v1301_v60, %v774_v23  ;;  %v831_v0 = vadd.f32 %v830_v62, %v1679_v61  ;;  %v862_v1 = vpop.f32.mrb[39].mxu1  ;;  %v888_v59 = vmax.f32 %v868_v32, 0.0  ;;  %v878_v7 = vmax.f32 %v828_v55, 0.0 }
 0x143   :  { %v881_v5 = vmax.f32 %v839_v58, 0.0  ;;  %v863_v6 = vadd.f32 %v862_v1, %v1695_v4  ;;  %v886_v10 = vmax.f32 %v860_v11, 0.0 }
 0x144   :  { %v889_v8 = vmax.f32 %v871_v63, 0.0  ;;  %v879_v9 = vmax.f32 %v831_v0, 0.0 }
 0x145   :  { %v1109_v12 = vpack.c.bf16 %v881_v5, %v880_v3  ;;  %v887_v15 = vmax.f32 %v863_v6, 0.0 }
 0x146   :  { %v1129_v2 = vpack.c.bf16 %v889_v8, %v888_v59  ;;  %v1104_v16 = vpack.c.bf16 %v879_v9, %v878_v7 }
 0x147   :  { %1133 = vst [vmem:[%s1736_s3 + $0x18] sm:$0xff] %v1109_v12   ;;  %v1124_v13 = vpack.c.bf16 %v887_v15, %v886_v10 }
 0x148   :  { %1137 = vst [vmem:[%s1736_s3 + $0x38] sm:$0xff] %v1129_v2   ;;  %1132 = vst [vmem:[%s1736_s3 + $0x10] sm:$0xff] %v1104_v16  }
 0x149   :  { %1136 = vst [vmem:[%s1736_s3 + $0x30] sm:$0xff] %v1124_v13  }

// kernel: beta_vae_forward.14
= control target key start
LH: loop header
LB: loop body
LE: loop exit
PB: predicated region body
PF: predicated region fallthrough
CT: control target
= control target key end

     0   :  { %s7708_s1 = inlined_call_operand.vmem [shape: bf16[2304,512], index: 1, kind: input, shape index: {}]   ;;  %s7709_s0 = inlined_call_operand.vmem [shape: bf16[8,2304], index: 0, kind: input, shape index: {}]   ;;  %s7710_s2 = inlined_call_operand.vmem [shape: f32[1,512], index: 2, kind: input, shape index: {}]   ;;  %s7711_s3 = inlined_call_operand.vmem [shape: bf16[8,512], index: 3, kind: output, shape index: {}]  }
   0x1   :  { %v4994_v0 = vld [vmem:[%s7708_s1 + $0x4] ss:$16 sps:$4 sm:$0xff]   ;;  %v4996_v1 = vld [vmem:[%s7708_s1 + $0xc] ss:$16 sps:$4 sm:$0xff]   ;;  %v4998_v2 = vld [vmem:[%s7708_s1] ss:$16 sps:$4 sm:$0xff]  }
   0x2   :  { %3564 = vmatprep.subr.bf16.mxu0 %v4994_v0  ;;  %v4999_v3 = vld [vmem:[%s7708_s1 + $0x8] ss:$16 sps:$4 sm:$0xff]   ;;  %3933 = vmatprep.subr.bf16.mxu1 %v4996_v1  ;;  %v5000_v4 = vld [vmem:[%s7708_s1 + $0x24] ss:$16 sps:$4 sm:$0xff]   ;;  %v5002_v5 = vld [vmem:[%s7708_s1 + $0x2c] ss:$16 sps:$4 sm:$0xff]  }
   0x3   :  { %3565 = vmatpush1.bf16.msra.mxu0 %v4998_v2  ;;  %3934 = vmatpush1.bf16.msra.mxu1 %v4999_v3  ;;  %v5004_v6 = vld [vmem:[%s7708_s1 + $0x20] ss:$16 sps:$4 sm:$0xff]   ;;  %v5005_v7 = vld [vmem:[%s7708_s1 + $0x28] ss:$16 sps:$4 sm:$0xff]   ;;  %v5006_v8 = vld [vmem:[%s7708_s1 + $0x44] ss:$16 sps:$4 sm:$0xff]  }
   0x4   :  { %3566 = vmatprep.subr.bf16.mxu0 %v5000_v4  ;;  %3935 = vmatprep.subr.bf16.mxu1 %v5002_v5  ;;  %v5008_v9 = vld [vmem:[%s7708_s1 + $0x4c] ss:$16 sps:$4 sm:$0xff]   ;;  %v5010_v10 = vld [vmem:[%s7708_s1 + $0x40] ss:$16 sps:$4 sm:$0xff]   ;;  %v5011_v11 = vld [vmem:[%s7708_s1 + $0x48] ss:$16 sps:$4 sm:$0xff]  }
   0x5   :  { %v5012_v12 = vld [vmem:[%s7708_s1 + $0x64] ss:$16 sps:$4 sm:$0xff]   ;;  %v5014_v13 = vld [vmem:[%s7708_s1 + $0x6c] ss:$16 sps:$4 sm:$0xff]   ;;  %v5016_v14 = vld [vmem:[%s7708_s1 + $0x60] ss:$16 sps:$4 sm:$0xff]  }
   0x6   :  { %v5017_v15 = vld [vmem:[%s7708_s1 + $0x68] ss:$16 sps:$4 sm:$0xff]   ;;  %v5018_v16 = vld [vmem:[%s7708_s1 + $0x84] ss:$16 sps:$4 sm:$0xff]   ;;  %v5020_v17 = vld [vmem:[%s7708_s1 + $0x8c] ss:$16 sps:$4 sm:$0xff]  }
   0x7   :  { %3567 = vmatpush1.bf16.msra.mxu0 %v5004_v6  ;;  %3936 = vmatpush1.bf16.msra.mxu1 %v5005_v7  ;;  %v5022_v18 = vld [vmem:[%s7708_s1 + $0x80] ss:$16 sps:$4 sm:$0xff]   ;;  %v5023_v19 = vld [vmem:[%s7708_s1 + $0x88] ss:$16 sps:$4 sm:$0xff]   ;;  %v5024_v20 = vld [vmem:[%s7708_s1 + $0xa4] ss:$16 sps:$4 sm:$0xff]  }
   0x8   :  { %3568 = vmatprep.subr.bf16.mxu0 %v5006_v8  ;;  %3937 = vmatprep.subr.bf16.mxu1 %v5008_v9  ;;  %v5026_v21 = vld [vmem:[%s7708_s1 + $0xac] ss:$16 sps:$4 sm:$0xff]   ;;  %v5028_v22 = vld [vmem:[%s7708_s1 + $0xa0] ss:$16 sps:$4 sm:$0xff]   ;;  %v5029_v23 = vld [vmem:[%s7708_s1 + $0xa8] ss:$16 sps:$4 sm:$0xff]  }
   0x9   :  { %v5030_v24 = vld [vmem:[%s7708_s1 + $0xc4] ss:$16 sps:$4 sm:$0xff]   ;;  %v5032_v25 = vld [vmem:[%s7708_s1 + $0xcc] ss:$16 sps:$4 sm:$0xff]   ;;  %v5034_v26 = vld [vmem:[%s7708_s1 + $0xc0] ss:$16 sps:$4 sm:$0xff]  }
   0xa   :  { %v5035_v27 = vld [vmem:[%s7708_s1 + $0xc8] ss:$16 sps:$4 sm:$0xff]   ;;  %v5036_v28 = vld [vmem:[%s7708_s1 + $0xe4] ss:$16 sps:$4 sm:$0xff]   ;;  %v5038_v29 = vld [vmem:[%s7708_s1 + $0xec] ss:$16 sps:$4 sm:$0xff]  }
   0xb   :  { %3569 = vmatpush1.bf16.msra.mxu0 %v5010_v10  ;;  %3938 = vmatpush1.bf16.msra.mxu1 %v5011_v11  ;;  %v5040_v30 = vld [vmem:[%s7708_s1 + $0xe0] ss:$16 sps:$4 sm:$0xff]   ;;  %v5041_v31 = vld [vmem:[%s7708_s1 + $0xe8] ss:$16 sps:$4 sm:$0xff]   ;;  %v5042_v32 = vld [vmem:[%s7708_s1 + $0x104] ss:$16 sps:$4 sm:$0xff]  }
   0xc   :  { %3570 = vmatprep.subr.bf16.mxu0 %v5012_v12  ;;  %3939 = vmatprep.subr.bf16.mxu1 %v5014_v13  ;;  %v5044_v33 = vld [vmem:[%s7708_s1 + $0x10c] ss:$16 sps:$4 sm:$0xff]   ;;  %v5046_v34 = vld [vmem:[%s7708_s1 + $0x100] ss:$16 sps:$4 sm:$0xff]   ;;  %v5047_v35 = vld [vmem:[%s7708_s1 + $0x108] ss:$16 sps:$4 sm:$0xff]  }
   0xd   :  { %v5048_v36 = vld [vmem:[%s7708_s1 + $0x124] ss:$16 sps:$4 sm:$0xff]   ;;  %v5050_v37 = vld [vmem:[%s7708_s1 + $0x12c] ss:$16 sps:$4 sm:$0xff]   ;;  %v5052_v38 = vld [vmem:[%s7708_s1 + $0x120] ss:$16 sps:$4 sm:$0xff]  }
   0xe   :  { %v5053_v39 = vld [vmem:[%s7708_s1 + $0x128] ss:$16 sps:$4 sm:$0xff]   ;;  %v5054_v40 = vld [vmem:[%s7708_s1 + $0x144] ss:$16 sps:$4 sm:$0xff]   ;;  %v5056_v41 = vld [vmem:[%s7708_s1 + $0x14c] ss:$16 sps:$4 sm:$0xff]  }
   0xf   :  { %3571 = vmatpush1.bf16.msra.mxu0 %v5016_v14  ;;  %3940 = vmatpush1.bf16.msra.mxu1 %v5017_v15  ;;  %v5058_v42 = vld [vmem:[%s7708_s1 + $0x140] ss:$16 sps:$4 sm:$0xff]   ;;  %v5059_v43 = vld [vmem:[%s7708_s1 + $0x148] ss:$16 sps:$4 sm:$0xff]   ;;  %v5060_v44 = vld [vmem:[%s7708_s1 + $0x164] ss:$16 sps:$4 sm:$0xff]  }
  0x10   :  { %3572 = vmatprep.subr.bf16.mxu0 %v5018_v16  ;;  %3941 = vmatprep.subr.bf16.mxu1 %v5020_v17  ;;  %v5062_v45 = vld [vmem:[%s7708_s1 + $0x16c] ss:$16 sps:$4 sm:$0xff]   ;;  %v14_v46 = vld [vmem:[%s7709_s0] sm:$0xff]  ;;  %v5065_v49 = vld [vmem:[%s7708_s1 + $0x168] ss:$16 sps:$4 sm:$0xff]  }
  0x11   :  { %v5064_v47 = vld [vmem:[%s7708_s1 + $0x160] ss:$16 sps:$4 sm:$0xff]   ;;  %v4329_v48 = vcombine.high %v14_v46, %v14_v46  ;;  %v5066_v50 = vld [vmem:[%s7708_s1 + $0x184] ss:$16 sps:$4 sm:$0xff]   ;;  %v5068_v51 = vld [vmem:[%s7708_s1 + $0x18c] ss:$16 sps:$4 sm:$0xff]   ;;  %v4328_v4 = vcombine.low %v14_v46, %v14_v46 }
  0x12   :  { %v5070_v52 = vld [vmem:[%s7708_s1 + $0x180] ss:$16 sps:$4 sm:$0xff]   ;;  %v5071_v53 = vld [vmem:[%s7708_s1 + $0x188] ss:$16 sps:$4 sm:$0xff]   ;;  %v5072_v54 = vld [vmem:[%s7708_s1 + $0x1a4] ss:$16 sps:$4 sm:$0xff]  }
  0x13   :  { %3573 = vmatpush1.bf16.msra.mxu0 %v5022_v18  ;;  %3942 = vmatpush1.bf16.msra.mxu1 %v5023_v19  ;;  %v5074_v55 = vld [vmem:[%s7708_s1 + $0x1ac] ss:$16 sps:$4 sm:$0xff]   ;;  %v5076_v56 = vld [vmem:[%s7708_s1 + $0x1a0] ss:$16 sps:$4 sm:$0xff]   ;;  %v5077_v57 = vld [vmem:[%s7708_s1 + $0x1a8] ss:$16 sps:$4 sm:$0xff]  }
  0x14   :  { %3574 = vmatprep.subr.bf16.mxu0 %v5024_v20  ;;  %3943 = vmatprep.subr.bf16.mxu1 %v5026_v21  ;;  %v5078_v58 = vld [vmem:[%s7708_s1 + $0x1c4] ss:$16 sps:$4 sm:$0xff]   ;;  %v5080_v59 = vld [vmem:[%s7708_s1 + $0x1cc] ss:$16 sps:$4 sm:$0xff]   ;;  %v5082_v60 = vld [vmem:[%s7708_s1 + $0x1c0] ss:$16 sps:$4 sm:$0xff]  }
  0x15   :  { %3596 = vmatprep.mubr.bf16.mxu0 %v4329_v48  ;;  %3965 = vmatprep.mubr.bf16.mxu1 %v4329_v48  ;;  %v5083_v61 = vld [vmem:[%s7708_s1 + $0x1c8] ss:$16 sps:$4 sm:$0xff]   ;;  %v5084_v62 = vld [vmem:[%s7708_s1 + $0x1e4] ss:$16 sps:$4 sm:$0xff]   ;;  %v5086_v63 = vld [vmem:[%s7708_s1 + $0x1ec] ss:$16 sps:$4 sm:$0xff]  }
  0x16   :  { %v5088_v0 = vld [vmem:[%s7708_s1 + $0x1e0] ss:$16 sps:$4 sm:$0xff]   ;;  %v5089_v1 = vld [vmem:[%s7708_s1 + $0x1e8] ss:$16 sps:$4 sm:$0xff]   ;;  %v5094_v2 = vld [vmem:[%s7708_s1 + $0x204] ss:$16 sps:$4 sm:$0xff]  }
  0x17   :  { %3575 = vmatpush1.bf16.msra.mxu0 %v5028_v22  ;;  %3944 = vmatpush1.bf16.msra.mxu1 %v5029_v23  ;;  %v5097_v3 = vld [vmem:[%s7708_s1 + $0x20c] ss:$16 sps:$4 sm:$0xff]   ;;  %v5092_v5 = vld [vmem:[%s7708_s1 + $0x200] ss:$16 sps:$4 sm:$0xff]   ;;  %v5095_v6 = vld [vmem:[%s7708_s1 + $0x208] ss:$16 sps:$4 sm:$0xff]  }
  0x18   :  { %3576 = vmatprep.subr.bf16.mxu0 %v5030_v24  ;;  %3945 = vmatprep.subr.bf16.mxu1 %v5032_v25  ;;  %v5100_v7 = vld [vmem:[%s7708_s1 + $0x224] ss:$16 sps:$4 sm:$0xff]   ;;  %v5103_v8 = vld [vmem:[%s7708_s1 + $0x22c] ss:$16 sps:$4 sm:$0xff]   ;;  %v5098_v9 = vld [vmem:[%s7708_s1 + $0x220] ss:$16 sps:$4 sm:$0xff]  }
  0x19   :  { %v5101_v10 = vld [vmem:[%s7708_s1 + $0x228] ss:$16 sps:$4 sm:$0xff]   ;;  %v5106_v11 = vld [vmem:[%s7708_s1 + $0x244] ss:$16 sps:$4 sm:$0xff]   ;;  %v5109_v12 = vld [vmem:[%s7708_s1 + $0x24c] ss:$16 sps:$4 sm:$0xff]  }
  0x1a   :  { %v5104_v13 = vld [vmem:[%s7708_s1 + $0x240] ss:$16 sps:$4 sm:$0xff]   ;;  %v5107_v14 = vld [vmem:[%s7708_s1 + $0x248] ss:$16 sps:$4 sm:$0xff]   ;;  %v5112_v15 = vld [vmem:[%s7708_s1 + $0x264] ss:$16 sps:$4 sm:$0xff]  }
  0x1b   :  { %3577 = vmatpush1.bf16.msra.mxu0 %v5034_v26  ;;  %3946 = vmatpush1.bf16.msra.mxu1 %v5035_v27  ;;  %v5115_v16 = vld [vmem:[%s7708_s1 + $0x26c] ss:$16 sps:$4 sm:$0xff]   ;;  %v5110_v17 = vld [vmem:[%s7708_s1 + $0x260] ss:$16 sps:$4 sm:$0xff]   ;;  %v5113_v18 = vld [vmem:[%s7708_s1 + $0x268] ss:$16 sps:$4 sm:$0xff]  }
  0x1c   :  { %3578 = vmatprep.subr.bf16.mxu0 %v5036_v28  ;;  %3947 = vmatprep.subr.bf16.mxu1 %v5038_v29  ;;  %v5118_v19 = vld [vmem:[%s7708_s1 + $0x284] ss:$16 sps:$4 sm:$0xff]   ;;  %v5121_v20 = vld [vmem:[%s7708_s1 + $0x28c] ss:$16 sps:$4 sm:$0xff]   ;;  %v5116_v21 = vld [vmem:[%s7708_s1 + $0x280] ss:$16 sps:$4 sm:$0xff]  }
  0x1d   :  { %v5119_v22 = vld [vmem:[%s7708_s1 + $0x288] ss:$16 sps:$4 sm:$0xff]   ;;  %v5124_v23 = vld [vmem:[%s7708_s1 + $0x2a4] ss:$16 sps:$4 sm:$0xff]   ;;  %v5127_v24 = vld [vmem:[%s7708_s1 + $0x2ac] ss:$16 sps:$4 sm:$0xff]  }
  0x1e   :  { %v5122_v25 = vld [vmem:[%s7708_s1 + $0x2a0] ss:$16 sps:$4 sm:$0xff]   ;;  %v5125_v26 = vld [vmem:[%s7708_s1 + $0x2a8] ss:$16 sps:$4 sm:$0xff]   ;;  %v5130_v27 = vld [vmem:[%s7708_s1 + $0x2c4] ss:$16 sps:$4 sm:$0xff]  }
  0x1f   :  { %3579 = vmatpush1.bf16.msra.mxu0 %v5040_v30  ;;  %3948 = vmatpush1.bf16.msra.mxu1 %v5041_v31  ;;  %v5133_v28 = vld [vmem:[%s7708_s1 + $0x2cc] ss:$16 sps:$4 sm:$0xff]   ;;  %v5128_v31 = vld [vmem:[%s7708_s1 + $0x2c0] ss:$16 sps:$4 sm:$0xff]   ;;  %v5155_v48 = vld [vmem:[%s7708_s1 + $0x348] ss:$16 sps:$4 sm:$0xff]  }
  0x20   :  { %3580 = vmatprep.subr.bf16.mxu0 %v5042_v32  ;;  %3949 = vmatprep.subr.bf16.mxu1 %v5044_v33  ;;  %v6172_v29 = vld [vmem:[%s7709_s0 + $0x8] sm:$0xff]  ;;  %v5136_v33 = vld [vmem:[%s7708_s1 + $0x2e4] ss:$16 sps:$4 sm:$0xff]  }
  0x21   :  { %v4331_v30 = vcombine.high %v6172_v29, %v6172_v29  ;;  %v5131_v32 = vld [vmem:[%s7708_s1 + $0x2c8] ss:$16 sps:$4 sm:$0xff]   ;;  %v5157_v46 = vld [vmem:[%s7708_s1 + $0x34c] ss:$16 sps:$4 sm:$0xff]  }
  0x23   :  { %3581 = vmatpush1.bf16.msra.mxu0 %v5046_v34  ;;  %3950 = vmatpush1.bf16.msra.mxu1 %v5047_v35  ;;  %v5139_v34 = vld [vmem:[%s7708_s1 + $0x2ec] ss:$16 sps:$4 sm:$0xff]   ;;  %v5134_v35 = vld [vmem:[%s7708_s1 + $0x2e0] ss:$16 sps:$4 sm:$0xff]  }
  0x24   :  { %3582 = vmatprep.subr.bf16.mxu0 %v5048_v36  ;;  %3951 = vmatprep.subr.bf16.mxu1 %v5050_v37  ;;  %v5137_v36 = vld [vmem:[%s7708_s1 + $0x2e8] ss:$16 sps:$4 sm:$0xff]   ;;  %v5142_v37 = vld [vmem:[%s7708_s1 + $0x304] ss:$16 sps:$4 sm:$0xff]  }
  0x27   :  { %3583 = vmatpush1.bf16.msra.mxu0 %v5052_v38  ;;  %3952 = vmatpush1.bf16.msra.mxu1 %v5053_v39  ;;  %v5145_v38 = vld [vmem:[%s7708_s1 + $0x30c] ss:$16 sps:$4 sm:$0xff]   ;;  %v5140_v39 = vld [vmem:[%s7708_s1 + $0x300] ss:$16 sps:$4 sm:$0xff]  }
  0x28   :  { %3584 = vmatprep.subr.bf16.mxu0 %v5054_v40  ;;  %3953 = vmatprep.subr.bf16.mxu1 %v5056_v41  ;;  %v5143_v40 = vld [vmem:[%s7708_s1 + $0x308] ss:$16 sps:$4 sm:$0xff]   ;;  %v5148_v41 = vld [vmem:[%s7708_s1 + $0x324] ss:$16 sps:$4 sm:$0xff]  }
  0x2b   :  { %3585 = vmatpush1.bf16.msra.mxu0 %v5058_v42  ;;  %3954 = vmatpush1.bf16.msra.mxu1 %v5059_v43  ;;  %v5151_v42 = vld [vmem:[%s7708_s1 + $0x32c] ss:$16 sps:$4 sm:$0xff]   ;;  %v5146_v43 = vld [vmem:[%s7708_s1 + $0x320] ss:$16 sps:$4 sm:$0xff]  }
  0x2c   :  { %3586 = vmatprep.subr.bf16.mxu0 %v5060_v44  ;;  %3955 = vmatprep.subr.bf16.mxu1 %v5062_v45  ;;  %v5149_v44 = vld [vmem:[%s7708_s1 + $0x328] ss:$16 sps:$4 sm:$0xff]   ;;  %v5154_v45 = vld [vmem:[%s7708_s1 + $0x344] ss:$16 sps:$4 sm:$0xff]  }
  0x2f   :  { %3587 = vmatpush1.bf16.msra.mxu0 %v5064_v47  ;;  %3956 = vmatpush1.bf16.msra.mxu1 %v5065_v49  ;;  %v5152_v47 = vld [vmem:[%s7708_s1 + $0x340] ss:$16 sps:$4 sm:$0xff]   ;;  %v5160_v49 = vld [vmem:[%s7708_s1 + $0x364] ss:$16 sps:$4 sm:$0xff]  }
  0x30   :  { %3588 = vmatprep.subr.bf16.mxu0 %v5066_v50  ;;  %3957 = vmatprep.subr.bf16.mxu1 %v5068_v51  ;;  %v5163_v50 = vld [vmem:[%s7708_s1 + $0x36c] ss:$16 sps:$4 sm:$0xff]   ;;  %v5158_v51 = vld [vmem:[%s7708_s1 + $0x360] ss:$16 sps:$4 sm:$0xff]  }
  0x33   :  { %3589 = vmatpush1.bf16.msra.mxu0 %v5070_v52  ;;  %3958 = vmatpush1.bf16.msra.mxu1 %v5071_v53  ;;  %v5161_v52 = vld [vmem:[%s7708_s1 + $0x368] ss:$16 sps:$4 sm:$0xff]   ;;  %v5166_v53 = vld [vmem:[%s7708_s1 + $0x384] ss:$16 sps:$4 sm:$0xff]  }
  0x34   :  { %3590 = vmatprep.subr.bf16.mxu0 %v5072_v54  ;;  %3959 = vmatprep.subr.bf16.mxu1 %v5074_v55  ;;  %v5169_v54 = vld [vmem:[%s7708_s1 + $0x38c] ss:$16 sps:$4 sm:$0xff]   ;;  %v5164_v55 = vld [vmem:[%s7708_s1 + $0x380] ss:$16 sps:$4 sm:$0xff]  }
  0x37   :  { %3591 = vmatpush1.bf16.msra.mxu0 %v5076_v56  ;;  %3960 = vmatpush1.bf16.msra.mxu1 %v5077_v57  ;;  %v5167_v56 = vld [vmem:[%s7708_s1 + $0x388] ss:$16 sps:$4 sm:$0xff]   ;;  %v5172_v57 = vld [vmem:[%s7708_s1 + $0x3a4] ss:$16 sps:$4 sm:$0xff]  }
  0x38   :  { %3592 = vmatprep.subr.bf16.mxu0 %v5078_v58  ;;  %3961 = vmatprep.subr.bf16.mxu1 %v5080_v59  ;;  %v5175_v58 = vld [vmem:[%s7708_s1 + $0x3ac] ss:$16 sps:$4 sm:$0xff]   ;;  %v5170_v59 = vld [vmem:[%s7708_s1 + $0x3a0] ss:$16 sps:$4 sm:$0xff]  }
  0x3b   :  { %3593 = vmatpush1.bf16.msra.mxu0 %v5082_v60  ;;  %3962 = vmatpush1.bf16.msra.mxu1 %v5083_v61  ;;  %v5173_v60 = vld [vmem:[%s7708_s1 + $0x3a8] ss:$16 sps:$4 sm:$0xff]   ;;  %v5178_v61 = vld [vmem:[%s7708_s1 + $0x3c4] ss:$16 sps:$4 sm:$0xff]  }
  0x3c   :  { %3594 = vmatprep.subr.bf16.mxu0 %v5084_v62  ;;  %3963 = vmatprep.subr.bf16.mxu1 %v5086_v63  ;;  %v5181_v62 = vld [vmem:[%s7708_s1 + $0x3cc] ss:$16 sps:$4 sm:$0xff]   ;;  %v5176_v63 = vld [vmem:[%s7708_s1 + $0x3c0] ss:$16 sps:$4 sm:$0xff]  }
  0x3f   :  { %3595 = vmatpush1.bf16.msra.mxu0 %v5088_v0  ;;  %3964 = vmatpush1.bf16.msra.mxu1 %v5089_v1  ;;  %v5179_v0 = vld [vmem:[%s7708_s1 + $0x3c8] ss:$16 sps:$4 sm:$0xff]   ;;  %v5184_v1 = vld [vmem:[%s7708_s1 + $0x3e4] ss:$16 sps:$4 sm:$0xff]  }
  0x40   :  { %3605 = vmatprep.subr.bf16.mxu0 %v5094_v2  ;;  %3974 = vmatprep.subr.bf16.mxu1 %v5097_v3  ;;  %v5187_v2 = vld [vmem:[%s7708_s1 + $0x3ec] ss:$16 sps:$4 sm:$0xff]   ;;  %v5182_v3 = vld [vmem:[%s7708_s1 + $0x3e0] ss:$16 sps:$4 sm:$0xff]  }
  0x42   :  { %3597 = vmatmul.mubr.bf16.vlgmr.msra.gmra.mrb[0].mxu0 %v4328_v4  ;;  %3966 = vmatmul.mubr.bf16.vlgmr.msra.gmra.mrb[0].mxu1 %v4328_v4  ;;  %v5185_v4 = vld [vmem:[%s7708_s1 + $0x3e8] ss:$16 sps:$4 sm:$0xff]  }
  0x43   :  { %3606 = vmatpush1.bf16.msra.mxu0 %v5092_v5  ;;  %3975 = vmatpush1.bf16.msra.mxu1 %v5095_v6  ;;  %v5192_v5 = vld [vmem:[%s7708_s1 + $0x404] ss:$16 sps:$4 sm:$0xff]   ;;  %v5195_v6 = vld [vmem:[%s7708_s1 + $0x40c] ss:$16 sps:$4 sm:$0xff]  }
  0x44   :  { %3607 = vmatprep.subr.bf16.mxu0 %v5100_v7  ;;  %3976 = vmatprep.subr.bf16.mxu1 %v5103_v8  ;;  %v4330_v7 = vcombine.low %v6172_v29, %v6172_v29  ;;  %v5190_v8 = vld [vmem:[%s7708_s1 + $0x400] ss:$16 sps:$4 sm:$0xff]   ;;  %v5225_v29 = vld [vmem:[%s7708_s1 + $0x4ac] ss:$16 sps:$4 sm:$0xff]  }
  0x45   :  { %3637 = vmatprep.mubr.bf16.mxu0 %v4331_v30  ;;  %4006 = vmatprep.mubr.bf16.mxu1 %v4331_v30  ;;  %v5220_v30 = vld [vmem:[%s7708_s1 + $0x4a0] ss:$16 sps:$4 sm:$0xff]  }
  0x47   :  { %3608 = vmatpush1.bf16.msra.mxu0 %v5098_v9  ;;  %3977 = vmatpush1.bf16.msra.mxu1 %v5101_v10  ;;  %v5193_v9 = vld [vmem:[%s7708_s1 + $0x408] ss:$16 sps:$4 sm:$0xff]   ;;  %v5198_v10 = vld [vmem:[%s7708_s1 + $0x424] ss:$16 sps:$4 sm:$0xff]  }
  0x48   :  { %3609 = vmatprep.subr.bf16.mxu0 %v5106_v11  ;;  %3978 = vmatprep.subr.bf16.mxu1 %v5109_v12  ;;  %v6310_v11 = vld [vmem:[%s7709_s0 + $0x10] sm:$0xff]  ;;  %v5201_v12 = vld [vmem:[%s7708_s1 + $0x42c] ss:$16 sps:$4 sm:$0xff]  }
  0x4b   :  { %3610 = vmatpush1.bf16.msra.mxu0 %v5104_v13  ;;  %3979 = vmatpush1.bf16.msra.mxu1 %v5107_v14  ;;  %v4333_v13 = vcombine.high %v6310_v11, %v6310_v11  ;;  %v5196_v14 = vld [vmem:[%s7708_s1 + $0x420] ss:$16 sps:$4 sm:$0xff]  }
  0x4c   :  { %3611 = vmatprep.subr.bf16.mxu0 %v5112_v15  ;;  %3980 = vmatprep.subr.bf16.mxu1 %v5115_v16  ;;  %v5199_v15 = vld [vmem:[%s7708_s1 + $0x428] ss:$16 sps:$4 sm:$0xff]   ;;  %v5204_v16 = vld [vmem:[%s7708_s1 + $0x444] ss:$16 sps:$4 sm:$0xff]  }
  0x4f   :  { %3612 = vmatpush1.bf16.msra.mxu0 %v5110_v17  ;;  %3981 = vmatpush1.bf16.msra.mxu1 %v5113_v18  ;;  %v5207_v17 = vld [vmem:[%s7708_s1 + $0x44c] ss:$16 sps:$4 sm:$0xff]   ;;  %v5202_v18 = vld [vmem:[%s7708_s1 + $0x440] ss:$16 sps:$4 sm:$0xff]  }
  0x50   :  { %3613 = vmatprep.subr.bf16.mxu0 %v5118_v19  ;;  %3982 = vmatprep.subr.bf16.mxu1 %v5121_v20  ;;  %v5205_v19 = vld [vmem:[%s7708_s1 + $0x448] ss:$16 sps:$4 sm:$0xff]   ;;  %v5210_v20 = vld [vmem:[%s7708_s1 + $0x464] ss:$16 sps:$4 sm:$0xff]  }
  0x53   :  { %3614 = vmatpush1.bf16.msra.mxu0 %v5116_v21  ;;  %3983 = vmatpush1.bf16.msra.mxu1 %v5119_v22  ;;  %v5213_v21 = vld [vmem:[%s7708_s1 + $0x46c] ss:$16 sps:$4 sm:$0xff]   ;;  %v5208_v22 = vld [vmem:[%s7708_s1 + $0x460] ss:$16 sps:$4 sm:$0xff]  }
  0x54   :  { %3615 = vmatprep.subr.bf16.mxu0 %v5124_v23  ;;  %3984 = vmatprep.subr.bf16.mxu1 %v5127_v24  ;;  %v5211_v23 = vld [vmem:[%s7708_s1 + $0x468] ss:$16 sps:$4 sm:$0xff]   ;;  %v5216_v24 = vld [vmem:[%s7708_s1 + $0x484] ss:$16 sps:$4 sm:$0xff]  }
  0x57   :  { %3616 = vmatpush1.bf16.msra.mxu0 %v5122_v25  ;;  %3985 = vmatpush1.bf16.msra.mxu1 %v5125_v26  ;;  %v5219_v25 = vld [vmem:[%s7708_s1 + $0x48c] ss:$16 sps:$4 sm:$0xff]   ;;  %v5214_v26 = vld [vmem:[%s7708_s1 + $0x480] ss:$16 sps:$4 sm:$0xff]  }
  0x58   :  { %3617 = vmatprep.subr.bf16.mxu0 %v5130_v27  ;;  %3986 = vmatprep.subr.bf16.mxu1 %v5133_v28  ;;  %v5217_v27 = vld [vmem:[%s7708_s1 + $0x488] ss:$16 sps:$4 sm:$0xff]   ;;  %v5222_v28 = vld [vmem:[%s7708_s1 + $0x4a4] ss:$16 sps:$4 sm:$0xff]  }
  0x5b   :  { %3618 = vmatpush1.bf16.msra.mxu0 %v5128_v31  ;;  %3987 = vmatpush1.bf16.msra.mxu1 %v5131_v32  ;;  %v5223_v31 = vld [vmem:[%s7708_s1 + $0x4a8] ss:$16 sps:$4 sm:$0xff]   ;;  %v5228_v32 = vld [vmem:[%s7708_s1 + $0x4c4] ss:$16 sps:$4 sm:$0xff]  }
  0x5c   :  { %3619 = vmatprep.subr.bf16.mxu0 %v5136_v33  ;;  %3988 = vmatprep.subr.bf16.mxu1 %v5139_v34  ;;  %v5231_v33 = vld [vmem:[%s7708_s1 + $0x4cc] ss:$16 sps:$4 sm:$0xff]   ;;  %v5226_v34 = vld [vmem:[%s7708_s1 + $0x4c0] ss:$16 sps:$4 sm:$0xff]  }
  0x5f   :  { %3620 = vmatpush1.bf16.msra.mxu0 %v5134_v35  ;;  %3989 = vmatpush1.bf16.msra.mxu1 %v5137_v36  ;;  %v5229_v35 = vld [vmem:[%s7708_s1 + $0x4c8] ss:$16 sps:$4 sm:$0xff]   ;;  %v5234_v36 = vld [vmem:[%s7708_s1 + $0x4e4] ss:$16 sps:$4 sm:$0xff]  }
  0x60   :  { %3621 = vmatprep.subr.bf16.mxu0 %v5142_v37  ;;  %3990 = vmatprep.subr.bf16.mxu1 %v5145_v38  ;;  %v5237_v37 = vld [vmem:[%s7708_s1 + $0x4ec] ss:$16 sps:$4 sm:$0xff]   ;;  %v5232_v38 = vld [vmem:[%s7708_s1 + $0x4e0] ss:$16 sps:$4 sm:$0xff]  }
  0x63   :  { %3622 = vmatpush1.bf16.msra.mxu0 %v5140_v39  ;;  %3991 = vmatpush1.bf16.msra.mxu1 %v5143_v40  ;;  %v5235_v39 = vld [vmem:[%s7708_s1 + $0x4e8] ss:$16 sps:$4 sm:$0xff]   ;;  %v5240_v40 = vld [vmem:[%s7708_s1 + $0x504] ss:$16 sps:$4 sm:$0xff]  }
  0x64   :  { %3623 = vmatprep.subr.bf16.mxu0 %v5148_v41  ;;  %3992 = vmatprep.subr.bf16.mxu1 %v5151_v42  ;;  %v5243_v41 = vld [vmem:[%s7708_s1 + $0x50c] ss:$16 sps:$4 sm:$0xff]   ;;  %v5238_v42 = vld [vmem:[%s7708_s1 + $0x500] ss:$16 sps:$4 sm:$0xff]  }
  0x67   :  { %3624 = vmatpush1.bf16.msra.mxu0 %v5146_v43  ;;  %3993 = vmatpush1.bf16.msra.mxu1 %v5149_v44  ;;  %v5241_v43 = vld [vmem:[%s7708_s1 + $0x508] ss:$16 sps:$4 sm:$0xff]   ;;  %v5246_v44 = vld [vmem:[%s7708_s1 + $0x524] ss:$16 sps:$4 sm:$0xff]  }
  0x68   :  { %3625 = vmatprep.subr.bf16.mxu0 %v5154_v45  ;;  %3994 = vmatprep.subr.bf16.mxu1 %v5157_v46  ;;  %v5249_v45 = vld [vmem:[%s7708_s1 + $0x52c] ss:$16 sps:$4 sm:$0xff]   ;;  %v5244_v46 = vld [vmem:[%s7708_s1 + $0x520] ss:$16 sps:$4 sm:$0xff]  }
  0x6b   :  { %3626 = vmatpush1.bf16.msra.mxu0 %v5152_v47  ;;  %3995 = vmatpush1.bf16.msra.mxu1 %v5155_v48  ;;  %v5247_v47 = vld [vmem:[%s7708_s1 + $0x528] ss:$16 sps:$4 sm:$0xff]   ;;  %v5252_v48 = vld [vmem:[%s7708_s1 + $0x544] ss:$16 sps:$4 sm:$0xff]  }
  0x6c   :  { %3627 = vmatprep.subr.bf16.mxu0 %v5160_v49  ;;  %3996 = vmatprep.subr.bf16.mxu1 %v5163_v50  ;;  %v5255_v49 = vld [vmem:[%s7708_s1 + $0x54c] ss:$16 sps:$4 sm:$0xff]   ;;  %v5250_v50 = vld [vmem:[%s7708_s1 + $0x540] ss:$16 sps:$4 sm:$0xff]  }
  0x6f   :  { %3628 = vmatpush1.bf16.msra.mxu0 %v5158_v51  ;;  %3997 = vmatpush1.bf16.msra.mxu1 %v5161_v52  ;;  %v5253_v51 = vld [vmem:[%s7708_s1 + $0x548] ss:$16 sps:$4 sm:$0xff]   ;;  %v5258_v52 = vld [vmem:[%s7708_s1 + $0x564] ss:$16 sps:$4 sm:$0xff]  }
  0x70   :  { %3629 = vmatprep.subr.bf16.mxu0 %v5166_v53  ;;  %3998 = vmatprep.subr.bf16.mxu1 %v5169_v54  ;;  %v5261_v53 = vld [vmem:[%s7708_s1 + $0x56c] ss:$16 sps:$4 sm:$0xff]   ;;  %v5256_v54 = vld [vmem:[%s7708_s1 + $0x560] ss:$16 sps:$4 sm:$0xff]  }
  0x73   :  { %3630 = vmatpush1.bf16.msra.mxu0 %v5164_v55  ;;  %3999 = vmatpush1.bf16.msra.mxu1 %v5167_v56  ;;  %v5259_v55 = vld [vmem:[%s7708_s1 + $0x568] ss:$16 sps:$4 sm:$0xff]   ;;  %v5264_v56 = vld [vmem:[%s7708_s1 + $0x584] ss:$16 sps:$4 sm:$0xff]  }
  0x74   :  { %3631 = vmatprep.subr.bf16.mxu0 %v5172_v57  ;;  %4000 = vmatprep.subr.bf16.mxu1 %v5175_v58  ;;  %v5267_v57 = vld [vmem:[%s7708_s1 + $0x58c] ss:$16 sps:$4 sm:$0xff]   ;;  %v5262_v58 = vld [vmem:[%s7708_s1 + $0x580] ss:$16 sps:$4 sm:$0xff]  }
  0x77   :  { %3632 = vmatpush1.bf16.msra.mxu0 %v5170_v59  ;;  %4001 = vmatpush1.bf16.msra.mxu1 %v5173_v60  ;;  %v5265_v59 = vld [vmem:[%s7708_s1 + $0x588] ss:$16 sps:$4 sm:$0xff]   ;;  %v5270_v60 = vld [vmem:[%s7708_s1 + $0x5a4] ss:$16 sps:$4 sm:$0xff]  }
  0x78   :  { %3633 = vmatprep.subr.bf16.mxu0 %v5178_v61  ;;  %4002 = vmatprep.subr.bf16.mxu1 %v5181_v62  ;;  %v5273_v61 = vld [vmem:[%s7708_s1 + $0x5ac] ss:$16 sps:$4 sm:$0xff]   ;;  %v5268_v62 = vld [vmem:[%s7708_s1 + $0x5a0] ss:$16 sps:$4 sm:$0xff]  }
  0x7b   :  { %3634 = vmatpush1.bf16.msra.mxu0 %v5176_v63  ;;  %4003 = vmatpush1.bf16.msra.mxu1 %v5179_v0  ;;  %v5271_v63 = vld [vmem:[%s7708_s1 + $0x5a8] ss:$16 sps:$4 sm:$0xff]   ;;  %v5276_v0 = vld [vmem:[%s7708_s1 + $0x5c4] ss:$16 sps:$4 sm:$0xff]  }
  0x7c   :  { %3635 = vmatprep.subr.bf16.mxu0 %v5184_v1  ;;  %4004 = vmatprep.subr.bf16.mxu1 %v5187_v2  ;;  %v5279_v1 = vld [vmem:[%s7708_s1 + $0x5cc] ss:$16 sps:$4 sm:$0xff]   ;;  %v5274_v2 = vld [vmem:[%s7708_s1 + $0x5c0] ss:$16 sps:$4 sm:$0xff]  }
  0x7f   :  { %3636 = vmatpush1.bf16.msra.mxu0 %v5182_v3  ;;  %4005 = vmatpush1.bf16.msra.mxu1 %v5185_v4  ;;  %v5277_v3 = vld [vmem:[%s7708_s1 + $0x5c8] ss:$16 sps:$4 sm:$0xff]   ;;  %v5282_v4 = vld [vmem:[%s7708_s1 + $0x5e4] ss:$16 sps:$4 sm:$0xff]  }
  0x80   :  { %3646 = vmatprep.subr.bf16.mxu0 %v5192_v5  ;;  %4015 = vmatprep.subr.bf16.mxu1 %v5195_v6  ;;  %v5285_v5 = vld [vmem:[%s7708_s1 + $0x5ec] ss:$16 sps:$4 sm:$0xff]   ;;  %v5280_v6 = vld [vmem:[%s7708_s1 + $0x5e0] ss:$16 sps:$4 sm:$0xff]  }
  0x82   :  { %3638 = vmatmul.mubr.bf16.vlgmr.msra.gmra.mrb[0].mxu0 %v4330_v7  ;;  %4007 = vmatmul.mubr.bf16.vlgmr.msra.gmra.mrb[0].mxu1 %v4330_v7  ;;  %v5283_v7 = vld [vmem:[%s7708_s1 + $0x5e8] ss:$16 sps:$4 sm:$0xff]  }
  0x83   :  { %3647 = vmatpush1.bf16.msra.mxu0 %v5190_v8  ;;  %4016 = vmatpush1.bf16.msra.mxu1 %v5193_v9  ;;  %v5290_v8 = vld [vmem:[%s7708_s1 + $0x604] ss:$16 sps:$4 sm:$0xff]   ;;  %v5293_v9 = vld [vmem:[%s7708_s1 + $0x60c] ss:$16 sps:$4 sm:$0xff]  }
  0x84   :  { %3648 = vmatprep.subr.bf16.mxu0 %v5198_v10  ;;  %4017 = vmatprep.subr.bf16.mxu1 %v5201_v12  ;;  %v5288_v10 = vld [vmem:[%s7708_s1 + $0x600] ss:$16 sps:$4 sm:$0xff]   ;;  %v4332_v12 = vcombine.low %v6310_v11, %v6310_v11  ;;  %v5299_v11 = vld [vmem:[%s7708_s1 + $0x62c] ss:$16 sps:$4 sm:$0xff]  }
  0x85   :  { %3678 = vmatprep.mubr.bf16.mxu0 %v4333_v13  ;;  %4047 = vmatprep.mubr.bf16.mxu1 %v4333_v13  ;;  %v5291_v13 = vld [vmem:[%s7708_s1 + $0x608] ss:$16 sps:$4 sm:$0xff]  }
  0x87   :  { %3649 = vmatpush1.bf16.msra.mxu0 %v5196_v14  ;;  %4018 = vmatpush1.bf16.msra.mxu1 %v5199_v15  ;;  %v6508_v14 = vld [vmem:[%s7709_s0 + $0x18] sm:$0xff]  ;;  %v5296_v15 = vld [vmem:[%s7708_s1 + $0x624] ss:$16 sps:$4 sm:$0xff]  }
  0x88   :  { %3650 = vmatprep.subr.bf16.mxu0 %v5204_v16  ;;  %4019 = vmatprep.subr.bf16.mxu1 %v5207_v17  ;;  %v4335_v16 = vcombine.high %v6508_v14, %v6508_v14  ;;  %v5294_v17 = vld [vmem:[%s7708_s1 + $0x620] ss:$16 sps:$4 sm:$0xff]  }
  0x8b   :  { %3651 = vmatpush1.bf16.msra.mxu0 %v5202_v18  ;;  %4020 = vmatpush1.bf16.msra.mxu1 %v5205_v19  ;;  %v5297_v18 = vld [vmem:[%s7708_s1 + $0x628] ss:$16 sps:$4 sm:$0xff]   ;;  %v5302_v19 = vld [vmem:[%s7708_s1 + $0x644] ss:$16 sps:$4 sm:$0xff]  }
  0x8c   :  { %3652 = vmatprep.subr.bf16.mxu0 %v5210_v20  ;;  %4021 = vmatprep.subr.bf16.mxu1 %v5213_v21  ;;  %v5305_v20 = vld [vmem:[%s7708_s1 + $0x64c] ss:$16 sps:$4 sm:$0xff]   ;;  %v5300_v21 = vld [vmem:[%s7708_s1 + $0x640] ss:$16 sps:$4 sm:$0xff]  }
  0x8f   :  { %3653 = vmatpush1.bf16.msra.mxu0 %v5208_v22  ;;  %4022 = vmatpush1.bf16.msra.mxu1 %v5211_v23  ;;  %v5303_v22 = vld [vmem:[%s7708_s1 + $0x648] ss:$16 sps:$4 sm:$0xff]   ;;  %v5308_v23 = vld [vmem:[%s7708_s1 + $0x664] ss:$16 sps:$4 sm:$0xff]  }
  0x90   :  { %3654 = vmatprep.subr.bf16.mxu0 %v5216_v24  ;;  %4023 = vmatprep.subr.bf16.mxu1 %v5219_v25  ;;  %v5311_v24 = vld [vmem:[%s7708_s1 + $0x66c] ss:$16 sps:$4 sm:$0xff]   ;;  %v5306_v25 = vld [vmem:[%s7708_s1 + $0x660] ss:$16 sps:$4 sm:$0xff]  }
  0x93   :  { %3655 = vmatpush1.bf16.msra.mxu0 %v5214_v26  ;;  %4024 = vmatpush1.bf16.msra.mxu1 %v5217_v27  ;;  %v5309_v26 = vld [vmem:[%s7708_s1 + $0x668] ss:$16 sps:$4 sm:$0xff]   ;;  %v5314_v27 = vld [vmem:[%s7708_s1 + $0x684] ss:$16 sps:$4 sm:$0xff]  }
  0x94   :  { %3656 = vmatprep.subr.bf16.mxu0 %v5222_v28  ;;  %4025 = vmatprep.subr.bf16.mxu1 %v5225_v29  ;;  %v5317_v28 = vld [vmem:[%s7708_s1 + $0x68c] ss:$16 sps:$4 sm:$0xff]   ;;  %v5312_v29 = vld [vmem:[%s7708_s1 + $0x680] ss:$16 sps:$4 sm:$0xff]  }
  0x97   :  { %3657 = vmatpush1.bf16.msra.mxu0 %v5220_v30  ;;  %4026 = vmatpush1.bf16.msra.mxu1 %v5223_v31  ;;  %v5315_v30 = vld [vmem:[%s7708_s1 + $0x688] ss:$16 sps:$4 sm:$0xff]   ;;  %v5320_v31 = vld [vmem:[%s7708_s1 + $0x6a4] ss:$16 sps:$4 sm:$0xff]  }
  0x98   :  { %3658 = vmatprep.subr.bf16.mxu0 %v5228_v32  ;;  %4027 = vmatprep.subr.bf16.mxu1 %v5231_v33  ;;  %v5323_v32 = vld [vmem:[%s7708_s1 + $0x6ac] ss:$16 sps:$4 sm:$0xff]   ;;  %v5318_v33 = vld [vmem:[%s7708_s1 + $0x6a0] ss:$16 sps:$4 sm:$0xff]  }
  0x9b   :  { %3659 = vmatpush1.bf16.msra.mxu0 %v5226_v34  ;;  %4028 = vmatpush1.bf16.msra.mxu1 %v5229_v35  ;;  %v5321_v34 = vld [vmem:[%s7708_s1 + $0x6a8] ss:$16 sps:$4 sm:$0xff]   ;;  %v5326_v35 = vld [vmem:[%s7708_s1 + $0x6c4] ss:$16 sps:$4 sm:$0xff]  }
  0x9c   :  { %3660 = vmatprep.subr.bf16.mxu0 %v5234_v36  ;;  %4029 = vmatprep.subr.bf16.mxu1 %v5237_v37  ;;  %v5329_v36 = vld [vmem:[%s7708_s1 + $0x6cc] ss:$16 sps:$4 sm:$0xff]   ;;  %v5324_v37 = vld [vmem:[%s7708_s1 + $0x6c0] ss:$16 sps:$4 sm:$0xff]  }
  0x9f   :  { %3661 = vmatpush1.bf16.msra.mxu0 %v5232_v38  ;;  %4030 = vmatpush1.bf16.msra.mxu1 %v5235_v39  ;;  %v5327_v38 = vld [vmem:[%s7708_s1 + $0x6c8] ss:$16 sps:$4 sm:$0xff]   ;;  %v5332_v39 = vld [vmem:[%s7708_s1 + $0x6e4] ss:$16 sps:$4 sm:$0xff]  }
  0xa0   :  { %3662 = vmatprep.subr.bf16.mxu0 %v5240_v40  ;;  %4031 = vmatprep.subr.bf16.mxu1 %v5243_v41  ;;  %v5335_v40 = vld [vmem:[%s7708_s1 + $0x6ec] ss:$16 sps:$4 sm:$0xff]   ;;  %v5330_v41 = vld [vmem:[%s7708_s1 + $0x6e0] ss:$16 sps:$4 sm:$0xff]  }
  0xa3   :  { %3663 = vmatpush1.bf16.msra.mxu0 %v5238_v42  ;;  %4032 = vmatpush1.bf16.msra.mxu1 %v5241_v43  ;;  %v5333_v42 = vld [vmem:[%s7708_s1 + $0x6e8] ss:$16 sps:$4 sm:$0xff]   ;;  %v5338_v43 = vld [vmem:[%s7708_s1 + $0x704] ss:$16 sps:$4 sm:$0xff]  }
  0xa4   :  { %3664 = vmatprep.subr.bf16.mxu0 %v5246_v44  ;;  %4033 = vmatprep.subr.bf16.mxu1 %v5249_v45  ;;  %v5341_v44 = vld [vmem:[%s7708_s1 + $0x70c] ss:$16 sps:$4 sm:$0xff]   ;;  %v5336_v45 = vld [vmem:[%s7708_s1 + $0x700] ss:$16 sps:$4 sm:$0xff]  }
  0xa7   :  { %3665 = vmatpush1.bf16.msra.mxu0 %v5244_v46  ;;  %4034 = vmatpush1.bf16.msra.mxu1 %v5247_v47  ;;  %v5339_v46 = vld [vmem:[%s7708_s1 + $0x708] ss:$16 sps:$4 sm:$0xff]   ;;  %v5344_v47 = vld [vmem:[%s7708_s1 + $0x724] ss:$16 sps:$4 sm:$0xff]  }
  0xa8   :  { %3666 = vmatprep.subr.bf16.mxu0 %v5252_v48  ;;  %4035 = vmatprep.subr.bf16.mxu1 %v5255_v49  ;;  %v5347_v48 = vld [vmem:[%s7708_s1 + $0x72c] ss:$16 sps:$4 sm:$0xff]   ;;  %v5342_v49 = vld [vmem:[%s7708_s1 + $0x720] ss:$16 sps:$4 sm:$0xff]  }
  0xab   :  { %3667 = vmatpush1.bf16.msra.mxu0 %v5250_v50  ;;  %4036 = vmatpush1.bf16.msra.mxu1 %v5253_v51  ;;  %v5345_v50 = vld [vmem:[%s7708_s1 + $0x728] ss:$16 sps:$4 sm:$0xff]   ;;  %v5350_v51 = vld [vmem:[%s7708_s1 + $0x744] ss:$16 sps:$4 sm:$0xff]  }
  0xac   :  { %3668 = vmatprep.subr.bf16.mxu0 %v5258_v52  ;;  %4037 = vmatprep.subr.bf16.mxu1 %v5261_v53  ;;  %v5353_v52 = vld [vmem:[%s7708_s1 + $0x74c] ss:$16 sps:$4 sm:$0xff]   ;;  %v5348_v53 = vld [vmem:[%s7708_s1 + $0x740] ss:$16 sps:$4 sm:$0xff]  }
  0xaf   :  { %3669 = vmatpush1.bf16.msra.mxu0 %v5256_v54  ;;  %4038 = vmatpush1.bf16.msra.mxu1 %v5259_v55  ;;  %v5351_v54 = vld [vmem:[%s7708_s1 + $0x748] ss:$16 sps:$4 sm:$0xff]   ;;  %v5356_v55 = vld [vmem:[%s7708_s1 + $0x764] ss:$16 sps:$4 sm:$0xff]  }
  0xb0   :  { %3670 = vmatprep.subr.bf16.mxu0 %v5264_v56  ;;  %4039 = vmatprep.subr.bf16.mxu1 %v5267_v57  ;;  %v5359_v56 = vld [vmem:[%s7708_s1 + $0x76c] ss:$16 sps:$4 sm:$0xff]   ;;  %v5354_v57 = vld [vmem:[%s7708_s1 + $0x760] ss:$16 sps:$4 sm:$0xff]  }
  0xb3   :  { %3671 = vmatpush1.bf16.msra.mxu0 %v5262_v58  ;;  %4040 = vmatpush1.bf16.msra.mxu1 %v5265_v59  ;;  %v5357_v58 = vld [vmem:[%s7708_s1 + $0x768] ss:$16 sps:$4 sm:$0xff]   ;;  %v5362_v59 = vld [vmem:[%s7708_s1 + $0x784] ss:$16 sps:$4 sm:$0xff]  }
  0xb4   :  { %3672 = vmatprep.subr.bf16.mxu0 %v5270_v60  ;;  %4041 = vmatprep.subr.bf16.mxu1 %v5273_v61  ;;  %v5365_v60 = vld [vmem:[%s7708_s1 + $0x78c] ss:$16 sps:$4 sm:$0xff]   ;;  %v5360_v61 = vld [vmem:[%s7708_s1 + $0x780] ss:$16 sps:$4 sm:$0xff]  }
  0xb7   :  { %3673 = vmatpush1.bf16.msra.mxu0 %v5268_v62  ;;  %4042 = vmatpush1.bf16.msra.mxu1 %v5271_v63  ;;  %v5363_v62 = vld [vmem:[%s7708_s1 + $0x788] ss:$16 sps:$4 sm:$0xff]   ;;  %v5368_v63 = vld [vmem:[%s7708_s1 + $0x7a4] ss:$16 sps:$4 sm:$0xff]  }
  0xb8   :  { %3674 = vmatprep.subr.bf16.mxu0 %v5276_v0  ;;  %4043 = vmatprep.subr.bf16.mxu1 %v5279_v1  ;;  %v5371_v0 = vld [vmem:[%s7708_s1 + $0x7ac] ss:$16 sps:$4 sm:$0xff]   ;;  %v5366_v1 = vld [vmem:[%s7708_s1 + $0x7a0] ss:$16 sps:$4 sm:$0xff]  }
  0xbb   :  { %3675 = vmatpush1.bf16.msra.mxu0 %v5274_v2  ;;  %4044 = vmatpush1.bf16.msra.mxu1 %v5277_v3  ;;  %v5369_v2 = vld [vmem:[%s7708_s1 + $0x7a8] ss:$16 sps:$4 sm:$0xff]   ;;  %v5374_v3 = vld [vmem:[%s7708_s1 + $0x7c4] ss:$16 sps:$4 sm:$0xff]  }
  0xbc   :  { %3676 = vmatprep.subr.bf16.mxu0 %v5282_v4  ;;  %4045 = vmatprep.subr.bf16.mxu1 %v5285_v5  ;;  %v5377_v4 = vld [vmem:[%s7708_s1 + $0x7cc] ss:$16 sps:$4 sm:$0xff]   ;;  %v5372_v5 = vld [vmem:[%s7708_s1 + $0x7c0] ss:$16 sps:$4 sm:$0xff]  }
  0xbf   :  { %3677 = vmatpush1.bf16.msra.mxu0 %v5280_v6  ;;  %4046 = vmatpush1.bf16.msra.mxu1 %v5283_v7  ;;  %v5375_v6 = vld [vmem:[%s7708_s1 + $0x7c8] ss:$16 sps:$4 sm:$0xff]   ;;  %v5380_v7 = vld [vmem:[%s7708_s1 + $0x7e4] ss:$16 sps:$4 sm:$0xff]  }
  0xc0   :  { %3687 = vmatprep.subr.bf16.mxu0 %v5290_v8  ;;  %4056 = vmatprep.subr.bf16.mxu1 %v5293_v9  ;;  %v5383_v8 = vld [vmem:[%s7708_s1 + $0x7ec] ss:$16 sps:$4 sm:$0xff]   ;;  %v5378_v9 = vld [vmem:[%s7708_s1 + $0x7e0] ss:$16 sps:$4 sm:$0xff]  }
  0xc2   :  { %3679 = vmatmul.mubr.bf16.vlgmr.msra.gmra.mrb[0].mxu0 %v4332_v12  ;;  %4048 = vmatmul.mubr.bf16.vlgmr.msra.gmra.mrb[0].mxu1 %v4332_v12  ;;  %v5388_v12 = vld [vmem:[%s7708_s1 + $0x804] ss:$16 sps:$4 sm:$0xff]  }
  0xc3   :  { %3688 = vmatpush1.bf16.msra.mxu0 %v5288_v10  ;;  %4057 = vmatpush1.bf16.msra.mxu1 %v5291_v13  ;;  %v5381_v10 = vld [vmem:[%s7708_s1 + $0x7e8] ss:$16 sps:$4 sm:$0xff]   ;;  %v5391_v13 = vld [vmem:[%s7708_s1 + $0x80c] ss:$16 sps:$4 sm:$0xff]  }
  0xc4   :  { %3689 = vmatprep.subr.bf16.mxu0 %v5296_v15  ;;  %4058 = vmatprep.subr.bf16.mxu1 %v5299_v11  ;;  %v5386_v15 = vld [vmem:[%s7708_s1 + $0x800] ss:$16 sps:$4 sm:$0xff]   ;;  %v4334_v11 = vcombine.low %v6508_v14, %v6508_v14  ;;  %v5397_v14 = vld [vmem:[%s7708_s1 + $0x82c] ss:$16 sps:$4 sm:$0xff]  }
  0xc5   :  { %3719 = vmatprep.mubr.bf16.mxu0 %v4335_v16  ;;  %4088 = vmatprep.mubr.bf16.mxu1 %v4335_v16  ;;  %v6706_v16 = vld [vmem:[%s7709_s0 + $0x20] sm:$0xff] }
  0xc7   :  { %3690 = vmatpush1.bf16.msra.mxu0 %v5294_v17  ;;  %4059 = vmatpush1.bf16.msra.mxu1 %v5297_v18  ;;  %v5389_v17 = vld [vmem:[%s7708_s1 + $0x808] ss:$16 sps:$4 sm:$0xff]   ;;  %v5394_v18 = vld [vmem:[%s7708_s1 + $0x824] ss:$16 sps:$4 sm:$0xff]  }
  0xc8   :  { %3691 = vmatprep.subr.bf16.mxu0 %v5302_v19  ;;  %4060 = vmatprep.subr.bf16.mxu1 %v5305_v20  ;;  %v4337_v19 = vcombine.high %v6706_v16, %v6706_v16  ;;  %v5392_v20 = vld [vmem:[%s7708_s1 + $0x820] ss:$16 sps:$4 sm:$0xff]  }
  0xcb   :  { %3692 = vmatpush1.bf16.msra.mxu0 %v5300_v21  ;;  %4061 = vmatpush1.bf16.msra.mxu1 %v5303_v22  ;;  %v5395_v21 = vld [vmem:[%s7708_s1 + $0x828] ss:$16 sps:$4 sm:$0xff]   ;;  %v5400_v22 = vld [vmem:[%s7708_s1 + $0x844] ss:$16 sps:$4 sm:$0xff]  }
  0xcc   :  { %3693 = vmatprep.subr.bf16.mxu0 %v5308_v23  ;;  %4062 = vmatprep.subr.bf16.mxu1 %v5311_v24  ;;  %v5403_v23 = vld [vmem:[%s7708_s1 + $0x84c] ss:$16 sps:$4 sm:$0xff]   ;;  %v5398_v24 = vld [vmem:[%s7708_s1 + $0x840] ss:$16 sps:$4 sm:$0xff]  }
  0xcf   :  { %3694 = vmatpush1.bf16.msra.mxu0 %v5306_v25  ;;  %4063 = vmatpush1.bf16.msra.mxu1 %v5309_v26  ;;  %v5401_v25 = vld [vmem:[%s7708_s1 + $0x848] ss:$16 sps:$4 sm:$0xff]   ;;  %v5406_v26 = vld [vmem:[%s7708_s1 + $0x864] ss:$16 sps:$4 sm:$0xff]  }
  0xd0   :  { %3695 = vmatprep.subr.bf16.mxu0 %v5314_v27  ;;  %4064 = vmatprep.subr.bf16.mxu1 %v5317_v28  ;;  %v5409_v27 = vld [vmem:[%s7708_s1 + $0x86c] ss:$16 sps:$4 sm:$0xff]   ;;  %v5404_v28 = vld [vmem:[%s7708_s1 + $0x860] ss:$16 sps:$4 sm:$0xff]  }
  0xd3   :  { %3696 = vmatpush1.bf16.msra.mxu0 %v5312_v29  ;;  %4065 = vmatpush1.bf16.msra.mxu1 %v5315_v30  ;;  %v5407_v29 = vld [vmem:[%s7708_s1 + $0x868] ss:$16 sps:$4 sm:$0xff]   ;;  %v5412_v30 = vld [vmem:[%s7708_s1 + $0x884] ss:$16 sps:$4 sm:$0xff]  }
  0xd4   :  { %3697 = vmatprep.subr.bf16.mxu0 %v5320_v31  ;;  %4066 = vmatprep.subr.bf16.mxu1 %v5323_v32  ;;  %v5415_v31 = vld [vmem:[%s7708_s1 + $0x88c] ss:$16 sps:$4 sm:$0xff]   ;;  %v5410_v32 = vld [vmem:[%s7708_s1 + $0x880] ss:$16 sps:$4 sm:$0xff]  }
  0xd7   :  { %3698 = vmatpush1.bf16.msra.mxu0 %v5318_v33  ;;  %4067 = vmatpush1.bf16.msra.mxu1 %v5321_v34  ;;  %v5413_v33 = vld [vmem:[%s7708_s1 + $0x888] ss:$16 sps:$4 sm:$0xff]   ;;  %v5418_v34 = vld [vmem:[%s7708_s1 + $0x8a4] ss:$16 sps:$4 sm:$0xff]  }
  0xd8   :  { %3699 = vmatprep.subr.bf16.mxu0 %v5326_v35  ;;  %4068 = vmatprep.subr.bf16.mxu1 %v5329_v36  ;;  %v5421_v35 = vld [vmem:[%s7708_s1 + $0x8ac] ss:$16 sps:$4 sm:$0xff]   ;;  %v5416_v36 = vld [vmem:[%s7708_s1 + $0x8a0] ss:$16 sps:$4 sm:$0xff]  }
  0xdb   :  { %3700 = vmatpush1.bf16.msra.mxu0 %v5324_v37  ;;  %4069 = vmatpush1.bf16.msra.mxu1 %v5327_v38  ;;  %v5419_v37 = vld [vmem:[%s7708_s1 + $0x8a8] ss:$16 sps:$4 sm:$0xff]   ;;  %v5424_v38 = vld [vmem:[%s7708_s1 + $0x8c4] ss:$16 sps:$4 sm:$0xff]  }
  0xdc   :  { %3701 = vmatprep.subr.bf16.mxu0 %v5332_v39  ;;  %4070 = vmatprep.subr.bf16.mxu1 %v5335_v40  ;;  %v5427_v39 = vld [vmem:[%s7708_s1 + $0x8cc] ss:$16 sps:$4 sm:$0xff]   ;;  %v5422_v40 = vld [vmem:[%s7708_s1 + $0x8c0] ss:$16 sps:$4 sm:$0xff]  }
  0xdf   :  { %3702 = vmatpush1.bf16.msra.mxu0 %v5330_v41  ;;  %4071 = vmatpush1.bf16.msra.mxu1 %v5333_v42  ;;  %v5425_v41 = vld [vmem:[%s7708_s1 + $0x8c8] ss:$16 sps:$4 sm:$0xff]   ;;  %v5430_v42 = vld [vmem:[%s7708_s1 + $0x8e4] ss:$16 sps:$4 sm:$0xff]  }
  0xe0   :  { %3703 = vmatprep.subr.bf16.mxu0 %v5338_v43  ;;  %4072 = vmatprep.subr.bf16.mxu1 %v5341_v44  ;;  %v5433_v43 = vld [vmem:[%s7708_s1 + $0x8ec] ss:$16 sps:$4 sm:$0xff]   ;;  %v5428_v44 = vld [vmem:[%s7708_s1 + $0x8e0] ss:$16 sps:$4 sm:$0xff]  }
  0xe3   :  { %3704 = vmatpush1.bf16.msra.mxu0 %v5336_v45  ;;  %4073 = vmatpush1.bf16.msra.mxu1 %v5339_v46  ;;  %v5431_v45 = vld [vmem:[%s7708_s1 + $0x8e8] ss:$16 sps:$4 sm:$0xff]   ;;  %v5436_v46 = vld [vmem:[%s7708_s1 + $0x904] ss:$16 sps:$4 sm:$0xff]  }
  0xe4   :  { %3705 = vmatprep.subr.bf16.mxu0 %v5344_v47  ;;  %4074 = vmatprep.subr.bf16.mxu1 %v5347_v48  ;;  %v5439_v47 = vld [vmem:[%s7708_s1 + $0x90c] ss:$16 sps:$4 sm:$0xff]   ;;  %v5434_v48 = vld [vmem:[%s7708_s1 + $0x900] ss:$16 sps:$4 sm:$0xff]  }
  0xe7   :  { %3706 = vmatpush1.bf16.msra.mxu0 %v5342_v49  ;;  %4075 = vmatpush1.bf16.msra.mxu1 %v5345_v50  ;;  %v5437_v49 = vld [vmem:[%s7708_s1 + $0x908] ss:$16 sps:$4 sm:$0xff]   ;;  %v5442_v50 = vld [vmem:[%s7708_s1 + $0x924] ss:$16 sps:$4 sm:$0xff]  }
  0xe8   :  { %3707 = vmatprep.subr.bf16.mxu0 %v5350_v51  ;;  %4076 = vmatprep.subr.bf16.mxu1 %v5353_v52  ;;  %v5445_v51 = vld [vmem:[%s7708_s1 + $0x92c] ss:$16 sps:$4 sm:$0xff]   ;;  %v5440_v52 = vld [vmem:[%s7708_s1 + $0x920] ss:$16 sps:$4 sm:$0xff]  }
  0xeb   :  { %3708 = vmatpush1.bf16.msra.mxu0 %v5348_v53  ;;  %4077 = vmatpush1.bf16.msra.mxu1 %v5351_v54  ;;  %v5443_v53 = vld [vmem:[%s7708_s1 + $0x928] ss:$16 sps:$4 sm:$0xff]   ;;  %v5448_v54 = vld [vmem:[%s7708_s1 + $0x944] ss:$16 sps:$4 sm:$0xff]  }
  0xec   :  { %3709 = vmatprep.subr.bf16.mxu0 %v5356_v55  ;;  %4078 = vmatprep.subr.bf16.mxu1 %v5359_v56  ;;  %v5451_v55 = vld [vmem:[%s7708_s1 + $0x94c] ss:$16 sps:$4 sm:$0xff]   ;;  %v5446_v56 = vld [vmem:[%s7708_s1 + $0x940] ss:$16 sps:$4 sm:$0xff]  }
  0xef   :  { %3710 = vmatpush1.bf16.msra.mxu0 %v5354_v57  ;;  %4079 = vmatpush1.bf16.msra.mxu1 %v5357_v58  ;;  %v5449_v57 = vld [vmem:[%s7708_s1 + $0x948] ss:$16 sps:$4 sm:$0xff]   ;;  %v5454_v58 = vld [vmem:[%s7708_s1 + $0x964] ss:$16 sps:$4 sm:$0xff]  }
  0xf0   :  { %3711 = vmatprep.subr.bf16.mxu0 %v5362_v59  ;;  %4080 = vmatprep.subr.bf16.mxu1 %v5365_v60  ;;  %v5457_v59 = vld [vmem:[%s7708_s1 + $0x96c] ss:$16 sps:$4 sm:$0xff]   ;;  %v5452_v60 = vld [vmem:[%s7708_s1 + $0x960] ss:$16 sps:$4 sm:$0xff]  }
  0xf3   :  { %3712 = vmatpush1.bf16.msra.mxu0 %v5360_v61  ;;  %4081 = vmatpush1.bf16.msra.mxu1 %v5363_v62  ;;  %v5455_v61 = vld [vmem:[%s7708_s1 + $0x968] ss:$16 sps:$4 sm:$0xff]   ;;  %v5460_v62 = vld [vmem:[%s7708_s1 + $0x984] ss:$16 sps:$4 sm:$0xff]  }
  0xf4   :  { %3713 = vmatprep.subr.bf16.mxu0 %v5368_v63  ;;  %4082 = vmatprep.subr.bf16.mxu1 %v5371_v0  ;;  %v5463_v63 = vld [vmem:[%s7708_s1 + $0x98c] ss:$16 sps:$4 sm:$0xff]   ;;  %v5458_v0 = vld [vmem:[%s7708_s1 + $0x980] ss:$16 sps:$4 sm:$0xff]  }
  0xf7   :  { %3714 = vmatpush1.bf16.msra.mxu0 %v5366_v1  ;;  %4083 = vmatpush1.bf16.msra.mxu1 %v5369_v2  ;;  %v5461_v1 = vld [vmem:[%s7708_s1 + $0x988] ss:$16 sps:$4 sm:$0xff]   ;;  %v5466_v2 = vld [vmem:[%s7708_s1 + $0x9a4] ss:$16 sps:$4 sm:$0xff]  }
  0xf8   :  { %3715 = vmatprep.subr.bf16.mxu0 %v5374_v3  ;;  %4084 = vmatprep.subr.bf16.mxu1 %v5377_v4  ;;  %v5469_v3 = vld [vmem:[%s7708_s1 + $0x9ac] ss:$16 sps:$4 sm:$0xff]   ;;  %v5464_v4 = vld [vmem:[%s7708_s1 + $0x9a0] ss:$16 sps:$4 sm:$0xff]  }
  0xfb   :  { %3716 = vmatpush1.bf16.msra.mxu0 %v5372_v5  ;;  %4085 = vmatpush1.bf16.msra.mxu1 %v5375_v6  ;;  %v5467_v5 = vld [vmem:[%s7708_s1 + $0x9a8] ss:$16 sps:$4 sm:$0xff]   ;;  %v5472_v6 = vld [vmem:[%s7708_s1 + $0x9c4] ss:$16 sps:$4 sm:$0xff]  }
  0xfc   :  { %3717 = vmatprep.subr.bf16.mxu0 %v5380_v7  ;;  %4086 = vmatprep.subr.bf16.mxu1 %v5383_v8  ;;  %v5475_v7 = vld [vmem:[%s7708_s1 + $0x9cc] ss:$16 sps:$4 sm:$0xff]   ;;  %v5470_v8 = vld [vmem:[%s7708_s1 + $0x9c0] ss:$16 sps:$4 sm:$0xff]  }
  0xff   :  { %3718 = vmatpush1.bf16.msra.mxu0 %v5378_v9  ;;  %4087 = vmatpush1.bf16.msra.mxu1 %v5381_v10  ;;  %v5473_v9 = vld [vmem:[%s7708_s1 + $0x9c8] ss:$16 sps:$4 sm:$0xff]   ;;  %v5478_v10 = vld [vmem:[%s7708_s1 + $0x9e4] ss:$16 sps:$4 sm:$0xff]  }
 0x100   :  { %3728 = vmatprep.subr.bf16.mxu0 %v5388_v12  ;;  %4097 = vmatprep.subr.bf16.mxu1 %v5391_v13  ;;  %v5481_v12 = vld [vmem:[%s7708_s1 + $0x9ec] ss:$16 sps:$4 sm:$0xff]   ;;  %v5476_v13 = vld [vmem:[%s7708_s1 + $0x9e0] ss:$16 sps:$4 sm:$0xff]  }
 0x102   :  { %3720 = vmatmul.mubr.bf16.vlgmr.msra.gmra.mrb[0].mxu0 %v4334_v11  ;;  %4089 = vmatmul.mubr.bf16.vlgmr.msra.gmra.mrb[0].mxu1 %v4334_v11  ;;  %v5486_v11 = vld [vmem:[%s7708_s1 + $0xa04] ss:$16 sps:$4 sm:$0xff]  }
 0x103   :  { %3729 = vmatpush1.bf16.msra.mxu0 %v5386_v15  ;;  %4098 = vmatpush1.bf16.msra.mxu1 %v5389_v17  ;;  %v5479_v15 = vld [vmem:[%s7708_s1 + $0x9e8] ss:$16 sps:$4 sm:$0xff]   ;;  %v5489_v17 = vld [vmem:[%s7708_s1 + $0xa0c] ss:$16 sps:$4 sm:$0xff]  }
 0x104   :  { %3730 = vmatprep.subr.bf16.mxu0 %v5394_v18  ;;  %4099 = vmatprep.subr.bf16.mxu1 %v5397_v14  ;;  %v6902_v18 = vld [vmem:[%s7709_s0 + $0x28] sm:$0xff]  ;;  %v4336_v14 = vcombine.low %v6706_v16, %v6706_v16 }
 0x105   :  { %3760 = vmatprep.mubr.bf16.mxu0 %v4337_v19  ;;  %4129 = vmatprep.mubr.bf16.mxu1 %v4337_v19  ;;  %v5484_v19 = vld [vmem:[%s7708_s1 + $0xa00] ss:$16 sps:$4 sm:$0xff]   ;;  %v5495_v16 = vld [vmem:[%s7708_s1 + $0xa2c] ss:$16 sps:$4 sm:$0xff]  }
 0x107   :  { %3731 = vmatpush1.bf16.msra.mxu0 %v5392_v20  ;;  %4100 = vmatpush1.bf16.msra.mxu1 %v5395_v21  ;;  %v5487_v20 = vld [vmem:[%s7708_s1 + $0xa08] ss:$16 sps:$4 sm:$0xff]   ;;  %v5492_v21 = vld [vmem:[%s7708_s1 + $0xa24] ss:$16 sps:$4 sm:$0xff]  }
 0x108   :  { %3732 = vmatprep.subr.bf16.mxu0 %v5400_v22  ;;  %4101 = vmatprep.subr.bf16.mxu1 %v5403_v23  ;;  %v4339_v22 = vcombine.high %v6902_v18, %v6902_v18  ;;  %v5490_v23 = vld [vmem:[%s7708_s1 + $0xa20] ss:$16 sps:$4 sm:$0xff]  }
 0x10b   :  { %3733 = vmatpush1.bf16.msra.mxu0 %v5398_v24  ;;  %4102 = vmatpush1.bf16.msra.mxu1 %v5401_v25  ;;  %v5493_v24 = vld [vmem:[%s7708_s1 + $0xa28] ss:$16 sps:$4 sm:$0xff]   ;;  %v5498_v25 = vld [vmem:[%s7708_s1 + $0xa44] ss:$16 sps:$4 sm:$0xff]  }
 0x10c   :  { %3734 = vmatprep.subr.bf16.mxu0 %v5406_v26  ;;  %4103 = vmatprep.subr.bf16.mxu1 %v5409_v27  ;;  %v5501_v26 = vld [vmem:[%s7708_s1 + $0xa4c] ss:$16 sps:$4 sm:$0xff]   ;;  %v5496_v27 = vld [vmem:[%s7708_s1 + $0xa40] ss:$16 sps:$4 sm:$0xff]  }
 0x10f   :  { %3735 = vmatpush1.bf16.msra.mxu0 %v5404_v28  ;;  %4104 = vmatpush1.bf16.msra.mxu1 %v5407_v29  ;;  %v5499_v28 = vld [vmem:[%s7708_s1 + $0xa48] ss:$16 sps:$4 sm:$0xff]   ;;  %v5504_v29 = vld [vmem:[%s7708_s1 + $0xa64] ss:$16 sps:$4 sm:$0xff]  }
 0x110   :  { %3736 = vmatprep.subr.bf16.mxu0 %v5412_v30  ;;  %4105 = vmatprep.subr.bf16.mxu1 %v5415_v31  ;;  %v5507_v30 = vld [vmem:[%s7708_s1 + $0xa6c] ss:$16 sps:$4 sm:$0xff]   ;;  %v5502_v31 = vld [vmem:[%s7708_s1 + $0xa60] ss:$16 sps:$4 sm:$0xff]  }
 0x113   :  { %3737 = vmatpush1.bf16.msra.mxu0 %v5410_v32  ;;  %4106 = vmatpush1.bf16.msra.mxu1 %v5413_v33  ;;  %v5505_v32 = vld [vmem:[%s7708_s1 + $0xa68] ss:$16 sps:$4 sm:$0xff]   ;;  %v5510_v33 = vld [vmem:[%s7708_s1 + $0xa84] ss:$16 sps:$4 sm:$0xff]  }
 0x114   :  { %3738 = vmatprep.subr.bf16.mxu0 %v5418_v34  ;;  %4107 = vmatprep.subr.bf16.mxu1 %v5421_v35  ;;  %v5513_v34 = vld [vmem:[%s7708_s1 + $0xa8c] ss:$16 sps:$4 sm:$0xff]   ;;  %v5508_v35 = vld [vmem:[%s7708_s1 + $0xa80] ss:$16 sps:$4 sm:$0xff]  }
 0x117   :  { %3739 = vmatpush1.bf16.msra.mxu0 %v5416_v36  ;;  %4108 = vmatpush1.bf16.msra.mxu1 %v5419_v37  ;;  %v5511_v36 = vld [vmem:[%s7708_s1 + $0xa88] ss:$16 sps:$4 sm:$0xff]   ;;  %v5516_v37 = vld [vmem:[%s7708_s1 + $0xaa4] ss:$16 sps:$4 sm:$0xff]  }
 0x118   :  { %3740 = vmatprep.subr.bf16.mxu0 %v5424_v38  ;;  %4109 = vmatprep.subr.bf16.mxu1 %v5427_v39  ;;  %v5519_v38 = vld [vmem:[%s7708_s1 + $0xaac] ss:$16 sps:$4 sm:$0xff]   ;;  %v5514_v39 = vld [vmem:[%s7708_s1 + $0xaa0] ss:$16 sps:$4 sm:$0xff]  }
 0x11b   :  { %3741 = vmatpush1.bf16.msra.mxu0 %v5422_v40  ;;  %4110 = vmatpush1.bf16.msra.mxu1 %v5425_v41  ;;  %v5517_v40 = vld [vmem:[%s7708_s1 + $0xaa8] ss:$16 sps:$4 sm:$0xff]   ;;  %v5522_v41 = vld [vmem:[%s7708_s1 + $0xac4] ss:$16 sps:$4 sm:$0xff]  }
 0x11c   :  { %3742 = vmatprep.subr.bf16.mxu0 %v5430_v42  ;;  %4111 = vmatprep.subr.bf16.mxu1 %v5433_v43  ;;  %v5525_v42 = vld [vmem:[%s7708_s1 + $0xacc] ss:$16 sps:$4 sm:$0xff]   ;;  %v5520_v43 = vld [vmem:[%s7708_s1 + $0xac0] ss:$16 sps:$4 sm:$0xff]  }
 0x11f   :  { %3743 = vmatpush1.bf16.msra.mxu0 %v5428_v44  ;;  %4112 = vmatpush1.bf16.msra.mxu1 %v5431_v45  ;;  %v5523_v44 = vld [vmem:[%s7708_s1 + $0xac8] ss:$16 sps:$4 sm:$0xff]   ;;  %v5528_v45 = vld [vmem:[%s7708_s1 + $0xae4] ss:$16 sps:$4 sm:$0xff]  }
 0x120   :  { %3744 = vmatprep.subr.bf16.mxu0 %v5436_v46  ;;  %4113 = vmatprep.subr.bf16.mxu1 %v5439_v47  ;;  %v5531_v46 = vld [vmem:[%s7708_s1 + $0xaec] ss:$16 sps:$4 sm:$0xff]   ;;  %v5526_v47 = vld [vmem:[%s7708_s1 + $0xae0] ss:$16 sps:$4 sm:$0xff]  }
 0x123   :  { %3745 = vmatpush1.bf16.msra.mxu0 %v5434_v48  ;;  %4114 = vmatpush1.bf16.msra.mxu1 %v5437_v49  ;;  %v5529_v48 = vld [vmem:[%s7708_s1 + $0xae8] ss:$16 sps:$4 sm:$0xff]   ;;  %v5534_v49 = vld [vmem:[%s7708_s1 + $0xb04] ss:$16 sps:$4 sm:$0xff]  }
 0x124   :  { %3746 = vmatprep.subr.bf16.mxu0 %v5442_v50  ;;  %4115 = vmatprep.subr.bf16.mxu1 %v5445_v51  ;;  %v5537_v50 = vld [vmem:[%s7708_s1 + $0xb0c] ss:$16 sps:$4 sm:$0xff]   ;;  %v5532_v51 = vld [vmem:[%s7708_s1 + $0xb00] ss:$16 sps:$4 sm:$0xff]  }
 0x127   :  { %3747 = vmatpush1.bf16.msra.mxu0 %v5440_v52  ;;  %4116 = vmatpush1.bf16.msra.mxu1 %v5443_v53  ;;  %v5535_v52 = vld [vmem:[%s7708_s1 + $0xb08] ss:$16 sps:$4 sm:$0xff]   ;;  %v5540_v53 = vld [vmem:[%s7708_s1 + $0xb24] ss:$16 sps:$4 sm:$0xff]  }
 0x128   :  { %3748 = vmatprep.subr.bf16.mxu0 %v5448_v54  ;;  %4117 = vmatprep.subr.bf16.mxu1 %v5451_v55  ;;  %v5543_v54 = vld [vmem:[%s7708_s1 + $0xb2c] ss:$16 sps:$4 sm:$0xff]   ;;  %v5538_v55 = vld [vmem:[%s7708_s1 + $0xb20] ss:$16 sps:$4 sm:$0xff]  }
 0x12b   :  { %3749 = vmatpush1.bf16.msra.mxu0 %v5446_v56  ;;  %4118 = vmatpush1.bf16.msra.mxu1 %v5449_v57  ;;  %v5541_v56 = vld [vmem:[%s7708_s1 + $0xb28] ss:$16 sps:$4 sm:$0xff]   ;;  %v5546_v57 = vld [vmem:[%s7708_s1 + $0xb44] ss:$16 sps:$4 sm:$0xff]  }
 0x12c   :  { %3750 = vmatprep.subr.bf16.mxu0 %v5454_v58  ;;  %4119 = vmatprep.subr.bf16.mxu1 %v5457_v59  ;;  %v5549_v58 = vld [vmem:[%s7708_s1 + $0xb4c] ss:$16 sps:$4 sm:$0xff]   ;;  %v5544_v59 = vld [vmem:[%s7708_s1 + $0xb40] ss:$16 sps:$4 sm:$0xff]  }
 0x12f   :  { %3751 = vmatpush1.bf16.msra.mxu0 %v5452_v60  ;;  %4120 = vmatpush1.bf16.msra.mxu1 %v5455_v61  ;;  %v5547_v60 = vld [vmem:[%s7708_s1 + $0xb48] ss:$16 sps:$4 sm:$0xff]   ;;  %v5552_v61 = vld [vmem:[%s7708_s1 + $0xb64] ss:$16 sps:$4 sm:$0xff]  }
 0x130   :  { %3752 = vmatprep.subr.bf16.mxu0 %v5460_v62  ;;  %4121 = vmatprep.subr.bf16.mxu1 %v5463_v63  ;;  %v5555_v62 = vld [vmem:[%s7708_s1 + $0xb6c] ss:$16 sps:$4 sm:$0xff]   ;;  %v5550_v63 = vld [vmem:[%s7708_s1 + $0xb60] ss:$16 sps:$4 sm:$0xff]  }
 0x133   :  { %3753 = vmatpush1.bf16.msra.mxu0 %v5458_v0  ;;  %4122 = vmatpush1.bf16.msra.mxu1 %v5461_v1  ;;  %v5553_v0 = vld [vmem:[%s7708_s1 + $0xb68] ss:$16 sps:$4 sm:$0xff]   ;;  %v5558_v1 = vld [vmem:[%s7708_s1 + $0xb84] ss:$16 sps:$4 sm:$0xff]  }
 0x134   :  { %3754 = vmatprep.subr.bf16.mxu0 %v5466_v2  ;;  %4123 = vmatprep.subr.bf16.mxu1 %v5469_v3  ;;  %v5561_v2 = vld [vmem:[%s7708_s1 + $0xb8c] ss:$16 sps:$4 sm:$0xff]   ;;  %v5556_v3 = vld [vmem:[%s7708_s1 + $0xb80] ss:$16 sps:$4 sm:$0xff]  }
 0x137   :  { %3755 = vmatpush1.bf16.msra.mxu0 %v5464_v4  ;;  %4124 = vmatpush1.bf16.msra.mxu1 %v5467_v5  ;;  %v5559_v4 = vld [vmem:[%s7708_s1 + $0xb88] ss:$16 sps:$4 sm:$0xff]   ;;  %v5564_v5 = vld [vmem:[%s7708_s1 + $0xba4] ss:$16 sps:$4 sm:$0xff]  }
 0x138   :  { %3756 = vmatprep.subr.bf16.mxu0 %v5472_v6  ;;  %4125 = vmatprep.subr.bf16.mxu1 %v5475_v7  ;;  %v5567_v6 = vld [vmem:[%s7708_s1 + $0xbac] ss:$16 sps:$4 sm:$0xff]   ;;  %v5562_v7 = vld [vmem:[%s7708_s1 + $0xba0] ss:$16 sps:$4 sm:$0xff]  }
 0x13b   :  { %3757 = vmatpush1.bf16.msra.mxu0 %v5470_v8  ;;  %4126 = vmatpush1.bf16.msra.mxu1 %v5473_v9  ;;  %v5565_v8 = vld [vmem:[%s7708_s1 + $0xba8] ss:$16 sps:$4 sm:$0xff]   ;;  %v5570_v9 = vld [vmem:[%s7708_s1 + $0xbc4] ss:$16 sps:$4 sm:$0xff]  }
 0x13c   :  { %3758 = vmatprep.subr.bf16.mxu0 %v5478_v10  ;;  %4127 = vmatprep.subr.bf16.mxu1 %v5481_v12  ;;  %v5573_v10 = vld [vmem:[%s7708_s1 + $0xbcc] ss:$16 sps:$4 sm:$0xff]   ;;  %v5568_v12 = vld [vmem:[%s7708_s1 + $0xbc0] ss:$16 sps:$4 sm:$0xff]  }
 0x13f   :  { %3759 = vmatpush1.bf16.msra.mxu0 %v5476_v13  ;;  %4128 = vmatpush1.bf16.msra.mxu1 %v5479_v15  ;;  %v5571_v13 = vld [vmem:[%s7708_s1 + $0xbc8] ss:$16 sps:$4 sm:$0xff]   ;;  %v5576_v15 = vld [vmem:[%s7708_s1 + $0xbe4] ss:$16 sps:$4 sm:$0xff]  }
 0x140   :  { %3769 = vmatprep.subr.bf16.mxu0 %v5486_v11  ;;  %4138 = vmatprep.subr.bf16.mxu1 %v5489_v17  ;;  %v5579_v11 = vld [vmem:[%s7708_s1 + $0xbec] ss:$16 sps:$4 sm:$0xff]   ;;  %v5574_v17 = vld [vmem:[%s7708_s1 + $0xbe0] ss:$16 sps:$4 sm:$0xff]  }
 0x142   :  { %3761 = vmatmul.mubr.bf16.vlgmr.msra.gmra.mrb[0].mxu0 %v4336_v14  ;;  %4130 = vmatmul.mubr.bf16.vlgmr.msra.gmra.mrb[0].mxu1 %v4336_v14  ;;  %v5577_v14 = vld [vmem:[%s7708_s1 + $0xbe8] ss:$16 sps:$4 sm:$0xff]  }
 0x143   :  { %3770 = vmatpush1.bf16.msra.mxu0 %v5484_v19  ;;  %4139 = vmatpush1.bf16.msra.mxu1 %v5487_v20  ;;  %v5584_v19 = vld [vmem:[%s7708_s1 + $0xc04] ss:$16 sps:$4 sm:$0xff]   ;;  %v5587_v20 = vld [vmem:[%s7708_s1 + $0xc0c] ss:$16 sps:$4 sm:$0xff]  }
 0x144   :  { %3771 = vmatprep.subr.bf16.mxu0 %v5492_v21  ;;  %4140 = vmatprep.subr.bf16.mxu1 %v5495_v16  ;;  %v4338_v21 = vcombine.low %v6902_v18, %v6902_v18  ;;  %v7105_v16 = vld [vmem:[%s7709_s0 + $0x30] sm:$0xff] }
 0x145   :  { %3801 = vmatprep.mubr.bf16.mxu0 %v4339_v22  ;;  %4170 = vmatprep.mubr.bf16.mxu1 %v4339_v22  ;;  %v5582_v22 = vld [vmem:[%s7708_s1 + $0xc00] ss:$16 sps:$4 sm:$0xff]   ;;  %v5590_v18 = vld [vmem:[%s7708_s1 + $0xc24] ss:$16 sps:$4 sm:$0xff]  }
 0x147   :  { %3772 = vmatpush1.bf16.msra.mxu0 %v5490_v23  ;;  %4141 = vmatpush1.bf16.msra.mxu1 %v5493_v24  ;;  %v5585_v23 = vld [vmem:[%s7708_s1 + $0xc08] ss:$16 sps:$4 sm:$0xff]   ;;  %v5593_v24 = vld [vmem:[%s7708_s1 + $0xc2c] ss:$16 sps:$4 sm:$0xff]  }
 0x148   :  { %3773 = vmatprep.subr.bf16.mxu0 %v5498_v25  ;;  %4142 = vmatprep.subr.bf16.mxu1 %v5501_v26  ;;  %v4341_v25 = vcombine.high %v7105_v16, %v7105_v16  ;;  %v5588_v26 = vld [vmem:[%s7708_s1 + $0xc20] ss:$16 sps:$4 sm:$0xff]  }
 0x14b   :  { %3774 = vmatpush1.bf16.msra.mxu0 %v5496_v27  ;;  %4143 = vmatpush1.bf16.msra.mxu1 %v5499_v28  ;;  %v5591_v27 = vld [vmem:[%s7708_s1 + $0xc28] ss:$16 sps:$4 sm:$0xff]   ;;  %v5596_v28 = vld [vmem:[%s7708_s1 + $0xc44] ss:$16 sps:$4 sm:$0xff]  }
 0x14c   :  { %3775 = vmatprep.subr.bf16.mxu0 %v5504_v29  ;;  %4144 = vmatprep.subr.bf16.mxu1 %v5507_v30  ;;  %v5599_v29 = vld [vmem:[%s7708_s1 + $0xc4c] ss:$16 sps:$4 sm:$0xff]   ;;  %v5594_v30 = vld [vmem:[%s7708_s1 + $0xc40] ss:$16 sps:$4 sm:$0xff]  }
 0x14f   :  { %3776 = vmatpush1.bf16.msra.mxu0 %v5502_v31  ;;  %4145 = vmatpush1.bf16.msra.mxu1 %v5505_v32  ;;  %v5597_v31 = vld [vmem:[%s7708_s1 + $0xc48] ss:$16 sps:$4 sm:$0xff]   ;;  %v5602_v32 = vld [vmem:[%s7708_s1 + $0xc64] ss:$16 sps:$4 sm:$0xff]  }
 0x150   :  { %3777 = vmatprep.subr.bf16.mxu0 %v5510_v33  ;;  %4146 = vmatprep.subr.bf16.mxu1 %v5513_v34  ;;  %v5605_v33 = vld [vmem:[%s7708_s1 + $0xc6c] ss:$16 sps:$4 sm:$0xff]   ;;  %v5600_v34 = vld [vmem:[%s7708_s1 + $0xc60] ss:$16 sps:$4 sm:$0xff]  }
 0x153   :  { %3778 = vmatpush1.bf16.msra.mxu0 %v5508_v35  ;;  %4147 = vmatpush1.bf16.msra.mxu1 %v5511_v36  ;;  %v5603_v35 = vld [vmem:[%s7708_s1 + $0xc68] ss:$16 sps:$4 sm:$0xff]   ;;  %v5608_v36 = vld [vmem:[%s7708_s1 + $0xc84] ss:$16 sps:$4 sm:$0xff]  }
 0x154   :  { %3779 = vmatprep.subr.bf16.mxu0 %v5516_v37  ;;  %4148 = vmatprep.subr.bf16.mxu1 %v5519_v38  ;;  %v5611_v37 = vld [vmem:[%s7708_s1 + $0xc8c] ss:$16 sps:$4 sm:$0xff]   ;;  %v5606_v38 = vld [vmem:[%s7708_s1 + $0xc80] ss:$16 sps:$4 sm:$0xff]  }
 0x157   :  { %3780 = vmatpush1.bf16.msra.mxu0 %v5514_v39  ;;  %4149 = vmatpush1.bf16.msra.mxu1 %v5517_v40  ;;  %v5609_v39 = vld [vmem:[%s7708_s1 + $0xc88] ss:$16 sps:$4 sm:$0xff]   ;;  %v5614_v40 = vld [vmem:[%s7708_s1 + $0xca4] ss:$16 sps:$4 sm:$0xff]  }
 0x158   :  { %3781 = vmatprep.subr.bf16.mxu0 %v5522_v41  ;;  %4150 = vmatprep.subr.bf16.mxu1 %v5525_v42  ;;  %v5617_v41 = vld [vmem:[%s7708_s1 + $0xcac] ss:$16 sps:$4 sm:$0xff]   ;;  %v5612_v42 = vld [vmem:[%s7708_s1 + $0xca0] ss:$16 sps:$4 sm:$0xff]  }
 0x15b   :  { %3782 = vmatpush1.bf16.msra.mxu0 %v5520_v43  ;;  %4151 = vmatpush1.bf16.msra.mxu1 %v5523_v44  ;;  %v5615_v43 = vld [vmem:[%s7708_s1 + $0xca8] ss:$16 sps:$4 sm:$0xff]   ;;  %v5620_v44 = vld [vmem:[%s7708_s1 + $0xcc4] ss:$16 sps:$4 sm:$0xff]  }
 0x15c   :  { %3783 = vmatprep.subr.bf16.mxu0 %v5528_v45  ;;  %4152 = vmatprep.subr.bf16.mxu1 %v5531_v46  ;;  %v5623_v45 = vld [vmem:[%s7708_s1 + $0xccc] ss:$16 sps:$4 sm:$0xff]   ;;  %v5618_v46 = vld [vmem:[%s7708_s1 + $0xcc0] ss:$16 sps:$4 sm:$0xff]  }
 0x15f   :  { %3784 = vmatpush1.bf16.msra.mxu0 %v5526_v47  ;;  %4153 = vmatpush1.bf16.msra.mxu1 %v5529_v48  ;;  %v5621_v47 = vld [vmem:[%s7708_s1 + $0xcc8] ss:$16 sps:$4 sm:$0xff]   ;;  %v5626_v48 = vld [vmem:[%s7708_s1 + $0xce4] ss:$16 sps:$4 sm:$0xff]  }
 0x160   :  { %3785 = vmatprep.subr.bf16.mxu0 %v5534_v49  ;;  %4154 = vmatprep.subr.bf16.mxu1 %v5537_v50  ;;  %v5629_v49 = vld [vmem:[%s7708_s1 + $0xcec] ss:$16 sps:$4 sm:$0xff]   ;;  %v5624_v50 = vld [vmem:[%s7708_s1 + $0xce0] ss:$16 sps:$4 sm:$0xff]  }
 0x163   :  { %3786 = vmatpush1.bf16.msra.mxu0 %v5532_v51  ;;  %4155 = vmatpush1.bf16.msra.mxu1 %v5535_v52  ;;  %v5627_v51 = vld [vmem:[%s7708_s1 + $0xce8] ss:$16 sps:$4 sm:$0xff]   ;;  %v5632_v52 = vld [vmem:[%s7708_s1 + $0xd04] ss:$16 sps:$4 sm:$0xff]  }
 0x164   :  { %3787 = vmatprep.subr.bf16.mxu0 %v5540_v53  ;;  %4156 = vmatprep.subr.bf16.mxu1 %v5543_v54  ;;  %v5635_v53 = vld [vmem:[%s7708_s1 + $0xd0c] ss:$16 sps:$4 sm:$0xff]   ;;  %v5630_v54 = vld [vmem:[%s7708_s1 + $0xd00] ss:$16 sps:$4 sm:$0xff]  }
 0x167   :  { %3788 = vmatpush1.bf16.msra.mxu0 %v5538_v55  ;;  %4157 = vmatpush1.bf16.msra.mxu1 %v5541_v56  ;;  %v5633_v55 = vld [vmem:[%s7708_s1 + $0xd08] ss:$16 sps:$4 sm:$0xff]   ;;  %v5638_v56 = vld [vmem:[%s7708_s1 + $0xd24] ss:$16 sps:$4 sm:$0xff]  }
 0x168   :  { %3789 = vmatprep.subr.bf16.mxu0 %v5546_v57  ;;  %4158 = vmatprep.subr.bf16.mxu1 %v5549_v58  ;;  %v5641_v57 = vld [vmem:[%s7708_s1 + $0xd2c] ss:$16 sps:$4 sm:$0xff]   ;;  %v5636_v58 = vld [vmem:[%s7708_s1 + $0xd20] ss:$16 sps:$4 sm:$0xff]  }
 0x16b   :  { %3790 = vmatpush1.bf16.msra.mxu0 %v5544_v59  ;;  %4159 = vmatpush1.bf16.msra.mxu1 %v5547_v60  ;;  %v5639_v59 = vld [vmem:[%s7708_s1 + $0xd28] ss:$16 sps:$4 sm:$0xff]   ;;  %v5644_v60 = vld [vmem:[%s7708_s1 + $0xd44] ss:$16 sps:$4 sm:$0xff]  }
 0x16c   :  { %3791 = vmatprep.subr.bf16.mxu0 %v5552_v61  ;;  %4160 = vmatprep.subr.bf16.mxu1 %v5555_v62  ;;  %v5647_v61 = vld [vmem:[%s7708_s1 + $0xd4c] ss:$16 sps:$4 sm:$0xff]   ;;  %v5642_v62 = vld [vmem:[%s7708_s1 + $0xd40] ss:$16 sps:$4 sm:$0xff]  }
 0x16f   :  { %3792 = vmatpush1.bf16.msra.mxu0 %v5550_v63  ;;  %4161 = vmatpush1.bf16.msra.mxu1 %v5553_v0  ;;  %v5645_v63 = vld [vmem:[%s7708_s1 + $0xd48] ss:$16 sps:$4 sm:$0xff]   ;;  %v5650_v0 = vld [vmem:[%s7708_s1 + $0xd64] ss:$16 sps:$4 sm:$0xff]  }
 0x170   :  { %3793 = vmatprep.subr.bf16.mxu0 %v5558_v1  ;;  %4162 = vmatprep.subr.bf16.mxu1 %v5561_v2  ;;  %v5653_v1 = vld [vmem:[%s7708_s1 + $0xd6c] ss:$16 sps:$4 sm:$0xff]   ;;  %v5648_v2 = vld [vmem:[%s7708_s1 + $0xd60] ss:$16 sps:$4 sm:$0xff]  }
 0x173   :  { %3794 = vmatpush1.bf16.msra.mxu0 %v5556_v3  ;;  %4163 = vmatpush1.bf16.msra.mxu1 %v5559_v4  ;;  %v5651_v3 = vld [vmem:[%s7708_s1 + $0xd68] ss:$16 sps:$4 sm:$0xff]   ;;  %v5656_v4 = vld [vmem:[%s7708_s1 + $0xd84] ss:$16 sps:$4 sm:$0xff]  }
 0x174   :  { %3795 = vmatprep.subr.bf16.mxu0 %v5564_v5  ;;  %4164 = vmatprep.subr.bf16.mxu1 %v5567_v6  ;;  %v5659_v5 = vld [vmem:[%s7708_s1 + $0xd8c] ss:$16 sps:$4 sm:$0xff]   ;;  %v5654_v6 = vld [vmem:[%s7708_s1 + $0xd80] ss:$16 sps:$4 sm:$0xff]  }
 0x177   :  { %3796 = vmatpush1.bf16.msra.mxu0 %v5562_v7  ;;  %4165 = vmatpush1.bf16.msra.mxu1 %v5565_v8  ;;  %v5657_v7 = vld [vmem:[%s7708_s1 + $0xd88] ss:$16 sps:$4 sm:$0xff]   ;;  %v5662_v8 = vld [vmem:[%s7708_s1 + $0xda4] ss:$16 sps:$4 sm:$0xff]  }
 0x178   :  { %3797 = vmatprep.subr.bf16.mxu0 %v5570_v9  ;;  %4166 = vmatprep.subr.bf16.mxu1 %v5573_v10  ;;  %v5665_v9 = vld [vmem:[%s7708_s1 + $0xdac] ss:$16 sps:$4 sm:$0xff]   ;;  %v5660_v10 = vld [vmem:[%s7708_s1 + $0xda0] ss:$16 sps:$4 sm:$0xff]  }
 0x17b   :  { %3798 = vmatpush1.bf16.msra.mxu0 %v5568_v12  ;;  %4167 = vmatpush1.bf16.msra.mxu1 %v5571_v13  ;;  %v5663_v12 = vld [vmem:[%s7708_s1 + $0xda8] ss:$16 sps:$4 sm:$0xff]   ;;  %v5668_v13 = vld [vmem:[%s7708_s1 + $0xdc4] ss:$16 sps:$4 sm:$0xff]  }
 0x17c   :  { %3799 = vmatprep.subr.bf16.mxu0 %v5576_v15  ;;  %4168 = vmatprep.subr.bf16.mxu1 %v5579_v11  ;;  %v5671_v15 = vld [vmem:[%s7708_s1 + $0xdcc] ss:$16 sps:$4 sm:$0xff]   ;;  %v5666_v11 = vld [vmem:[%s7708_s1 + $0xdc0] ss:$16 sps:$4 sm:$0xff]  }
 0x17f   :  { %3800 = vmatpush1.bf16.msra.mxu0 %v5574_v17  ;;  %4169 = vmatpush1.bf16.msra.mxu1 %v5577_v14  ;;  %v5669_v17 = vld [vmem:[%s7708_s1 + $0xdc8] ss:$16 sps:$4 sm:$0xff]   ;;  %v5674_v14 = vld [vmem:[%s7708_s1 + $0xde4] ss:$16 sps:$4 sm:$0xff]  }
 0x180   :  { %3810 = vmatprep.subr.bf16.mxu0 %v5584_v19  ;;  %4179 = vmatprep.subr.bf16.mxu1 %v5587_v20  ;;  %v5677_v19 = vld [vmem:[%s7708_s1 + $0xdec] ss:$16 sps:$4 sm:$0xff]   ;;  %v5672_v20 = vld [vmem:[%s7708_s1 + $0xde0] ss:$16 sps:$4 sm:$0xff]  }
 0x182   :  { %3802 = vmatmul.mubr.bf16.vlgmr.msra.gmra.mrb[0].mxu0 %v4338_v21  ;;  %4171 = vmatmul.mubr.bf16.vlgmr.msra.gmra.mrb[0].mxu1 %v4338_v21  ;;  %v5675_v21 = vld [vmem:[%s7708_s1 + $0xde8] ss:$16 sps:$4 sm:$0xff]  }
 0x183   :  { %3811 = vmatpush1.bf16.msra.mxu0 %v5582_v22  ;;  %4180 = vmatpush1.bf16.msra.mxu1 %v5585_v23  ;;  %v5682_v22 = vld [vmem:[%s7708_s1 + $0xe04] ss:$16 sps:$4 sm:$0xff]   ;;  %v5685_v23 = vld [vmem:[%s7708_s1 + $0xe0c] ss:$16 sps:$4 sm:$0xff]  }
 0x184   :  { %3812 = vmatprep.subr.bf16.mxu0 %v5590_v18  ;;  %4181 = vmatprep.subr.bf16.mxu1 %v5593_v24  ;;  %v4340_v18 = vcombine.low %v7105_v16, %v7105_v16  ;;  %v7306_v24 = vld [vmem:[%s7709_s0 + $0x38] sm:$0xff]  ;;  %v5688_v16 = vld [vmem:[%s7708_s1 + $0xe24] ss:$16 sps:$4 sm:$0xff]  }
 0x185   :  { %3842 = vmatprep.mubr.bf16.mxu0 %v4341_v25  ;;  %4211 = vmatprep.mubr.bf16.mxu1 %v4341_v25  ;;  %v5680_v25 = vld [vmem:[%s7708_s1 + $0xe00] ss:$16 sps:$4 sm:$0xff]  }
 0x187   :  { %3813 = vmatpush1.bf16.msra.mxu0 %v5588_v26  ;;  %4182 = vmatpush1.bf16.msra.mxu1 %v5591_v27  ;;  %v5683_v26 = vld [vmem:[%s7708_s1 + $0xe08] ss:$16 sps:$4 sm:$0xff]   ;;  %v5691_v27 = vld [vmem:[%s7708_s1 + $0xe2c] ss:$16 sps:$4 sm:$0xff]  }
 0x188   :  { %3814 = vmatprep.subr.bf16.mxu0 %v5596_v28  ;;  %4183 = vmatprep.subr.bf16.mxu1 %v5599_v29  ;;  %v4343_v28 = vcombine.high %v7306_v24, %v7306_v24  ;;  %v5686_v29 = vld [vmem:[%s7708_s1 + $0xe20] ss:$16 sps:$4 sm:$0xff]  }
 0x18b   :  { %3815 = vmatpush1.bf16.msra.mxu0 %v5594_v30  ;;  %4184 = vmatpush1.bf16.msra.mxu1 %v5597_v31  ;;  %v5689_v30 = vld [vmem:[%s7708_s1 + $0xe28] ss:$16 sps:$4 sm:$0xff]   ;;  %v5694_v31 = vld [vmem:[%s7708_s1 + $0xe44] ss:$16 sps:$4 sm:$0xff]  }
 0x18c   :  { %3816 = vmatprep.subr.bf16.mxu0 %v5602_v32  ;;  %4185 = vmatprep.subr.bf16.mxu1 %v5605_v33  ;;  %v5697_v32 = vld [vmem:[%s7708_s1 + $0xe4c] ss:$16 sps:$4 sm:$0xff]   ;;  %v5692_v33 = vld [vmem:[%s7708_s1 + $0xe40] ss:$16 sps:$4 sm:$0xff]  }
 0x18f   :  { %3817 = vmatpush1.bf16.msra.mxu0 %v5600_v34  ;;  %4186 = vmatpush1.bf16.msra.mxu1 %v5603_v35  ;;  %v5695_v34 = vld [vmem:[%s7708_s1 + $0xe48] ss:$16 sps:$4 sm:$0xff]   ;;  %v5700_v35 = vld [vmem:[%s7708_s1 + $0xe64] ss:$16 sps:$4 sm:$0xff]  }
 0x190   :  { %3818 = vmatprep.subr.bf16.mxu0 %v5608_v36  ;;  %4187 = vmatprep.subr.bf16.mxu1 %v5611_v37  ;;  %v5703_v36 = vld [vmem:[%s7708_s1 + $0xe6c] ss:$16 sps:$4 sm:$0xff]   ;;  %v5698_v37 = vld [vmem:[%s7708_s1 + $0xe60] ss:$16 sps:$4 sm:$0xff]  }
 0x193   :  { %3819 = vmatpush1.bf16.msra.mxu0 %v5606_v38  ;;  %4188 = vmatpush1.bf16.msra.mxu1 %v5609_v39  ;;  %v5701_v38 = vld [vmem:[%s7708_s1 + $0xe68] ss:$16 sps:$4 sm:$0xff]   ;;  %v5706_v39 = vld [vmem:[%s7708_s1 + $0xe84] ss:$16 sps:$4 sm:$0xff]  }
 0x194   :  { %3820 = vmatprep.subr.bf16.mxu0 %v5614_v40  ;;  %4189 = vmatprep.subr.bf16.mxu1 %v5617_v41  ;;  %v5709_v40 = vld [vmem:[%s7708_s1 + $0xe8c] ss:$16 sps:$4 sm:$0xff]   ;;  %v5704_v41 = vld [vmem:[%s7708_s1 + $0xe80] ss:$16 sps:$4 sm:$0xff]  }
 0x197   :  { %3821 = vmatpush1.bf16.msra.mxu0 %v5612_v42  ;;  %4190 = vmatpush1.bf16.msra.mxu1 %v5615_v43  ;;  %v5707_v42 = vld [vmem:[%s7708_s1 + $0xe88] ss:$16 sps:$4 sm:$0xff]   ;;  %v5712_v43 = vld [vmem:[%s7708_s1 + $0xea4] ss:$16 sps:$4 sm:$0xff]  }
 0x198   :  { %3822 = vmatprep.subr.bf16.mxu0 %v5620_v44  ;;  %4191 = vmatprep.subr.bf16.mxu1 %v5623_v45  ;;  %v5715_v44 = vld [vmem:[%s7708_s1 + $0xeac] ss:$16 sps:$4 sm:$0xff]   ;;  %v5710_v45 = vld [vmem:[%s7708_s1 + $0xea0] ss:$16 sps:$4 sm:$0xff]  }
 0x19b   :  { %3823 = vmatpush1.bf16.msra.mxu0 %v5618_v46  ;;  %4192 = vmatpush1.bf16.msra.mxu1 %v5621_v47  ;;  %v5713_v46 = vld [vmem:[%s7708_s1 + $0xea8] ss:$16 sps:$4 sm:$0xff]   ;;  %v5718_v47 = vld [vmem:[%s7708_s1 + $0xec4] ss:$16 sps:$4 sm:$0xff]  }
 0x19c   :  { %3824 = vmatprep.subr.bf16.mxu0 %v5626_v48  ;;  %4193 = vmatprep.subr.bf16.mxu1 %v5629_v49  ;;  %v5721_v48 = vld [vmem:[%s7708_s1 + $0xecc] ss:$16 sps:$4 sm:$0xff]   ;;  %v5716_v49 = vld [vmem:[%s7708_s1 + $0xec0] ss:$16 sps:$4 sm:$0xff]  }
 0x19f   :  { %3825 = vmatpush1.bf16.msra.mxu0 %v5624_v50  ;;  %4194 = vmatpush1.bf16.msra.mxu1 %v5627_v51  ;;  %v5719_v50 = vld [vmem:[%s7708_s1 + $0xec8] ss:$16 sps:$4 sm:$0xff]   ;;  %v5724_v51 = vld [vmem:[%s7708_s1 + $0xee4] ss:$16 sps:$4 sm:$0xff]  }
 0x1a0   :  { %3826 = vmatprep.subr.bf16.mxu0 %v5632_v52  ;;  %4195 = vmatprep.subr.bf16.mxu1 %v5635_v53  ;;  %v5727_v52 = vld [vmem:[%s7708_s1 + $0xeec] ss:$16 sps:$4 sm:$0xff]   ;;  %v5722_v53 = vld [vmem:[%s7708_s1 + $0xee0] ss:$16 sps:$4 sm:$0xff]  }
 0x1a3   :  { %3827 = vmatpush1.bf16.msra.mxu0 %v5630_v54  ;;  %4196 = vmatpush1.bf16.msra.mxu1 %v5633_v55  ;;  %v5725_v54 = vld [vmem:[%s7708_s1 + $0xee8] ss:$16 sps:$4 sm:$0xff]   ;;  %v5730_v55 = vld [vmem:[%s7708_s1 + $0xf04] ss:$16 sps:$4 sm:$0xff]  }
 0x1a4   :  { %3828 = vmatprep.subr.bf16.mxu0 %v5638_v56  ;;  %4197 = vmatprep.subr.bf16.mxu1 %v5641_v57  ;;  %v5733_v56 = vld [vmem:[%s7708_s1 + $0xf0c] ss:$16 sps:$4 sm:$0xff]   ;;  %v5728_v57 = vld [vmem:[%s7708_s1 + $0xf00] ss:$16 sps:$4 sm:$0xff]  }
 0x1a7   :  { %3829 = vmatpush1.bf16.msra.mxu0 %v5636_v58  ;;  %4198 = vmatpush1.bf16.msra.mxu1 %v5639_v59  ;;  %v5731_v58 = vld [vmem:[%s7708_s1 + $0xf08] ss:$16 sps:$4 sm:$0xff]   ;;  %v5736_v59 = vld [vmem:[%s7708_s1 + $0xf24] ss:$16 sps:$4 sm:$0xff]  }
 0x1a8   :  { %3830 = vmatprep.subr.bf16.mxu0 %v5644_v60  ;;  %4199 = vmatprep.subr.bf16.mxu1 %v5647_v61  ;;  %v5739_v60 = vld [vmem:[%s7708_s1 + $0xf2c] ss:$16 sps:$4 sm:$0xff]   ;;  %v5734_v61 = vld [vmem:[%s7708_s1 + $0xf20] ss:$16 sps:$4 sm:$0xff]  }
 0x1ab   :  { %3831 = vmatpush1.bf16.msra.mxu0 %v5642_v62  ;;  %4200 = vmatpush1.bf16.msra.mxu1 %v5645_v63  ;;  %v5737_v62 = vld [vmem:[%s7708_s1 + $0xf28] ss:$16 sps:$4 sm:$0xff]   ;;  %v5742_v63 = vld [vmem:[%s7708_s1 + $0xf44] ss:$16 sps:$4 sm:$0xff]  }
 0x1ac   :  { %3832 = vmatprep.subr.bf16.mxu0 %v5650_v0  ;;  %4201 = vmatprep.subr.bf16.mxu1 %v5653_v1  ;;  %v5745_v0 = vld [vmem:[%s7708_s1 + $0xf4c] ss:$16 sps:$4 sm:$0xff]   ;;  %v5740_v1 = vld [vmem:[%s7708_s1 + $0xf40] ss:$16 sps:$4 sm:$0xff]  }
 0x1af   :  { %3833 = vmatpush1.bf16.msra.mxu0 %v5648_v2  ;;  %4202 = vmatpush1.bf16.msra.mxu1 %v5651_v3  ;;  %v5743_v2 = vld [vmem:[%s7708_s1 + $0xf48] ss:$16 sps:$4 sm:$0xff]   ;;  %v5748_v3 = vld [vmem:[%s7708_s1 + $0xf64] ss:$16 sps:$4 sm:$0xff]  }
 0x1b0   :  { %3834 = vmatprep.subr.bf16.mxu0 %v5656_v4  ;;  %4203 = vmatprep.subr.bf16.mxu1 %v5659_v5  ;;  %v5751_v4 = vld [vmem:[%s7708_s1 + $0xf6c] ss:$16 sps:$4 sm:$0xff]   ;;  %v5746_v5 = vld [vmem:[%s7708_s1 + $0xf60] ss:$16 sps:$4 sm:$0xff]  }
 0x1b3   :  { %3835 = vmatpush1.bf16.msra.mxu0 %v5654_v6  ;;  %4204 = vmatpush1.bf16.msra.mxu1 %v5657_v7  ;;  %v5749_v6 = vld [vmem:[%s7708_s1 + $0xf68] ss:$16 sps:$4 sm:$0xff]   ;;  %v5754_v7 = vld [vmem:[%s7708_s1 + $0xf84] ss:$16 sps:$4 sm:$0xff]  }
 0x1b4   :  { %3836 = vmatprep.subr.bf16.mxu0 %v5662_v8  ;;  %4205 = vmatprep.subr.bf16.mxu1 %v5665_v9  ;;  %v5757_v8 = vld [vmem:[%s7708_s1 + $0xf8c] ss:$16 sps:$4 sm:$0xff]   ;;  %v5752_v9 = vld [vmem:[%s7708_s1 + $0xf80] ss:$16 sps:$4 sm:$0xff]  }
 0x1b7   :  { %3837 = vmatpush1.bf16.msra.mxu0 %v5660_v10  ;;  %4206 = vmatpush1.bf16.msra.mxu1 %v5663_v12  ;;  %v5755_v10 = vld [vmem:[%s7708_s1 + $0xf88] ss:$16 sps:$4 sm:$0xff]   ;;  %v5760_v12 = vld [vmem:[%s7708_s1 + $0xfa4] ss:$16 sps:$4 sm:$0xff]  }
 0x1b8   :  { %3838 = vmatprep.subr.bf16.mxu0 %v5668_v13  ;;  %4207 = vmatprep.subr.bf16.mxu1 %v5671_v15  ;;  %v5763_v13 = vld [vmem:[%s7708_s1 + $0xfac] ss:$16 sps:$4 sm:$0xff]   ;;  %v5758_v15 = vld [vmem:[%s7708_s1 + $0xfa0] ss:$16 sps:$4 sm:$0xff]  }
 0x1bb   :  { %3839 = vmatpush1.bf16.msra.mxu0 %v5666_v11  ;;  %4208 = vmatpush1.bf16.msra.mxu1 %v5669_v17  ;;  %v5761_v11 = vld [vmem:[%s7708_s1 + $0xfa8] ss:$16 sps:$4 sm:$0xff]   ;;  %v5766_v17 = vld [vmem:[%s7708_s1 + $0xfc4] ss:$16 sps:$4 sm:$0xff]  }
 0x1bc   :  { %3840 = vmatprep.subr.bf16.mxu0 %v5674_v14  ;;  %4209 = vmatprep.subr.bf16.mxu1 %v5677_v19  ;;  %v5769_v14 = vld [vmem:[%s7708_s1 + $0xfcc] ss:$16 sps:$4 sm:$0xff]   ;;  %v5764_v19 = vld [vmem:[%s7708_s1 + $0xfc0] ss:$16 sps:$4 sm:$0xff]  }
 0x1bf   :  { %3841 = vmatpush1.bf16.msra.mxu0 %v5672_v20  ;;  %4210 = vmatpush1.bf16.msra.mxu1 %v5675_v21  ;;  %v5767_v20 = vld [vmem:[%s7708_s1 + $0xfc8] ss:$16 sps:$4 sm:$0xff]   ;;  %v5772_v21 = vld [vmem:[%s7708_s1 + $0xfe4] ss:$16 sps:$4 sm:$0xff]  }
 0x1c0   :  { %3851 = vmatprep.subr.bf16.mxu0 %v5682_v22  ;;  %4220 = vmatprep.subr.bf16.mxu1 %v5685_v23  ;;  %v5775_v22 = vld [vmem:[%s7708_s1 + $0xfec] ss:$16 sps:$4 sm:$0xff]   ;;  %v5770_v23 = vld [vmem:[%s7708_s1 + $0xfe0] ss:$16 sps:$4 sm:$0xff]  }
 0x1c2   :  { %3843 = vmatmul.mubr.bf16.vlgmr.msra.gmra.mrb[0].mxu0 %v4340_v18  ;;  %4212 = vmatmul.mubr.bf16.vlgmr.msra.gmra.mrb[0].mxu1 %v4340_v18  ;;  %v5773_v18 = vld [vmem:[%s7708_s1 + $0xfe8] ss:$16 sps:$4 sm:$0xff]  }
 0x1c3   :  { %3852 = vmatpush1.bf16.msra.mxu0 %v5680_v25  ;;  %4221 = vmatpush1.bf16.msra.mxu1 %v5683_v26  ;;  %v5780_v25 = vld [vmem:[%s7708_s1 + $0x1004] ss:$16 sps:$4 sm:$0xff]   ;;  %v5783_v26 = vld [vmem:[%s7708_s1 + $0x100c] ss:$16 sps:$4 sm:$0xff]  }
 0x1c4   :  { %3853 = vmatprep.subr.bf16.mxu0 %v5688_v16  ;;  %4222 = vmatprep.subr.bf16.mxu1 %v5691_v27  ;;  %v4342_v16 = vcombine.low %v7306_v24, %v7306_v24  ;;  %v7507_v27 = vld [vmem:[%s7709_s0 + $0x40] sm:$0xff] }
 0x1c5   :  { %3883 = vmatprep.mubr.bf16.mxu0 %v4343_v28  ;;  %4252 = vmatprep.mubr.bf16.mxu1 %v4343_v28  ;;  %v5778_v28 = vld [vmem:[%s7708_s1 + $0x1000] ss:$16 sps:$4 sm:$0xff]   ;;  %v5786_v24 = vld [vmem:[%s7708_s1 + $0x1024] ss:$16 sps:$4 sm:$0xff]  }
 0x1c7   :  { %3854 = vmatpush1.bf16.msra.mxu0 %v5686_v29  ;;  %4223 = vmatpush1.bf16.msra.mxu1 %v5689_v30  ;;  %v5781_v29 = vld [vmem:[%s7708_s1 + $0x1008] ss:$16 sps:$4 sm:$0xff]   ;;  %v5789_v30 = vld [vmem:[%s7708_s1 + $0x102c] ss:$16 sps:$4 sm:$0xff]  }
 0x1c8   :  { %3855 = vmatprep.subr.bf16.mxu0 %v5694_v31  ;;  %4224 = vmatprep.subr.bf16.mxu1 %v5697_v32  ;;  %v4345_v31 = vcombine.high %v7507_v27, %v7507_v27  ;;  %v5784_v32 = vld [vmem:[%s7708_s1 + $0x1020] ss:$16 sps:$4 sm:$0xff]  }
 0x1cb   :  { %3856 = vmatpush1.bf16.msra.mxu0 %v5692_v33  ;;  %4225 = vmatpush1.bf16.msra.mxu1 %v5695_v34  ;;  %v5787_v33 = vld [vmem:[%s7708_s1 + $0x1028] ss:$16 sps:$4 sm:$0xff]   ;;  %v5792_v34 = vld [vmem:[%s7708_s1 + $0x1044] ss:$16 sps:$4 sm:$0xff]  }
 0x1cc   :  { %3857 = vmatprep.subr.bf16.mxu0 %v5700_v35  ;;  %4226 = vmatprep.subr.bf16.mxu1 %v5703_v36  ;;  %v5795_v35 = vld [vmem:[%s7708_s1 + $0x104c] ss:$16 sps:$4 sm:$0xff]   ;;  %v5790_v36 = vld [vmem:[%s7708_s1 + $0x1040] ss:$16 sps:$4 sm:$0xff]  }
 0x1cf   :  { %3858 = vmatpush1.bf16.msra.mxu0 %v5698_v37  ;;  %4227 = vmatpush1.bf16.msra.mxu1 %v5701_v38  ;;  %v5793_v37 = vld [vmem:[%s7708_s1 + $0x1048] ss:$16 sps:$4 sm:$0xff]   ;;  %v5798_v38 = vld [vmem:[%s7708_s1 + $0x1064] ss:$16 sps:$4 sm:$0xff]  }
 0x1d0   :  { %3859 = vmatprep.subr.bf16.mxu0 %v5706_v39  ;;  %4228 = vmatprep.subr.bf16.mxu1 %v5709_v40  ;;  %v5801_v39 = vld [vmem:[%s7708_s1 + $0x106c] ss:$16 sps:$4 sm:$0xff]   ;;  %v5796_v40 = vld [vmem:[%s7708_s1 + $0x1060] ss:$16 sps:$4 sm:$0xff]  }
 0x1d3   :  { %3860 = vmatpush1.bf16.msra.mxu0 %v5704_v41  ;;  %4229 = vmatpush1.bf16.msra.mxu1 %v5707_v42  ;;  %v5799_v41 = vld [vmem:[%s7708_s1 + $0x1068] ss:$16 sps:$4 sm:$0xff]   ;;  %v5804_v42 = vld [vmem:[%s7708_s1 + $0x1084] ss:$16 sps:$4 sm:$0xff]  }
 0x1d4   :  { %3861 = vmatprep.subr.bf16.mxu0 %v5712_v43  ;;  %4230 = vmatprep.subr.bf16.mxu1 %v5715_v44  ;;  %v5807_v43 = vld [vmem:[%s7708_s1 + $0x108c] ss:$16 sps:$4 sm:$0xff]   ;;  %v5802_v44 = vld [vmem:[%s7708_s1 + $0x1080] ss:$16 sps:$4 sm:$0xff]  }
 0x1d7   :  { %3862 = vmatpush1.bf16.msra.mxu0 %v5710_v45  ;;  %4231 = vmatpush1.bf16.msra.mxu1 %v5713_v46  ;;  %v5805_v45 = vld [vmem:[%s7708_s1 + $0x1088] ss:$16 sps:$4 sm:$0xff]   ;;  %v5810_v46 = vld [vmem:[%s7708_s1 + $0x10a4] ss:$16 sps:$4 sm:$0xff]  }
 0x1d8   :  { %3863 = vmatprep.subr.bf16.mxu0 %v5718_v47  ;;  %4232 = vmatprep.subr.bf16.mxu1 %v5721_v48  ;;  %v5813_v47 = vld [vmem:[%s7708_s1 + $0x10ac] ss:$16 sps:$4 sm:$0xff]   ;;  %v5808_v48 = vld [vmem:[%s7708_s1 + $0x10a0] ss:$16 sps:$4 sm:$0xff]  }
 0x1db   :  { %3864 = vmatpush1.bf16.msra.mxu0 %v5716_v49  ;;  %4233 = vmatpush1.bf16.msra.mxu1 %v5719_v50  ;;  %v5811_v49 = vld [vmem:[%s7708_s1 + $0x10a8] ss:$16 sps:$4 sm:$0xff]   ;;  %v5816_v50 = vld [vmem:[%s7708_s1 + $0x10c4] ss:$16 sps:$4 sm:$0xff]  }
 0x1dc   :  { %3865 = vmatprep.subr.bf16.mxu0 %v5724_v51  ;;  %4234 = vmatprep.subr.bf16.mxu1 %v5727_v52  ;;  %v5819_v51 = vld [vmem:[%s7708_s1 + $0x10cc] ss:$16 sps:$4 sm:$0xff]   ;;  %v5814_v52 = vld [vmem:[%s7708_s1 + $0x10c0] ss:$16 sps:$4 sm:$0xff]  }
 0x1df   :  { %3866 = vmatpush1.bf16.msra.mxu0 %v5722_v53  ;;  %4235 = vmatpush1.bf16.msra.mxu1 %v5725_v54  ;;  %v5817_v53 = vld [vmem:[%s7708_s1 + $0x10c8] ss:$16 sps:$4 sm:$0xff]   ;;  %v5822_v54 = vld [vmem:[%s7708_s1 + $0x10e4] ss:$16 sps:$4 sm:$0xff]  }
 0x1e0   :  { %3867 = vmatprep.subr.bf16.mxu0 %v5730_v55  ;;  %4236 = vmatprep.subr.bf16.mxu1 %v5733_v56  ;;  %v5825_v55 = vld [vmem:[%s7708_s1 + $0x10ec] ss:$16 sps:$4 sm:$0xff]   ;;  %v5820_v56 = vld [vmem:[%s7708_s1 + $0x10e0] ss:$16 sps:$4 sm:$0xff]  }
 0x1e3   :  { %3868 = vmatpush1.bf16.msra.mxu0 %v5728_v57  ;;  %4237 = vmatpush1.bf16.msra.mxu1 %v5731_v58  ;;  %v5823_v57 = vld [vmem:[%s7708_s1 + $0x10e8] ss:$16 sps:$4 sm:$0xff]   ;;  %v5828_v58 = vld [vmem:[%s7708_s1 + $0x1104] ss:$16 sps:$4 sm:$0xff]  }
 0x1e4   :  { %3869 = vmatprep.subr.bf16.mxu0 %v5736_v59  ;;  %4238 = vmatprep.subr.bf16.mxu1 %v5739_v60  ;;  %v5831_v59 = vld [vmem:[%s7708_s1 + $0x110c] ss:$16 sps:$4 sm:$0xff]   ;;  %v5826_v60 = vld [vmem:[%s7708_s1 + $0x1100] ss:$16 sps:$4 sm:$0xff]  }
 0x1e7   :  { %3870 = vmatpush1.bf16.msra.mxu0 %v5734_v61  ;;  %4239 = vmatpush1.bf16.msra.mxu1 %v5737_v62  ;;  %v5829_v61 = vld [vmem:[%s7708_s1 + $0x1108] ss:$16 sps:$4 sm:$0xff]   ;;  %v5834_v62 = vld [vmem:[%s7708_s1 + $0x1124] ss:$16 sps:$4 sm:$0xff]  }
 0x1e8   :  { %3871 = vmatprep.subr.bf16.mxu0 %v5742_v63  ;;  %4240 = vmatprep.subr.bf16.mxu1 %v5745_v0  ;;  %v5837_v63 = vld [vmem:[%s7708_s1 + $0x112c] ss:$16 sps:$4 sm:$0xff]   ;;  %v5832_v0 = vld [vmem:[%s7708_s1 + $0x1120] ss:$16 sps:$4 sm:$0xff]  }
 0x1eb   :  { %3872 = vmatpush1.bf16.msra.mxu0 %v5740_v1  ;;  %4241 = vmatpush1.bf16.msra.mxu1 %v5743_v2  ;;  %v5835_v1 = vld [vmem:[%s7708_s1 + $0x1128] ss:$16 sps:$4 sm:$0xff]   ;;  %v5840_v2 = vld [vmem:[%s7708_s1 + $0x1144] ss:$16 sps:$4 sm:$0xff]  }
 0x1ec   :  { %3873 = vmatprep.subr.bf16.mxu0 %v5748_v3  ;;  %4242 = vmatprep.subr.bf16.mxu1 %v5751_v4  ;;  %v5843_v3 = vld [vmem:[%s7708_s1 + $0x114c] ss:$16 sps:$4 sm:$0xff]   ;;  %v5838_v4 = vld [vmem:[%s7708_s1 + $0x1140] ss:$16 sps:$4 sm:$0xff]  }
 0x1ef   :  { %3874 = vmatpush1.bf16.msra.mxu0 %v5746_v5  ;;  %4243 = vmatpush1.bf16.msra.mxu1 %v5749_v6  ;;  %v5841_v5 = vld [vmem:[%s7708_s1 + $0x1148] ss:$16 sps:$4 sm:$0xff]   ;;  %v5846_v6 = vld [vmem:[%s7708_s1 + $0x1164] ss:$16 sps:$4 sm:$0xff]  }
 0x1f0   :  { %3875 = vmatprep.subr.bf16.mxu0 %v5754_v7  ;;  %4244 = vmatprep.subr.bf16.mxu1 %v5757_v8  ;;  %v5849_v7 = vld [vmem:[%s7708_s1 + $0x116c] ss:$16 sps:$4 sm:$0xff]   ;;  %v5844_v8 = vld [vmem:[%s7708_s1 + $0x1160] ss:$16 sps:$4 sm:$0xff]  }
 0x1f3   :  { %3876 = vmatpush1.bf16.msra.mxu0 %v5752_v9  ;;  %4245 = vmatpush1.bf16.msra.mxu1 %v5755_v10  ;;  %v5847_v9 = vld [vmem:[%s7708_s1 + $0x1168] ss:$16 sps:$4 sm:$0xff]   ;;  %v5852_v10 = vld [vmem:[%s7708_s1 + $0x1184] ss:$16 sps:$4 sm:$0xff]  }
 0x1f4   :  { %3877 = vmatprep.subr.bf16.mxu0 %v5760_v12  ;;  %4246 = vmatprep.subr.bf16.mxu1 %v5763_v13  ;;  %v5855_v12 = vld [vmem:[%s7708_s1 + $0x118c] ss:$16 sps:$4 sm:$0xff]   ;;  %v5850_v13 = vld [vmem:[%s7708_s1 + $0x1180] ss:$16 sps:$4 sm:$0xff]  }
 0x1f7   :  { %3878 = vmatpush1.bf16.msra.mxu0 %v5758_v15  ;;  %4247 = vmatpush1.bf16.msra.mxu1 %v5761_v11  ;;  %v5853_v15 = vld [vmem:[%s7708_s1 + $0x1188] ss:$16 sps:$4 sm:$0xff]   ;;  %v5858_v11 = vld [vmem:[%s7708_s1 + $0x11a4] ss:$16 sps:$4 sm:$0xff]  }
 0x1f8   :  { %3879 = vmatprep.subr.bf16.mxu0 %v5766_v17  ;;  %4248 = vmatprep.subr.bf16.mxu1 %v5769_v14  ;;  %v5861_v17 = vld [vmem:[%s7708_s1 + $0x11ac] ss:$16 sps:$4 sm:$0xff]   ;;  %v5856_v14 = vld [vmem:[%s7708_s1 + $0x11a0] ss:$16 sps:$4 sm:$0xff]  }
 0x1fb   :  { %3880 = vmatpush1.bf16.msra.mxu0 %v5764_v19  ;;  %4249 = vmatpush1.bf16.msra.mxu1 %v5767_v20  ;;  %v5859_v19 = vld [vmem:[%s7708_s1 + $0x11a8] ss:$16 sps:$4 sm:$0xff]   ;;  %v5864_v20 = vld [vmem:[%s7708_s1 + $0x11c4] ss:$16 sps:$4 sm:$0xff]  }
 0x1fc   :  { %3881 = vmatprep.subr.bf16.mxu0 %v5772_v21  ;;  %4250 = vmatprep.subr.bf16.mxu1 %v5775_v22  ;;  %v5867_v21 = vld [vmem:[%s7708_s1 + $0x11cc] ss:$16 sps:$4 sm:$0xff]   ;;  %v5862_v22 = vld [vmem:[%s7708_s1 + $0x11c0] ss:$16 sps:$4 sm:$0xff]  }
 0x1ff   :  { %3882 = vmatpush1.bf16.msra.mxu0 %v5770_v23  ;;  %4251 = vmatpush1.bf16.msra.mxu1 %v5773_v18  ;;  %v5865_v23 = vld [vmem:[%s7708_s1 + $0x11c8] ss:$16 sps:$4 sm:$0xff]   ;;  %v5870_v18 = vld [vmem:[%s7708_s1 + $0x11e4] ss:$16 sps:$4 sm:$0xff]  }
 0x200   :  { %3892 = vmatprep.subr.bf16.mxu0 %v5780_v25  ;;  %4261 = vmatprep.subr.bf16.mxu1 %v5783_v26  ;;  %v5873_v25 = vld [vmem:[%s7708_s1 + $0x11ec] ss:$16 sps:$4 sm:$0xff]   ;;  %v5868_v26 = vld [vmem:[%s7708_s1 + $0x11e0] ss:$16 sps:$4 sm:$0xff]  }
 0x202   :  { %3884 = vmatmul.mubr.bf16.vlgmr.msra.gmra.mrb[0].mxu0 %v4342_v16  ;;  %4253 = vmatmul.mubr.bf16.vlgmr.msra.gmra.mrb[0].mxu1 %v4342_v16  ;;  %v5871_v16 = vld [vmem:[%s7708_s1 + $0x11e8] ss:$16 sps:$4 sm:$0xff]  }
 0x203   :  { %3893 = vmatpush1.bf16.msra.mxu0 %v5778_v28  ;;  %4262 = vmatpush1.bf16.msra.mxu1 %v5781_v29  ;;  %v4344_v28 = vcombine.low %v7507_v27, %v7507_v27  ;;  %v601_v29 = vlaneseq }
 0x204   :  { %3894 = vmatprep.subr.bf16.mxu0 %v5786_v24  ;;  %4263 = vmatprep.subr.bf16.mxu1 %v5789_v30 }
 0x205   :  { %3924 = vmatprep.mubr.bf16.mxu0 %v4345_v31  ;;  %4293 = vmatprep.mubr.bf16.mxu1 %v4345_v31  ;;  %v602_v24 = vshrl.u32 %v601_v29, 7 }
 0x207   :  { %3895 = vmatpush1.bf16.msra.mxu0 %v5784_v32  ;;  %4264 = vmatpush1.bf16.msra.mxu1 %v5787_v33  ;;  %v603_v30 = vsub.s32 0, %v602_v24  ;;  %v611_v31 = vsub.s32 2, %v602_v24  ;;  %v599_v32 = vld [vmem:[%s7710_s2] sm:$0xf]  ;;  %v607_v33 = vsub.s32 1, %v602_v24 }
 0x208   :  { %3896 = vmatprep.subr.bf16.mxu0 %v5792_v34  ;;  %4265 = vmatprep.subr.bf16.mxu1 %v5795_v35  ;;  %v615_v34 = vsub.s32 3, %v602_v24 }
 0x209   :  { %v604_v35 = vrot.slane %v599_v32, %v603_v30 }
 0x20b   :  { %3897 = vmatpush1.bf16.msra.mxu0 %v5790_v36  ;;  %4266 = vmatpush1.bf16.msra.mxu1 %v5793_v37  ;;  %v612_v36 = vrot.slane %v599_v32, %v611_v31  ;;  %v608_v37 = vrot.slane %v599_v32, %v607_v33 }
 0x20c   :  { %3898 = vmatprep.subr.bf16.mxu0 %v5798_v38  ;;  %4267 = vmatprep.subr.bf16.mxu1 %v5801_v39  ;;  %v616_v38 = vrot.slane %v599_v32, %v615_v34 }
 0x20f   :  { %3899 = vmatpush1.bf16.msra.mxu0 %v5796_v40  ;;  %4268 = vmatpush1.bf16.msra.mxu1 %v5799_v41 }
 0x210   :  { %3900 = vmatprep.subr.bf16.mxu0 %v5804_v42  ;;  %4269 = vmatprep.subr.bf16.mxu1 %v5807_v43 }
 0x213   :  { %3901 = vmatpush1.bf16.msra.mxu0 %v5802_v44  ;;  %4270 = vmatpush1.bf16.msra.mxu1 %v5805_v45 }
 0x214   :  { %3902 = vmatprep.subr.bf16.mxu0 %v5810_v46  ;;  %4271 = vmatprep.subr.bf16.mxu1 %v5813_v47 }
 0x217   :  { %3903 = vmatpush1.bf16.msra.mxu0 %v5808_v48  ;;  %4272 = vmatpush1.bf16.msra.mxu1 %v5811_v49 }
 0x218   :  { %3904 = vmatprep.subr.bf16.mxu0 %v5816_v50  ;;  %4273 = vmatprep.subr.bf16.mxu1 %v5819_v51 }
 0x21b   :  { %3905 = vmatpush1.bf16.msra.mxu0 %v5814_v52  ;;  %4274 = vmatpush1.bf16.msra.mxu1 %v5817_v53 }
 0x21c   :  { %3906 = vmatprep.subr.bf16.mxu0 %v5822_v54  ;;  %4275 = vmatprep.subr.bf16.mxu1 %v5825_v55 }
 0x21f   :  { %3907 = vmatpush1.bf16.msra.mxu0 %v5820_v56  ;;  %4276 = vmatpush1.bf16.msra.mxu1 %v5823_v57 }
 0x220   :  { %3908 = vmatprep.subr.bf16.mxu0 %v5828_v58  ;;  %4277 = vmatprep.subr.bf16.mxu1 %v5831_v59 }
 0x223   :  { %3909 = vmatpush1.bf16.msra.mxu0 %v5826_v60  ;;  %4278 = vmatpush1.bf16.msra.mxu1 %v5829_v61 }
 0x224   :  { %3910 = vmatprep.subr.bf16.mxu0 %v5834_v62  ;;  %4279 = vmatprep.subr.bf16.mxu1 %v5837_v63 }
 0x227   :  { %3911 = vmatpush1.bf16.msra.mxu0 %v5832_v0  ;;  %4280 = vmatpush1.bf16.msra.mxu1 %v5835_v1 }
 0x228   :  { %3912 = vmatprep.subr.bf16.mxu0 %v5840_v2  ;;  %4281 = vmatprep.subr.bf16.mxu1 %v5843_v3 }
 0x22b   :  { %3913 = vmatpush1.bf16.msra.mxu0 %v5838_v4  ;;  %4282 = vmatpush1.bf16.msra.mxu1 %v5841_v5 }
 0x22c   :  { %3914 = vmatprep.subr.bf16.mxu0 %v5846_v6  ;;  %4283 = vmatprep.subr.bf16.mxu1 %v5849_v7 }
 0x22f   :  { %3915 = vmatpush1.bf16.msra.mxu0 %v5844_v8  ;;  %4284 = vmatpush1.bf16.msra.mxu1 %v5847_v9 }
 0x230   :  { %3916 = vmatprep.subr.bf16.mxu0 %v5852_v10  ;;  %4285 = vmatprep.subr.bf16.mxu1 %v5855_v12 }
 0x233   :  { %3917 = vmatpush1.bf16.msra.mxu0 %v5850_v13  ;;  %4286 = vmatpush1.bf16.msra.mxu1 %v5853_v15 }
 0x234   :  { %3918 = vmatprep.subr.bf16.mxu0 %v5858_v11  ;;  %4287 = vmatprep.subr.bf16.mxu1 %v5861_v17 }
 0x237   :  { %3919 = vmatpush1.bf16.msra.mxu0 %v5856_v14  ;;  %4288 = vmatpush1.bf16.msra.mxu1 %v5859_v19 }
 0x238   :  { %3920 = vmatprep.subr.bf16.mxu0 %v5864_v20  ;;  %4289 = vmatprep.subr.bf16.mxu1 %v5867_v21 }
 0x23b   :  { %3921 = vmatpush1.bf16.msra.mxu0 %v5862_v22  ;;  %4290 = vmatpush1.bf16.msra.mxu1 %v5865_v23 }
 0x23c   :  { %3922 = vmatprep.subr.bf16.mxu0 %v5870_v18  ;;  %4291 = vmatprep.subr.bf16.mxu1 %v5873_v25 }
 0x23f   :  { %3923 = vmatpush1.bf16.msra.mxu0 %v5868_v26  ;;  %4292 = vmatpush1.bf16.msra.mxu1 %v5871_v16 }
 0x242   :  { %3925 = vmatmul.mubr.bf16.vlgmr.msra.gmra.mrb[0].mxu0 %v4344_v28  ;;  %4294 = vmatmul.mubr.bf16.vlgmr.msra.gmra.mrb[0].mxu1 %v4344_v28 }
 0x315   :  { %v3926_v39 = vpop.f32.mrb[0].mxu0  ;;  %v4295_v27 = vpop.f32.mrb[0].mxu1 }
 0x316   :  { %v4926_v40 = vadd.f32 %v3926_v39, %v604_v35  ;;  %v4928_v41 = vadd.f32 %v4295_v27, %v612_v36  ;;  %v3928_v42 = vpop.f32.mrb[1].mxu0  ;;  %v4297_v43 = vpop.f32.mrb[1].mxu1 }
 0x317   :  { %v4927_v44 = vadd.f32 %v3928_v42, %v608_v37  ;;  %v4929_v45 = vadd.f32 %v4297_v43, %v616_v38  ;;  %v3930_v46 = vpop.f32.mrb[2].mxu0  ;;  %v4299_v47 = vpop.f32.mrb[2].mxu1 }
 0x318   :  { %v4302_v48 = vmax.f32 %v4926_v40, 0.0  ;;  %v4304_v49 = vmax.f32 %v4928_v41, 0.0  ;;  %v3931_v50 = vpop.f32.mrb[3].mxu0  ;;  %v4300_v51 = vpop.f32.mrb[3].mxu1 }
 0x319   :  { %v4303_v52 = vmax.f32 %v4927_v44, 0.0  ;;  %v4305_v53 = vmax.f32 %v4929_v45, 0.0 }
 0x31b   :  { %v4924_v54 = vpack.c.bf16 %v4303_v52, %v4302_v48  ;;  %v4925_v55 = vpack.c.bf16 %v4305_v53, %v4304_v49 }
 0x31d   :  { %4322 = vst [vmem:[%s7711_s3] sm:$0xff] %v4924_v54  ;;  %4323 = vst [vmem:[%s7711_s3 + $0x8] sm:$0xff] %v4925_v55 }

// kernel: beta_vae_forward.17
= control target key start
LH: loop header
LB: loop body
LE: loop exit
PB: predicated region body
PF: predicated region fallthrough
CT: control target
= control target key end

     0   :  { %s1487_s12 = smov 0   ;;  %s1729_s0 = inlined_call_operand.vmem [shape: bf16[512,288], index: 0, kind: input, shape index: {}]   ;;  %s1730_s1 = inlined_call_operand.vmem [shape: bf16[288,128], index: 1, kind: input, shape index: {}]   ;;  %s1731_s2 = inlined_call_operand.vmem [shape: f32[1,128], index: 2, kind: input, shape index: {}]   ;;  %s1732_s3 = inlined_call_operand.vmem [shape: f32[512,128], index: 3, kind: output, shape index: {}]  }
   0x1 LB: > { %s1092_s13 = sadd.s32 4294967295, %s1465_s12   ;;  %p1096_p0 = scmp.ge.s32.totalorder %s1465_s12, 1  ;;  %s1465_s12 = sphi %s1487_s12, %s13_s12  }
   0x2   : > { %p139_p1 = scmp.lt.s32.totalorder %s1465_s12, 3 }
   0x4   : > { %p140_p2 = pnand %p1096_p0, %p139_p1 }
   0x5   : > { %v1377_v0 = vld [vmem:[%s1730_s1 + $0x40] sm:$0xff] (!%p140_p2)   ;;  %s1097_s16 = sshll.u32 (!%p140_p2), %s1092_s13, 5  ;;  %v1379_v2 = vld [vmem:[%s1730_s1 + $0x48] sm:$0xff] (!%p140_p2)   ;;  %v1381_v4 = vld [vmem:[%s1730_s1 + $0x50] sm:$0xff] (!%p140_p2)   ;;  %vm633_vm0 = vcmask (!%p140_p2), 261120  }
   0x6   : > { %143 = sbr.rel (%p140_p2) target bundleno = 348 (0x15c), region = 32  ;;  %v1378_v1 = vld [vmem:[%s1730_s1] sm:$0xff] (!%p140_p2)   ;;  %1186 = vmatprep.subr.bf16.mxu0 (!%p140_p2), %v1377_v0  ;;  %1352 = vmatprep.subr.bf16.mxu1 (!%p140_p2), %v1377_v0  ;;  %p165_p3 = scmp.lt.s32.totalorder (!%p140_p2), %s1097_s16, 63  ;;  %v1380_v3 = vld [vmem:[%s1730_s1 + $0x8] sm:$0xff] (!%p140_p2)   ;;  %v1382_v5 = vld [vmem:[%s1730_s1 + $0x10] sm:$0xff] (!%p140_p2)  }
   0x7   : > { %1187 = vmatpush3.bf16.msra.mxu0 (!%p140_p2), %v1378_v1  ;;  %1360 = vmatpush3.bf16.msra.mxu1 (!%p140_p2), %v1378_v1  ;;  %v1383_v6 = vld [vmem:[%s1730_s1 + $0x58] sm:$0xff] (!%p140_p2)   ;;  %v1385_v8 = vld [vmem:[%s1730_s1 + $0x60] sm:$0xff] (!%p140_p2)   ;;  %v1387_v10 = vld [vmem:[%s1730_s1 + $0x68] sm:$0xff] (!%p140_p2)  }
   0x8   : > { %1188 = vmatprep.subr.bf16.mxu0 (!%p140_p2), %v1379_v2  ;;  %1353 = vmatprep.subr.bf16.mxu1 (!%p140_p2), %v1379_v2  ;;  %v1384_v7 = vld [vmem:[%s1730_s1 + $0x18] sm:$0xff] (!%p140_p2)   ;;  %v1386_v9 = vld [vmem:[%s1730_s1 + $0x20] sm:$0xff] (!%p140_p2)   ;;  %v1388_v13 = vld [vmem:[%s1730_s1 + $0x28] sm:$0xff] (!%p140_p2)  }
   0x9   : > { %v1389_v14 = vld [vmem:[%s1730_s1 + $0x70] sm:$0xff] (!%p140_p2)   ;;  %v1391_v16 = vld [vmem:[%s1730_s1 + $0x78] sm:$0xff] (!%p140_p2)   ;;  %v1399_v18 = vld [vmem:[%s1730_s1 + $0x80] sm:$0xff] (!%p140_p2)  }
   0xa   : > { %v1390_v15 = vld [vmem:[%s1730_s1 + $0x30] sm:$0xff] (!%p140_p2)   ;;  %v1392_v17 = vld [vmem:[%s1730_s1 + $0x38] sm:$0xff] (!%p140_p2)   ;;  %v1412_v23 = vld [vmem:[%s1730_s1 + $0x88] sm:$0xff] (!%p140_p2)  }
   0xb   : > { %1189 = vmatpush3.bf16.msra.mxu0 (!%p140_p2), %v1380_v3  ;;  %1361 = vmatpush3.bf16.msra.mxu1 (!%p140_p2), %v1380_v3 }
   0xc   : > { %1190 = vmatprep.subr.bf16.mxu0 (!%p140_p2), %v1381_v4  ;;  %1354 = vmatprep.subr.bf16.mxu1 (!%p140_p2), %v1381_v4 }
   0xd   : > { %s1734_s16 = smov (!%p165_p3, %s1097_s16), 63 }
   0xe   : > { %s1368_s29 = smul.u32 12, %s1734_s16  ;;  %s1100_s30 = sshll.u32 %s1734_s16, 3 }
   0xf   : > { %1191 = vmatpush3.bf16.msra.mxu0 %v1382_v5  ;;  %1362 = vmatpush3.bf16.msra.mxu1 %v1382_v5  ;;  %s1647_s8 = scalar_lea.vmem %s1732_s3, %s1100_s30 }
  0x10   : > { %1192 = vmatprep.subr.bf16.mxu0 %v1383_v6  ;;  %1355 = vmatprep.subr.bf16.mxu1 %v1383_v6  ;;  %s1528_s9 = scalar_lea.vmem %s1729_s0, %s1368_s29 }
  0x11   : > { %v1395_v11 = vld [vmem:[%s1528_s9 + $0x4] ss:$12 sps:$4 sm:$0xff]   ;;  %v1393_v19 = vld [vmem:[%s1528_s9] ss:$12 sps:$4 sm:$0xff]   ;;  %v1400_v21 = vld [vmem:[%s1528_s9 + $0x1c] ss:$12 sps:$4 sm:$0xff]  }
  0x12   : > { %v1398_v12 = vld [vmem:[%s1528_s9 + $0x124] ss:$12 sps:$4 sm:$0xff]   ;;  %714 = vmatprep.mubr.bf16.mxu0 %v1395_v11  ;;  %v1396_v20 = vld [vmem:[%s1528_s9 + $0x120] ss:$12 sps:$4 sm:$0xff]   ;;  %v1402_v22 = vld [vmem:[%s1528_s9 + $0x13c] ss:$12 sps:$4 sm:$0xff]  }
  0x13   : > { %1193 = vmatpush3.bf16.msra.mxu0 %v1384_v7  ;;  %1363 = vmatpush3.bf16.msra.mxu1 %v1384_v7  ;;  %v1404_v24 = vld [vmem:[%s1528_s9 + $0x18] ss:$12 sps:$4 sm:$0xff]   ;;  %v1406_v26 = vld [vmem:[%s1528_s9 + $0x34] ss:$12 sps:$4 sm:$0xff]   ;;  %v1410_v28 = vld [vmem:[%s1528_s9 + $0x30] ss:$12 sps:$4 sm:$0xff]  }
  0x14   : > { %1194 = vmatprep.subr.bf16.mxu0 %v1385_v8  ;;  %1356 = vmatprep.subr.bf16.mxu1 %v1385_v8  ;;  %v1405_v25 = vld [vmem:[%s1528_s9 + $0x138] ss:$12 sps:$4 sm:$0xff]   ;;  %v1408_v27 = vld [vmem:[%s1528_s9 + $0x154] ss:$12 sps:$4 sm:$0xff]   ;;  %v1411_v29 = vld [vmem:[%s1528_s9 + $0x150] ss:$12 sps:$4 sm:$0xff]  }
  0x15   : > { %810 = vmatprep.mubr.bf16.mxu1 %v1398_v12  ;;  %v1413_v30 = vld [vmem:[%s1528_s9 + $0x4c] ss:$12 sps:$4 sm:$0xff]   ;;  %v1417_v32 = vld [vmem:[%s1528_s9 + $0x48] ss:$12 sps:$4 sm:$0xff]   ;;  %v1419_v34 = vld [vmem:[%s1528_s9 + $0x64] ss:$12 sps:$4 sm:$0xff]  }
  0x16   : > { %v1415_v31 = vld [vmem:[%s1528_s9 + $0x16c] ss:$12 sps:$4 sm:$0xff]   ;;  %v1418_v33 = vld [vmem:[%s1528_s9 + $0x168] ss:$12 sps:$4 sm:$0xff]   ;;  %v1428_v41 = vld [vmem:[%s1528_s9 + $0x50] ss:$12 sps:$4 sm:$0xff]  }
  0x17   : > { %1195 = vmatpush3.bf16.msra.mxu0 %v1386_v9  ;;  %1364 = vmatpush3.bf16.msra.mxu1 %v1386_v9  ;;  %v1421_v35 = vld [vmem:[%s1528_s9 + $0x8] ss:$12 sps:$4 sm:$0xff]   ;;  %v1422_v36 = vld [vmem:[%s1528_s9 + $0x60] ss:$12 sps:$4 sm:$0xff]   ;;  %v1426_v39 = vld [vmem:[%s1528_s9 + $0x38] ss:$12 sps:$4 sm:$0xff]  }
  0x18   : > { %1196 = vmatprep.subr.bf16.mxu0 %v1387_v10  ;;  %1357 = vmatprep.subr.bf16.mxu1 %v1387_v10  ;;  %v1423_v37 = vld [vmem:[%s1528_s9 + $0x20] ss:$12 sps:$4 sm:$0xff]   ;;  %v1424_v38 = vld [vmem:[%s1528_s9 + $0x7c] ss:$12 sps:$4 sm:$0xff]   ;;  %v1427_v40 = vld [vmem:[%s1528_s9 + $0x78] ss:$12 sps:$4 sm:$0xff]  }
  0x19   : > { %v1429_v42 = vld [vmem:[%s1528_s9 + $0x94] ss:$12 sps:$4 sm:$0xff]   ;;  %v1432_v44 = vld [vmem:[%s1528_s9 + $0x90] ss:$12 sps:$4 sm:$0xff]   ;;  %v1434_v46 = vld [vmem:[%s1528_s9 + $0xac] ss:$12 sps:$4 sm:$0xff]  }
  0x1a   : > { %v1431_v43 = vld [vmem:[%s1528_s9 + $0x68] ss:$12 sps:$4 sm:$0xff]   ;;  %v1433_v45 = vld [vmem:[%s1528_s9 + $0x80] ss:$12 sps:$4 sm:$0xff]   ;;  %v1436_v47 = vld [vmem:[%s1528_s9 + $0x98] ss:$12 sps:$4 sm:$0xff]  }
  0x1b   : > { %1197 = vmatpush3.bf16.msra.mxu0 %v1388_v13  ;;  %1365 = vmatpush3.bf16.msra.mxu1 %v1388_v13  ;;  %v1437_v48 = vld [vmem:[%s1528_s9 + $0xa8] ss:$12 sps:$4 sm:$0xff]   ;;  %v1438_v49 = vld [vmem:[%s1528_s9 + $0xb0] ss:$12 sps:$4 sm:$0xff]   ;;  %v1442_v52 = vld [vmem:[%s1528_s9 + $0xc0] ss:$12 sps:$4 sm:$0xff]  }
  0x1c   : > { %1198 = vmatprep.subr.bf16.mxu0 %v1389_v14  ;;  %1358 = vmatprep.subr.bf16.mxu1 %v1389_v14  ;;  %v1439_v50 = vld [vmem:[%s1528_s9 + $0xc4] ss:$12 sps:$4 sm:$0xff]   ;;  %v1441_v51 = vld [vmem:[%s1528_s9 + $0xc8] ss:$12 sps:$4 sm:$0xff]   ;;  %v1443_v53 = vld [vmem:[%s1528_s9 + $0xe0] ss:$12 sps:$4 sm:$0xff]  }
  0x1d   : > { %v1444_v54 = vld [vmem:[%s1528_s9 + $0xdc] ss:$12 sps:$4 sm:$0xff]   ;;  %v1446_v55 = vld [vmem:[%s1528_s9 + $0xf8] ss:$12 sps:$4 sm:$0xff]   ;;  %v1449_v58 = vld [vmem:[%s1528_s9 + $0xf4] ss:$12 sps:$4 sm:$0xff]  }
  0x1e   : > { %v1447_v56 = vld [vmem:[%s1528_s9 + $0xd8] ss:$12 sps:$4 sm:$0xff]   ;;  %v1448_v57 = vld [vmem:[%s1528_s9 + $0x110] ss:$12 sps:$4 sm:$0xff]   ;;  %v1451_v59 = vld [vmem:[%s1528_s9 + $0x128] ss:$12 sps:$4 sm:$0xff]  }
  0x1f   : > { %1199 = vmatpush3.bf16.msra.mxu0 %v1390_v15  ;;  %1366 = vmatpush3.bf16.msra.mxu1 %v1390_v15  ;;  %v1452_v60 = vld [vmem:[%s1528_s9 + $0xf0] ss:$12 sps:$4 sm:$0xff]   ;;  %v1453_v61 = vld [vmem:[%s1528_s9 + $0x140] ss:$12 sps:$4 sm:$0xff]   ;;  %v1456_v63 = vld [vmem:[%s1528_s9 + $0x158] ss:$12 sps:$4 sm:$0xff]  }
  0x20   : > { %1200 = vmatprep.subr.bf16.mxu0 %v1391_v16  ;;  %1359 = vmatprep.subr.bf16.mxu1 %v1391_v16  ;;  %v1454_v62 = vld [vmem:[%s1528_s9 + $0x10c] ss:$12 sps:$4 sm:$0xff]   ;;  %v1457_v0 = vld [vmem:[%s1528_s9 + $0x108] ss:$12 sps:$4 sm:$0xff]   ;;  %v1458_v1 = vld [vmem:[%s1528_s9 + $0x170] ss:$12 sps:$4 sm:$0xff]  }
  0x23   : > { %1201 = vmatpush3.bf16.msra.mxu0 %v1392_v17  ;;  %1367 = vmatpush3.bf16.msra.mxu1 %v1392_v17 }
  0x24   : > { %1316 = vmatprep.subr.bf16.mxu1 %v1399_v18 }
  0x26   : > { %715 = vmatmul.mubr.bf16.vlgmr.msra.gmra.mrb[0].mxu0 %v1393_v19  ;;  %811 = vmatmul.mubr.bf16.vlgmr.msra.gmra.mrb[0].mxu1 %v1396_v20 }
  0x27   : > { %1317 = vmatpush3.bf16.msra.mxu1 %v1399_v18  ;;  %722 = vmatprep.mubr.bf16.mxu0 %v1400_v21 }
  0x28   : > { %818 = vmatprep.mubr.bf16.mxu1 %v1402_v22  ;;  %1318 = vmatprep.subr.bf16.mxu1 %v1412_v23 }
  0x2b   : > { %1319 = vmatpush3.bf16.msra.mxu1 %v1412_v23 }
  0x2e   : > { %723 = vmatmul.mubr.bf16.gmra.mrb[4].mxu0 %v1404_v24  ;;  %819 = vmatmul.mubr.bf16.gmra.mrb[4].mxu1 %v1405_v25 }
  0x2f   : > { %730 = vmatprep.mubr.bf16.mxu0 %v1406_v26  ;;  %826 = vmatprep.mubr.bf16.mxu1 %v1408_v27 }
  0x36   : > { %731 = vmatmul.mubr.bf16.gmra.mrb[8].mxu0 %v1410_v28  ;;  %827 = vmatmul.mubr.bf16.gmra.mrb[8].mxu1 %v1411_v29 }
  0x37   : > { %738 = vmatprep.mubr.bf16.mxu0 %v1413_v30  ;;  %834 = vmatprep.mubr.bf16.mxu1 %v1415_v31 }
  0x3e   : > { %739 = vmatmul.mubr.bf16.gmra.mrb[12].mxu0 %v1417_v32  ;;  %835 = vmatmul.mubr.bf16.gmra.mrb[12].mxu1 %v1418_v33 }
  0x3f   : > { %746 = vmatprep.mubr.bf16.mxu0 %v1419_v34  ;;  %1320 = vmatprep.mubr.msk.bf16.mxu1 %vm633_vm0, %v1421_v35 }
  0x46   : > { %747 = vmatmul.mubr.bf16.gmra.mrb[16].mxu0 %v1422_v36  ;;  %1321 = vmatmul.mubr.msk.bf16.vlgmr.msra.gmra.mrb[16].mxu1 %vm633_vm0, %v1423_v37 }
  0x47   : > { %754 = vmatprep.mubr.bf16.mxu0 %v1424_v38  ;;  %1324 = vmatprep.mubr.msk.bf16.mxu1 %vm633_vm0, %v1426_v39 }
  0x4e   : > { %755 = vmatmul.mubr.bf16.gmra.mrb[20].mxu0 %v1427_v40  ;;  %1325 = vmatmul.mubr.msk.bf16.gmra.mrb[20].mxu1 %vm633_vm0, %v1428_v41 }
  0x4f   : > { %762 = vmatprep.mubr.bf16.mxu0 %v1429_v42  ;;  %1328 = vmatprep.mubr.msk.bf16.mxu1 %vm633_vm0, %v1431_v43 }
  0x56   : > { %763 = vmatmul.mubr.bf16.gmra.mrb[24].mxu0 %v1432_v44  ;;  %1329 = vmatmul.mubr.msk.bf16.gmra.mrb[24].mxu1 %vm633_vm0, %v1433_v45 }
  0x57   : > { %770 = vmatprep.mubr.bf16.mxu0 %v1434_v46  ;;  %1332 = vmatprep.mubr.msk.bf16.mxu1 %vm633_vm0, %v1436_v47 }
  0x5e   : > { %771 = vmatmul.mubr.bf16.gmra.mrb[28].mxu0 %v1437_v48  ;;  %1333 = vmatmul.mubr.msk.bf16.gmra.mrb[28].mxu1 %vm633_vm0, %v1438_v49 }
  0x5f   : > { %778 = vmatprep.mubr.bf16.mxu0 %v1439_v50  ;;  %1336 = vmatprep.mubr.msk.bf16.mxu1 %vm633_vm0, %v1441_v51  ;;  %v1641_v50 = vld [vmem:[%s1731_s2] ss:$0 sm:$0xff] }
  0x66   : > { %779 = vmatmul.mubr.bf16.gmra.mrb[32].mxu0 %v1442_v52  ;;  %1337 = vmatmul.mubr.msk.bf16.gmra.mrb[32].mxu1 %vm633_vm0, %v1443_v53 }
  0x67   : > { %786 = vmatprep.mubr.bf16.mxu0 %v1444_v54  ;;  %1340 = vmatprep.mubr.msk.bf16.mxu1 %vm633_vm0, %v1446_v55 }
  0x6e   : > { %787 = vmatmul.mubr.bf16.gmra.mrb[36].mxu0 %v1447_v56  ;;  %1341 = vmatmul.mubr.msk.bf16.gmra.mrb[36].mxu1 %vm633_vm0, %v1448_v57 }
  0x6f   : > { %794 = vmatprep.mubr.bf16.mxu0 %v1449_v58  ;;  %1344 = vmatprep.mubr.msk.bf16.mxu1 %vm633_vm0, %v1451_v59 }
  0x76   : > { %795 = vmatmul.mubr.bf16.gmra.mrb[40].mxu0 %v1452_v60  ;;  %1345 = vmatmul.mubr.msk.bf16.gmra.mrb[40].mxu1 %vm633_vm0, %v1453_v61 }
  0x77   : > { %802 = vmatprep.mubr.bf16.mxu0 %v1454_v62  ;;  %1348 = vmatprep.mubr.msk.bf16.mxu1 %vm633_vm0, %v1456_v63 }
  0x7e   : > { %803 = vmatmul.mubr.bf16.gmra.mrb[44].mxu0 %v1457_v0  ;;  %1349 = vmatmul.mubr.msk.bf16.gmra.mrb[44].mxu1 %vm633_vm0, %v1458_v1 }
  0xf9   : > { %v1202_v2 = vpop.f32.mrb[0].mxu0  ;;  %v1274_v3 = vpop.f32.mrb[0].mxu1 }
  0xfa   : > { %v1203_v4 = vpop.f32.mrb[1].mxu0  ;;  %v1275_v5 = vpop.f32.mrb[1].mxu1 }
  0xfb   : > { %v1204_v6 = vadd.f32 %v1203_v4, %v1202_v2  ;;  %v1205_v7 = vpop.f32.mrb[2].mxu0  ;;  %v1621_v8 = vadd.f32 %v1275_v5, %v1274_v3  ;;  %v1277_v9 = vpop.f32.mrb[2].mxu1 }
  0xfc   : > { %v1206_v10 = vpop.f32.mrb[3].mxu0  ;;  %v1278_v11 = vpop.f32.mrb[3].mxu1 }
  0xfd   : > { %v1207_v12 = vadd.f32 %v1206_v10, %v1205_v7  ;;  %v1623_v13 = vadd.f32 %v1278_v11, %v1277_v9  ;;  %v717_v54 = vadd.f32 %v1204_v6, %v1641_v50 }
  0xff   : > { %v720_v63 = vadd.f32 %v1207_v12, %v1641_v50 }
 0x101   : > { %v1208_v14 = vpop.f32.mrb[4].mxu0  ;;  %v1280_v15 = vpop.f32.mrb[4].mxu1 }
 0x102   : > { %v1209_v16 = vpop.f32.mrb[5].mxu0  ;;  %v1281_v17 = vpop.f32.mrb[5].mxu1 }
 0x103   : > { %v1210_v18 = vadd.f32 %v1209_v16, %v1208_v14  ;;  %v1211_v19 = vpop.f32.mrb[6].mxu0  ;;  %v1625_v20 = vadd.f32 %v1281_v17, %v1280_v15  ;;  %v1283_v21 = vpop.f32.mrb[6].mxu1 }
 0x104   : > { %v1212_v22 = vpop.f32.mrb[7].mxu0  ;;  %v1284_v23 = vpop.f32.mrb[7].mxu1 }
 0x105   : > { %v1213_v24 = vadd.f32 %v1212_v22, %v1211_v19  ;;  %v1627_v25 = vadd.f32 %v1284_v23, %v1283_v21  ;;  %v725_v51 = vadd.f32 %v1210_v18, %v1641_v50 }
 0x107   : > { %v728_v58 = vadd.f32 %v1213_v24, %v1641_v50 }
 0x109   : > { %v1214_v26 = vpop.f32.mrb[8].mxu0  ;;  %v1286_v27 = vpop.f32.mrb[8].mxu1 }
 0x10a   : > { %v1215_v28 = vpop.f32.mrb[9].mxu0  ;;  %v1287_v29 = vpop.f32.mrb[9].mxu1 }
 0x10b   : > { %v1216_v30 = vadd.f32 %v1215_v28, %v1214_v26  ;;  %v1217_v31 = vpop.f32.mrb[10].mxu0  ;;  %v1629_v32 = vadd.f32 %v1287_v29, %v1286_v27  ;;  %v1289_v33 = vpop.f32.mrb[10].mxu1 }
 0x10c   : > { %v1218_v34 = vpop.f32.mrb[11].mxu0  ;;  %v1290_v35 = vpop.f32.mrb[11].mxu1 }
 0x10d   : > { %v1219_v36 = vadd.f32 %v1218_v34, %v1217_v31  ;;  %v1631_v37 = vadd.f32 %v1290_v35, %v1289_v33  ;;  %v733_v9 = vadd.f32 %v1216_v30, %v1641_v50 }
 0x10f   : > { %v736_v19 = vadd.f32 %v1219_v36, %v1641_v50 }
 0x111   : > { %v1220_v38 = vpop.f32.mrb[12].mxu0  ;;  %v1292_v39 = vpop.f32.mrb[12].mxu1 }
 0x112   : > { %v1221_v40 = vpop.f32.mrb[13].mxu0  ;;  %v1293_v41 = vpop.f32.mrb[13].mxu1 }
 0x113   : > { %v1222_v42 = vadd.f32 %v1221_v40, %v1220_v38  ;;  %v1223_v43 = vpop.f32.mrb[14].mxu0  ;;  %v1633_v44 = vadd.f32 %v1293_v41, %v1292_v39  ;;  %v1295_v45 = vpop.f32.mrb[14].mxu1 }
 0x114   : > { %v1224_v46 = vpop.f32.mrb[15].mxu0  ;;  %v1296_v47 = vpop.f32.mrb[15].mxu1 }
 0x115   : > { %v1225_v48 = vadd.f32 %v1224_v46, %v1223_v43  ;;  %v1635_v49 = vadd.f32 %v1296_v47, %v1295_v45  ;;  %v741_v5 = vadd.f32 %v1222_v42, %v1641_v50 }
 0x117   : > { %v744_v14 = vadd.f32 %v1225_v48, %v1641_v50 }
 0x119   : > { %v1226_v52 = vpop.f32.mrb[16].mxu0  ;;  %v1322_v53 = vpop.f32.mrb[16].mxu1 }
 0x11a   : > { %v886_v55 = vadd.f32 %v1322_v53, %v725_v51  ;;  %v1227_v56 = vpop.f32.mrb[17].mxu0  ;;  %v877_v57 = vpop.f32.mrb[17].mxu1 }
 0x11b   : > { %v1228_v59 = vadd.f32 %v1227_v56, %v1226_v52  ;;  %v878_v60 = vadd.f32 %v877_v57, %v717_v54  ;;  %v1229_v61 = vpop.f32.mrb[18].mxu0  ;;  %v1323_v62 = vpop.f32.mrb[18].mxu1 }
 0x11c   : > { %1006 = vst [vmem:[%s1647_s8 + $0x10] sm:$0xff] %v886_v55  ;;  %v889_v0 = vadd.f32 %v1323_v62, %v728_v58  ;;  %v1230_v1 = vpop.f32.mrb[19].mxu0  ;;  %v880_v2 = vpop.f32.mrb[19].mxu1 }
 0x11d   : > { %1004 = vst [vmem:[%s1647_s8] sm:$0xff] %v878_v60  ;;  %v1231_v3 = vadd.f32 %v1230_v1, %v1229_v61  ;;  %v881_v4 = vadd.f32 %v880_v2, %v720_v63  ;;  %v749_v30 = vadd.f32 %v1228_v59, %v1641_v50 }
 0x11e   : > { %1007 = vst [vmem:[%s1647_s8 + $0x18] sm:$0xff] %v889_v0 }
 0x11f   : > { %1005 = vst [vmem:[%s1647_s8 + $0x8] sm:$0xff] %v881_v4  ;;  %v752_v41 = vadd.f32 %v1231_v3, %v1641_v50 }
 0x121   : > { %v1232_v6 = vpop.f32.mrb[20].mxu0  ;;  %v1326_v7 = vpop.f32.mrb[20].mxu1 }
 0x122   : > { %v902_v10 = vadd.f32 %v1326_v7, %v741_v5  ;;  %v1233_v11 = vpop.f32.mrb[21].mxu0  ;;  %v893_v12 = vpop.f32.mrb[21].mxu1 }
 0x123   : > { %v1234_v15 = vadd.f32 %v1233_v11, %v1232_v6  ;;  %v894_v16 = vadd.f32 %v893_v12, %v733_v9  ;;  %v1235_v17 = vpop.f32.mrb[22].mxu0  ;;  %v1327_v18 = vpop.f32.mrb[22].mxu1 }
 0x124   : > { %1010 = vst [vmem:[%s1647_s8 + $0x30] sm:$0xff] %v902_v10  ;;  %v905_v21 = vadd.f32 %v1327_v18, %v744_v14  ;;  %v1236_v22 = vpop.f32.mrb[23].mxu0  ;;  %v896_v23 = vpop.f32.mrb[23].mxu1 }
 0x125   : > { %1008 = vst [vmem:[%s1647_s8 + $0x20] sm:$0xff] %v894_v16  ;;  %v1237_v24 = vadd.f32 %v1236_v22, %v1235_v17  ;;  %v897_v26 = vadd.f32 %v896_v23, %v736_v19  ;;  %v757_v27 = vadd.f32 %v1234_v15, %v1641_v50 }
 0x126   : > { %1011 = vst [vmem:[%s1647_s8 + $0x38] sm:$0xff] %v905_v21 }
 0x127   : > { %1009 = vst [vmem:[%s1647_s8 + $0x28] sm:$0xff] %v897_v26  ;;  %v760_v35 = vadd.f32 %v1237_v24, %v1641_v50 }
 0x129   : > { %v1238_v28 = vpop.f32.mrb[24].mxu0  ;;  %v1330_v29 = vpop.f32.mrb[24].mxu1 }
 0x12a   : > { %v918_v31 = vadd.f32 %v1330_v29, %v757_v27  ;;  %v1239_v33 = vpop.f32.mrb[25].mxu0  ;;  %v909_v34 = vpop.f32.mrb[25].mxu1 }
 0x12b   : > { %v1240_v36 = vadd.f32 %v1239_v33, %v1238_v28  ;;  %v910_v38 = vadd.f32 %v909_v34, %v749_v30  ;;  %v1241_v39 = vpop.f32.mrb[26].mxu0  ;;  %v1331_v40 = vpop.f32.mrb[26].mxu1 }
 0x12c   : > { %1014 = vst [vmem:[%s1647_s8 + $0x50] sm:$0xff] %v918_v31  ;;  %v921_v42 = vadd.f32 %v1331_v40, %v760_v35  ;;  %v1242_v43 = vpop.f32.mrb[27].mxu0  ;;  %v912_v45 = vpop.f32.mrb[27].mxu1 }
 0x12d   : > { %1012 = vst [vmem:[%s1647_s8 + $0x40] sm:$0xff] %v910_v38  ;;  %v1243_v46 = vadd.f32 %v1242_v43, %v1241_v39  ;;  %v913_v47 = vadd.f32 %v912_v45, %v752_v41  ;;  %v765_v52 = vadd.f32 %v1240_v36, %v1641_v50  ;;  %v821_v36 = vadd.f32 %v1625_v20, %v1641_v50 }
 0x12e   : > { %1015 = vst [vmem:[%s1647_s8 + $0x58] sm:$0xff] %v921_v42  ;;  %v813_v41 = vadd.f32 %v1621_v8, %v1641_v50 }
 0x12f   : > { %1013 = vst [vmem:[%s1647_s8 + $0x48] sm:$0xff] %v913_v47  ;;  %v768_v59 = vadd.f32 %v1243_v46, %v1641_v50  ;;  %v824_v46 = vadd.f32 %v1627_v25, %v1641_v50 }
 0x131   : > { %v1244_v48 = vpop.f32.mrb[28].mxu0  ;;  %v1334_v51 = vpop.f32.mrb[28].mxu1 }
 0x132   : > { %v1245_v53 = vpop.f32.mrb[29].mxu0  ;;  %v925_v54 = vpop.f32.mrb[29].mxu1 }
 0x133   : > { %v1246_v55 = vadd.f32 %v1245_v53, %v1244_v48  ;;  %v926_v56 = vadd.f32 %v925_v54, %v765_v52  ;;  %v1247_v57 = vpop.f32.mrb[30].mxu0  ;;  %v1335_v58 = vpop.f32.mrb[30].mxu1  ;;  %v816_v52 = vadd.f32 %v1623_v13, %v1641_v50 }
 0x134   : > { %v1248_v60 = vpop.f32.mrb[31].mxu0  ;;  %v928_v61 = vpop.f32.mrb[31].mxu1 }
 0x135   : > { %v773_v62 = vadd.f32 %v1246_v55, %v1641_v50  ;;  %1016 = vst [vmem:[%s1647_s8 + $0x60] sm:$0xff] %v926_v56  ;;  %v1249_v63 = vadd.f32 %v1248_v60, %v1247_v57  ;;  %v929_v0 = vadd.f32 %v928_v61, %v768_v59  ;;  %v837_v59 = vadd.f32 %v1633_v44, %v1641_v50 }
 0x137   : > { %v934_v1 = vadd.f32 %v1334_v51, %v773_v62  ;;  %v776_v2 = vadd.f32 %v1249_v63, %v1641_v50  ;;  %1017 = vst [vmem:[%s1647_s8 + $0x68] sm:$0xff] %v929_v0  ;;  %v829_v62 = vadd.f32 %v1629_v32, %v1641_v50 }
 0x139   : > { %1018 = vst [vmem:[%s1647_s8 + $0x70] sm:$0xff] %v934_v1  ;;  %v937_v3 = vadd.f32 %v1335_v58, %v776_v2  ;;  %v1250_v4 = vpop.f32.mrb[32].mxu0  ;;  %v1338_v5 = vpop.f32.mrb[32].mxu1  ;;  %v840_v2 = vadd.f32 %v1635_v49, %v1641_v50 }
 0x13a   : > { %v1251_v6 = vpop.f32.mrb[33].mxu0  ;;  %v941_v7 = vpop.f32.mrb[33].mxu1 }
 0x13b   : > { %1019 = vst [vmem:[%s1647_s8 + $0x78] sm:$0xff] %v937_v3  ;;  %v1252_v9 = vadd.f32 %v1251_v6, %v1250_v4  ;;  %v1253_v10 = vpop.f32.mrb[34].mxu0  ;;  %v1339_v11 = vpop.f32.mrb[34].mxu1  ;;  %v832_v6 = vadd.f32 %v1631_v37, %v1641_v50 }
 0x13c   : > { %v1254_v12 = vpop.f32.mrb[35].mxu0  ;;  %v944_v14 = vpop.f32.mrb[35].mxu1 }
 0x13d   : > { %v781_v15 = vadd.f32 %v1252_v9, %v1641_v50  ;;  %v1255_v16 = vadd.f32 %v1254_v12, %v1253_v10 }
 0x13f   : > { %v942_v17 = vadd.f32 %v941_v7, %v781_v15  ;;  %v784_v18 = vadd.f32 %v1255_v16, %v1641_v50 }
 0x141   : > { %1020 = vst [vmem:[%s1647_s8 + $0x80] sm:$0xff] %v942_v17  ;;  %v945_v19 = vadd.f32 %v944_v14, %v784_v18  ;;  %v1256_v21 = vpop.f32.mrb[36].mxu0  ;;  %v1683_v22 = vpop.f32.mrb[36].mxu1 }
 0x142   : > { %v1257_v23 = vpop.f32.mrb[37].mxu0  ;;  %v957_v24 = vpop.f32.mrb[37].mxu1 }
 0x143   : > { %1021 = vst [vmem:[%s1647_s8 + $0x88] sm:$0xff] %v945_v19  ;;  %v1258_v26 = vadd.f32 %v1257_v23, %v1256_v21  ;;  %v1259_v27 = vpop.f32.mrb[38].mxu0  ;;  %v1686_v28 = vpop.f32.mrb[38].mxu1 }
 0x144   : > { %v1260_v29 = vpop.f32.mrb[39].mxu0  ;;  %v960_v30 = vpop.f32.mrb[39].mxu1 }
 0x145   : > { %v789_v31 = vadd.f32 %v1258_v26, %v1641_v50  ;;  %v1261_v33 = vadd.f32 %v1260_v29, %v1259_v27 }
 0x147   : > { %v950_v34 = vadd.f32 %v1338_v5, %v789_v31  ;;  %v792_v35 = vadd.f32 %v1261_v33, %v1641_v50 }
 0x149   : > { %1022 = vst [vmem:[%s1647_s8 + $0x90] sm:$0xff] %v950_v34  ;;  %v953_v38 = vadd.f32 %v1339_v11, %v792_v35  ;;  %v1262_v39 = vpop.f32.mrb[40].mxu0  ;;  %v1346_v40 = vpop.f32.mrb[40].mxu1 }
 0x14a   : > { %v982_v42 = vadd.f32 %v1346_v40, %v821_v36  ;;  %v1263_v43 = vpop.f32.mrb[41].mxu0  ;;  %v973_v45 = vpop.f32.mrb[41].mxu1 }
 0x14b   : > { %1023 = vst [vmem:[%s1647_s8 + $0x98] sm:$0xff] %v953_v38  ;;  %v1264_v47 = vadd.f32 %v1263_v43, %v1262_v39  ;;  %v974_v20 = vadd.f32 %v973_v45, %v813_v41  ;;  %v1265_v48 = vpop.f32.mrb[42].mxu0  ;;  %v1347_v51 = vpop.f32.mrb[42].mxu1 }
 0x14c   : > { %1030 = vst [vmem:[%s1647_s8 + $0xd0] sm:$0xff] %v982_v42  ;;  %v985_v8 = vadd.f32 %v1347_v51, %v824_v46  ;;  %v1266_v53 = vpop.f32.mrb[43].mxu0  ;;  %v976_v54 = vpop.f32.mrb[43].mxu1 }
 0x14d   : > { %v797_v55 = vadd.f32 %v1264_v47, %v1641_v50  ;;  %1028 = vst [vmem:[%s1647_s8 + $0xc0] sm:$0xff] %v974_v20  ;;  %v1267_v56 = vadd.f32 %v1266_v53, %v1265_v48  ;;  %v977_v25 = vadd.f32 %v976_v54, %v816_v52 }
 0x14e   : > { %1031 = vst [vmem:[%s1647_s8 + $0xd8] sm:$0xff] %v985_v8 }
 0x14f   : > { %v958_v57 = vadd.f32 %v957_v24, %v797_v55  ;;  %v800_v58 = vadd.f32 %v1267_v56, %v1641_v50  ;;  %1029 = vst [vmem:[%s1647_s8 + $0xc8] sm:$0xff] %v977_v25 }
 0x151   : > { %1024 = vst [vmem:[%s1647_s8 + $0xa0] sm:$0xff] %v958_v57  ;;  %v961_v13 = vadd.f32 %v960_v30, %v800_v58  ;;  %v1268_v60 = vpop.f32.mrb[44].mxu0  ;;  %v1350_v61 = vpop.f32.mrb[44].mxu1 }
 0x152   : > { %v998_v63 = vadd.f32 %v1350_v61, %v837_v59  ;;  %v1269_v0 = vpop.f32.mrb[45].mxu0  ;;  %v989_v1 = vpop.f32.mrb[45].mxu1 }
 0x153   : > { %1025 = vst [vmem:[%s1647_s8 + $0xa8] sm:$0xff] %v961_v13  ;;  %v1270_v3 = vadd.f32 %v1269_v0, %v1268_v60  ;;  %v990_v44 = vadd.f32 %v989_v1, %v829_v62  ;;  %v1271_v4 = vpop.f32.mrb[46].mxu0  ;;  %v1351_v5 = vpop.f32.mrb[46].mxu1 }
 0x154   : > { %1034 = vst [vmem:[%s1647_s8 + $0xf0] sm:$0xff] %v998_v63  ;;  %v1001_v32 = vadd.f32 %v1351_v5, %v840_v2  ;;  %v1272_v7 = vpop.f32.mrb[47].mxu0  ;;  %v992_v9 = vpop.f32.mrb[47].mxu1 }
 0x155   : > { %v805_v10 = vadd.f32 %v1270_v3, %v1641_v50  ;;  %1032 = vst [vmem:[%s1647_s8 + $0xe0] sm:$0xff] %v990_v44  ;;  %v1273_v11 = vadd.f32 %v1272_v7, %v1271_v4  ;;  %v993_v49 = vadd.f32 %v992_v9, %v832_v6 }
 0x156   : > { %1035 = vst [vmem:[%s1647_s8 + $0xf8] sm:$0xff] %v1001_v32 }
 0x157   : > { %v966_v12 = vadd.f32 %v1683_v22, %v805_v10  ;;  %v808_v14 = vadd.f32 %v1273_v11, %v1641_v50  ;;  %1033 = vst [vmem:[%s1647_s8 + $0xe8] sm:$0xff] %v993_v49 }
 0x159   : > { %1026 = vst [vmem:[%s1647_s8 + $0xb0] sm:$0xff] %v966_v12  ;;  %v969_v15 = vadd.f32 %v1686_v28, %v808_v14 }
 0x15b   : > { %1027 = vst [vmem:[%s1647_s8 + $0xb8] sm:$0xff] %v969_v15 }
 0x15c PF: > { %s13_s12 = sadd.s32 1, %s1465_s12  }
 0x15d   : > { %p10_p4 = scmp.ge.s32.totalorder %s13_s12, 4  }
 0x15f   :  { %12 = sbr.rel (!%p10_p4) target bundleno = 1 (0x1), region = 62 }

</bundles_post_ra>
